<compile_context>
chip_gen: v6e
topology: v6e:2x2x1
jax: 0.10.0
libtpu: 0.0.40
codegen_flags: <defaults>
</compile_context>

<pallas_src>
import functools

import jax
import jax.numpy as jnp
from jax import lax
from jax.experimental import pallas as pl
from jax.experimental.pallas import tpu as pltpu


def _round_up(v, m):
    return (v + m - 1) // m * m


@functools.lru_cache(maxsize=None)
def _probe_roll_convention():
    """Probe pltpu.roll's wrap direction once with a tiny kernel (run eagerly)."""
    def k(x_ref, o_ref):
        o_ref[...] = pltpu.roll(x_ref[...], 1, axis=1)

    x = jnp.arange(8 * 128, dtype=jnp.float32).reshape(8, 128)
    try:
        y = pl.pallas_call(
            k, out_shape=jax.ShapeDtypeStruct((8, 128), jnp.float32))(x)
        v = float(y[0, 0])
    except Exception:                      # roll unavailable -> slice fallback
        return "slices"
    if v == 127.0:
        return "jnp"                       # out[c] = in[(c - shift) % n]
    if v == 1.0:
        return "reversed"                  # out[c] = in[(c + shift) % n]
    return "slices"


def _decoder_block_kernel(*refs, Hu, Wu, Wp, Mp, KH, Cx, sf,
                          roll_mode, shift_back, shift_fwd, has_skip):
    """One batch element per grid step.

      xw_ref:   (1, Cx, H, Wu)    width-upsampled low-res input (compute dtype)
      skip_ref: (1, Cs, Hu, Wu)   skip features (only if has_skip)
      w1_ref:   (Cout, 9*Cin)     conv1 weight, BN1 scale folded in
      b1_ref:   (Cout, 1)         folded BN1 bias (f32)
      w2_ref:   (Cout, 9*Cout)    conv2 weight, BN2 scale folded in
      b2_ref:   (Cout, 1)         folded BN2 bias (f32)
      mask_ref: (1, Mp)           1.0 on valid flat columns, 0.0 on junk (f32)
      o_ref:    (1, Cout, Hu, Wu) NCHW output block
      xflat:    (Cin, Lp)         VMEM scratch: zero-padded flat input
    """
    if has_skip:
        (xw_ref, skip_ref, w1_ref, b1_ref, w2_ref, b2_ref, mask_ref,
         o_ref, xflat) = refs
    else:
        (xw_ref, w1_ref, b1_ref, w2_ref, b2_ref, mask_ref,
         o_ref, xflat) = refs
        skip_ref = None

    cdt = xflat.dtype
    Cin = xflat.shape[0]
    Lp = xflat.shape[1]

    # --- stage 0: upsample-H + concat + zero-pad + flatten, all in VMEM -----
    # Padded-image row r lives in flat lanes [r*Wp, (r+1)*Wp); interior pixel
    # (i, j) sits at (i+1)*Wp + (j+1).  The height half of the nearest
    # upsample is just the static source index i // sf.  Padding / junk lanes
    # are zeroed every step (grid steps may land on different cores under
    # megacore sharding, so no cross-step scratch persistence is assumed).
    xflat[...] = jnp.zeros_like(xflat)
    xw = xw_ref[0]                                     # (Cx, H,  Wu)
    sk = skip_ref[0] if has_skip else None             # (Cs, Hu, Wu)
    for i in range(Hu):
        base = (i + 1) * Wp + 1                        # static lane offset
        xflat[0:Cx, base:base + Wu] = xw[:, i // sf, :]
        if has_skip:
            xflat[Cx:Cin, base:base + Wu] = sk[:, i, :]

    mask = mask_ref[...]                               # (1, Mp) f32, resident

    # --- im2col: (9*C, Mp) from one lane slice + two XLU rolls per kh -------
    # kw=1 tap is an exact slice; kw=0 / kw=2 are lane rotates of it.  The
    # kw=2 wrap lands in flat column Mp-1, always a junk column (masked for
    # conv1, never stored for conv2).  For kw=0 the wrapped lane must equal
    # the true value at column 0 -- which is always a zero padding lane -- so
    # the rotate source has its last lane zeroed first.
    if roll_mode != "slices":
        notlast = (lax.broadcasted_iota(jnp.int32, (1, Mp), 1)
                   < (Mp - 1)).astype(cdt)

    def taps_from(flat):
        blocks = []
        for kh in range(KH):
            base = kh * Wp
            if roll_mode == "slices":   # fallback: 9 unaligned lane slices
                blocks.extend(flat[:, base + kw: base + kw + Mp]
                              for kw in range(3))
            else:
                mid = flat[:, base + 1: base + 1 + Mp]                 # kw=1
                blocks.append(pltpu.roll(mid * notlast, shift_back,
                                         axis=1))                      # kw=0
                blocks.append(mid)                                     # kw=1
                blocks.append(pltpu.roll(mid, shift_fwd, axis=1))      # kw=2
        return jnp.concatenate(blocks, axis=0)

    # --- conv1 (+ folded BN1) -> bias -> ReLU -> junk-column zeroing --------
    p1 = taps_from(xflat)                                          # (9*Cin, Mp)
    y1 = lax.dot_general(w1_ref[...], p1, (((1,), (0,)), ((), ())),
                         preferred_element_type=jnp.float32)       # (Cout, Mp)
    a1 = (jnp.maximum(y1 + b1_ref[...], 0.0) * mask).astype(cdt)

    # conv2's padded flat input: valid pixel (i, j) of a1 must land at flat
    # index (i+1)*Wp + (j+1) = its own column + Wp + 1; a1's zeroed junk
    # columns double as conv2's left/right/bottom zero padding.
    zpre = jnp.zeros((a1.shape[0], Wp + 1), cdt)
    zpost = jnp.zeros((a1.shape[0], Lp - (Wp + 1) - Mp), cdt)
    a1_flat = jnp.concatenate([zpre, a1, zpost], axis=1)           # (Cout, Lp)

    # --- conv2 (+ folded BN2) -> bias -> ReLU --------------------------------
    p2 = taps_from(a1_flat)                                        # (9*Cout, Mp)
    y2 = lax.dot_general(w2_ref[...], p2, (((1,), (0,)), ((), ())),
                         preferred_element_type=jnp.float32)
    a2 = jnp.maximum(y2 + b2_ref[...], 0.0).astype(o_ref.dtype)    # (Cout, Mp)

    # --- store NCHW directly: no post-kernel de-junk slice / HBM round trip --
    # TODO(synk): at production widths (Wu >= 128) these row stores are lane-dense.
    for i in range(Hu):
        o_ref[0, :, i, :] = a2[:, i * Wp: i * Wp + Wu]


def decoder_basic_block_forward(x, skip,
                                w1, gamma1, beta1, mean1, var1,
                                w2, gamma2, beta2, mean2, var2,
                                *, scale_factor=2, eps=1e-5,
                                compute_dtype=jnp.float32):
    """DecoderBasicBlock.forward (inference-mode BatchNorm).  Returns NCHW."""
    assert int(scale_factor) == scale_factor
    sf = int(scale_factor)
    N, Cx, H, W = x.shape
    Hu, Wu = sf * H, sf * W
    Cs = 0 if skip is None else skip.shape[1]
    Cin = Cx + Cs
    Cout, Cin_w, KH, KW = w1.shape
    assert Cin_w == Cin and (KH, KW) == (3, 3)
    if skip is not None:
        assert skip.shape == (N, Cs, Hu, Wu)

    Wp = Wu + 2                          # padded row pitch (pad=1 each side)
    M = Hu * Wp                          # valid+junk flat output columns
    Mp = _round_up(M, 128)               # lane-aligned flat free dimension
    Lp = Mp + 2 * Wp + (KW - 1)          # flat padded-input length (+ tap slack)

    # Only the *width* half of the nearest upsample happens here, on the tiny
    # low-res x; the height replication, channel concat, zero-pad and flatten
    # all happen inside the kernel (no HBM materialization of xu/xin/x_pad).
    xw = jnp.repeat(x, sf, axis=3).astype(compute_dtype)          # (N, Cx, H, Wu)
    operands = [xw]
    if skip is not None:
        operands.append(skip.astype(compute_dtype))

    # Fold the inference BN scale into the conv weights; only bias stays (f32).
    def fold(w, gamma, beta, mean, var):
        s = gamma / jnp.sqrt(var + eps)                                 # (Cout,)
        wm = jnp.transpose(w, (0, 2, 3, 1)).reshape(w.shape[0], -1)     # (Cout, 9*Cin)
        wm = (wm * s[:, None]).astype(compute_dtype)
        bias = (beta - mean * s).reshape(-1, 1).astype(jnp.float32)     # (Cout, 1)
        return wm, bias

    w1m, b1v = fold(w1, gamma1, beta1, mean1, var1)
    w2m, b2v = fold(w2, gamma2, beta2, mean2, var2)
    K1, K2 = w1m.shape[1], w2m.shape[1]

    # VMEM-resident junk-column mask (replaces the per-step `col % Wp` modulo).
    cols = jnp.arange(Mp, dtype=jnp.int32)
    mask = (((cols % Wp) < Wu) & (cols < M)).astype(jnp.float32).reshape(1, Mp)
    operands += [w1m, b1v, w2m, b2v, mask]

    roll_mode = _probe_roll_convention()
    if roll_mode == "jnp":
        shift_back, shift_fwd = 1, Mp - 1
    elif roll_mode == "reversed":
        shift_back, shift_fwd = Mp - 1, 1
    else:
        shift_back = shift_fwd = 0

    kernel = functools.partial(
        _decoder_block_kernel, Hu=Hu, Wu=Wu, Wp=Wp, Mp=Mp, KH=KH, Cx=Cx, sf=sf,
        roll_mode=roll_mode, shift_back=shift_back, shift_fwd=shift_fwd,
        has_skip=skip is not None)

    in_specs = [pl.BlockSpec((1, Cx, H, Wu), lambda n: (n, 0, 0, 0))]
    if skip is not None:
        in_specs.append(pl.BlockSpec((1, Cs, Hu, Wu), lambda n: (n, 0, 0, 0)))
    in_specs += [
        pl.BlockSpec((Cout, K1), lambda n: (0, 0)),
        pl.BlockSpec((Cout, 1), lambda n: (0, 0)),
        pl.BlockSpec((Cout, K2), lambda n: (0, 0)),
        pl.BlockSpec((Cout, 1), lambda n: (0, 0)),
        pl.BlockSpec((1, Mp), lambda n: (0, 0)),
    ]

    # grid=(N,) "parallel": one batch element per TensorCore on v7x.
    # TODO(synk): on 1-TC generations (v5e/v6e) fold N into the lane axis or row-tile.
    return pl.pallas_call(
        kernel,
        out_shape=jax.ShapeDtypeStruct((N, Cout, Hu, Wu), x.dtype),
        grid_spec=pltpu.PrefetchScalarGridSpec(
            num_scalar_prefetch=0,
            grid=(N,),
            in_specs=in_specs,
            out_specs=pl.BlockSpec((1, Cout, Hu, Wu), lambda n: (n, 0, 0, 0)),
            scratch_shapes=[pltpu.VMEM((Cin, Lp), compute_dtype)],
        ),
        compiler_params=pltpu.CompilerParams(
            dimension_semantics=("parallel",)),
    )(*operands)


def _reference(x, skip,
               w1, gamma1, beta1, mean1, var1,
               w2, gamma2, beta2, mean2, var2,
               *, scale_factor=2, eps=1e-5):
    """Pure-JAX reference (lax conv) for the correctness check."""
    xu = jnp.repeat(jnp.repeat(x, scale_factor, axis=2), scale_factor, axis=3)
    xin = jnp.concatenate([xu, skip], axis=1) if skip is not None else xu

    def conv_bn_relu(z, w, gamma, beta, mean, var):
        y = lax.conv_general_dilated(
            z.astype(jnp.float32), w.astype(jnp.float32),
            window_strides=(1, 1), padding=((1, 1), (1, 1)),
            dimension_numbers=("NCHW", "OIHW", "NCHW"),
            precision=lax.Precision.HIGHEST)
        s = gamma / jnp.sqrt(var + eps)
        y = y * s.reshape(1, -1, 1, 1) + (beta - mean * s).reshape(1, -1, 1, 1)
        return jnp.maximum(y, 0.0)

    y = conv_bn_relu(xin, w1, gamma1, beta1, mean1, var1)
    y = conv_bn_relu(y, w2, gamma2, beta2, mean2, var2)
    return y.astype(x.dtype)


if __name__ == "__main__":
    # DecoderBasicBlock(in_channels=8, out_channels=8): x upsampled 2x (nearest),
    # concatenated with a skip feature map, then [conv3x3+BN+ReLU] x 2.
    N, Cx, Cs, Cout, H, W = 2, 4, 4, 8, 16, 16
    Cin = Cx + Cs

    key = jax.random.PRNGKey(0)
    keys = jax.random.split(key, 6)
    x = jax.random.normal(keys[0], (N, Cx, H, W), dtype=jnp.float32)
    skip = jax.random.normal(keys[1], (N, Cs, 2 * H, 2 * W), dtype=jnp.float32)

    def kaiming(k, cout, cin):
        fan_in = cin * 9
        return (2.0 / fan_in) ** 0.5 * jax.random.normal(
            k, (cout, cin, 3, 3), dtype=jnp.float32)

    w1 = kaiming(keys[2], Cout, Cin)
    w2 = kaiming(keys[3], Cout, Cout)

    def bn_params(k):
        k1, k2, k3, k4 = jax.random.split(k, 4)
        gamma = 1.0 + 0.1 * jax.random.normal(k1, (Cout,), jnp.float32)
        beta = 0.1 * jax.random.normal(k2, (Cout,), jnp.float32)
        mean = 0.1 * jax.random.normal(k3, (Cout,), jnp.float32)
        var = (1.0 + 0.1 * jax.random.normal(k4, (Cout,), jnp.float32)) ** 2
        return gamma, beta, mean, var

    bn1 = bn_params(keys[4])
    bn2 = bn_params(keys[5])

    out = decoder_basic_block_forward(x, skip, w1, *bn1, w2, *bn2)
    out = jax.block_until_ready(out)

    ref = _reference(x, skip, w1, *bn1, w2, *bn2)
    assert out.shape == (N, Cout, 2 * H, 2 * W), out.shape
    assert jnp.allclose(out, ref, atol=2e-3, rtol=2e-3), \
        float(jnp.max(jnp.abs(out - ref)))

    # bf16-operand path (all generations: halves operand DMA + im2col bytes;
    # accumulation, bias and ReLU stay f32) -- tolerance-checked vs reference.
    out_bf16 = decoder_basic_block_forward(x, skip, w1, *bn1, w2, *bn2,
                                           compute_dtype=jnp.bfloat16)
    out_bf16 = jax.block_until_ready(out_bf16)
    assert out_bf16.shape == out.shape
    assert jnp.allclose(out_bf16, ref, atol=1e-1, rtol=1e-1), \
        float(jnp.max(jnp.abs(out_bf16 - ref)))

    print("KERNEL_OK")
</pallas_src>

<mosaic_0001>
module attributes {stable_mosaic.version = 11 : i64} {
  func.func @k(%arg0: memref<8x128xf32, #tpu.memory_space<vmem>>, %arg1: memref<8x128xf32, #tpu.memory_space<vmem>>) attributes {dimension_semantics = [], scalar_prefetch = 0 : i64, scratch_operands = 0 : i64, tpu.core_type = #tpu.core_type<tc>} {
    %c0 = arith.constant 0 : index
    %c0_0 = arith.constant 0 : index
    %0 = vector.load %arg0[%c0, %c0_0] : memref<8x128xf32, #tpu.memory_space<vmem>>, vector<8x128xf32>
    %c1_i32 = arith.constant 1 : i32
    %1 = tpu.dynamic_rotate %0 by %c1_i32 dim 1 : vector<8x128xf32>, i32 -> vector<8x128xf32>
    %c0_1 = arith.constant 0 : index
    %c0_2 = arith.constant 0 : index
    %2 = vector.load %arg1[%c0_1, %c0_2] : memref<8x128xf32, #tpu.memory_space<vmem>>, vector<8x128xf32>
    tpu.vector_store %arg1[%c0_1, %c0_2], %1 {strides = array<i32>} : memref<8x128xf32, #tpu.memory_space<vmem>>, vector<8x128xf32>,
    return
  }
}

module attributes {stable_mosaic.version = 11 : i64} {
  func.func @_decoder_block_kernel(%arg0: i32, %arg1: memref<1x4x16x32xf32, #tpu.memory_space<vmem>>, %arg2: memref<1x4x32x32xf32, #tpu.memory_space<vmem>>, %arg3: memref<8x72xf32, #tpu.memory_space<vmem>>, %arg4: memref<8x1xf32, #tpu.memory_space<vmem>>, %arg5: memref<8x72xf32, #tpu.memory_space<vmem>>, %arg6: memref<8x1xf32, #tpu.memory_space<vmem>>, %arg7: memref<1x1152xf32, #tpu.memory_space<vmem>>, %arg8: memref<1x8x32x32xf32, #tpu.memory_space<vmem>>, %arg9: memref<8x1222xf32, #tpu.memory_space<vmem>>) attributes {dimension_semantics = [#tpu.dimension_semantics<parallel>], iteration_bounds = array<i64: 2>, scalar_prefetch = 0 : i64, scratch_operands = 1 : i64, tpu.core_type = #tpu.core_type<tc>, window_params = [{transform_indices = @transform_0, window_bounds = array<i64: 1, 4, 16, 32>}, {transform_indices = @transform_1, window_bounds = array<i64: 1, 4, 32, 32>}, {pipeline_mode = #tpu.pipeline_mode<synchronous>, transform_indices = @transform_2, window_bounds = array<i64: 8, 72>}, {pipeline_mode = #tpu.pipeline_mode<synchronous>, transform_indices = @transform_3, window_bounds = array<i64: 8, 1>}, {pipeline_mode = #tpu.pipeline_mode<synchronous>, transform_indices = @transform_4, window_bounds = array<i64: 8, 72>}, {pipeline_mode = #tpu.pipeline_mode<synchronous>, transform_indices = @transform_5, window_bounds = array<i64: 8, 1>}, {pipeline_mode = #tpu.pipeline_mode<synchronous>, transform_indices = @transform_6, window_bounds = array<i64: 1, 1152>}, {transform_indices = @transform_7, window_bounds = array<i64: 1, 8, 32, 32>}]} {
    %cst = arith.constant 0.000000e+00 : f32
    %0 = vector.broadcast %cst : f32 to vector<8x1222xf32>
    %c0 = arith.constant 0 : index
    %c0_0 = arith.constant 0 : index
    %1 = vector.load %arg9[%c0, %c0_0] : memref<8x1222xf32, #tpu.memory_space<vmem>>, vector<8x1222xf32>
    tpu.vector_store %arg9[%c0, %c0_0], %0 {strides = array<i32>} : memref<8x1222xf32, #tpu.memory_space<vmem>>, vector<8x1222xf32>,
    %c0_1 = arith.constant 0 : index
    %c0_2 = arith.constant 0 : index
    %c0_3 = arith.constant 0 : index
    %c0_4 = arith.constant 0 : index
    %2 = vector.load %arg1[%c0_1, %c0_2, %c0_3, %c0_4] : memref<1x4x16x32xf32, #tpu.memory_space<vmem>>, vector<1x4x16x32xf32>
    %3 = vector.shape_cast %2 : vector<1x4x16x32xf32> to vector<4x16x32xf32>
    %c0_5 = arith.constant 0 : index
    %c0_6 = arith.constant 0 : index
    %c0_7 = arith.constant 0 : index
    %c0_8 = arith.constant 0 : index
    %4 = vector.load %arg2[%c0_5, %c0_6, %c0_7, %c0_8] : memref<1x4x32x32xf32, #tpu.memory_space<vmem>>, vector<1x4x32x32xf32>
    %5 = vector.shape_cast %4 : vector<1x4x32x32xf32> to vector<4x32x32xf32>
    %6 = vector.extract_strided_slice %3 {offsets = [0, 0, 0], sizes = [4, 1, 32], strides = [1, 1, 1]} : vector<4x16x32xf32> to vector<4x1x32xf32>
    %7 = vector.shape_cast %6 : vector<4x1x32xf32> to vector<4x32xf32>
    %c0_9 = arith.constant 0 : index
    %c35 = arith.constant 35 : index
    %8 = vector.load %arg9[%c0_9, %c35] : memref<8x1222xf32, #tpu.memory_space<vmem>>, vector<4x32xf32>
    tpu.vector_store %arg9[%c0_9, %c35], %7 {strides = array<i32>} : memref<8x1222xf32, #tpu.memory_space<vmem>>, vector<4x32xf32>,
    %9 = vector.extract_strided_slice %5 {offsets = [0, 0, 0], sizes = [4, 1, 32], strides = [1, 1, 1]} : vector<4x32x32xf32> to vector<4x1x32xf32>
    %10 = vector.shape_cast %9 : vector<4x1x32xf32> to vector<4x32xf32>
    %c4 = arith.constant 4 : index
    %c35_10 = arith.constant 35 : index
    %11 = vector.load %arg9[%c4, %c35_10] : memref<8x1222xf32, #tpu.memory_space<vmem>>, vector<4x32xf32>
    tpu.vector_store %arg9[%c4, %c35_10], %10 {strides = array<i32>} : memref<8x1222xf32, #tpu.memory_space<vmem>>, vector<4x32xf32>,
    %12 = vector.extract_strided_slice %3 {offsets = [0, 0, 0], sizes = [4, 1, 32], strides = [1, 1, 1]} : vector<4x16x32xf32> to vector<4x1x32xf32>
    %13 = vector.shape_cast %12 : vector<4x1x32xf32> to vector<4x32xf32>
    %c0_11 = arith.constant 0 : index
    %c69 = arith.constant 69 : index
    %14 = vector.load %arg9[%c0_11, %c69] : memref<8x1222xf32, #tpu.memory_space<vmem>>, vector<4x32xf32>
    tpu.vector_store %arg9[%c0_11, %c69], %13 {strides = array<i32>} : memref<8x1222xf32, #tpu.memory_space<vmem>>, vector<4x32xf32>,
    %15 = vector.extract_strided_slice %5 {offsets = [0, 1, 0], sizes = [4, 1, 32], strides = [1, 1, 1]} : vector<4x32x32xf32> to vector<4x1x32xf32>
    %16 = vector.shape_cast %15 : vector<4x1x32xf32> to vector<4x32xf32>
    %c4_12 = arith.constant 4 : index
    %c69_13 = arith.constant 69 : index
    %17 = vector.load %arg9[%c4_12, %c69_13] : memref<8x1222xf32, #tpu.memory_space<vmem>>, vector<4x32xf32>
    tpu.vector_store %arg9[%c4_12, %c69_13], %16 {strides = array<i32>} : memref<8x1222xf32, #tpu.memory_space<vmem>>, vector<4x32xf32>,
    %18 = vector.extract_strided_slice %3 {offsets = [0, 1, 0], sizes = [4, 1, 32], strides = [1, 1, 1]} : vector<4x16x32xf32> to vector<4x1x32xf32>
    %19 = vector.shape_cast %18 : vector<4x1x32xf32> to vector<4x32xf32>
    %c0_14 = arith.constant 0 : index
    %c103 = arith.constant 103 : index
    %20 = vector.load %arg9[%c0_14, %c103] : memref<8x1222xf32, #tpu.memory_space<vmem>>, vector<4x32xf32>
    tpu.vector_store %arg9[%c0_14, %c103], %19 {strides = array<i32>} : memref<8x1222xf32, #tpu.memory_space<vmem>>, vector<4x32xf32>,
    %21 = vector.extract_strided_slice %5 {offsets = [0, 2, 0], sizes = [4, 1, 32], strides = [1, 1, 1]} : vector<4x32x32xf32> to vector<4x1x32xf32>
    %22 = vector.shape_cast %21 : vector<4x1x32xf32> to vector<4x32xf32>
    %c4_15 = arith.constant 4 : index
    %c103_16 = arith.constant 103 : index
    %23 = vector.load %arg9[%c4_15, %c103_16] : memref<8x1222xf32, #tpu.memory_space<vmem>>, vector<4x32xf32>
    tpu.vector_store %arg9[%c4_15, %c103_16], %22 {strides = array<i32>} : memref<8x1222xf32, #tpu.memory_space<vmem>>, vector<4x32xf32>,
    %24 = vector.extract_strided_slice %3 {offsets = [0, 1, 0], sizes = [4, 1, 32], strides = [1, 1, 1]} : vector<4x16x32xf32> to vector<4x1x32xf32>
    %25 = vector.shape_cast %24 : vector<4x1x32xf32> to vector<4x32xf32>
    %c0_17 = arith.constant 0 : index
    %c137 = arith.constant 137 : index
    %26 = vector.load %arg9[%c0_17, %c137] : memref<8x1222xf32, #tpu.memory_space<vmem>>, vector<4x32xf32>
    tpu.vector_store %arg9[%c0_17, %c137], %25 {strides = array<i32>} : memref<8x1222xf32, #tpu.memory_space<vmem>>, vector<4x32xf32>,
    %27 = vector.extract_strided_slice %5 {offsets = [0, 3, 0], sizes = [4, 1, 32], strides = [1, 1, 1]} : vector<4x32x32xf32> to vector<4x1x32xf32>
    %28 = vector.shape_cast %27 : vector<4x1x32xf32> to vector<4x32xf32>
    %c4_18 = arith.constant 4 : index
    %c137_19 = arith.constant 137 : index
    %29 = vector.load %arg9[%c4_18, %c137_19] : memref<8x1222xf32, #tpu.memory_space<vmem>>, vector<4x32xf32>
    tpu.vector_store %arg9[%c4_18, %c137_19], %28 {strides = array<i32>} : memref<8x1222xf32, #tpu.memory_space<vmem>>, vector<4x32xf32>,
    %30 = vector.extract_strided_slice %3 {offsets = [0, 2, 0], sizes = [4, 1, 32], strides = [1, 1, 1]} : vector<4x16x32xf32> to vector<4x1x32xf32>
    %31 = vector.shape_cast %30 : vector<4x1x32xf32> to vector<4x32xf32>
    %c0_20 = arith.constant 0 : index
    %c171 = arith.constant 171 : index
    %32 = vector.load %arg9[%c0_20, %c171] : memref<8x1222xf32, #tpu.memory_space<vmem>>, vector<4x32xf32>
    tpu.vector_store %arg9[%c0_20, %c171], %31 {strides = array<i32>} : memref<8x1222xf32, #tpu.memory_space<vmem>>, vector<4x32xf32>,
    %33 = vector.extract_strided_slice %5 {offsets = [0, 4, 0], sizes = [4, 1, 32], strides = [1, 1, 1]} : vector<4x32x32xf32> to vector<4x1x32xf32>
    %34 = vector.shape_cast %33 : vector<4x1x32xf32> to vector<4x32xf32>
    %c4_21 = arith.constant 4 : index
    %c171_22 = arith.constant 171 : index
    %35 = vector.load %arg9[%c4_21, %c171_22] : memref<8x1222xf32, #tpu.memory_space<vmem>>, vector<4x32xf32>
    tpu.vector_store %arg9[%c4_21, %c171_22], %34 {strides = array<i32>} : memref<8x1222xf32, #tpu.memory_space<vmem>>, vector<4x32xf32>,
    %36 = vector.extract_strided_slice %3 {offsets = [0, 2, 0], sizes = [4, 1, 32], strides = [1, 1, 1]} : vector<4x16x32xf32> to vector<4x1x32xf32>
    %37 = vector.shape_cast %36 : vector<4x1x32xf32> to vector<4x32xf32>
    %c0_23 = arith.constant 0 : index
    %c205 = arith.constant 205 : index
    %38 = vector.load %arg9[%c0_23, %c205] : memref<8x1222xf32, #tpu.memory_space<vmem>>, vector<4x32xf32>
    tpu.vector_store %arg9[%c0_23, %c205], %37 {strides = array<i32>} : memref<8x1222xf32, #tpu.memory_space<vmem>>, vector<4x32xf32>,
    %39 = vector.extract_strided_slice %5 {offsets = [0, 5, 0], sizes = [4, 1, 32], strides = [1, 1, 1]} : vector<4x32x32xf32> to vector<4x1x32xf32>
    %40 = vector.shape_cast %39 : vector<4x1x32xf32> to vector<4x32xf32>
    %c4_24 = arith.constant 4 : index
    %c205_25 = arith.constant 205 : index
    %41 = vector.load %arg9[%c4_24, %c205_25] : memref<8x1222xf32, #tpu.memory_space<vmem>>, vector<4x32xf32>
    tpu.vector_store %arg9[%c4_24, %c205_25], %40 {strides = array<i32>} : memref<8x1222xf32, #tpu.memory_space<vmem>>, vector<4x32xf32>,
    %42 = vector.extract_strided_slice %3 {offsets = [0, 3, 0], sizes = [4, 1, 32], strides = [1, 1, 1]} : vector<4x16x32xf32> to vector<4x1x32xf32>
    %43 = vector.shape_cast %42 : vector<4x1x32xf32> to vector<4x32xf32>
    %c0_26 = arith.constant 0 : index
    %c239 = arith.constant 239 : index
    %44 = vector.load %arg9[%c0_26, %c239] : memref<8x1222xf32, #tpu.memory_space<vmem>>, vector<4x32xf32>
    tpu.vector_store %arg9[%c0_26, %c239], %43 {strides = array<i32>} : memref<8x1222xf32, #tpu.memory_space<vmem>>, vector<4x32xf32>,
    %45 = vector.extract_strided_slice %5 {offsets = [0, 6, 0], sizes = [4, 1, 32], strides = [1, 1, 1]} : vector<4x32x32xf32> to vector<4x1x32xf32>
    %46 = vector.shape_cast %45 : vector<4x1x32xf32> to vector<4x32xf32>
    %c4_27 = arith.constant 4 : index
    %c239_28 = arith.constant 239 : index
    %47 = vector.load %arg9[%c4_27, %c239_28] : memref<8x1222xf32, #tpu.memory_space<vmem>>, vector<4x32xf32>
    tpu.vector_store %arg9[%c4_27, %c239_28], %46 {strides = array<i32>} : memref<8x1222xf32, #tpu.memory_space<vmem>>, vector<4x32xf32>,
    %48 = vector.extract_strided_slice %3 {offsets = [0, 3, 0], sizes = [4, 1, 32], strides = [1, 1, 1]} : vector<4x16x32xf32> to vector<4x1x32xf32>
    %49 = vector.shape_cast %48 : vector<4x1x32xf32> to vector<4x32xf32>
    %c0_29 = arith.constant 0 : index
    %c273 = arith.constant 273 : index
    %50 = vector.load %arg9[%c0_29, %c273] : memref<8x1222xf32, #tpu.memory_space<vmem>>, vector<4x32xf32>
    tpu.vector_store %arg9[%c0_29, %c273], %49 {strides = array<i32>} : memref<8x1222xf32, #tpu.memory_space<vmem>>, vector<4x32xf32>,
    %51 = vector.extract_strided_slice %5 {offsets = [0, 7, 0], sizes = [4, 1, 32], strides = [1, 1, 1]} : vector<4x32x32xf32> to vector<4x1x32xf32>
    %52 = vector.shape_cast %51 : vector<4x1x32xf32> to vector<4x32xf32>
    %c4_30 = arith.constant 4 : index
    %c273_31 = arith.constant 273 : index
    %53 = vector.load %arg9[%c4_30, %c273_31] : memref<8x1222xf32, #tpu.memory_space<vmem>>, vector<4x32xf32>
    tpu.vector_store %arg9[%c4_30, %c273_31], %52 {strides = array<i32>} : memref<8x1222xf32, #tpu.memory_space<vmem>>, vector<4x32xf32>,
    %54 = vector.extract_strided_slice %3 {offsets = [0, 4, 0], sizes = [4, 1, 32], strides = [1, 1, 1]} : vector<4x16x32xf32> to vector<4x1x32xf32>
    %55 = vector.shape_cast %54 : vector<4x1x32xf32> to vector<4x32xf32>
    %c0_32 = arith.constant 0 : index
    %c307 = arith.constant 307 : index
    %56 = vector.load %arg9[%c0_32, %c307] : memref<8x1222xf32, #tpu.memory_space<vmem>>, vector<4x32xf32>
    tpu.vector_store %arg9[%c0_32, %c307], %55 {strides = array<i32>} : memref<8x1222xf32, #tpu.memory_space<vmem>>, vector<4x32xf32>,
    %57 = vector.extract_strided_slice %5 {offsets = [0, 8, 0], sizes = [4, 1, 32], strides = [1, 1, 1]} : vector<4x32x32xf32> to vector<4x1x32xf32>
    %58 = vector.shape_cast %57 : vector<4x1x32xf32> to vector<4x32xf32>
    %c4_33 = arith.constant 4 : index
    %c307_34 = arith.constant 307 : index
    %59 = vector.load %arg9[%c4_33, %c307_34] : memref<8x1222xf32, #tpu.memory_space<vmem>>, vector<4x32xf32>
    tpu.vector_store %arg9[%c4_33, %c307_34], %58 {strides = array<i32>} : memref<8x1222xf32, #tpu.memory_space<vmem>>, vector<4x32xf32>,
    %60 = vector.extract_strided_slice %3 {offsets = [0, 4, 0], sizes = [4, 1, 32], strides = [1, 1, 1]} : vector<4x16x32xf32> to vector<4x1x32xf32>
    %61 = vector.shape_cast %60 : vector<4x1x32xf32> to vector<4x32xf32>
    %c0_35 = arith.constant 0 : index
    %c341 = arith.constant 341 : index
    %62 = vector.load %arg9[%c0_35, %c341] : memref<8x1222xf32, #tpu.memory_space<vmem>>, vector<4x32xf32>
    tpu.vector_store %arg9[%c0_35, %c341], %61 {strides = array<i32>} : memref<8x1222xf32, #tpu.memory_space<vmem>>, vector<4x32xf32>,
    %63 = vector.extract_strided_slice %5 {offsets = [0, 9, 0], sizes = [4, 1, 32], strides = [1, 1, 1]} : vector<4x32x32xf32> to vector<4x1x32xf32>
    %64 = vector.shape_cast %63 : vector<4x1x32xf32> to vector<4x32xf32>
    %c4_36 = arith.constant 4 : index
    %c341_37 = arith.constant 341 : index
    %65 = vector.load %arg9[%c4_36, %c341_37] : memref<8x1222xf32, #tpu.memory_space<vmem>>, vector<4x32xf32>
    tpu.vector_store %arg9[%c4_36, %c341_37], %64 {strides = array<i32>} : memref<8x1222xf32, #tpu.memory_space<vmem>>, vector<4x32xf32>,
    %66 = vector.extract_strided_slice %3 {offsets = [0, 5, 0], sizes = [4, 1, 32], strides = [1, 1, 1]} : vector<4x16x32xf32> to vector<4x1x32xf32>
    %67 = vector.shape_cast %66 : vector<4x1x32xf32> to vector<4x32xf32>
    %c0_38 = arith.constant 0 : index
    %c375 = arith.constant 375 : index
    %68 = vector.load %arg9[%c0_38, %c375] : memref<8x1222xf32, #tpu.memory_space<vmem>>, vector<4x32xf32>
    tpu.vector_store %arg9[%c0_38, %c375], %67 {strides = array<i32>} : memref<8x1222xf32, #tpu.memory_space<vmem>>, vector<4x32xf32>,
    %69 = vector.extract_strided_slice %5 {offsets = [0, 10, 0], sizes = [4, 1, 32], strides = [1, 1, 1]} : vector<4x32x32xf32> to vector<4x1x32xf32>
    %70 = vector.shape_cast %69 : vector<4x1x32xf32> to vector<4x32xf32>
    %c4_39 = arith.constant 4 : index
    %c375_40 = arith.constant 375 : index
    %71 = vector.load %arg9[%c4_39, %c375_40] : memref<8x1222xf32, #tpu.memory_space<vmem>>, vector<4x32xf32>
    tpu.vector_store %arg9[%c4_39, %c375_40], %70 {strides = array<i32>} : memref<8x1222xf32, #tpu.memory_space<vmem>>, vector<4x32xf32>,
    %72 = vector.extract_strided_slice %3 {offsets = [0, 5, 0], sizes = [4, 1, 32], strides = [1, 1, 1]} : vector<4x16x32xf32> to vector<4x1x32xf32>
    %73 = vector.shape_cast %72 : vector<4x1x32xf32> to vector<4x32xf32>
    %c0_41 = arith.constant 0 : index
    %c409 = arith.constant 409 : index
    %74 = vector.load %arg9[%c0_41, %c409] : memref<8x1222xf32, #tpu.memory_space<vmem>>, vector<4x32xf32>
    tpu.vector_store %arg9[%c0_41, %c409], %73 {strides = array<i32>} : memref<8x1222xf32, #tpu.memory_space<vmem>>, vector<4x32xf32>,
    %75 = vector.extract_strided_slice %5 {offsets = [0, 11, 0], sizes = [4, 1, 32], strides = [1, 1, 1]} : vector<4x32x32xf32> to vector<4x1x32xf32>
    %76 = vector.shape_cast %75 : vector<4x1x32xf32> to vector<4x32xf32>
    %c4_42 = arith.constant 4 : index
    %c409_43 = arith.constant 409 : index
    %77 = vector.load %arg9[%c4_42, %c409_43] : memref<8x1222xf32, #tpu.memory_space<vmem>>, vector<4x32xf32>
    tpu.vector_store %arg9[%c4_42, %c409_43], %76 {strides = array<i32>} : memref<8x1222xf32, #tpu.memory_space<vmem>>, vector<4x32xf32>,
    %78 = vector.extract_strided_slice %3 {offsets = [0, 6, 0], sizes = [4, 1, 32], strides = [1, 1, 1]} : vector<4x16x32xf32> to vector<4x1x32xf32>
    %79 = vector.shape_cast %78 : vector<4x1x32xf32> to vector<4x32xf32>
    %c0_44 = arith.constant 0 : index
    %c443 = arith.constant 443 : index
    %80 = vector.load %arg9[%c0_44, %c443] : memref<8x1222xf32, #tpu.memory_space<vmem>>, vector<4x32xf32>
    tpu.vector_store %arg9[%c0_44, %c443], %79 {strides = array<i32>} : memref<8x1222xf32, #tpu.memory_space<vmem>>, vector<4x32xf32>,
    %81 = vector.extract_strided_slice %5 {offsets = [0, 12, 0], sizes = [4, 1, 32], strides = [1, 1, 1]} : vector<4x32x32xf32> to vector<4x1x32xf32>
    %82 = vector.shape_cast %81 : vector<4x1x32xf32> to vector<4x32xf32>
    %c4_45 = arith.constant 4 : index
    %c443_46 = arith.constant 443 : index
    %83 = vector.load %arg9[%c4_45, %c443_46] : memref<8x1222xf32, #tpu.memory_space<vmem>>, vector<4x32xf32>
    tpu.vector_store %arg9[%c4_45, %c443_46], %82 {strides = array<i32>} : memref<8x1222xf32, #tpu.memory_space<vmem>>, vector<4x32xf32>,
    %84 = vector.extract_strided_slice %3 {offsets = [0, 6, 0], sizes = [4, 1, 32], strides = [1, 1, 1]} : vector<4x16x32xf32> to vector<4x1x32xf32>
    %85 = vector.shape_cast %84 : vector<4x1x32xf32> to vector<4x32xf32>
    %c0_47 = arith.constant 0 : index
    %c477 = arith.constant 477 : index
    %86 = vector.load %arg9[%c0_47, %c477] : memref<8x1222xf32, #tpu.memory_space<vmem>>, vector<4x32xf32>
    tpu.vector_store %arg9[%c0_47, %c477], %85 {strides = array<i32>} : memref<8x1222xf32, #tpu.memory_space<vmem>>, vector<4x32xf32>,
    %87 = vector.extract_strided_slice %5 {offsets = [0, 13, 0], sizes = [4, 1, 32], strides = [1, 1, 1]} : vector<4x32x32xf32> to vector<4x1x32xf32>
    %88 = vector.shape_cast %87 : vector<4x1x32xf32> to vector<4x32xf32>
    %c4_48 = arith.constant 4 : index
    %c477_49 = arith.constant 477 : index
    %89 = vector.load %arg9[%c4_48, %c477_49] : memref<8x1222xf32, #tpu.memory_space<vmem>>, vector<4x32xf32>
    tpu.vector_store %arg9[%c4_48, %c477_49], %88 {strides = array<i32>} : memref<8x1222xf32, #tpu.memory_space<vmem>>, vector<4x32xf32>,
    %90 = vector.extract_strided_slice %3 {offsets = [0, 7, 0], sizes = [4, 1, 32], strides = [1, 1, 1]} : vector<4x16x32xf32> to vector<4x1x32xf32>
    %91 = vector.shape_cast %90 : vector<4x1x32xf32> to vector<4x32xf32>
    %c0_50 = arith.constant 0 : index
    %c511 = arith.constant 511 : index
    %92 = vector.load %arg9[%c0_50, %c511] : memref<8x1222xf32, #tpu.memory_space<vmem>>, vector<4x32xf32>
    tpu.vector_store %arg9[%c0_50, %c511], %91 {strides = array<i32>} : memref<8x1222xf32, #tpu.memory_space<vmem>>, vector<4x32xf32>,
    %93 = vector.extract_strided_slice %5 {offsets = [0, 14, 0], sizes = [4, 1, 32], strides = [1, 1, 1]} : vector<4x32x32xf32> to vector<4x1x32xf32>
    %94 = vector.shape_cast %93 : vector<4x1x32xf32> to vector<4x32xf32>
    %c4_51 = arith.constant 4 : index
    %c511_52 = arith.constant 511 : index
    %95 = vector.load %arg9[%c4_51, %c511_52] : memref<8x1222xf32, #tpu.memory_space<vmem>>, vector<4x32xf32>
    tpu.vector_store %arg9[%c4_51, %c511_52], %94 {strides = array<i32>} : memref<8x1222xf32, #tpu.memory_space<vmem>>, vector<4x32xf32>,
    %96 = vector.extract_strided_slice %3 {offsets = [0, 7, 0], sizes = [4, 1, 32], strides = [1, 1, 1]} : vector<4x16x32xf32> to vector<4x1x32xf32>
    %97 = vector.shape_cast %96 : vector<4x1x32xf32> to vector<4x32xf32>
    %c0_53 = arith.constant 0 : index
    %c545 = arith.constant 545 : index
    %98 = vector.load %arg9[%c0_53, %c545] : memref<8x1222xf32, #tpu.memory_space<vmem>>, vector<4x32xf32>
    tpu.vector_store %arg9[%c0_53, %c545], %97 {strides = array<i32>} : memref<8x1222xf32, #tpu.memory_space<vmem>>, vector<4x32xf32>,
    %99 = vector.extract_strided_slice %5 {offsets = [0, 15, 0], sizes = [4, 1, 32], strides = [1, 1, 1]} : vector<4x32x32xf32> to vector<4x1x32xf32>
    %100 = vector.shape_cast %99 : vector<4x1x32xf32> to vector<4x32xf32>
    %c4_54 = arith.constant 4 : index
    %c545_55 = arith.constant 545 : index
    %101 = vector.load %arg9[%c4_54, %c545_55] : memref<8x1222xf32, #tpu.memory_space<vmem>>, vector<4x32xf32>
    tpu.vector_store %arg9[%c4_54, %c545_55], %100 {strides = array<i32>} : memref<8x1222xf32, #tpu.memory_space<vmem>>, vector<4x32xf32>,
    %102 = vector.extract_strided_slice %3 {offsets = [0, 8, 0], sizes = [4, 1, 32], strides = [1, 1, 1]} : vector<4x16x32xf32> to vector<4x1x32xf32>
    %103 = vector.shape_cast %102 : vector<4x1x32xf32> to vector<4x32xf32>
    %c0_56 = arith.constant 0 : index
    %c579 = arith.constant 579 : index
    %104 = vector.load %arg9[%c0_56, %c579] : memref<8x1222xf32, #tpu.memory_space<vmem>>, vector<4x32xf32>
    tpu.vector_store %arg9[%c0_56, %c579], %103 {strides = array<i32>} : memref<8x1222xf32, #tpu.memory_space<vmem>>, vector<4x32xf32>,
    %105 = vector.extract_strided_slice %5 {offsets = [0, 16, 0], sizes = [4, 1, 32], strides = [1, 1, 1]} : vector<4x32x32xf32> to vector<4x1x32xf32>
    %106 = vector.shape_cast %105 : vector<4x1x32xf32> to vector<4x32xf32>
    %c4_57 = arith.constant 4 : index
    %c579_58 = arith.constant 579 : index
    %107 = vector.load %arg9[%c4_57, %c579_58] : memref<8x1222xf32, #tpu.memory_space<vmem>>, vector<4x32xf32>
    tpu.vector_store %arg9[%c4_57, %c579_58], %106 {strides = array<i32>} : memref<8x1222xf32, #tpu.memory_space<vmem>>, vector<4x32xf32>,
    %108 = vector.extract_strided_slice %3 {offsets = [0, 8, 0], sizes = [4, 1, 32], strides = [1, 1, 1]} : vector<4x16x32xf32> to vector<4x1x32xf32>
    %109 = vector.shape_cast %108 : vector<4x1x32xf32> to vector<4x32xf32>
    %c0_59 = arith.constant 0 : index
    %c613 = arith.constant 613 : index
    %110 = vector.load %arg9[%c0_59, %c613] : memref<8x1222xf32, #tpu.memory_space<vmem>>, vector<4x32xf32>
    tpu.vector_store %arg9[%c0_59, %c613], %109 {strides = array<i32>} : memref<8x1222xf32, #tpu.memory_space<vmem>>, vector<4x32xf32>,
    %111 = vector.extract_strided_slice %5 {offsets = [0, 17, 0], sizes = [4, 1, 32], strides = [1, 1, 1]} : vector<4x32x32xf32> to vector<4x1x32xf32>
    %112 = vector.shape_cast %111 : vector<4x1x32xf32> to vector<4x32xf32>
    %c4_60 = arith.constant 4 : index
    %c613_61 = arith.constant 613 : index
    %113 = vector.load %arg9[%c4_60, %c613_61] : memref<8x1222xf32, #tpu.memory_space<vmem>>, vector<4x32xf32>
    tpu.vector_store %arg9[%c4_60, %c613_61], %112 {strides = array<i32>} : memref<8x1222xf32, #tpu.memory_space<vmem>>, vector<4x32xf32>,
    %114 = vector.extract_strided_slice %3 {offsets = [0, 9, 0], sizes = [4, 1, 32], strides = [1, 1, 1]} : vector<4x16x32xf32> to vector<4x1x32xf32>
    %115 = vector.shape_cast %114 : vector<4x1x32xf32> to vector<4x32xf32>
    %c0_62 = arith.constant 0 : index
    %c647 = arith.constant 647 : index
    %116 = vector.load %arg9[%c0_62, %c647] : memref<8x1222xf32, #tpu.memory_space<vmem>>, vector<4x32xf32>
    tpu.vector_store %arg9[%c0_62, %c647], %115 {strides = array<i32>} : memref<8x1222xf32, #tpu.memory_space<vmem>>, vector<4x32xf32>,
    %117 = vector.extract_strided_slice %5 {offsets = [0, 18, 0], sizes = [4, 1, 32], strides = [1, 1, 1]} : vector<4x32x32xf32> to vector<4x1x32xf32>
    %118 = vector.shape_cast %117 : vector<4x1x32xf32> to vector<4x32xf32>
    %c4_63 = arith.constant 4 : index
    %c647_64 = arith.constant 647 : index
    %119 = vector.load %arg9[%c4_63, %c647_64] : memref<8x1222xf32, #tpu.memory_space<vmem>>, vector<4x32xf32>
    tpu.vector_store %arg9[%c4_63, %c647_64], %118 {strides = array<i32>} : memref<8x1222xf32, #tpu.memory_space<vmem>>, vector<4x32xf32>,
    %120 = vector.extract_strided_slice %3 {offsets = [0, 9, 0], sizes = [4, 1, 32], strides = [1, 1, 1]} : vector<4x16x32xf32> to vector<4x1x32xf32>
    %121 = vector.shape_cast %120 : vector<4x1x32xf32> to vector<4x32xf32>
    %c0_65 = arith.constant 0 : index
    %c681 = arith.constant 681 : index
    %122 = vector.load %arg9[%c0_65, %c681] : memref<8x1222xf32, #tpu.memory_space<vmem>>, vector<4x32xf32>
    tpu.vector_store %arg9[%c0_65, %c681], %121 {strides = array<i32>} : memref<8x1222xf32, #tpu.memory_space<vmem>>, vector<4x32xf32>,
    %123 = vector.extract_strided_slice %5 {offsets = [0, 19, 0], sizes = [4, 1, 32], strides = [1, 1, 1]} : vector<4x32x32xf32> to vector<4x1x32xf32>
    %124 = vector.shape_cast %123 : vector<4x1x32xf32> to vector<4x32xf32>
    %c4_66 = arith.constant 4 : index
    %c681_67 = arith.constant 681 : index
    %125 = vector.load %arg9[%c4_66, %c681_67] : memref<8x1222xf32, #tpu.memory_space<vmem>>, vector<4x32xf32>
    tpu.vector_store %arg9[%c4_66, %c681_67], %124 {strides = array<i32>} : memref<8x1222xf32, #tpu.memory_space<vmem>>, vector<4x32xf32>,
    %126 = vector.extract_strided_slice %3 {offsets = [0, 10, 0], sizes = [4, 1, 32], strides = [1, 1, 1]} : vector<4x16x32xf32> to vector<4x1x32xf32>
    %127 = vector.shape_cast %126 : vector<4x1x32xf32> to vector<4x32xf32>
    %c0_68 = arith.constant 0 : index
    %c715 = arith.constant 715 : index
    %128 = vector.load %arg9[%c0_68, %c715] : memref<8x1222xf32, #tpu.memory_space<vmem>>, vector<4x32xf32>
    tpu.vector_store %arg9[%c0_68, %c715], %127 {strides = array<i32>} : memref<8x1222xf32, #tpu.memory_space<vmem>>, vector<4x32xf32>,
    %129 = vector.extract_strided_slice %5 {offsets = [0, 20, 0], sizes = [4, 1, 32], strides = [1, 1, 1]} : vector<4x32x32xf32> to vector<4x1x32xf32>
    %130 = vector.shape_cast %129 : vector<4x1x32xf32> to vector<4x32xf32>
    %c4_69 = arith.constant 4 : index
    %c715_70 = arith.constant 715 : index
    %131 = vector.load %arg9[%c4_69, %c715_70] : memref<8x1222xf32, #tpu.memory_space<vmem>>, vector<4x32xf32>
    tpu.vector_store %arg9[%c4_69, %c715_70], %130 {strides = array<i32>} : memref<8x1222xf32, #tpu.memory_space<vmem>>, vector<4x32xf32>,
    %132 = vector.extract_strided_slice %3 {offsets = [0, 10, 0], sizes = [4, 1, 32], strides = [1, 1, 1]} : vector<4x16x32xf32> to vector<4x1x32xf32>
    %133 = vector.shape_cast %132 : vector<4x1x32xf32> to vector<4x32xf32>
    %c0_71 = arith.constant 0 : index
    %c749 = arith.constant 749 : index
    %134 = vector.load %arg9[%c0_71, %c749] : memref<8x1222xf32, #tpu.memory_space<vmem>>, vector<4x32xf32>
    tpu.vector_store %arg9[%c0_71, %c749], %133 {strides = array<i32>} : memref<8x1222xf32, #tpu.memory_space<vmem>>, vector<4x32xf32>,
    %135 = vector.extract_strided_slice %5 {offsets = [0, 21, 0], sizes = [4, 1, 32], strides = [1, 1, 1]} : vector<4x32x32xf32> to vector<4x1x32xf32>
    %136 = vector.shape_cast %135 : vector<4x1x32xf32> to vector<4x32xf32>
    %c4_72 = arith.constant 4 : index
    %c749_73 = arith.constant 749 : index
    %137 = vector.load %arg9[%c4_72, %c749_73] : memref<8x1222xf32, #tpu.memory_space<vmem>>, vector<4x32xf32>
    tpu.vector_store %arg9[%c4_72, %c749_73], %136 {strides = array<i32>} : memref<8x1222xf32, #tpu.memory_space<vmem>>, vector<4x32xf32>,
    %138 = vector.extract_strided_slice %3 {offsets = [0, 11, 0], sizes = [4, 1, 32], strides = [1, 1, 1]} : vector<4x16x32xf32> to vector<4x1x32xf32>
    %139 = vector.shape_cast %138 : vector<4x1x32xf32> to vector<4x32xf32>
    %c0_74 = arith.constant 0 : index
    %c783 = arith.constant 783 : index
    %140 = vector.load %arg9[%c0_74, %c783] : memref<8x1222xf32, #tpu.memory_space<vmem>>, vector<4x32xf32>
    tpu.vector_store %arg9[%c0_74, %c783], %139 {strides = array<i32>} : memref<8x1222xf32, #tpu.memory_space<vmem>>, vector<4x32xf32>,
    %141 = vector.extract_strided_slice %5 {offsets = [0, 22, 0], sizes = [4, 1, 32], strides = [1, 1, 1]} : vector<4x32x32xf32> to vector<4x1x32xf32>
    %142 = vector.shape_cast %141 : vector<4x1x32xf32> to vector<4x32xf32>
    %c4_75 = arith.constant 4 : index
    %c783_76 = arith.constant 783 : index
    %143 = vector.load %arg9[%c4_75, %c783_76] : memref<8x1222xf32, #tpu.memory_space<vmem>>, vector<4x32xf32>
    tpu.vector_store %arg9[%c4_75, %c783_76], %142 {strides = array<i32>} : memref<8x1222xf32, #tpu.memory_space<vmem>>, vector<4x32xf32>,
    %144 = vector.extract_strided_slice %3 {offsets = [0, 11, 0], sizes = [4, 1, 32], strides = [1, 1, 1]} : vector<4x16x32xf32> to vector<4x1x32xf32>
    %145 = vector.shape_cast %144 : vector<4x1x32xf32> to vector<4x32xf32>
    %c0_77 = arith.constant 0 : index
    %c817 = arith.constant 817 : index
    %146 = vector.load %arg9[%c0_77, %c817] : memref<8x1222xf32, #tpu.memory_space<vmem>>, vector<4x32xf32>
    tpu.vector_store %arg9[%c0_77, %c817], %145 {strides = array<i32>} : memref<8x1222xf32, #tpu.memory_space<vmem>>, vector<4x32xf32>,
    %147 = vector.extract_strided_slice %5 {offsets = [0, 23, 0], sizes = [4, 1, 32], strides = [1, 1, 1]} : vector<4x32x32xf32> to vector<4x1x32xf32>
    %148 = vector.shape_cast %147 : vector<4x1x32xf32> to vector<4x32xf32>
    %c4_78 = arith.constant 4 : index
    %c817_79 = arith.constant 817 : index
    %149 = vector.load %arg9[%c4_78, %c817_79] : memref<8x1222xf32, #tpu.memory_space<vmem>>, vector<4x32xf32>
    tpu.vector_store %arg9[%c4_78, %c817_79], %148 {strides = array<i32>} : memref<8x1222xf32, #tpu.memory_space<vmem>>, vector<4x32xf32>,
    %150 = vector.extract_strided_slice %3 {offsets = [0, 12, 0], sizes = [4, 1, 32], strides = [1, 1, 1]} : vector<4x16x32xf32> to vector<4x1x32xf32>
    %151 = vector.shape_cast %150 : vector<4x1x32xf32> to vector<4x32xf32>
    %c0_80 = arith.constant 0 : index
    %c851 = arith.constant 851 : index
    %152 = vector.load %arg9[%c0_80, %c851] : memref<8x1222xf32, #tpu.memory_space<vmem>>, vector<4x32xf32>
    tpu.vector_store %arg9[%c0_80, %c851], %151 {strides = array<i32>} : memref<8x1222xf32, #tpu.memory_space<vmem>>, vector<4x32xf32>,
    %153 = vector.extract_strided_slice %5 {offsets = [0, 24, 0], sizes = [4, 1, 32], strides = [1, 1, 1]} : vector<4x32x32xf32> to vector<4x1x32xf32>
    %154 = vector.shape_cast %153 : vector<4x1x32xf32> to vector<4x32xf32>
    %c4_81 = arith.constant 4 : index
    %c851_82 = arith.constant 851 : index
    %155 = vector.load %arg9[%c4_81, %c851_82] : memref<8x1222xf32, #tpu.memory_space<vmem>>, vector<4x32xf32>
    tpu.vector_store %arg9[%c4_81, %c851_82], %154 {strides = array<i32>} : memref<8x1222xf32, #tpu.memory_space<vmem>>, vector<4x32xf32>,
    %156 = vector.extract_strided_slice %3 {offsets = [0, 12, 0], sizes = [4, 1, 32], strides = [1, 1, 1]} : vector<4x16x32xf32> to vector<4x1x32xf32>
    %157 = vector.shape_cast %156 : vector<4x1x32xf32> to vector<4x32xf32>
    %c0_83 = arith.constant 0 : index
    %c885 = arith.constant 885 : index
    %158 = vector.load %arg9[%c0_83, %c885] : memref<8x1222xf32, #tpu.memory_space<vmem>>, vector<4x32xf32>
    tpu.vector_store %arg9[%c0_83, %c885], %157 {strides = array<i32>} : memref<8x1222xf32, #tpu.memory_space<vmem>>, vector<4x32xf32>,
    %159 = vector.extract_strided_slice %5 {offsets = [0, 25, 0], sizes = [4, 1, 32], strides = [1, 1, 1]} : vector<4x32x32xf32> to vector<4x1x32xf32>
    %160 = vector.shape_cast %159 : vector<4x1x32xf32> to vector<4x32xf32>
    %c4_84 = arith.constant 4 : index
    %c885_85 = arith.constant 885 : index
    %161 = vector.load %arg9[%c4_84, %c885_85] : memref<8x1222xf32, #tpu.memory_space<vmem>>, vector<4x32xf32>
    tpu.vector_store %arg9[%c4_84, %c885_85], %160 {strides = array<i32>} : memref<8x1222xf32, #tpu.memory_space<vmem>>, vector<4x32xf32>,
    %162 = vector.extract_strided_slice %3 {offsets = [0, 13, 0], sizes = [4, 1, 32], strides = [1, 1, 1]} : vector<4x16x32xf32> to vector<4x1x32xf32>
    %163 = vector.shape_cast %162 : vector<4x1x32xf32> to vector<4x32xf32>
    %c0_86 = arith.constant 0 : index
    %c919 = arith.constant 919 : index
    %164 = vector.load %arg9[%c0_86, %c919] : memref<8x1222xf32, #tpu.memory_space<vmem>>, vector<4x32xf32>
    tpu.vector_store %arg9[%c0_86, %c919], %163 {strides = array<i32>} : memref<8x1222xf32, #tpu.memory_space<vmem>>, vector<4x32xf32>,
    %165 = vector.extract_strided_slice %5 {offsets = [0, 26, 0], sizes = [4, 1, 32], strides = [1, 1, 1]} : vector<4x32x32xf32> to vector<4x1x32xf32>
    %166 = vector.shape_cast %165 : vector<4x1x32xf32> to vector<4x32xf32>
    %c4_87 = arith.constant 4 : index
    %c919_88 = arith.constant 919 : index
    %167 = vector.load %arg9[%c4_87, %c919_88] : memref<8x1222xf32, #tpu.memory_space<vmem>>, vector<4x32xf32>
    tpu.vector_store %arg9[%c4_87, %c919_88], %166 {strides = array<i32>} : memref<8x1222xf32, #tpu.memory_space<vmem>>, vector<4x32xf32>,
    %168 = vector.extract_strided_slice %3 {offsets = [0, 13, 0], sizes = [4, 1, 32], strides = [1, 1, 1]} : vector<4x16x32xf32> to vector<4x1x32xf32>
    %169 = vector.shape_cast %168 : vector<4x1x32xf32> to vector<4x32xf32>
    %c0_89 = arith.constant 0 : index
    %c953 = arith.constant 953 : index
    %170 = vector.load %arg9[%c0_89, %c953] : memref<8x1222xf32, #tpu.memory_space<vmem>>, vector<4x32xf32>
    tpu.vector_store %arg9[%c0_89, %c953], %169 {strides = array<i32>} : memref<8x1222xf32, #tpu.memory_space<vmem>>, vector<4x32xf32>,
    %171 = vector.extract_strided_slice %5 {offsets = [0, 27, 0], sizes = [4, 1, 32], strides = [1, 1, 1]} : vector<4x32x32xf32> to vector<4x1x32xf32>
    %172 = vector.shape_cast %171 : vector<4x1x32xf32> to vector<4x32xf32>
    %c4_90 = arith.constant 4 : index
    %c953_91 = arith.constant 953 : index
    %173 = vector.load %arg9[%c4_90, %c953_91] : memref<8x1222xf32, #tpu.memory_space<vmem>>, vector<4x32xf32>
    tpu.vector_store %arg9[%c4_90, %c953_91], %172 {strides = array<i32>} : memref<8x1222xf32, #tpu.memory_space<vmem>>, vector<4x32xf32>,
    %174 = vector.extract_strided_slice %3 {offsets = [0, 14, 0], sizes = [4, 1, 32], strides = [1, 1, 1]} : vector<4x16x32xf32> to vector<4x1x32xf32>
    %175 = vector.shape_cast %174 : vector<4x1x32xf32> to vector<4x32xf32>
    %c0_92 = arith.constant 0 : index
    %c987 = arith.constant 987 : index
    %176 = vector.load %arg9[%c0_92, %c987] : memref<8x1222xf32, #tpu.memory_space<vmem>>, vector<4x32xf32>
    tpu.vector_store %arg9[%c0_92, %c987], %175 {strides = array<i32>} : memref<8x1222xf32, #tpu.memory_space<vmem>>, vector<4x32xf32>,
    %177 = vector.extract_strided_slice %5 {offsets = [0, 28, 0], sizes = [4, 1, 32], strides = [1, 1, 1]} : vector<4x32x32xf32> to vector<4x1x32xf32>
    %178 = vector.shape_cast %177 : vector<4x1x32xf32> to vector<4x32xf32>
    %c4_93 = arith.constant 4 : index
    %c987_94 = arith.constant 987 : index
    %179 = vector.load %arg9[%c4_93, %c987_94] : memref<8x1222xf32, #tpu.memory_space<vmem>>, vector<4x32xf32>
    tpu.vector_store %arg9[%c4_93, %c987_94], %178 {strides = array<i32>} : memref<8x1222xf32, #tpu.memory_space<vmem>>, vector<4x32xf32>,
    %180 = vector.extract_strided_slice %3 {offsets = [0, 14, 0], sizes = [4, 1, 32], strides = [1, 1, 1]} : vector<4x16x32xf32> to vector<4x1x32xf32>
    %181 = vector.shape_cast %180 : vector<4x1x32xf32> to vector<4x32xf32>
    %c0_95 = arith.constant 0 : index
    %c1021 = arith.constant 1021 : index
    %182 = vector.load %arg9[%c0_95, %c1021] : memref<8x1222xf32, #tpu.memory_space<vmem>>, vector<4x32xf32>
    tpu.vector_store %arg9[%c0_95, %c1021], %181 {strides = array<i32>} : memref<8x1222xf32, #tpu.memory_space<vmem>>, vector<4x32xf32>,
    %183 = vector.extract_strided_slice %5 {offsets = [0, 29, 0], sizes = [4, 1, 32], strides = [1, 1, 1]} : vector<4x32x32xf32> to vector<4x1x32xf32>
    %184 = vector.shape_cast %183 : vector<4x1x32xf32> to vector<4x32xf32>
    %c4_96 = arith.constant 4 : index
    %c1021_97 = arith.constant 1021 : index
    %185 = vector.load %arg9[%c4_96, %c1021_97] : memref<8x1222xf32, #tpu.memory_space<vmem>>, vector<4x32xf32>
    tpu.vector_store %arg9[%c4_96, %c1021_97], %184 {strides = array<i32>} : memref<8x1222xf32, #tpu.memory_space<vmem>>, vector<4x32xf32>,
    %186 = vector.extract_strided_slice %3 {offsets = [0, 15, 0], sizes = [4, 1, 32], strides = [1, 1, 1]} : vector<4x16x32xf32> to vector<4x1x32xf32>
    %187 = vector.shape_cast %186 : vector<4x1x32xf32> to vector<4x32xf32>
    %c0_98 = arith.constant 0 : index
    %c1055 = arith.constant 1055 : index
    %188 = vector.load %arg9[%c0_98, %c1055] : memref<8x1222xf32, #tpu.memory_space<vmem>>, vector<4x32xf32>
    tpu.vector_store %arg9[%c0_98, %c1055], %187 {strides = array<i32>} : memref<8x1222xf32, #tpu.memory_space<vmem>>, vector<4x32xf32>,
    %189 = vector.extract_strided_slice %5 {offsets = [0, 30, 0], sizes = [4, 1, 32], strides = [1, 1, 1]} : vector<4x32x32xf32> to vector<4x1x32xf32>
    %190 = vector.shape_cast %189 : vector<4x1x32xf32> to vector<4x32xf32>
    %c4_99 = arith.constant 4 : index
    %c1055_100 = arith.constant 1055 : index
    %191 = vector.load %arg9[%c4_99, %c1055_100] : memref<8x1222xf32, #tpu.memory_space<vmem>>, vector<4x32xf32>
    tpu.vector_store %arg9[%c4_99, %c1055_100], %190 {strides = array<i32>} : memref<8x1222xf32, #tpu.memory_space<vmem>>, vector<4x32xf32>,
    %192 = vector.extract_strided_slice %3 {offsets = [0, 15, 0], sizes = [4, 1, 32], strides = [1, 1, 1]} : vector<4x16x32xf32> to vector<4x1x32xf32>
    %193 = vector.shape_cast %192 : vector<4x1x32xf32> to vector<4x32xf32>
    %c0_101 = arith.constant 0 : index
    %c1089 = arith.constant 1089 : index
    %194 = vector.load %arg9[%c0_101, %c1089] : memref<8x1222xf32, #tpu.memory_space<vmem>>, vector<4x32xf32>
    tpu.vector_store %arg9[%c0_101, %c1089], %193 {strides = array<i32>} : memref<8x1222xf32, #tpu.memory_space<vmem>>, vector<4x32xf32>,
    %195 = vector.extract_strided_slice %5 {offsets = [0, 31, 0], sizes = [4, 1, 32], strides = [1, 1, 1]} : vector<4x32x32xf32> to vector<4x1x32xf32>
    %196 = vector.shape_cast %195 : vector<4x1x32xf32> to vector<4x32xf32>
    %c4_102 = arith.constant 4 : index
    %c1089_103 = arith.constant 1089 : index
    %197 = vector.load %arg9[%c4_102, %c1089_103] : memref<8x1222xf32, #tpu.memory_space<vmem>>, vector<4x32xf32>
    tpu.vector_store %arg9[%c4_102, %c1089_103], %196 {strides = array<i32>} : memref<8x1222xf32, #tpu.memory_space<vmem>>, vector<4x32xf32>,
    %c0_104 = arith.constant 0 : index
    %c0_105 = arith.constant 0 : index
    %198 = vector.load %arg7[%c0_104, %c0_105] : memref<1x1152xf32, #tpu.memory_space<vmem>>, vector<1x1152xf32>
    %c0_106 = arith.constant 0 : index
    %c0_107 = arith.constant 0 : index
    %199 = vector.load %arg9[%c0_106, %c0_107] : memref<8x1222xf32, #tpu.memory_space<vmem>>, vector<8x1152xf32>
    %c0_108 = arith.constant 0 : index
    %c1 = arith.constant 1 : index
    %200 = vector.load %arg9[%c0_108, %c1] : memref<8x1222xf32, #tpu.memory_space<vmem>>, vector<8x1152xf32>
    %c0_109 = arith.constant 0 : index
    %c2 = arith.constant 2 : index
    %201 = vector.load %arg9[%c0_109, %c2] : memref<8x1222xf32, #tpu.memory_space<vmem>>, vector<8x1152xf32>
    %c0_110 = arith.constant 0 : index
    %c34 = arith.constant 34 : index
    %202 = vector.load %arg9[%c0_110, %c34] : memref<8x1222xf32, #tpu.memory_space<vmem>>, vector<8x1152xf32>
    %c0_111 = arith.constant 0 : index
    %c35_112 = arith.constant 35 : index
    %203 = vector.load %arg9[%c0_111, %c35_112] : memref<8x1222xf32, #tpu.memory_space<vmem>>, vector<8x1152xf32>
    %c0_113 = arith.constant 0 : index
    %c36 = arith.constant 36 : index
    %204 = vector.load %arg9[%c0_113, %c36] : memref<8x1222xf32, #tpu.memory_space<vmem>>, vector<8x1152xf32>
    %c0_114 = arith.constant 0 : index
    %c68 = arith.constant 68 : index
    %205 = vector.load %arg9[%c0_114, %c68] : memref<8x1222xf32, #tpu.memory_space<vmem>>, vector<8x1152xf32>
    %c0_115 = arith.constant 0 : index
    %c69_116 = arith.constant 69 : index
    %206 = vector.load %arg9[%c0_115, %c69_116] : memref<8x1222xf32, #tpu.memory_space<vmem>>, vector<8x1152xf32>
    %c0_117 = arith.constant 0 : index
    %c70 = arith.constant 70 : index
    %207 = vector.load %arg9[%c0_117, %c70] : memref<8x1222xf32, #tpu.memory_space<vmem>>, vector<8x1152xf32>
    %208 = tpu.concatenate %199, %200, %201, %202, %203, %204, %205, %206, %207 in 0 : vector<8x1152xf32>, vector<8x1152xf32>, vector<8x1152xf32>, vector<8x1152xf32>, vector<8x1152xf32>, vector<8x1152xf32>, vector<8x1152xf32>, vector<8x1152xf32>, vector<8x1152xf32> -> vector<72x1152xf32>
    %c0_118 = arith.constant 0 : index
    %c0_119 = arith.constant 0 : index
    %209 = vector.load %arg3[%c0_118, %c0_119] : memref<8x72xf32, #tpu.memory_space<vmem>>, vector<8x72xf32>
    %cst_120 = arith.constant dense<0.000000e+00> : vector<8x1152xf32>
    %210 = tpu.matmul %209, %208, %cst_120 {dimension_numbers = #tpu.dot_dimension_numbers<[1], [0], [0], [1], [0, 0, 1, 1], [], []>} : vector<8x72xf32>, vector<72x1152xf32>, vector<8x1152xf32> -> vector<8x1152xf32>
    %c0_121 = arith.constant 0 : index
    %c0_122 = arith.constant 0 : index
    %211 = vector.load %arg4[%c0_121, %c0_122] : memref<8x1xf32, #tpu.memory_space<vmem>>, vector<8x1xf32>
    %212 = vector.broadcast %211 : vector<8x1xf32> to vector<8x1152xf32>
    %213 = arith.addf %210, %212 : vector<8x1152xf32>
    %cst_123 = arith.constant 0.000000e+00 : f32
    %214 = vector.broadcast %cst_123 : f32 to vector<8x1152xf32>
    %215 = arith.maximumf %213, %214 : vector<8x1152xf32>
    %216 = vector.broadcast %198 : vector<1x1152xf32> to vector<8x1152xf32>
    %217 = arith.mulf %215, %216 : vector<8x1152xf32>
    %cst_124 = arith.constant 0.000000e+00 : f32
    %218 = vector.broadcast %cst_124 : f32 to vector<8x35xf32>
    %cst_125 = arith.constant 0.000000e+00 : f32
    %219 = vector.broadcast %cst_125 : f32 to vector<8x35xf32>
    %220 = tpu.concatenate %218, %217, %219 in 1 : vector<8x35xf32>, vector<8x1152xf32>, vector<8x35xf32> -> vector<8x1222xf32>
    %221 = vector.extract_strided_slice %220 {offsets = [0, 0], sizes = [8, 1152], strides = [1, 1]} : vector<8x1222xf32> to vector<8x1152xf32>
    %222 = vector.extract_strided_slice %220 {offsets = [0, 1], sizes = [8, 1152], strides = [1, 1]} : vector<8x1222xf32> to vector<8x1152xf32>
    %223 = vector.extract_strided_slice %220 {offsets = [0, 2], sizes = [8, 1152], strides = [1, 1]} : vector<8x1222xf32> to vector<8x1152xf32>
    %224 = vector.extract_strided_slice %220 {offsets = [0, 34], sizes = [8, 1152], strides = [1, 1]} : vector<8x1222xf32> to vector<8x1152xf32>
    %225 = vector.extract_strided_slice %220 {offsets = [0, 35], sizes = [8, 1152], strides = [1, 1]} : vector<8x1222xf32> to vector<8x1152xf32>
    %226 = vector.extract_strided_slice %220 {offsets = [0, 36], sizes = [8, 1152], strides = [1, 1]} : vector<8x1222xf32> to vector<8x1152xf32>
    %227 = vector.extract_strided_slice %220 {offsets = [0, 68], sizes = [8, 1152], strides = [1, 1]} : vector<8x1222xf32> to vector<8x1152xf32>
    %228 = vector.extract_strided_slice %220 {offsets = [0, 69], sizes = [8, 1152], strides = [1, 1]} : vector<8x1222xf32> to vector<8x1152xf32>
    %229 = vector.extract_strided_slice %220 {offsets = [0, 70], sizes = [8, 1152], strides = [1, 1]} : vector<8x1222xf32> to vector<8x1152xf32>
    %230 = tpu.concatenate %221, %222, %223, %224, %225, %226, %227, %228, %229 in 0 : vector<8x1152xf32>, vector<8x1152xf32>, vector<8x1152xf32>, vector<8x1152xf32>, vector<8x1152xf32>, vector<8x1152xf32>, vector<8x1152xf32>, vector<8x1152xf32>, vector<8x1152xf32> -> vector<72x1152xf32>
    %c0_126 = arith.constant 0 : index
    %c0_127 = arith.constant 0 : index
    %231 = vector.load %arg5[%c0_126, %c0_127] : memref<8x72xf32, #tpu.memory_space<vmem>>, vector<8x72xf32>
    %cst_128 = arith.constant dense<0.000000e+00> : vector<8x1152xf32>
    %232 = tpu.matmul %231, %230, %cst_128 {dimension_numbers = #tpu.dot_dimension_numbers<[1], [0], [0], [1], [0, 0, 1, 1], [], []>} : vector<8x72xf32>, vector<72x1152xf32>, vector<8x1152xf32> -> vector<8x1152xf32>
    %c0_129 = arith.constant 0 : index
    %c0_130 = arith.constant 0 : index
    %233 = vector.load %arg6[%c0_129, %c0_130] : memref<8x1xf32, #tpu.memory_space<vmem>>, vector<8x1xf32>
    %234 = vector.broadcast %233 : vector<8x1xf32> to vector<8x1152xf32>
    %235 = arith.addf %232, %234 : vector<8x1152xf32>
    %cst_131 = arith.constant 0.000000e+00 : f32
    %236 = vector.broadcast %cst_131 : f32 to vector<8x1152xf32>
    %237 = arith.maximumf %235, %236 : vector<8x1152xf32>
    %238 = vector.extract_strided_slice %237 {offsets = [0, 0], sizes = [8, 32], strides = [1, 1]} : vector<8x1152xf32> to vector<8x32xf32>
    %c0_132 = arith.constant 0 : index
    %c0_133 = arith.constant 0 : index
    %c0_134 = arith.constant 0 : index
    %c0_135 = arith.constant 0 : index
    %239 = vector.load %arg8[%c0_132, %c0_133, %c0_134, %c0_135] : memref<1x8x32x32xf32, #tpu.memory_space<vmem>>, vector<1x8x1x32xf32>
    %240 = vector.shape_cast %239 : vector<1x8x1x32xf32> to vector<8x32xf32>
    %241 = vector.shape_cast %238 : vector<8x32xf32> to vector<1x8x1x32xf32>
    tpu.vector_store %arg8[%c0_132, %c0_133, %c0_134, %c0_135], %241 {strides = array<i32>} : memref<1x8x32x32xf32, #tpu.memory_space<vmem>>, vector<1x8x1x32xf32>,
    %242 = vector.extract_strided_slice %237 {offsets = [0, 34], sizes = [8, 32], strides = [1, 1]} : vector<8x1152xf32> to vector<8x32xf32>
    %c0_136 = arith.constant 0 : index
    %c0_137 = arith.constant 0 : index
    %c1_138 = arith.constant 1 : index
    %c0_139 = arith.constant 0 : index
    %243 = vector.load %arg8[%c0_136, %c0_137, %c1_138, %c0_139] : memref<1x8x32x32xf32, #tpu.memory_space<vmem>>, vector<1x8x1x32xf32>
    %244 = vector.shape_cast %243 : vector<1x8x1x32xf32> to vector<8x32xf32>
    %245 = vector.shape_cast %242 : vector<8x32xf32> to vector<1x8x1x32xf32>
    tpu.vector_store %arg8[%c0_136, %c0_137, %c1_138, %c0_139], %245 {strides = array<i32>} : memref<1x8x32x32xf32, #tpu.memory_space<vmem>>, vector<1x8x1x32xf32>,
    %246 = vector.extract_strided_slice %237 {offsets = [0, 68], sizes = [8, 32], strides = [1, 1]} : vector<8x1152xf32> to vector<8x32xf32>
    %c0_140 = arith.constant 0 : index
    %c0_141 = arith.constant 0 : index
    %c2_142 = arith.constant 2 : index
    %c0_143 = arith.constant 0 : index
    %247 = vector.load %arg8[%c0_140, %c0_141, %c2_142, %c0_143] : memref<1x8x32x32xf32, #tpu.memory_space<vmem>>, vector<1x8x1x32xf32>
    %248 = vector.shape_cast %247 : vector<1x8x1x32xf32> to vector<8x32xf32>
    %249 = vector.shape_cast %246 : vector<8x32xf32> to vector<1x8x1x32xf32>
    tpu.vector_store %arg8[%c0_140, %c0_141, %c2_142, %c0_143], %249 {strides = array<i32>} : memref<1x8x32x32xf32, #tpu.memory_space<vmem>>, vector<1x8x1x32xf32>,
    %250 = vector.extract_strided_slice %237 {offsets = [0, 102], sizes = [8, 32], strides = [1, 1]} : vector<8x1152xf32> to vector<8x32xf32>
    %c0_144 = arith.constant 0 : index
    %c0_145 = arith.constant 0 : index
    %c3 = arith.constant 3 : index
    %c0_146 = arith.constant 0 : index
    %251 = vector.load %arg8[%c0_144, %c0_145, %c3, %c0_146] : memref<1x8x32x32xf32, #tpu.memory_space<vmem>>, vector<1x8x1x32xf32>
    %252 = vector.shape_cast %251 : vector<1x8x1x32xf32> to vector<8x32xf32>
    %253 = vector.shape_cast %250 : vector<8x32xf32> to vector<1x8x1x32xf32>
    tpu.vector_store %arg8[%c0_144, %c0_145, %c3, %c0_146], %253 {strides = array<i32>} : memref<1x8x32x32xf32, #tpu.memory_space<vmem>>, vector<1x8x1x32xf32>,
    %254 = vector.extract_strided_slice %237 {offsets = [0, 136], sizes = [8, 32], strides = [1, 1]} : vector<8x1152xf32> to vector<8x32xf32>
    %c0_147 = arith.constant 0 : index
    %c0_148 = arith.constant 0 : index
    %c4_149 = arith.constant 4 : index
    %c0_150 = arith.constant 0 : index
    %255 = vector.load %arg8[%c0_147, %c0_148, %c4_149, %c0_150] : memref<1x8x32x32xf32, #tpu.memory_space<vmem>>, vector<1x8x1x32xf32>
    %256 = vector.shape_cast %255 : vector<1x8x1x32xf32> to vector<8x32xf32>
    %257 = vector.shape_cast %254 : vector<8x32xf32> to vector<1x8x1x32xf32>
    tpu.vector_store %arg8[%c0_147, %c0_148, %c4_149, %c0_150], %257 {strides = array<i32>} : memref<1x8x32x32xf32, #tpu.memory_space<vmem>>, vector<1x8x1x32xf32>,
    %258 = vector.extract_strided_slice %237 {offsets = [0, 170], sizes = [8, 32], strides = [1, 1]} : vector<8x1152xf32> to vector<8x32xf32>
    %c0_151 = arith.constant 0 : index
    %c0_152 = arith.constant 0 : index
    %c5 = arith.constant 5 : index
    %c0_153 = arith.constant 0 : index
    %259 = vector.load %arg8[%c0_151, %c0_152, %c5, %c0_153] : memref<1x8x32x32xf32, #tpu.memory_space<vmem>>, vector<1x8x1x32xf32>
    %260 = vector.shape_cast %259 : vector<1x8x1x32xf32> to vector<8x32xf32>
    %261 = vector.shape_cast %258 : vector<8x32xf32> to vector<1x8x1x32xf32>
    tpu.vector_store %arg8[%c0_151, %c0_152, %c5, %c0_153], %261 {strides = array<i32>} : memref<1x8x32x32xf32, #tpu.memory_space<vmem>>, vector<1x8x1x32xf32>,
    %262 = vector.extract_strided_slice %237 {offsets = [0, 204], sizes = [8, 32], strides = [1, 1]} : vector<8x1152xf32> to vector<8x32xf32>
    %c0_154 = arith.constant 0 : index
    %c0_155 = arith.constant 0 : index
    %c6 = arith.constant 6 : index
    %c0_156 = arith.constant 0 : index
    %263 = vector.load %arg8[%c0_154, %c0_155, %c6, %c0_156] : memref<1x8x32x32xf32, #tpu.memory_space<vmem>>, vector<1x8x1x32xf32>
    %264 = vector.shape_cast %263 : vector<1x8x1x32xf32> to vector<8x32xf32>
    %265 = vector.shape_cast %262 : vector<8x32xf32> to vector<1x8x1x32xf32>
    tpu.vector_store %arg8[%c0_154, %c0_155, %c6, %c0_156], %265 {strides = array<i32>} : memref<1x8x32x32xf32, #tpu.memory_space<vmem>>, vector<1x8x1x32xf32>,
    %266 = vector.extract_strided_slice %237 {offsets = [0, 238], sizes = [8, 32], strides = [1, 1]} : vector<8x1152xf32> to vector<8x32xf32>
    %c0_157 = arith.constant 0 : index
    %c0_158 = arith.constant 0 : index
    %c7 = arith.constant 7 : index
    %c0_159 = arith.constant 0 : index
    %267 = vector.load %arg8[%c0_157, %c0_158, %c7, %c0_159] : memref<1x8x32x32xf32, #tpu.memory_space<vmem>>, vector<1x8x1x32xf32>
    %268 = vector.shape_cast %267 : vector<1x8x1x32xf32> to vector<8x32xf32>
    %269 = vector.shape_cast %266 : vector<8x32xf32> to vector<1x8x1x32xf32>
    tpu.vector_store %arg8[%c0_157, %c0_158, %c7, %c0_159], %269 {strides = array<i32>} : memref<1x8x32x32xf32, #tpu.memory_space<vmem>>, vector<1x8x1x32xf32>,
    %270 = vector.extract_strided_slice %237 {offsets = [0, 272], sizes = [8, 32], strides = [1, 1]} : vector<8x1152xf32> to vector<8x32xf32>
    %c0_160 = arith.constant 0 : index
    %c0_161 = arith.constant 0 : index
    %c8 = arith.constant 8 : index
    %c0_162 = arith.constant 0 : index
    %271 = vector.load %arg8[%c0_160, %c0_161, %c8, %c0_162] : memref<1x8x32x32xf32, #tpu.memory_space<vmem>>, vector<1x8x1x32xf32>
    %272 = vector.shape_cast %271 : vector<1x8x1x32xf32> to vector<8x32xf32>
    %273 = vector.shape_cast %270 : vector<8x32xf32> to vector<1x8x1x32xf32>
    tpu.vector_store %arg8[%c0_160, %c0_161, %c8, %c0_162], %273 {strides = array<i32>} : memref<1x8x32x32xf32, #tpu.memory_space<vmem>>, vector<1x8x1x32xf32>,
    %274 = vector.extract_strided_slice %237 {offsets = [0, 306], sizes = [8, 32], strides = [1, 1]} : vector<8x1152xf32> to vector<8x32xf32>
    %c0_163 = arith.constant 0 : index
    %c0_164 = arith.constant 0 : index
    %c9 = arith.constant 9 : index
    %c0_165 = arith.constant 0 : index
    %275 = vector.load %arg8[%c0_163, %c0_164, %c9, %c0_165] : memref<1x8x32x32xf32, #tpu.memory_space<vmem>>, vector<1x8x1x32xf32>
    %276 = vector.shape_cast %275 : vector<1x8x1x32xf32> to vector<8x32xf32>
    %277 = vector.shape_cast %274 : vector<8x32xf32> to vector<1x8x1x32xf32>
    tpu.vector_store %arg8[%c0_163, %c0_164, %c9, %c0_165], %277 {strides = array<i32>} : memref<1x8x32x32xf32, #tpu.memory_space<vmem>>, vector<1x8x1x32xf32>,
    %278 = vector.extract_strided_slice %237 {offsets = [0, 340], sizes = [8, 32], strides = [1, 1]} : vector<8x1152xf32> to vector<8x32xf32>
    %c0_166 = arith.constant 0 : index
    %c0_167 = arith.constant 0 : index
    %c10 = arith.constant 10 : index
    %c0_168 = arith.constant 0 : index
    %279 = vector.load %arg8[%c0_166, %c0_167, %c10, %c0_168] : memref<1x8x32x32xf32, #tpu.memory_space<vmem>>, vector<1x8x1x32xf32>
    %280 = vector.shape_cast %279 : vector<1x8x1x32xf32> to vector<8x32xf32>
    %281 = vector.shape_cast %278 : vector<8x32xf32> to vector<1x8x1x32xf32>
    tpu.vector_store %arg8[%c0_166, %c0_167, %c10, %c0_168], %281 {strides = array<i32>} : memref<1x8x32x32xf32, #tpu.memory_space<vmem>>, vector<1x8x1x32xf32>,
    %282 = vector.extract_strided_slice %237 {offsets = [0, 374], sizes = [8, 32], strides = [1, 1]} : vector<8x1152xf32> to vector<8x32xf32>
    %c0_169 = arith.constant 0 : index
    %c0_170 = arith.constant 0 : index
    %c11 = arith.constant 11 : index
    %c0_171 = arith.constant 0 : index
    %283 = vector.load %arg8[%c0_169, %c0_170, %c11, %c0_171] : memref<1x8x32x32xf32, #tpu.memory_space<vmem>>, vector<1x8x1x32xf32>
    %284 = vector.shape_cast %283 : vector<1x8x1x32xf32> to vector<8x32xf32>
    %285 = vector.shape_cast %282 : vector<8x32xf32> to vector<1x8x1x32xf32>
    tpu.vector_store %arg8[%c0_169, %c0_170, %c11, %c0_171], %285 {strides = array<i32>} : memref<1x8x32x32xf32, #tpu.memory_space<vmem>>, vector<1x8x1x32xf32>,
    %286 = vector.extract_strided_slice %237 {offsets = [0, 408], sizes = [8, 32], strides = [1, 1]} : vector<8x1152xf32> to vector<8x32xf32>
    %c0_172 = arith.constant 0 : index
    %c0_173 = arith.constant 0 : index
    %c12 = arith.constant 12 : index
    %c0_174 = arith.constant 0 : index
    %287 = vector.load %arg8[%c0_172, %c0_173, %c12, %c0_174] : memref<1x8x32x32xf32, #tpu.memory_space<vmem>>, vector<1x8x1x32xf32>
    %288 = vector.shape_cast %287 : vector<1x8x1x32xf32> to vector<8x32xf32>
    %289 = vector.shape_cast %286 : vector<8x32xf32> to vector<1x8x1x32xf32>
    tpu.vector_store %arg8[%c0_172, %c0_173, %c12, %c0_174], %289 {strides = array<i32>} : memref<1x8x32x32xf32, #tpu.memory_space<vmem>>, vector<1x8x1x32xf32>,
    %290 = vector.extract_strided_slice %237 {offsets = [0, 442], sizes = [8, 32], strides = [1, 1]} : vector<8x1152xf32> to vector<8x32xf32>
    %c0_175 = arith.constant 0 : index
    %c0_176 = arith.constant 0 : index
    %c13 = arith.constant 13 : index
    %c0_177 = arith.constant 0 : index
    %291 = vector.load %arg8[%c0_175, %c0_176, %c13, %c0_177] : memref<1x8x32x32xf32, #tpu.memory_space<vmem>>, vector<1x8x1x32xf32>
    %292 = vector.shape_cast %291 : vector<1x8x1x32xf32> to vector<8x32xf32>
    %293 = vector.shape_cast %290 : vector<8x32xf32> to vector<1x8x1x32xf32>
    tpu.vector_store %arg8[%c0_175, %c0_176, %c13, %c0_177], %293 {strides = array<i32>} : memref<1x8x32x32xf32, #tpu.memory_space<vmem>>, vector<1x8x1x32xf32>,
    %294 = vector.extract_strided_slice %237 {offsets = [0, 476], sizes = [8, 32], strides = [1, 1]} : vector<8x1152xf32> to vector<8x32xf32>
    %c0_178 = arith.constant 0 : index
    %c0_179 = arith.constant 0 : index
    %c14 = arith.constant 14 : index
    %c0_180 = arith.constant 0 : index
    %295 = vector.load %arg8[%c0_178, %c0_179, %c14, %c0_180] : memref<1x8x32x32xf32, #tpu.memory_space<vmem>>, vector<1x8x1x32xf32>
    %296 = vector.shape_cast %295 : vector<1x8x1x32xf32> to vector<8x32xf32>
    %297 = vector.shape_cast %294 : vector<8x32xf32> to vector<1x8x1x32xf32>
    tpu.vector_store %arg8[%c0_178, %c0_179, %c14, %c0_180], %297 {strides = array<i32>} : memref<1x8x32x32xf32, #tpu.memory_space<vmem>>, vector<1x8x1x32xf32>,
    %298 = vector.extract_strided_slice %237 {offsets = [0, 510], sizes = [8, 32], strides = [1, 1]} : vector<8x1152xf32> to vector<8x32xf32>
    %c0_181 = arith.constant 0 : index
    %c0_182 = arith.constant 0 : index
    %c15 = arith.constant 15 : index
    %c0_183 = arith.constant 0 : index
    %299 = vector.load %arg8[%c0_181, %c0_182, %c15, %c0_183] : memref<1x8x32x32xf32, #tpu.memory_space<vmem>>, vector<1x8x1x32xf32>
    %300 = vector.shape_cast %299 : vector<1x8x1x32xf32> to vector<8x32xf32>
    %301 = vector.shape_cast %298 : vector<8x32xf32> to vector<1x8x1x32xf32>
    tpu.vector_store %arg8[%c0_181, %c0_182, %c15, %c0_183], %301 {strides = array<i32>} : memref<1x8x32x32xf32, #tpu.memory_space<vmem>>, vector<1x8x1x32xf32>,
    %302 = vector.extract_strided_slice %237 {offsets = [0, 544], sizes = [8, 32], strides = [1, 1]} : vector<8x1152xf32> to vector<8x32xf32>
    %c0_184 = arith.constant 0 : index
    %c0_185 = arith.constant 0 : index
    %c16 = arith.constant 16 : index
    %c0_186 = arith.constant 0 : index
    %303 = vector.load %arg8[%c0_184, %c0_185, %c16, %c0_186] : memref<1x8x32x32xf32, #tpu.memory_space<vmem>>, vector<1x8x1x32xf32>
    %304 = vector.shape_cast %303 : vector<1x8x1x32xf32> to vector<8x32xf32>
    %305 = vector.shape_cast %302 : vector<8x32xf32> to vector<1x8x1x32xf32>
    tpu.vector_store %arg8[%c0_184, %c0_185, %c16, %c0_186], %305 {strides = array<i32>} : memref<1x8x32x32xf32, #tpu.memory_space<vmem>>, vector<1x8x1x32xf32>,
    %306 = vector.extract_strided_slice %237 {offsets = [0, 578], sizes = [8, 32], strides = [1, 1]} : vector<8x1152xf32> to vector<8x32xf32>
    %c0_187 = arith.constant 0 : index
    %c0_188 = arith.constant 0 : index
    %c17 = arith.constant 17 : index
    %c0_189 = arith.constant 0 : index
    %307 = vector.load %arg8[%c0_187, %c0_188, %c17, %c0_189] : memref<1x8x32x32xf32, #tpu.memory_space<vmem>>, vector<1x8x1x32xf32>
    %308 = vector.shape_cast %307 : vector<1x8x1x32xf32> to vector<8x32xf32>
    %309 = vector.shape_cast %306 : vector<8x32xf32> to vector<1x8x1x32xf32>
    tpu.vector_store %arg8[%c0_187, %c0_188, %c17, %c0_189], %309 {strides = array<i32>} : memref<1x8x32x32xf32, #tpu.memory_space<vmem>>, vector<1x8x1x32xf32>,
    %310 = vector.extract_strided_slice %237 {offsets = [0, 612], sizes = [8, 32], strides = [1, 1]} : vector<8x1152xf32> to vector<8x32xf32>
    %c0_190 = arith.constant 0 : index
    %c0_191 = arith.constant 0 : index
    %c18 = arith.constant 18 : index
    %c0_192 = arith.constant 0 : index
    %311 = vector.load %arg8[%c0_190, %c0_191, %c18, %c0_192] : memref<1x8x32x32xf32, #tpu.memory_space<vmem>>, vector<1x8x1x32xf32>
    %312 = vector.shape_cast %311 : vector<1x8x1x32xf32> to vector<8x32xf32>
    %313 = vector.shape_cast %310 : vector<8x32xf32> to vector<1x8x1x32xf32>
    tpu.vector_store %arg8[%c0_190, %c0_191, %c18, %c0_192], %313 {strides = array<i32>} : memref<1x8x32x32xf32, #tpu.memory_space<vmem>>, vector<1x8x1x32xf32>,
    %314 = vector.extract_strided_slice %237 {offsets = [0, 646], sizes = [8, 32], strides = [1, 1]} : vector<8x1152xf32> to vector<8x32xf32>
    %c0_193 = arith.constant 0 : index
    %c0_194 = arith.constant 0 : index
    %c19 = arith.constant 19 : index
    %c0_195 = arith.constant 0 : index
    %315 = vector.load %arg8[%c0_193, %c0_194, %c19, %c0_195] : memref<1x8x32x32xf32, #tpu.memory_space<vmem>>, vector<1x8x1x32xf32>
    %316 = vector.shape_cast %315 : vector<1x8x1x32xf32> to vector<8x32xf32>
    %317 = vector.shape_cast %314 : vector<8x32xf32> to vector<1x8x1x32xf32>
    tpu.vector_store %arg8[%c0_193, %c0_194, %c19, %c0_195], %317 {strides = array<i32>} : memref<1x8x32x32xf32, #tpu.memory_space<vmem>>, vector<1x8x1x32xf32>,
    %318 = vector.extract_strided_slice %237 {offsets = [0, 680], sizes = [8, 32], strides = [1, 1]} : vector<8x1152xf32> to vector<8x32xf32>
    %c0_196 = arith.constant 0 : index
    %c0_197 = arith.constant 0 : index
    %c20 = arith.constant 20 : index
    %c0_198 = arith.constant 0 : index
    %319 = vector.load %arg8[%c0_196, %c0_197, %c20, %c0_198] : memref<1x8x32x32xf32, #tpu.memory_space<vmem>>, vector<1x8x1x32xf32>
    %320 = vector.shape_cast %319 : vector<1x8x1x32xf32> to vector<8x32xf32>
    %321 = vector.shape_cast %318 : vector<8x32xf32> to vector<1x8x1x32xf32>
    tpu.vector_store %arg8[%c0_196, %c0_197, %c20, %c0_198], %321 {strides = array<i32>} : memref<1x8x32x32xf32, #tpu.memory_space<vmem>>, vector<1x8x1x32xf32>,
    %322 = vector.extract_strided_slice %237 {offsets = [0, 714], sizes = [8, 32], strides = [1, 1]} : vector<8x1152xf32> to vector<8x32xf32>
    %c0_199 = arith.constant 0 : index
    %c0_200 = arith.constant 0 : index
    %c21 = arith.constant 21 : index
    %c0_201 = arith.constant 0 : index
    %323 = vector.load %arg8[%c0_199, %c0_200, %c21, %c0_201] : memref<1x8x32x32xf32, #tpu.memory_space<vmem>>, vector<1x8x1x32xf32>
    %324 = vector.shape_cast %323 : vector<1x8x1x32xf32> to vector<8x32xf32>
    %325 = vector.shape_cast %322 : vector<8x32xf32> to vector<1x8x1x32xf32>
    tpu.vector_store %arg8[%c0_199, %c0_200, %c21, %c0_201], %325 {strides = array<i32>} : memref<1x8x32x32xf32, #tpu.memory_space<vmem>>, vector<1x8x1x32xf32>,
    %326 = vector.extract_strided_slice %237 {offsets = [0, 748], sizes = [8, 32], strides = [1, 1]} : vector<8x1152xf32> to vector<8x32xf32>
    %c0_202 = arith.constant 0 : index
    %c0_203 = arith.constant 0 : index
    %c22 = arith.constant 22 : index
    %c0_204 = arith.constant 0 : index
    %327 = vector.load %arg8[%c0_202, %c0_203, %c22, %c0_204] : memref<1x8x32x32xf32, #tpu.memory_space<vmem>>, vector<1x8x1x32xf32>
    %328 = vector.shape_cast %327 : vector<1x8x1x32xf32> to vector<8x32xf32>
    %329 = vector.shape_cast %326 : vector<8x32xf32> to vector<1x8x1x32xf32>
    tpu.vector_store %arg8[%c0_202, %c0_203, %c22, %c0_204], %329 {strides = array<i32>} : memref<1x8x32x32xf32, #tpu.memory_space<vmem>>, vector<1x8x1x32xf32>,
    %330 = vector.extract_strided_slice %237 {offsets = [0, 782], sizes = [8, 32], strides = [1, 1]} : vector<8x1152xf32> to vector<8x32xf32>
    %c0_205 = arith.constant 0 : index
    %c0_206 = arith.constant 0 : index
    %c23 = arith.constant 23 : index
    %c0_207 = arith.constant 0 : index
    %331 = vector.load %arg8[%c0_205, %c0_206, %c23, %c0_207] : memref<1x8x32x32xf32, #tpu.memory_space<vmem>>, vector<1x8x1x32xf32>
    %332 = vector.shape_cast %331 : vector<1x8x1x32xf32> to vector<8x32xf32>
    %333 = vector.shape_cast %330 : vector<8x32xf32> to vector<1x8x1x32xf32>
    tpu.vector_store %arg8[%c0_205, %c0_206, %c23, %c0_207], %333 {strides = array<i32>} : memref<1x8x32x32xf32, #tpu.memory_space<vmem>>, vector<1x8x1x32xf32>,
    %334 = vector.extract_strided_slice %237 {offsets = [0, 816], sizes = [8, 32], strides = [1, 1]} : vector<8x1152xf32> to vector<8x32xf32>
    %c0_208 = arith.constant 0 : index
    %c0_209 = arith.constant 0 : index
    %c24 = arith.constant 24 : index
    %c0_210 = arith.constant 0 : index
    %335 = vector.load %arg8[%c0_208, %c0_209, %c24, %c0_210] : memref<1x8x32x32xf32, #tpu.memory_space<vmem>>, vector<1x8x1x32xf32>
    %336 = vector.shape_cast %335 : vector<1x8x1x32xf32> to vector<8x32xf32>
    %337 = vector.shape_cast %334 : vector<8x32xf32> to vector<1x8x1x32xf32>
    tpu.vector_store %arg8[%c0_208, %c0_209, %c24, %c0_210], %337 {strides = array<i32>} : memref<1x8x32x32xf32, #tpu.memory_space<vmem>>, vector<1x8x1x32xf32>,
    %338 = vector.extract_strided_slice %237 {offsets = [0, 850], sizes = [8, 32], strides = [1, 1]} : vector<8x1152xf32> to vector<8x32xf32>
    %c0_211 = arith.constant 0 : index
    %c0_212 = arith.constant 0 : index
    %c25 = arith.constant 25 : index
    %c0_213 = arith.constant 0 : index
    %339 = vector.load %arg8[%c0_211, %c0_212, %c25, %c0_213] : memref<1x8x32x32xf32, #tpu.memory_space<vmem>>, vector<1x8x1x32xf32>
    %340 = vector.shape_cast %339 : vector<1x8x1x32xf32> to vector<8x32xf32>
    %341 = vector.shape_cast %338 : vector<8x32xf32> to vector<1x8x1x32xf32>
    tpu.vector_store %arg8[%c0_211, %c0_212, %c25, %c0_213], %341 {strides = array<i32>} : memref<1x8x32x32xf32, #tpu.memory_space<vmem>>, vector<1x8x1x32xf32>,
    %342 = vector.extract_strided_slice %237 {offsets = [0, 884], sizes = [8, 32], strides = [1, 1]} : vector<8x1152xf32> to vector<8x32xf32>
    %c0_214 = arith.constant 0 : index
    %c0_215 = arith.constant 0 : index
    %c26 = arith.constant 26 : index
    %c0_216 = arith.constant 0 : index
    %343 = vector.load %arg8[%c0_214, %c0_215, %c26, %c0_216] : memref<1x8x32x32xf32, #tpu.memory_space<vmem>>, vector<1x8x1x32xf32>
    %344 = vector.shape_cast %343 : vector<1x8x1x32xf32> to vector<8x32xf32>
    %345 = vector.shape_cast %342 : vector<8x32xf32> to vector<1x8x1x32xf32>
    tpu.vector_store %arg8[%c0_214, %c0_215, %c26, %c0_216], %345 {strides = array<i32>} : memref<1x8x32x32xf32, #tpu.memory_space<vmem>>, vector<1x8x1x32xf32>,
    %346 = vector.extract_strided_slice %237 {offsets = [0, 918], sizes = [8, 32], strides = [1, 1]} : vector<8x1152xf32> to vector<8x32xf32>
    %c0_217 = arith.constant 0 : index
    %c0_218 = arith.constant 0 : index
    %c27 = arith.constant 27 : index
    %c0_219 = arith.constant 0 : index
    %347 = vector.load %arg8[%c0_217, %c0_218, %c27, %c0_219] : memref<1x8x32x32xf32, #tpu.memory_space<vmem>>, vector<1x8x1x32xf32>
    %348 = vector.shape_cast %347 : vector<1x8x1x32xf32> to vector<8x32xf32>
    %349 = vector.shape_cast %346 : vector<8x32xf32> to vector<1x8x1x32xf32>
    tpu.vector_store %arg8[%c0_217, %c0_218, %c27, %c0_219], %349 {strides = array<i32>} : memref<1x8x32x32xf32, #tpu.memory_space<vmem>>, vector<1x8x1x32xf32>,
    %350 = vector.extract_strided_slice %237 {offsets = [0, 952], sizes = [8, 32], strides = [1, 1]} : vector<8x1152xf32> to vector<8x32xf32>
    %c0_220 = arith.constant 0 : index
    %c0_221 = arith.constant 0 : index
    %c28 = arith.constant 28 : index
    %c0_222 = arith.constant 0 : index
    %351 = vector.load %arg8[%c0_220, %c0_221, %c28, %c0_222] : memref<1x8x32x32xf32, #tpu.memory_space<vmem>>, vector<1x8x1x32xf32>
    %352 = vector.shape_cast %351 : vector<1x8x1x32xf32> to vector<8x32xf32>
    %353 = vector.shape_cast %350 : vector<8x32xf32> to vector<1x8x1x32xf32>
    tpu.vector_store %arg8[%c0_220, %c0_221, %c28, %c0_222], %353 {strides = array<i32>} : memref<1x8x32x32xf32, #tpu.memory_space<vmem>>, vector<1x8x1x32xf32>,
    %354 = vector.extract_strided_slice %237 {offsets = [0, 986], sizes = [8, 32], strides = [1, 1]} : vector<8x1152xf32> to vector<8x32xf32>
    %c0_223 = arith.constant 0 : index
    %c0_224 = arith.constant 0 : index
    %c29 = arith.constant 29 : index
    %c0_225 = arith.constant 0 : index
    %355 = vector.load %arg8[%c0_223, %c0_224, %c29, %c0_225] : memref<1x8x32x32xf32, #tpu.memory_space<vmem>>, vector<1x8x1x32xf32>
    %356 = vector.shape_cast %355 : vector<1x8x1x32xf32> to vector<8x32xf32>
    %357 = vector.shape_cast %354 : vector<8x32xf32> to vector<1x8x1x32xf32>
    tpu.vector_store %arg8[%c0_223, %c0_224, %c29, %c0_225], %357 {strides = array<i32>} : memref<1x8x32x32xf32, #tpu.memory_space<vmem>>, vector<1x8x1x32xf32>,
    %358 = vector.extract_strided_slice %237 {offsets = [0, 1020], sizes = [8, 32], strides = [1, 1]} : vector<8x1152xf32> to vector<8x32xf32>
    %c0_226 = arith.constant 0 : index
    %c0_227 = arith.constant 0 : index
    %c30 = arith.constant 30 : index
    %c0_228 = arith.constant 0 : index
    %359 = vector.load %arg8[%c0_226, %c0_227, %c30, %c0_228] : memref<1x8x32x32xf32, #tpu.memory_space<vmem>>, vector<1x8x1x32xf32>
    %360 = vector.shape_cast %359 : vector<1x8x1x32xf32> to vector<8x32xf32>
    %361 = vector.shape_cast %358 : vector<8x32xf32> to vector<1x8x1x32xf32>
    tpu.vector_store %arg8[%c0_226, %c0_227, %c30, %c0_228], %361 {strides = array<i32>} : memref<1x8x32x32xf32, #tpu.memory_space<vmem>>, vector<1x8x1x32xf32>,
    %362 = vector.extract_strided_slice %237 {offsets = [0, 1054], sizes = [8, 32], strides = [1, 1]} : vector<8x1152xf32> to vector<8x32xf32>
    %c0_229 = arith.constant 0 : index
    %c0_230 = arith.constant 0 : index
    %c31 = arith.constant 31 : index
    %c0_231 = arith.constant 0 : index
    %363 = vector.load %arg8[%c0_229, %c0_230, %c31, %c0_231] : memref<1x8x32x32xf32, #tpu.memory_space<vmem>>, vector<1x8x1x32xf32>
    %364 = vector.shape_cast %363 : vector<1x8x1x32xf32> to vector<8x32xf32>
    %365 = vector.shape_cast %362 : vector<8x32xf32> to vector<1x8x1x32xf32>
    tpu.vector_store %arg8[%c0_229, %c0_230, %c31, %c0_231], %365 {strides = array<i32>} : memref<1x8x32x32xf32, #tpu.memory_space<vmem>>, vector<1x8x1x32xf32>,
    return
  }
  func.func @transform_0(%arg0: i32) -> (i32, i32, i32, i32) {
    %c0_i32 = arith.constant 0 : i32
    %c0_i32_0 = arith.constant 0 : i32
    %c0_i32_1 = arith.constant 0 : i32
    %c0_i32_2 = arith.constant 0 : i32
    return %arg0, %c0_i32, %c0_i32_0, %c0_i32_1 : i32, i32, i32, i32
  }
  func.func @transform_1(%arg0: i32) -> (i32, i32, i32, i32) {
    %c0_i32 = arith.constant 0 : i32
    %c0_i32_0 = arith.constant 0 : i32
    %c0_i32_1 = arith.constant 0 : i32
    %c0_i32_2 = arith.constant 0 : i32
    return %arg0, %c0_i32, %c0_i32_0, %c0_i32_1 : i32, i32, i32, i32
  }
  func.func @transform_2(%arg0: i32) -> (i32, i32) {
    %c0_i32 = arith.constant 0 : i32
    %c0_i32_0 = arith.constant 0 : i32
    %c0_i32_1 = arith.constant 0 : i32
    return %c0_i32, %c0_i32_0 : i32, i32
  }
  func.func @transform_3(%arg0: i32) -> (i32, i32) {
    %c0_i32 = arith.constant 0 : i32
    %c0_i32_0 = arith.constant 0 : i32
    %c0_i32_1 = arith.constant 0 : i32
    return %c0_i32, %c0_i32_0 : i32, i32
  }
  func.func @transform_4(%arg0: i32) -> (i32, i32) {
    %c0_i32 = arith.constant 0 : i32
    %c0_i32_0 = arith.constant 0 : i32
    %c0_i32_1 = arith.constant 0 : i32
    return %c0_i32, %c0_i32_0 : i32, i32
  }
  func.func @transform_5(%arg0: i32) -> (i32, i32) {
    %c0_i32 = arith.constant 0 : i32
    %c0_i32_0 = arith.constant 0 : i32
    %c0_i32_1 = arith.constant 0 : i32
    return %c0_i32, %c0_i32_0 : i32, i32
  }
  func.func @transform_6(%arg0: i32) -> (i32, i32) {
    %c0_i32 = arith.constant 0 : i32
    %c0_i32_0 = arith.constant 0 : i32
    %c0_i32_1 = arith.constant 0 : i32
    return %c0_i32, %c0_i32_0 : i32, i32
  }
  func.func @transform_7(%arg0: i32) -> (i32, i32, i32, i32) {
    %c0_i32 = arith.constant 0 : i32
    %c0_i32_0 = arith.constant 0 : i32
    %c0_i32_1 = arith.constant 0 : i32
    %c0_i32_2 = arith.constant 0 : i32
    return %arg0, %c0_i32, %c0_i32_0, %c0_i32_1 : i32, i32, i32, i32
  }
}

</mosaic_0001>

<bundles_post_ra>
// kernel: tpu_custom_call.1
= control target key start
LH: loop header
LB: loop body
LE: loop exit
PB: predicated region body
PF: predicated region fallthrough
CT: control target
= control target key end

     0   :  { %6 = vsyncpa [#allocation3], 0  ;;  %s106_s0 = inlined_call_operand.hbm [shape: f32[8,128], index: 0, kind: input, shape index: {}]   ;;  %s107_s1 = inlined_call_operand.hbm [shape: f32[8,128], index: 1, kind: output, shape index: {}]  }
   0x1   :  { %7 = vsyncpa [#allocation4], 0  ;;  %s87_s6 = smov [#allocation2]  }
   0x2   :  { %s14_s7 = sshll.u32 %s87_s6, 4  ;;  %s15_s7 = int_to_ptr.vmem [resolvable:$true] %s14_s7 }
   0x3   :  { %s51_s8 = scalar_lea.vmem %s15_s7, 128  ;;  %p56_p1 = scmp.lt.s32.totalorder %s15_s7, %s15_s7 }
   0x4   :  { %p52_p0 = scmp.ne.s32.totalorder %s15_s7, %s51_s8  ;;  %p57_p2 = scmp.lt.s32.totalorder %s51_s8, %s51_s8 }
   0x6   :  { %p58_p3 = por %p57_p2, %p56_p1 }
   0x8   :  { %p59_p4 = pnand %p58_p3, %p52_p0 }
   0xa   :  { %62 = shalt.err (!%p59_p4)
}
   0xb   :  { %17 = dma.hbm_to_vmem [thread:$0]  %s106_s0, 128, %s15_s7, [#allocation3]  }
   0xc   :  { %83 = dma.done.wait [#allocation3], 128  }
   0xd   :  { %84 = vsyncadd [#allocation3], 4294967168  ;;  %v21_v0 = vld [vmem:[#allocation2] sm:$0xff]  ;;  %s88_s11 = smov 1   ;;  %s89_s12 = smov [#allocation5]  }
   0xe   :  { %22 = vrot.lane.b32.xlu0 %v21_v0, %s88_s11  ;;  %s31_s13 = sshll.u32 %s89_s12, 4  ;;  %s32_s13 = int_to_ptr.vmem [resolvable:$true] %s31_s13 }
   0xf   :  { %s63_s14 = scalar_lea.vmem %s32_s13, 128  ;;  %p68_p6 = scmp.lt.s32.totalorder %s32_s13, %s32_s13 }
  0x10   :  { %p64_p5 = scmp.ne.s32.totalorder %s32_s13, %s63_s14  ;;  %p69_p7 = scmp.lt.s32.totalorder %s63_s14, %s63_s14 }
  0x12   :  { %p70_p8 = por %p69_p7, %p68_p6 }
  0x14   :  { %p71_p9 = pnand %p70_p8, %p64_p5 }
  0x80   :  { %v23_v1 = vpop.permute.xlu0 %22 }
  0x81   :  { %24 = vst [vmem:[#allocation5] sm:$0xff] %v23_v1 }
  0x82   :  { %74 = shalt.err (!%p71_p9)
}
  0x83   :  { %34 = dma.vmem_to_hbm [thread:$0]  %s32_s13, 128, %s107_s1, [#allocation4]  }
  0x84   :  { %85 = dma.done.wait [#allocation4], 128  }
  0x85   :  { %86 = vsyncadd [#allocation4], 4294967168 }
  0x86   :  { %38 = vsyncpa [#allocation3], 1 }
  0x87   :  { %39 = vsyncpa [#allocation4], 1 }

// kernel: tpu_custom_call.1
= control target key start
LH: loop header
LB: loop body
LE: loop exit
PB: predicated region body
PF: predicated region fallthrough
CT: control target
= control target key end

     0   :  { %s9401_s0 = inlined_call_operand.hbm [shape: f32[2,4,16,32], index: 0, kind: input, shape index: {}]   ;;  %s9402_s1 = inlined_call_operand.hbm [shape: f32[2,4,32,32], index: 1, kind: input, shape index: {}]   ;;  %s9403_s2 = inlined_call_operand.vmem [shape: f32[8,72], index: 2, kind: input, shape index: {}]   ;;  %s9404_s3 = inlined_call_operand.vmem [shape: f32[8,1], index: 3, kind: input, shape index: {}]   ;;  %s9405_s4 = inlined_call_operand.vmem [shape: f32[8,72], index: 4, kind: input, shape index: {}]   ;;  %s9406_s5 = inlined_call_operand.vmem [shape: f32[8,1], index: 5, kind: input, shape index: {}]   ;;  %s9407_s6 = inlined_call_operand.vmem [shape: f32[1,1152], index: 6, kind: input, shape index: {}]   ;;  %s9408_s7 = inlined_call_operand.hbm [shape: f32[2,8,32,32], index: 7, kind: output, shape index: {}]  }
   0x1   :  { %9433 = sst [smem:[#allocation39_spill]] %s9401_s0 }
   0x2   :  { %12 = vsyncpa [#allocation4], 0 }
   0x3   :  { %14 = vsyncpa [#allocation4 + $0x1], 0 }
   0x4   :  { %15 = vsyncpa [#allocation7], 0 }
   0x5   :  { %17 = vsyncpa [#allocation7 + $0x1], 0 }
   0x6   :  { %18 = vsyncpa [#allocation5], 0 }
   0x7   :  { %20 = vsyncpa [#allocation5 + $0x1], 0  ;;  %s5992_s24 = smov 0   ;;  %s5994_s25 = smov 0  }
   0x8   :  { %s5996_s26 = smov 0   ;;  %s5998_s27 = smov 0  }
   0x9 LB: > { %s6013_s28 = sadd.s32 4294967295, %s5873_s27   ;;  %s5526_s29 = sadd.s32 4294967294, %s5873_s27   ;;  %s5873_s27 = sphi %s5998_s27, %s9504_s27   ;;  %s5869_s26 = sphi %s5996_s26, %s9503_s26   ;;  %s5865_s25 = sphi %s5994_s25, %s9502_s25   ;;  %s5861_s24 = sphi %s5992_s24, %s9501_s24  }
   0xa   : > { %s6017_s30 = sadd.s32 1, %s5873_s27   ;;  %s33_s8 = sadd.s32 1, %s5869_s26 }
   0xb   : > { %s30_s9 = ssub.s32 %s5873_s27, %s6017_s30  ;;  %p40_p0 = scmp.ne.s32.totalorder %s5869_s26, %s5865_s25 }
   0xc   : > { %p31_p1 = scmp.eq.s32.totalorder %s30_s9, 0  ;;  %p41_p2 = scmp.eq.s32.totalorder %s5873_s27, 0 }
   0xd   : > { %p46_p3 = scmp.ne.s32.totalorder %s5865_s25, %s5861_s24  ;;  %p47_p4 = scmp.eq.s32.totalorder %s6013_s28, 0 }
   0xe   : > { %s6029_s10 = scalar_select %p31_p1, %s5869_s26, %s33_s8  }
   0xf   : > { %p6031_p5 = por %p41_p2, %p40_p0  ;;  %p6035_p6 = por %p47_p4, %p46_p3 }
  0x10   : > { %9434 = sst [smem:[#allocation12_spill]] %s6029_s10  ;;  %p201_p7 = scmp.eq.s32.totalorder %s6013_s28, 1 }
  0x11   : > { %s9436_s12 = scalar_select %p6035_p6, 1, 0 }
  0x12   : > { %p207_p8 = scmp.eq.s32.totalorder %s5526_s29, 1  ;;  %p5639_p10 = scmp.lt.s32.totalorder %s5873_s27, 2 }
  0x13   : > { %p6042_p11 = por %p201_p7, %p40_p0  ;;  %s6051_s15 = sand.u32 1, %s5869_s26  }
  0x14   : > { %p6046_p12 = por %p207_p8, %p46_p3  ;;  %s5557_s16 = sshll.u32 %s5873_s27, 10 }
  0x15   : > { %s9437_s13 = scalar_select %p6042_p11, 1, 0 }
  0x16   : > { %s9438_s14 = scalar_select %p6046_p12, 1, 0 }
  0x17   : > { %s5529_s17 = sshll.u32 %s6051_s15, 6  ;;  %s9439_s0 = sld [smem:[#allocation39_spill]] }
  0x18   : > { %s246_s21 = scalar_lea.vmem [#allocation3], %s5529_s17  ;;  %p6062_p13 = pnand %p5639_p10, %p6031_p5 }
  0x19   : > { %s253_s22 = sshll.u32 %s246_s21, 4  ;;  %s243_s29 = scalar_lea.sflag [#allocation4], %s6051_s15  ;;  %s6066_s22 = int_to_ptr.vmem [resolvable:$true] %s253_s22 }
  0x1a   : > { %p5751_p1 = pneg %p6062_p13 }
  0x1d   : > { %s6058_s20 = scalar_lea.hbm %s9439_s0, %s5557_s16  ;;  %s5754_s11 = scalar_lea.hbm %s9439_s0, 2048 }
  0x1e   : > { %s5749_s8 = scalar_lea.hbm %s6058_s20, 1024  ;;  %p5755_p4 = scmp.lt.s32.totalorder %s6058_s20, %s9439_s0 }
  0x1f   : > { %p5750_p0 = scmp.ne.s32.totalorder %s6058_s20, %s5749_s8  ;;  %p5756_p5 = scmp.lt.s32.totalorder %s5754_s11, %s5749_s8 }
  0x21   : > { %p5752_p2 = pnand %p5751_p1, %p5750_p0  ;;  %p5757_p7 = por %p5756_p5, %p5755_p4 }
  0x23   : > { %p5753_p3 = pneg %p5752_p2 }
  0x25   : > { %p5758_p8 = pnand %p5757_p7, %p5753_p3 }
  0x27   : > { %5761 = shalt.err (!%p5758_p8)
}
  0x28   : > { %s5762_s19 = scalar_lea.vmem %s6066_s22, 1024  ;;  %s5875_s21 = smov [#allocation3]  }
  0x29   : > { %p5763_p10 = scmp.ne.s32.totalorder %s6066_s22, %s5762_s19  ;;  %s5767_s9 = sshll.u32 %s5875_s21, 4  ;;  %s5768_s9 = int_to_ptr.vmem [resolvable:$false] %s5767_s9 }
  0x2a   : > { %s5769_s16 = scalar_lea.vmem %s5768_s9, 2048  ;;  %p5770_p9 = scmp.lt.s32.totalorder %s6066_s22, %s5768_s9 }
  0x2b   : > { %p5765_p0 = pnand %p5763_p10, %p5751_p1  ;;  %p5771_p12 = scmp.lt.s32.totalorder %s5769_s16, %s5762_s19 }
  0x2d   : > { %p5766_p2 = pneg %p5765_p0  ;;  %p5772_p11 = por %p5771_p12, %p5770_p9 }
  0x2f   : > { %p5773_p4 = pnand %p5772_p11, %p5766_p2 }
  0x31   : > { %5776 = shalt.err (!%p5773_p4)
}
  0x32   : > { %s9410_s8 = smov 128   ;;  %s5877_s11 = smov 8  }
  0x33   : > { %5631 = dma.hbm_to_vmem [thread:$0]  (!%p6062_p13), %s6058_s20, 1024, %s6066_s22, %s243_s29, %s9410_s8, %s9410_s8, %s5877_s11  }
  0x34   : > { %p5535_p9 = scmp.ge.s32.totalorder %s5873_s27, 1  ;;  %p282_p11 = scmp.lt.s32.totalorder %s5873_s27, 3 }
  0x35   : > { %s5532_s17 = sshll.u32 %s6051_s15, 7  ;;  %s5558_s19 = sshll.u32 %s5873_s27, 11 }
  0x36   : > { %p6101_p12 = pnand %p5535_p9, %p282_p11  ;;  %s267_s21 = scalar_lea.vmem [#allocation6], %s5532_s17 }
  0x37   : > { %s274_s9 = sshll.u32 %s267_s21, 4  ;;  %s6109_s10 = scalar_lea.hbm %s9402_s1, %s5558_s19  ;;  %s6111_s9 = int_to_ptr.vmem [resolvable:$true] %s274_s9 }
  0x38   : > { %s264_s20 = scalar_lea.sflag [#allocation7], %s6051_s15  ;;  %s5777_s22 = scalar_lea.hbm %s6109_s10, 2048 }
  0x39   : > { %p5778_p3 = scmp.ne.s32.totalorder %s6109_s10, %s5777_s22  ;;  %s5782_s21 = scalar_lea.hbm %s9402_s1, 4096 }
  0x3a   : > { %p5783_p8 = scmp.lt.s32.totalorder %s6109_s10, %s9402_s1  ;;  %p5784_p10 = scmp.lt.s32.totalorder %s5782_s21, %s5777_s22 }
  0x3b   : > { %p5780_p5 = pnand %p5778_p3, %p5751_p1 }
  0x3c   : > { %p5785_p0 = por %p5784_p10, %p5783_p8 }
  0x3d   : > { %p5781_p7 = pneg %p5780_p5 }
  0x3f   : > { %p5786_p2 = pnand %p5785_p0, %p5781_p7 }
  0x41   : > { %5789 = shalt.err (!%p5786_p2)
}
  0x42   : > { %s5790_s15 = scalar_lea.vmem %s6111_s9, 2048  ;;  %s5878_s19 = smov [#allocation6]  }
  0x43   : > { %p5791_p4 = scmp.ne.s32.totalorder %s6111_s9, %s5790_s15  ;;  %s5795_s16 = sshll.u32 %s5878_s19, 4  ;;  %s5796_s16 = int_to_ptr.vmem [resolvable:$false] %s5795_s16 }
  0x44   : > { %s5797_s29 = scalar_lea.vmem %s5796_s16, 4096  ;;  %p5798_p3 = scmp.lt.s32.totalorder %s6111_s9, %s5796_s16 }
  0x45   : > { %p5793_p9 = pnand %p5791_p4, %p5751_p1  ;;  %p5799_p5 = scmp.lt.s32.totalorder %s5797_s29, %s5790_s15 }
  0x47   : > { %p5794_p11 = pneg %p5793_p9  ;;  %p5800_p6 = por %p5799_p5, %p5798_p3 }
  0x49   : > { %p5801_p8 = pnand %p5800_p6, %p5794_p11 }
  0x4b   : > { %5804 = shalt.err (!%p5801_p8)
}
  0x4c   : > { %s9442_s8 = smov 128   ;;  %286 = sbr.rel (%p6101_p12) target bundleno = 2068 (0x814), region = 48 }
  0x4d   : > { %5634 = dma.hbm_to_vmem [thread:$0]  (!%p6062_p13), %s6109_s10, 2048, %s6111_s9, %s264_s20, %s9442_s8, %s9442_s8, %s5877_s11  }
  0x51   : > { %s6142_s22 = sand.u32 1, %s5865_s25   ;;  %p9443_p6 = scmp.ne.s32.totalorder %s9436_s12, 0 }
  0x52   : > { %s5536_s17 = sshll.u32 %s6142_s22, 6  ;;  %s289_s21 = scalar_lea.sflag [#allocation4], %s6142_s22 }
  0x53   : > { %s6146_s0 = scalar_lea.vmem [#allocation3], %s5536_s17 }
  0x54   : > { %5848 = dma.done.wait (%p9443_p6), %s289_s21, 1024  }
  0x55   : > { %5850 = vsyncadd (%p9443_p6), %s289_s21, 4294966272  ;;  %s5537_s10 = sshll.u32 %s6142_s22, 7  ;;  %s298_s23 = scalar_lea.sflag [#allocation7], %s6142_s22 }
  0x56   : > { %s6154_s11 = scalar_lea.vmem [#allocation6], %s5537_s10 }
  0x57   : > { %5852 = dma.done.wait (%p9443_p6), %s298_s23, 2048  }
  0x58   : > { %5854 = vsyncadd (%p9443_p6), %s298_s23, 4294965248  ;;  %v9412_v0 = vmov 0.0   ;;  %vm377_vm0 = vcmask 1041409   ;;  %vm380_vm1 = vcmask 1042434   ;;  %vm383_vm2 = vcmask 1043459   ;;  %v6172_v1 = vld [vmem:[%s6146_s0] sm:$0xff] }
  0x59   : > { %337 = vst [vmem:[#allocation2] sm:$0xff] %v9412_v0  ;;  %338 = vst [vmem:[#allocation2 + $0x8] sm:$0xff] %v9412_v0  ;;  %1475 = vmatprep.mubr.f32.mxu0 %v9412_v0  ;;  %1546 = vmatprep.mubr.f32.mxu1 %v9412_v0  ;;  %v6175_v2 = vld [vmem:[%s6146_s0 + $0x10] sm:$0xff]  ;;  %v6178_v3 = vld [vmem:[%s6146_s0 + $0x20] sm:$0xff]  ;;  %vm396_vm3 = vcmask 1045509   ;;  %vm399_vm4 = vcmask 1046534  }
  0x5a   : > { %339 = vst [vmem:[#allocation2 + $0x10] sm:$0xff] %v9412_v0  ;;  %340 = vst [vmem:[#allocation2 + $0x18] sm:$0xff] %v9412_v0  ;;  %vm402_vm5 = vcmask 1047559   ;;  %v6181_v4 = vld [vmem:[%s6146_s0 + $0x30] sm:$0xff]  ;;  %v376_v5 = vrot.slane %v6175_v2, 7  ;;  %v379_v6 = vrot.slane %v6178_v3, 6 }
  0x5b   : > { %341 = vst [vmem:[#allocation2 + $0x20] sm:$0xff] %v9412_v0  ;;  %342 = vst [vmem:[#allocation2 + $0x28] sm:$0xff] %v9412_v0  ;;  %v6186_v7 = vld [vmem:[%s6154_s11] sm:$0xff]  ;;  %v426_v9 = vrot.slane %v6172_v1, 1  ;;  %v382_v10 = vrot.slane %v6181_v4, 5  ;;  %s5880_s12 = smov 69  }
  0x5c   : > { %343 = vst [vmem:[#allocation2 + $0x30] sm:$0xff] %v9412_v0  ;;  %344 = vst [vmem:[#allocation2 + $0x38] sm:$0xff] %v9412_v0  ;;  %v6189_v8 = vld [vmem:[%s6154_s11 + $0x20] sm:$0xff]  ;;  %v414_v13 = vrot.slane %v6186_v7, 5  ;;  %v394_v15 = vrot.slane %v6186_v7, 4  ;;  %v378_v16 = vsel %vm377_vm0, %v376_v5, %v6172_v1  ;;  %v439_v27 = vrot.slane %v6186_v7, 6 }
  0x5d   : > { %345 = vst [vmem:[#allocation2 + $0x40] sm:$0xff] %v9412_v0  ;;  %v6194_v11 = vld [vmem:[%s6154_s11 + $0x40] sm:$0xff]  ;;  %v415_v14 = vrot.slane %v6189_v8, 4  ;;  %v395_v19 = vrot.slane %v6189_v8, 3  ;;  %v381_v20 = vsel %vm380_vm1, %v379_v6, %v378_v16  ;;  %s5881_s18 = smov 35   ;;  %v440_v30 = vrot.slane %v6189_v8, 5 }
  0x5e   : > { %v6197_v12 = vld [vmem:[%s6154_s11 + $0x60] sm:$0xff]  ;;  %v417_v17 = vrot.slane %v6194_v11, 3  ;;  %v398_v22 = vrot.slane %v6194_v11, 2  ;;  %v384_v24 = vsel %vm383_vm2, %v382_v10, %v381_v20  ;;  %v442_v31 = vrot.slane %v6194_v11, 4  ;;  %s5882_s9 = smov 103   ;;  %s5883_s20 = smov 9  }
  0x5f   : > { %v419_v18 = vrot.slane %v6197_v12, 2  ;;  %v416_v21 = vsel %vm396_vm3, %v415_v14, %v414_v13  ;;  %v401_v23 = vrot.slane %v6197_v12, 1  ;;  %v397_v26 = vsel %vm396_vm3, %v395_v19, %v394_v15  ;;  %409 = vrot.lane.b32.xlu1 %v384_v24, %s5880_s12  ;;  %385 = vrot.lane.b32.xlu0 %v384_v24, %s5881_s18  ;;  %v6269_v20 = vld [vmem:[%s6154_s11 + $0x8] sm:$0xff]  ;;  %s5884_s15 = smov 43   ;;  %s5885_s19 = smov 77  }
  0x60   : > { %v418_v25 = vsel %vm399_vm4, %v417_v17, %v416_v21  ;;  %v400_v29 = vsel %vm399_vm4, %v398_v22, %v397_v26  ;;  %v444_v33 = vrot.slane %v6197_v12, 3  ;;  %v427_v34 = vsel %vm377_vm0, %v6175_v2, %v426_v9  ;;  %v6272_v21 = vld [vmem:[%s6154_s11 + $0x28] sm:$0xff]  ;;  %s5886_s16 = smov 111   ;;  %s5887_s29 = smov 17  }
  0x61   : > { %v420_v28 = vsel %vm402_vm5, %v419_v18, %v418_v25  ;;  %v403_v32 = vsel %vm402_vm5, %v401_v23, %v400_v29  ;;  %v428_v35 = vrot.slane %v6178_v3, 7  ;;  %v441_v36 = vsel %vm396_vm3, %v440_v30, %v439_v27  ;;  %v6283_v27 = vld [vmem:[%s6154_s11 + $0x48] sm:$0xff]  ;;  %s5888_s8 = smov 51   ;;  %s5889_s17 = smov 85  }
  0x62   : > { %v430_v37 = vrot.slane %v6181_v4, 6  ;;  %v458_v38 = vrot.slane %v6186_v7, 7  ;;  %v459_v39 = vrot.slane %v6189_v8, 6  ;;  %v443_v40 = vsel %vm399_vm4, %v442_v31, %v441_v36  ;;  %s5890_s21 = smov 119   ;;  %s5891_s10 = smov 25  }
  0x63   : > { %v429_v41 = vsel %vm380_vm1, %v428_v35, %v427_v34  ;;  %v461_v42 = vrot.slane %v6194_v11, 5  ;;  %421 = vrot.lane.b32.xlu1 %v420_v28, %s5880_s12  ;;  %404 = vrot.lane.b32.xlu0 %v403_v32, %s5881_s18  ;;  %v481_v44 = vrot.slane %v6189_v8, 7  ;;  %v445_v45 = vsel %vm402_vm5, %v444_v33, %v443_v40  ;;  %v6293_v33 = vld [vmem:[%s6154_s11 + $0x68] sm:$0xff]  ;;  %s5892_s23 = smov 59   ;;  %s5893_s12 = smov 93  }
  0x64   : > { %v460_v43 = vsel %vm396_vm3, %v459_v39, %v458_v38  ;;  %v431_v46 = vsel %vm383_vm2, %v430_v37, %v429_v41  ;;  %v463_v47 = vrot.slane %v6197_v12, 4  ;;  %v470_v48 = vrot.slane %v6172_v1, 2  ;;  %p9497_p1 = scmp.ne.s32.totalorder %s9437_s13, 0 }
  0x65   : > { %v462_v49 = vsel %vm399_vm4, %v461_v42, %v460_v43  ;;  %v483_v50 = vrot.slane %v6194_v11, 6  ;;  %v471_v51 = vrot.slane %v6175_v2, 1  ;;  %v482_v52 = vsel %vm396_vm3, %v481_v44, %v6186_v7 }
  0x66   : > { %v497_v53 = vrot.slane %v6186_v7, 1  ;;  %v464_v55 = vsel %vm402_vm5, %v463_v47, %v462_v49  ;;  %v485_v56 = vrot.slane %v6197_v12, 5  ;;  %v474_v57 = vrot.slane %v6181_v4, 7 }
  0x67   : > { %446 = vrot.lane.b32.xlu1 %v445_v45, %s5882_s9  ;;  %432 = vrot.lane.b32.xlu0 %v431_v46, %s5882_s9  ;;  %v472_v54 = vsel %vm377_vm0, %v471_v51, %v470_v48  ;;  %v484_v58 = vsel %vm399_vm4, %v483_v50, %v482_v52  ;;  %v499_v60 = vrot.slane %v6194_v11, 7  ;;  %v521_v61 = vrot.slane %v6186_v7, 2  ;;  %s5894_s9 = smov 127  }
  0x68   : > { %v473_v59 = vsel %vm380_vm1, %v6178_v3, %v472_v54  ;;  %v498_v62 = vsel %vm396_vm3, %v6189_v8, %v497_v53  ;;  %v522_v63 = vrot.slane %v6189_v8, 1  ;;  %v508_v5 = vrot.slane %v6172_v1, 3 }
  0x69   : > { %v509_v6 = vrot.slane %v6175_v2, 2  ;;  %v486_v9 = vsel %vm402_vm5, %v485_v56, %v484_v58  ;;  %v475_v10 = vsel %vm383_vm2, %v474_v57, %v473_v59  ;;  %v501_v13 = vrot.slane %v6197_v12, 6 }
  0x6a   : > { %v500_v14 = vsel %vm399_vm4, %v499_v60, %v498_v62  ;;  %v511_v15 = vrot.slane %v6178_v3, 1  ;;  %v523_v16 = vsel %vm396_vm3, %v522_v63, %v521_v61  ;;  %v539_v18 = vrot.slane %v6186_v7, 3 }
  0x6b   : > { %465 = vrot.lane.b32.xlu1 %v464_v55, %s5883_s20  ;;  %453 = vrot.lane.b32.xlu0 %v431_v46, %s5883_s20  ;;  %v510_v17 = vsel %vm377_vm0, %v509_v6, %v508_v5  ;;  %v540_v19 = vrot.slane %v6189_v8, 2  ;;  %v502_v22 = vsel %vm402_vm5, %v501_v13, %v500_v14  ;;  %v525_v23 = vrot.slane %v6197_v12, 7  ;;  %s5896_s20 = smov 67  }
  0x6c   : > { %v524_v24 = vsel %vm399_vm4, %v6194_v11, %v523_v16  ;;  %v512_v25 = vsel %vm380_vm1, %v511_v15, %v510_v17  ;;  %v542_v7 = vrot.slane %v6194_v11, 1  ;;  %v566_v8 = vrot.slane %v6269_v20, 4 }
  0x6d   : > { %v541_v26 = vsel %vm396_vm3, %v540_v19, %v539_v18  ;;  %v567_v28 = vrot.slane %v6272_v21, 3  ;;  %v550_v29 = vrot.slane %v6172_v1, 4  ;;  %v551_v30 = vrot.slane %v6175_v2, 3 }
  0x6e   : > { %v526_v31 = vsel %vm402_vm5, %v525_v23, %v524_v24  ;;  %v513_v11 = vsel %vm383_vm2, %v6181_v4, %v512_v25  ;;  %v543_v32 = vsel %vm399_vm4, %v542_v7, %v541_v26  ;;  %v569_v34 = vrot.slane %v6283_v27, 2 }
  0x6f   : > { %487 = vrot.lane.b32.xlu1 %v486_v9, %s5884_s15  ;;  %476 = vrot.lane.b32.xlu0 %v475_v10, %s5884_s15  ;;  %v553_v35 = vrot.slane %v6178_v3, 2  ;;  %v568_v36 = vsel %vm396_vm3, %v567_v28, %v566_v8  ;;  %v552_v37 = vsel %vm377_vm0, %v551_v30, %v550_v29  ;;  %v583_v38 = vrot.slane %v6269_v20, 5  ;;  %s5897_s15 = smov 101  }
  0x70   : > { %v584_v39 = vrot.slane %v6272_v21, 4  ;;  %v544_v40 = vsel %vm402_vm5, %v6197_v12, %v543_v32  ;;  %v571_v41 = vrot.slane %v6293_v33, 1  ;;  %v555_v42 = vrot.slane %v6181_v4, 1 }
  0x71   : > { %v570_v43 = vsel %vm399_vm4, %v569_v34, %v568_v36  ;;  %v554_v44 = vsel %vm380_vm1, %v553_v35, %v552_v37  ;;  %v586_v45 = vrot.slane %v6283_v27, 3  ;;  %v609_v46 = vrot.slane %v6269_v20, 6 }
  0x72   : > { %v585_v47 = vsel %vm396_vm3, %v584_v39, %v583_v38  ;;  %v610_v48 = vrot.slane %v6272_v21, 5  ;;  %v595_v49 = vrot.slane %v6172_v1, 5  ;;  %v596_v12 = vrot.slane %v6175_v2, 4 }
  0x73   : > { %503 = vrot.lane.b32.xlu1 %v502_v22, %s5885_s19  ;;  %492 = vrot.lane.b32.xlu0 %v475_v10, %s5885_s19  ;;  %v572_v50 = vsel %vm402_vm5, %v571_v41, %v570_v43  ;;  %v556_v51 = vsel %vm383_vm2, %v555_v42, %v554_v44  ;;  %v588_v52 = vrot.slane %v6293_v33, 2  ;;  %v587_v53 = vsel %vm399_vm4, %v586_v45, %v585_v47  ;;  %v6365_v43 = vld [vmem:[%s6154_s11 + $0x10] sm:$0xff]  ;;  %s5898_s19 = smov 7  }
  0x74   : > { %v612_v54 = vrot.slane %v6283_v27, 4  ;;  %v598_v55 = vrot.slane %v6178_v3, 3  ;;  %v611_v56 = vsel %vm396_vm3, %v610_v48, %v609_v46  ;;  %v597_v57 = vsel %vm377_vm0, %v596_v12, %v595_v49  ;;  %v6370_v44 = vld [vmem:[%s6154_s11 + $0x30] sm:$0xff] }
  0x75   : > { %v628_v58 = vrot.slane %v6269_v20, 7  ;;  %v629_v59 = vrot.slane %v6272_v21, 6  ;;  %v589_v60 = vsel %vm402_vm5, %v588_v52, %v587_v53  ;;  %v614_v61 = vrot.slane %v6293_v33, 3  ;;  %v6384_v12 = vld [vmem:[%s6154_s11 + $0x50] sm:$0xff]  ;;  %v6389_v52 = vld [vmem:[%s6146_s0 + $0x28] sm:$0xff] }
  0x76   : > { %v600_v62 = vrot.slane %v6181_v4, 2  ;;  %v613_v63 = vsel %vm399_vm4, %v612_v54, %v611_v56  ;;  %v599_v5 = vsel %vm380_vm1, %v598_v55, %v597_v57  ;;  %v631_v6 = vrot.slane %v6283_v27, 5  ;;  %v6395_v53 = vld [vmem:[%s6146_s0 + $0x8] sm:$0xff]  ;;  %v6401_v56 = vld [vmem:[%s6154_s11 + $0x70] sm:$0xff] }
  0x77   : > { %527 = vrot.lane.b32.xlu1 %v526_v31, %s5886_s16  ;;  %514 = vrot.lane.b32.xlu0 %v513_v11, %s5886_s16  ;;  %v630_v9 = vsel %vm396_vm3, %v629_v59, %v628_v58  ;;  %v652_v10 = vrot.slane %v6272_v21, 7  ;;  %v640_v13 = vrot.slane %v6172_v1, 6  ;;  %v641_v14 = vrot.slane %v6175_v2, 5  ;;  %v6405_v58 = vld [vmem:[%s6146_s0 + $0x38] sm:$0xff]  ;;  %s5899_s16 = smov 41  }
  0x78   : > { %v615_v15 = vsel %vm402_vm5, %v614_v61, %v613_v63  ;;  %v601_v16 = vsel %vm383_vm2, %v600_v62, %v599_v5  ;;  %v633_v17 = vrot.slane %v6293_v33, 4  ;;  %v632_v18 = vsel %vm399_vm4, %v631_v6, %v630_v9 }
  0x79   : > { %v654_v19 = vrot.slane %v6283_v27, 6  ;;  %v643_v22 = vrot.slane %v6178_v3, 4  ;;  %v653_v23 = vsel %vm396_vm3, %v652_v10, %v6269_v20  ;;  %v642_v24 = vsel %vm377_vm0, %v641_v14, %v640_v13 }
  0x7a   : > { %v668_v25 = vrot.slane %v6269_v20, 1  ;;  %v634_v7 = vsel %vm402_vm5, %v633_v17, %v632_v18  ;;  %v656_v8 = vrot.slane %v6293_v33, 5  ;;  %v645_v26 = vrot.slane %v6181_v4, 3 }
  0x7b   : > { %545 = vrot.lane.b32.xlu1 %v544_v40, %s5887_s29  ;;  %534 = vrot.lane.b32.xlu0 %v513_v11, %s5887_s29  ;;  %v655_v28 = vsel %vm399_vm4, %v654_v19, %v653_v23  ;;  %v644_v29 = vsel %vm380_vm1, %v643_v22, %v642_v24  ;;  %v670_v30 = vrot.slane %v6283_v27, 7  ;;  %v693_v31 = vrot.slane %v6269_v20, 2  ;;  %s5900_s29 = smov 75  }
  0x7c   : > { %v669_v11 = vsel %vm396_vm3, %v6272_v21, %v668_v25  ;;  %v694_v32 = vrot.slane %v6272_v21, 1  ;;  %v679_v34 = vrot.slane %v6172_v1, 7  ;;  %v680_v35 = vrot.slane %v6175_v2, 6 }
  0x7d   : > { %v657_v36 = vsel %vm402_vm5, %v656_v8, %v655_v28  ;;  %v646_v37 = vsel %vm383_vm2, %v645_v26, %v644_v29  ;;  %v672_v38 = vrot.slane %v6293_v33, 6  ;;  %v671_v39 = vsel %vm399_vm4, %v670_v30, %v669_v11 }
  0x7e   : > { %v682_v40 = vrot.slane %v6178_v3, 5  ;;  %v695_v41 = vsel %vm396_vm3, %v694_v32, %v693_v31  ;;  %v681_v1 = vsel %vm377_vm0, %v680_v35, %v679_v34  ;;  %v711_v2 = vrot.slane %v6269_v20, 3  ;;  %v6373_v3 = vld [vmem:[%s6146_s0 + $0x18] sm:$0xff]  ;;  %s5895_s0 = smov 33  }
  0x7f   : > { %573 = vrot.lane.b32.xlu1 %v572_v50, %s5888_s8  ;;  %557 = vrot.lane.b32.xlu0 %v556_v51, %s5888_s8  ;;  %v712_v42 = vrot.slane %v6272_v21, 2  ;;  %v673_v45 = vsel %vm402_vm5, %v672_v38, %v671_v39  ;;  %v697_v46 = vrot.slane %v6293_v33, 7  ;;  %v684_v20 = vrot.slane %v6181_v4, 4  ;;  %s5901_s8 = smov 109  }
  0x80   : > { %v696_v21 = vsel %vm399_vm4, %v6283_v27, %v695_v41  ;;  %v683_v47 = vsel %vm380_vm1, %v682_v40, %v681_v1  ;;  %v714_v48 = vrot.slane %v6283_v27, 1  ;;  %v741_v50 = vrot.slane %v6365_v43, 4 }
  0x81   : > { %v713_v49 = vsel %vm396_vm3, %v712_v42, %v711_v2  ;;  %v726_v4 = vrot.slane %v6373_v3, 7  ;;  %v698_v27 = vsel %vm402_vm5, %v697_v46, %v696_v21  ;;  %v685_v54 = vsel %vm383_vm2, %v684_v20, %v683_v47 }
  0x82   : > { %v715_v55 = vsel %vm399_vm4, %v714_v48, %v713_v49  ;;  %v744_v57 = vrot.slane %v6384_v12, 2  ;;  %v728_v59 = vrot.slane %v6389_v52, 6  ;;  %v760_v62 = vrot.slane %v6365_v43, 5 }
  0x83   : > { %590 = vrot.lane.b32.xlu1 %v589_v60, %s5889_s17  ;;  %578 = vrot.lane.b32.xlu0 %v556_v51, %s5889_s17  ;;  %v742_v51 = vrot.slane %v6370_v44, 3  ;;  %v727_v61 = vsel %vm377_vm0, %v726_v4, %v6395_v53  ;;  %v761_v63 = vrot.slane %v6370_v44, 4  ;;  %v716_v5 = vsel %vm402_vm5, %v6293_v33, %v715_v55  ;;  %s5902_s17 = smov 15  }
  0x84   : > { %v746_v6 = vrot.slane %v6401_v56, 1  ;;  %v730_v9 = vrot.slane %v6405_v58, 5  ;;  %v729_v13 = vsel %vm380_vm1, %v728_v59, %v727_v61  ;;  %v763_v14 = vrot.slane %v6384_v12, 3 }
  0x85   : > { %v743_v60 = vsel %vm396_vm3, %v742_v51, %v741_v50  ;;  %v786_v17 = vrot.slane %v6370_v44, 5  ;;  %v774_v18 = vrot.slane %v6395_v53, 1  ;;  %v765_v22 = vrot.slane %v6401_v56, 2 }
  0x86   : > { %v745_v10 = vsel %vm399_vm4, %v744_v57, %v743_v60  ;;  %v731_v19 = vsel %vm383_vm2, %v730_v9, %v729_v13  ;;  %v788_v24 = vrot.slane %v6384_v12, 4  ;;  %v776_v25 = vrot.slane %v6389_v52, 7  ;;  %v6482_v13 = vld [vmem:[%s6154_s11 + $0x38] sm:$0xff] }
  0x87   : > { %616 = vrot.lane.b32.xlu1 %v615_v15, %s5890_s21  ;;  %602 = vrot.lane.b32.xlu0 %v601_v16, %s5890_s21  ;;  %v762_v15 = vsel %vm396_vm3, %v761_v63, %v760_v62  ;;  %v747_v33 = vsel %vm402_vm5, %v746_v6, %v745_v10  ;;  %v775_v8 = vsel %vm377_vm0, %v6373_v3, %v774_v18  ;;  %v802_v26 = vrot.slane %v6365_v43, 7  ;;  %v6479_v10 = vld [vmem:[%s6154_s11 + $0x18] sm:$0xff]  ;;  %s5904_s21 = smov 83  }
  0x88   : > { %v764_v23 = vsel %vm399_vm4, %v763_v14, %v762_v15  ;;  %v803_v28 = vrot.slane %v6370_v44, 6  ;;  %v790_v30 = vrot.slane %v6401_v56, 3  ;;  %v778_v31 = vrot.slane %v6405_v58, 6 }
  0x89   : > { %v766_v29 = vsel %vm402_vm5, %v765_v22, %v764_v23  ;;  %v777_v32 = vsel %vm380_vm1, %v776_v25, %v775_v8  ;;  %v805_v34 = vrot.slane %v6384_v12, 5  ;;  %v815_v38 = vrot.slane %v6373_v3, 1 }
  0x8a   : > { %v804_v35 = vsel %vm396_vm3, %v803_v28, %v802_v26  ;;  %v779_v40 = vsel %vm383_vm2, %v778_v31, %v777_v32  ;;  %v807_v41 = vrot.slane %v6401_v56, 4  ;;  %v827_v2 = vrot.slane %v6384_v12, 6 }
  0x8b   : > { %635 = vrot.lane.b32.xlu1 %v634_v7, %s5891_s10  ;;  %623 = vrot.lane.b32.xlu0 %v601_v16, %s5891_s10  ;;  %v785_v16 = vrot.slane %v6365_v43, 6  ;;  %v806_v1 = vsel %vm399_vm4, %v805_v34, %v804_v35  ;;  %v843_v42 = vrot.slane %v6365_v43, 1  ;;  %v829_v21 = vrot.slane %v6401_v56, 5  ;;  %s5905_s10 = smov 117  }
  0x8c   : > { %v808_v20 = vsel %vm402_vm5, %v807_v41, %v806_v1  ;;  %v818_v47 = vrot.slane %v6405_v58, 7  ;;  %v845_v51 = vrot.slane %v6384_v12, 7  ;;  %v867_v4 = vrot.slane %v6365_v43, 2 }
  0x8d   : > { %v787_v7 = vsel %vm396_vm3, %v786_v17, %v785_v16  ;;  %v844_v50 = vsel %vm396_vm3, %v6370_v44, %v843_v42  ;;  %v857_v55 = vrot.slane %v6373_v3, 2  ;;  %v847_v60 = vrot.slane %v6401_v56, 6 }
  0x8e   : > { %v789_v11 = vsel %vm399_vm4, %v788_v24, %v787_v7  ;;  %v846_v61 = vsel %vm399_vm4, %v845_v51, %v844_v50  ;;  %v859_v62 = vrot.slane %v6389_v52, 1  ;;  %v883_v6 = vrot.slane %v6365_v43, 3  ;;  %v6503_v7 = vld [vmem:[%s6154_s11 + $0x78] sm:$0xff] }
  0x8f   : > { %658 = vrot.lane.b32.xlu1 %v657_v36, %s5892_s23  ;;  %647 = vrot.lane.b32.xlu0 %v646_v37, %s5892_s23  ;;  %v825_v36 = vrot.slane %v6370_v44, 7  ;;  %v791_v39 = vsel %vm402_vm5, %v790_v30, %v789_v11  ;;  %v884_v9 = vrot.slane %v6370_v44, 2  ;;  %v848_v14 = vsel %vm402_vm5, %v847_v60, %v846_v61 }
  0x90   : > { %v871_v15 = vrot.slane %v6401_v56, 7  ;;  %v894_v22 = vrot.slane %v6395_v53, 4  ;;  %v895_v23 = vrot.slane %v6373_v3, 3  ;;  %v897_v26 = vrot.slane %v6389_v52, 2 }
  0x91   : > { %v885_v18 = vsel %vm396_vm3, %v884_v9, %v883_v6  ;;  %v929_v30 = vrot.slane %v6479_v10, 5  ;;  %v930_v31 = vrot.slane %v6482_v13, 4  ;;  %v915_v32 = vrot.slane %v6503_v7, 1 }
  0x92   : > { %v899_v34 = vrot.slane %v6405_v58, 1  ;;  %v943_v41 = vrot.slane %v6395_v53, 5  ;;  %v934_v42 = vrot.slane %v6503_v7, 2  ;;  %v960_v51 = vrot.slane %v6503_v7, 3 }
  0x93   : > { %674 = vrot.lane.b32.xlu1 %v673_v45, %s5893_s12  ;;  %663 = vrot.lane.b32.xlu0 %v646_v37, %s5893_s12  ;;  %v814_v37 = vrot.slane %v6395_v53, 2  ;;  %v826_v45 = vsel %vm396_vm3, %v825_v36, %v6365_v43  ;;  %v886_v43 = vrot.slane %v6384_v12, 1  ;;  %v984_v60 = vrot.slane %v6395_v53, 6 }
  0x94   : > { %v828_v48 = vsel %vm399_vm4, %v827_v2, %v826_v45  ;;  %v985_v61 = vrot.slane %v6373_v3, 5  ;;  %vm346_vm6 = vcmask 572416   ;;  %vm388_vm7 = vcmask 544024  }
  0x95   : > { %v816_v46 = vsel %vm377_vm0, %v815_v38, %v814_v37  ;;  %v830_v57 = vsel %vm402_vm5, %v829_v21, %v828_v48  ;;  %v887_v25 = vsel %vm399_vm4, %v886_v43, %v885_v18  ;;  %v955_v38 = vrot.slane %v6479_v10, 6  ;;  %347 = vst.msk [vmem:[#allocation2 + $0x48] sm:$0xff] %vm346_vm6, %v9412_v0 }
  0x96   : > { %v817_v49 = vsel %vm380_vm1, %v6389_v52, %v816_v46  ;;  %v888_v11 = vsel %vm402_vm5, %v6401_v56, %v887_v25  ;;  %v944_v56 = vrot.slane %v6373_v3, 4  ;;  %v972_v48 = vrot.slane %v6479_v10, 7 }
  0x97   : > { %699 = vrot.lane.b32.xlu1 %v698_v27, %s5894_s9  ;;  %686 = vrot.lane.b32.xlu0 %v685_v54, %s5894_s9  ;;  %v868_v27 = vrot.slane %v6370_v44, 1  ;;  %v819_v59 = vsel %vm383_vm2, %v818_v47, %v817_v49  ;;  %v910_v44 = vrot.slane %v6479_v10, 4  ;;  %v973_v49 = vrot.slane %v6482_v13, 6 }
  0x98   : > { %v945_v47 = vsel %vm377_vm0, %v944_v56, %v943_v41  ;;  %v1000_v18 = vrot.slane %v6503_v7, 5  ;;  %v1040_v25 = vrot.slane %v6482_v13, 1  ;;  %vm412_vm8 = vcmask 822824  }
  0x99   : > { %v869_v63 = vsel %vm396_vm3, %v868_v27, %v867_v4  ;;  %v948_v4 = vrot.slane %v6405_v58, 2  ;;  %vm407_vm9 = vcmask 548124   ;;  %vm424_vm10 = vcmask 826924  }
  0x9a   : > { %v870_v16 = vsel %vm399_vm4, %v6384_v12, %v869_v63  ;;  %vm449_vm11 = vcmask 1048380   ;;  %vm451_vm12 = vcmask 56324   ;;  %vm435_vm13 = vcmask 1044280  }
  0x9b   : > { %717 = vrot.lane.b32.xlu1 %v716_v5, %s5895_s0  ;;  %706 = vrot.lane.b32.xlu0 %v685_v54, %s5895_s0  ;;  %v856_v54 = vrot.slane %v6395_v53, 3  ;;  %v872_v24 = vsel %vm402_vm5, %v871_v15, %v870_v16  ;;  %v987_v15 = vrot.slane %v6389_v52, 4  ;;  %v986_v16 = vsel %vm377_vm0, %v985_v61, %v984_v60  ;;  %s5906_s0 = smov 23  }
  0x9c   : > { %vm437_vm14 = vcmask 52224   ;;  %vm468_vm15 = vcmask 334924   ;;  %vm532_vm6 = vcmask 121860  }
  0x9d   : > { %v858_v5 = vsel %vm377_vm0, %v857_v55, %v856_v54 }
  0x9e   : > { %v860_v17 = vsel %vm380_vm1, %v859_v62, %v858_v5  ;;  %v977_v5 = vrot.slane %v6503_v7, 4 }
  0x9f   : > { %748 = vrot.lane.b32.xlu1 %v747_v33, %s5896_s20  ;;  %732 = vrot.lane.b32.xlu0 %v731_v19, %s5896_s20  ;;  %v6493_v33 = vld [vmem:[%s6154_s11 + $0x58] sm:$0xff]  ;;  %v861_v12 = vsel %vm383_vm2, %v6405_v58, %v860_v17  ;;  %s5903_s11 = smov 49   ;;  %v1014_v17 = vrot.slane %v6479_v10, 1  ;;  %s5907_s20 = smov 57  }
  0xa0   : > { %v913_v8 = vrot.slane %v6493_v33, 2  ;;  %v932_v37 = vrot.slane %v6493_v33, 3  ;;  %v958_v46 = vrot.slane %v6493_v33, 4  ;;  %v975_v55 = vrot.slane %v6493_v33, 5 }
  0xa1   : > { %v998_v6 = vrot.slane %v6493_v33, 6 }
  0xa3   : > { %767 = vrot.lane.b32.xlu1 %v766_v29, %s5897_s15  ;;  %753 = vrot.lane.b32.xlu0 %v731_v19, %s5897_s15  ;;  %v911_v19 = vrot.slane %v6482_v13, 3  ;;  %v896_v29 = vsel %vm377_vm0, %v895_v23, %v894_v22  ;;  %v988_v22 = vsel %vm380_vm1, %v987_v15, %v986_v16  ;;  %v1016_v23 = vrot.slane %v6493_v33, 7  ;;  %s5908_s15 = smov 91  }
  0xa4   : > { %v898_v36 = vsel %vm380_vm1, %v897_v26, %v896_v29  ;;  %v1028_v26 = vrot.slane %v6373_v3, 6  ;;  %v1055_v3 = vrot.slane %v6479_v10, 3 }
  0xa5   : > { %v912_v28 = vsel %vm396_vm3, %v911_v19, %v910_v44  ;;  %v900_v2 = vsel %vm383_vm2, %v899_v34, %v898_v36  ;;  %v989_v19 = vrot.slane %v6405_v58, 3  ;;  %v1056_v34 = vrot.slane %v6482_v13, 2 }
  0xa6   : > { %v914_v35 = vsel %vm399_vm4, %v913_v8, %v912_v28  ;;  %v1027_v8 = vrot.slane %v6395_v53, 7  ;;  %v1043_v36 = vrot.slane %v6503_v7, 7 }
  0xa7   : > { %792 = vrot.lane.b32.xlu1 %v791_v39, %s5898_s19  ;;  %780 = vrot.lane.b32.xlu0 %v779_v40, %s5898_s19  ;;  %v931_v39 = vsel %vm396_vm3, %v930_v31, %v929_v30  ;;  %v916_v1 = vsel %vm402_vm5, %v915_v32, %v914_v35  ;;  %v990_v29 = vsel %vm383_vm2, %v989_v19, %v988_v22  ;;  %v1018_v30 = vrot.slane %v6503_v7, 6  ;;  %s5909_s19 = smov 125  }
  0xa8   : > { %v933_v45 = vsel %vm399_vm4, %v932_v37, %v931_v39  ;;  %v1029_v53 = vsel %vm377_vm0, %v1028_v26, %v1027_v8  ;;  %v1032_v37 = vrot.slane %v6405_v58, 4  ;;  %vm456_vm0 = vcmask 330824  }
  0xa9   : > { %v935_v50 = vsel %vm402_vm5, %v934_v42, %v933_v45 }
  0xab   : > { %809 = vrot.lane.b32.xlu1 %v808_v20, %s5899_s16  ;;  %797 = vrot.lane.b32.xlu0 %v779_v40, %s5899_s16  ;;  %v956_v40 = vrot.slane %v6482_v13, 5  ;;  %v946_v20 = vrot.slane %v6389_v52, 3  ;;  %s5910_s16 = smov 31  }
  0xad   : > { %v957_v21 = vsel %vm396_vm3, %v956_v40, %v955_v38  ;;  %v947_v54 = vsel %vm380_vm1, %v946_v20, %v945_v47  ;;  %v1057_v40 = vsel %vm396_vm3, %v1056_v34, %v1055_v3 }
  0xae   : > { %v959_v27 = vsel %vm399_vm4, %v958_v46, %v957_v21  ;;  %v949_v63 = vsel %vm383_vm2, %v948_v4, %v947_v54 }
  0xaf   : > { %831 = vrot.lane.b32.xlu1 %v830_v57, %s5900_s29  ;;  %820 = vrot.lane.b32.xlu0 %v819_v59, %s5900_s29  ;;  %v996_v57 = vrot.slane %v6482_v13, 7  ;;  %v961_v62 = vsel %vm402_vm5, %v960_v51, %v959_v27  ;;  %s5911_s29 = smov 65  }
  0xb3   : > { %849 = vrot.lane.b32.xlu1 %v848_v14, %s5901_s8  ;;  %836 = vrot.lane.b32.xlu0 %v819_v59, %s5901_s8  ;;  %v974_v59 = vsel %vm396_vm3, %v973_v49, %v972_v48  ;;  %v997_v14 = vsel %vm396_vm3, %v996_v57, %v6479_v10  ;;  %s5912_s8 = smov 126  }
  0xb4   : > { %v976_v9 = vsel %vm399_vm4, %v975_v55, %v974_v59  ;;  %v999_v44 = vsel %vm399_vm4, %v998_v6, %v997_v14 }
  0xb5   : > { %v978_v43 = vsel %vm402_vm5, %v977_v5, %v976_v9  ;;  %v1001_v28 = vsel %vm402_vm5, %v1000_v18, %v999_v44 }
  0xb7   : > { %873 = vrot.lane.b32.xlu1 %v872_v24, %s5902_s17  ;;  %862 = vrot.lane.b32.xlu0 %v861_v12, %s5902_s17  ;;  %v1039_v24 = vrot.slane %v6479_v10, 2  ;;  %s5913_s17 = smov 94  }
  0xb9   : > { %v1041_v32 = vsel %vm396_vm3, %v1040_v25, %v1039_v24 }
  0xba   : > { %v1042_v39 = vsel %vm399_vm4, %v6493_v33, %v1041_v32 }
  0xbb   : > { %889 = vrot.lane.b32.xlu1 %v888_v11, %s5903_s11  ;;  %878 = vrot.lane.b32.xlu0 %v861_v12, %s5903_s11  ;;  %v1015_v12 = vsel %vm396_vm3, %v6482_v13, %v1014_v17  ;;  %v1030_v11 = vrot.slane %v6389_v52, 5  ;;  %v1058_v13 = vrot.slane %v6493_v33, 1  ;;  %v1044_v58 = vsel %vm402_vm5, %v1043_v36, %v1042_v39  ;;  %s5914_s11 = smov 92  }
  0xbc   : > { %v1017_v31 = vsel %vm399_vm4, %v1016_v23, %v1015_v12  ;;  %vm506_vm3 = vcmask 892524  }
  0xbd   : > { %v1019_v35 = vsel %vm402_vm5, %v1018_v30, %v1017_v31  ;;  %v1031_v10 = vsel %vm380_vm1, %v1030_v11, %v1029_v53  ;;  %vm490_vm1 = vcmask 613724  }
  0xbe   : > { %v1033_v41 = vsel %vm383_vm2, %v1032_v37, %v1031_v10  ;;  %vm479_vm2 = vcmask 609624  }
  0xbf   : > { %917 = vrot.lane.b32.xlu1 %v916_v1, %s5904_s21  ;;  %901 = vrot.lane.b32.xlu0 %v900_v2, %s5904_s21  ;;  %s5915_s21 = smov 60  }
  0xc3   : > { %936 = vrot.lane.b32.xlu1 %v935_v50, %s5905_s10  ;;  %922 = vrot.lane.b32.xlu0 %v900_v2, %s5905_s10  ;;  %v1059_v2 = vsel %vm399_vm4, %v1058_v13, %v1057_v40  ;;  %vm495_vm4 = vcmask 888424   ;;  %s5916_s10 = smov 58  }
  0xc4   : > { %v1060_v33 = vsel %vm402_vm5, %v6503_v7, %v1059_v2  ;;  %vm530_vm5 = vcmask 1048444  }
  0xc7   : > { %962 = vrot.lane.b32.xlu1 %v961_v62, %s5906_s0  ;;  %950 = vrot.lane.b32.xlu0 %v949_v63, %s5906_s0  ;;  %s5927_s0 = smov 44  }
  0xcb   : > { %979 = vrot.lane.b32.xlu1 %v978_v43, %s5907_s20  ;;  %967 = vrot.lane.b32.xlu0 %v949_v63, %s5907_s20  ;;  %s5928_s20 = smov 104  }
  0xcf   : > { %1002 = vrot.lane.b32.xlu1 %v1001_v28, %s5908_s15  ;;  %991 = vrot.lane.b32.xlu0 %v990_v29, %s5908_s15  ;;  %s5929_s15 = smov 70  }
  0xd1   : > { %v410_v52 = vpop.permute.xlu1 %409  ;;  %v386_v38 = vpop.permute.xlu0 %385 }
  0xd2   : > { %389 = vst.msk [vmem:[#allocation2] sm:$0xf] %vm388_vm7, %v386_v38  ;;  %vm517_vm7 = vcmask 1044344  }
  0xd3   : > { %1020 = vrot.lane.b32.xlu1 %v1019_v35, %s5909_s19  ;;  %1007 = vrot.lane.b32.xlu0 %v990_v29, %s5909_s19  ;;  %413 = vst.msk [vmem:[#allocation2] sm:$0xf] %vm412_vm8, %v410_v52  ;;  %vm519_vm8 = vcmask 117760   ;;  %s5930_s19 = smov 36  }
  0xd5   : > { %v422_v56 = vpop.permute.xlu1 %421  ;;  %v405_v1 = vpop.permute.xlu0 %404 }
  0xd6   : > { %408 = vst.msk [vmem:[#allocation2] sm:$0xf0] %vm407_vm9, %v405_v1  ;;  %vm548_vm9 = vcmask 400524  }
  0xd7   : > { %1045 = vrot.lane.b32.xlu1 %v1044_v58, %s5910_s16  ;;  %1034 = vrot.lane.b32.xlu0 %v1033_v41, %s5910_s16  ;;  %425 = vst.msk [vmem:[#allocation2] sm:$0xf0] %vm424_vm10, %v422_v56  ;;  %vm537_vm10 = vcmask 396424   ;;  %s5923_s16 = smov 52  }
  0xd9   : > { %v447_v42 = vpop.permute.xlu1 %446  ;;  %v433_v45 = vpop.permute.xlu0 %432 }
  0xda   : > { %450 = vst.msk [vmem:[#allocation2] sm:$0xf0] %vm449_vm11, %v447_v42  ;;  %vm576_vm11 = vcmask 679324  }
  0xdb   : > { %452 = vst.msk [vmem:[#allocation2 + $0x8] sm:$0xf0] %vm451_vm12, %v447_v42  ;;  %1061 = vrot.lane.b32.xlu1 %v1060_v33, %s5911_s29  ;;  %1050 = vrot.lane.b32.xlu0 %v1033_v41, %s5911_s29  ;;  %vm560_vm12 = vcmask 675224   ;;  %s5926_s29 = smov 78  }
  0xdc   : > { %436 = vst.msk [vmem:[#allocation2] sm:$0xf] %vm435_vm13, %v433_v45  ;;  %vm593_vm13 = vcmask 958124  }
  0xdd   : > { %438 = vst.msk [vmem:[#allocation2 + $0x8] sm:$0xf] %vm437_vm14, %v433_v45  ;;  %v466_v46 = vpop.permute.xlu1 %465  ;;  %v454_v20 = vpop.permute.xlu0 %453  ;;  %vm581_vm14 = vcmask 954024  }
  0xde   : > { %469 = vst.msk [vmem:[#allocation2 + $0x8] sm:$0xf0] %vm468_vm15, %v466_v46  ;;  %vm619_vm15 = vcmask 1048508  }
  0xdf   : > { %457 = vst.msk [vmem:[#allocation2 + $0x8] sm:$0xf] %vm456_vm0, %v454_v20  ;;  %vm621_vm0 = vcmask 187396  }
  0xe1   : > { %v488_v21 = vpop.permute.xlu1 %487  ;;  %v477_v47 = vpop.permute.xlu0 %476 }
  0xe2   : > { %491 = vst.msk [vmem:[#allocation2 + $0x8] sm:$0xf0] %vm490_vm1, %v488_v21  ;;  %vm605_vm1 = vcmask 1044408  }
  0xe3   : > { %v6588_v7 = vld [vmem:[#allocation2] sm:$0xff]  ;;  %480 = vst.msk [vmem:[#allocation2 + $0x8] sm:$0xf] %vm479_vm2, %v477_v47  ;;  %vm607_vm2 = vcmask 183296   ;;  %v6620_v47 = vld [vmem:[#allocation2 + $0x48] sm:$0xff] }
  0xe4   : > { %1088 = vrot.lane.b32.xlu0 %v6588_v7, %s5894_s9 }
  0xe5   : > { %v504_v48 = vpop.permute.xlu1 %503  ;;  %v493_v49 = vpop.permute.xlu0 %492 }
  0xe6   : > { %507 = vst.msk [vmem:[#allocation2 + $0x8] sm:$0xf0] %vm506_vm3, %v504_v48  ;;  %vm638_vm3 = vcmask 466124  }
  0xe7   : > { %496 = vst.msk [vmem:[#allocation2 + $0x8] sm:$0xf] %vm495_vm4, %v493_v49  ;;  %vm626_vm4 = vcmask 462024  }
  0xe9   : > { %v528_v50 = vpop.permute.xlu1 %527  ;;  %v515_v51 = vpop.permute.xlu0 %514 }
  0xea   : > { %531 = vst.msk [vmem:[#allocation2 + $0x8] sm:$0xf0] %vm530_vm5, %v528_v50  ;;  %vm661_vm5 = vcmask 744924  }
  0xeb   : > { %533 = vst.msk [vmem:[#allocation2 + $0x10] sm:$0xf0] %vm532_vm6, %v528_v50  ;;  %vm650_vm6 = vcmask 740824  }
  0xec   : > { %518 = vst.msk [vmem:[#allocation2 + $0x8] sm:$0xf] %vm517_vm7, %v515_v51  ;;  %vm677_vm7 = vcmask 1023724  }
  0xed   : > { %520 = vst.msk [vmem:[#allocation2 + $0x10] sm:$0xf] %vm519_vm8, %v515_v51  ;;  %v546_v4 = vpop.permute.xlu1 %545  ;;  %v535_v27 = vpop.permute.xlu0 %534  ;;  %vm666_vm8 = vcmask 1019624  }
  0xee   : > { %549 = vst.msk [vmem:[#allocation2 + $0x10] sm:$0xf0] %vm548_vm9, %v546_v4  ;;  %vm702_vm9 = vcmask 1048572  }
  0xef   : > { %538 = vst.msk [vmem:[#allocation2 + $0x10] sm:$0xf] %vm537_vm10, %v535_v27  ;;  %vm704_vm10 = vcmask 252932  }
  0xf1   : > { %v574_v54 = vpop.permute.xlu1 %573  ;;  %v558_v55 = vpop.permute.xlu0 %557 }
  0xf2   : > { %577 = vst.msk [vmem:[#allocation2 + $0x10] sm:$0xf0] %vm576_vm11, %v574_v54  ;;  %vm689_vm11 = vcmask 1044472  }
  0xf3   : > { %v6592_v57 = vld [vmem:[#allocation2 + $0x8] sm:$0xff]  ;;  %561 = vst.msk [vmem:[#allocation2 + $0x10] sm:$0xf] %vm560_vm12, %v558_v55  ;;  %vm691_vm12 = vcmask 248832  }
  0xf4   : > { %1090 = vrot.lane.b32.xlu1 %v6592_v57, %s5894_s9 }
  0xf5   : > { %v591_v59 = vpop.permute.xlu1 %590  ;;  %v579_v60 = vpop.permute.xlu0 %578 }
  0xf6   : > { %594 = vst.msk [vmem:[#allocation2 + $0x10] sm:$0xf0] %vm593_vm13, %v591_v59  ;;  %vm720_vm13 = vcmask 531724  }
  0xf7   : > { %582 = vst.msk [vmem:[#allocation2 + $0x10] sm:$0xf] %vm581_vm14, %v579_v60  ;;  %vm709_vm14 = vcmask 527624  }
  0xf9   : > { %v617_v61 = vpop.permute.xlu1 %616  ;;  %v603_v62 = vpop.permute.xlu0 %602 }
  0xfa   : > { %620 = vst.msk [vmem:[#allocation2 + $0x10] sm:$0xf0] %vm619_vm15, %v617_v61  ;;  %vm751_vm15 = vcmask 810524  }
  0xfb   : > { %622 = vst.msk [vmem:[#allocation2 + $0x18] sm:$0xf0] %vm621_vm0, %v617_v61  ;;  %vm735_vm0 = vcmask 806424  }
  0xfc   : > { %606 = vst.msk [vmem:[#allocation2 + $0x10] sm:$0xf] %vm605_vm1, %v603_v62  ;;  %vm770_vm1 = vcmask 1048364  }
  0xfd   : > { %608 = vst.msk [vmem:[#allocation2 + $0x18] sm:$0xf] %vm607_vm2, %v603_v62  ;;  %v636_v63 = vpop.permute.xlu1 %635  ;;  %v624_v5 = vpop.permute.xlu0 %623  ;;  %vm772_vm2 = vcmask 39940  }
  0xfe   : > { %639 = vst.msk [vmem:[#allocation2 + $0x18] sm:$0xf0] %vm638_vm3, %v636_v63  ;;  %vm756_vm3 = vcmask 1044264  }
  0xff   : > { %627 = vst.msk [vmem:[#allocation2 + $0x18] sm:$0xf] %vm626_vm4, %v624_v5  ;;  %vm758_vm4 = vcmask 35840  }
 0x101   : > { %v659_v6 = vpop.permute.xlu1 %658  ;;  %v648_v9 = vpop.permute.xlu0 %647 }
 0x102   : > { %662 = vst.msk [vmem:[#allocation2 + $0x18] sm:$0xf0] %vm661_vm5, %v659_v6  ;;  %vm795_vm5 = vcmask 318524  }
 0x103   : > { %651 = vst.msk [vmem:[#allocation2 + $0x18] sm:$0xf] %vm650_vm6, %v648_v9  ;;  %vm783_vm6 = vcmask 314424   ;;  %v6604_v31 = vld [vmem:[#allocation2 + $0x10] sm:$0xff] }
 0x105   : > { %v675_v14 = vpop.permute.xlu1 %674  ;;  %v664_v15 = vpop.permute.xlu0 %663 }
 0x106   : > { %678 = vst.msk [vmem:[#allocation2 + $0x18] sm:$0xf0] %vm677_vm7, %v675_v14  ;;  %vm812_vm7 = vcmask 597324  }
 0x107   : > { %667 = vst.msk [vmem:[#allocation2 + $0x18] sm:$0xf] %vm666_vm8, %v664_v15  ;;  %vm800_vm8 = vcmask 593224  }
 0x109   : > { %v700_v16 = vpop.permute.xlu1 %699  ;;  %v687_v17 = vpop.permute.xlu0 %686 }
 0x10a   : > { %703 = vst.msk [vmem:[#allocation2 + $0x18] sm:$0xf0] %vm702_vm9, %v700_v16  ;;  %vm834_vm9 = vcmask 876124  }
 0x10b   : > { %705 = vst.msk [vmem:[#allocation2 + $0x20] sm:$0xf0] %vm704_vm10, %v700_v16  ;;  %vm823_vm10 = vcmask 872024  }
 0x10c   : > { %690 = vst.msk [vmem:[#allocation2 + $0x18] sm:$0xf] %vm689_vm11, %v687_v17  ;;  %vm852_vm11 = vcmask 1048428  }
 0x10d   : > { %692 = vst.msk [vmem:[#allocation2 + $0x20] sm:$0xf] %vm691_vm12, %v687_v17  ;;  %v718_v43 = vpop.permute.xlu1 %717  ;;  %v707_v44 = vpop.permute.xlu0 %706  ;;  %vm854_vm12 = vcmask 105476  }
 0x10e   : > { %721 = vst.msk [vmem:[#allocation2 + $0x20] sm:$0xf0] %vm720_vm13, %v718_v43  ;;  %vm839_vm13 = vcmask 1044328  }
 0x10f   : > { %710 = vst.msk [vmem:[#allocation2 + $0x20] sm:$0xf] %vm709_vm14, %v707_v44  ;;  %vm841_vm14 = vcmask 101376  }
 0x111   : > { %v749_v18 = vpop.permute.xlu1 %748  ;;  %v733_v19 = vpop.permute.xlu0 %732 }
 0x112   : > { %752 = vst.msk [vmem:[#allocation2 + $0x20] sm:$0xf0] %vm751_vm15, %v749_v18  ;;  %vm876_vm15 = vcmask 384124  }
 0x113   : > { %v6596_v22 = vld [vmem:[#allocation2 + $0x18] sm:$0xff]  ;;  %736 = vst.msk [vmem:[#allocation2 + $0x20] sm:$0xf] %vm735_vm0, %v733_v19  ;;  %vm865_vm0 = vcmask 380024  }
 0x114   : > { %1094 = vrot.lane.b32.xlu1 %v6596_v22, %s5894_s9 }
 0x115   : > { %v768_v23 = vpop.permute.xlu1 %767  ;;  %v754_v24 = vpop.permute.xlu0 %753 }
 0x116   : > { %771 = vst.msk [vmem:[#allocation2 + $0x20] sm:$0xf0] %vm770_vm1, %v768_v23  ;;  %vm892_vm1 = vcmask 662924  }
 0x117   : > { %773 = vst.msk [vmem:[#allocation2 + $0x28] sm:$0xf0] %vm772_vm2, %v768_v23  ;;  %vm881_vm2 = vcmask 658824  }
 0x118   : > { %757 = vst.msk [vmem:[#allocation2 + $0x20] sm:$0xf] %vm756_vm3, %v754_v24  ;;  %vm920_vm3 = vcmask 941724  }
 0x119   : > { %759 = vst.msk [vmem:[#allocation2 + $0x28] sm:$0xf] %vm758_vm4, %v754_v24  ;;  %v793_v12 = vpop.permute.xlu1 %792  ;;  %v781_v25 = vpop.permute.xlu0 %780  ;;  %vm904_vm4 = vcmask 937624  }
 0x11a   : > { %796 = vst.msk [vmem:[#allocation2 + $0x28] sm:$0xf0] %vm795_vm5, %v793_v12  ;;  %vm939_vm5 = vcmask 1048492  }
 0x11b   : > { %784 = vst.msk [vmem:[#allocation2 + $0x28] sm:$0xf] %vm783_vm6, %v781_v25  ;;  %vm941_vm6 = vcmask 171012  }
 0x11d   : > { %v810_v8 = vpop.permute.xlu1 %809  ;;  %v798_v26 = vpop.permute.xlu0 %797 }
 0x11e   : > { %813 = vst.msk [vmem:[#allocation2 + $0x28] sm:$0xf0] %vm812_vm7, %v810_v8  ;;  %vm925_vm7 = vcmask 1044392  }
 0x11f   : > { %v6600_v28 = vld [vmem:[#allocation2 + $0x20] sm:$0xff]  ;;  %801 = vst.msk [vmem:[#allocation2 + $0x28] sm:$0xf] %vm800_vm8, %v798_v26  ;;  %vm927_vm8 = vcmask 166912  }
 0x120   : > { %9444 = vst [vmem:[#allocation13_spill] sm:$0xff] %v6600_v28  ;;  %1096 = vrot.lane.b32.xlu0 %v6600_v28, %s5894_s9 }
 0x121   : > { %v832_v29 = vpop.permute.xlu1 %831  ;;  %v821_v30 = vpop.permute.xlu0 %820 }
 0x122   : > { %835 = vst.msk [vmem:[#allocation2 + $0x28] sm:$0xf0] %vm834_vm9, %v832_v29  ;;  %vm965_vm9 = vcmask 449724  }
 0x123   : > { %824 = vst.msk [vmem:[#allocation2 + $0x28] sm:$0xf] %vm823_vm10, %v821_v30  ;;  %vm953_vm10 = vcmask 445624  }
 0x124   : > { %1092 = vrot.lane.b32.xlu0 %v6604_v31, %s5894_s9 }
 0x125   : > { %v850_v11 = vpop.permute.xlu1 %849  ;;  %v837_v32 = vpop.permute.xlu0 %836 }
 0x126   : > { %853 = vst.msk [vmem:[#allocation2 + $0x28] sm:$0xf0] %vm852_vm11, %v850_v11  ;;  %vm982_vm11 = vcmask 728524  }
 0x127   : > { %855 = vst.msk [vmem:[#allocation2 + $0x30] sm:$0xf0] %vm854_vm12, %v850_v11  ;;  %vm970_vm12 = vcmask 724424  }
 0x128   : > { %840 = vst.msk [vmem:[#allocation2 + $0x28] sm:$0xf] %vm839_vm13, %v837_v32  ;;  %vm1005_vm13 = vcmask 1007324  }
 0x129   : > { %842 = vst.msk [vmem:[#allocation2 + $0x30] sm:$0xf] %vm841_vm14, %v837_v32  ;;  %v874_v53 = vpop.permute.xlu1 %873  ;;  %v863_v3 = vpop.permute.xlu0 %862  ;;  %vm994_vm14 = vcmask 1003224  }
 0x12a   : > { %877 = vst.msk [vmem:[#allocation2 + $0x30] sm:$0xf0] %vm876_vm15, %v874_v53  ;;  %vm1023_vm15 = vcmask 1048556  }
 0x12b   : > { %866 = vst.msk [vmem:[#allocation2 + $0x30] sm:$0xf] %vm865_vm0, %v863_v3  ;;  %vm1025_vm0 = vcmask 236548  }
 0x12d   : > { %v890_v34 = vpop.permute.xlu1 %889  ;;  %v879_v35 = vpop.permute.xlu0 %878 }
 0x12e   : > { %893 = vst.msk [vmem:[#allocation2 + $0x30] sm:$0xf0] %vm892_vm1, %v890_v34  ;;  %vm1010_vm1 = vcmask 1044456  }
 0x12f   : > { %v6608_v36 = vld [vmem:[#allocation2 + $0x28] sm:$0xff]  ;;  %882 = vst.msk [vmem:[#allocation2 + $0x30] sm:$0xf] %vm881_vm2, %v879_v35  ;;  %vm1012_vm2 = vcmask 232448  }
 0x130   : > { %9445 = vst [vmem:[#allocation14_spill] sm:$0xff] %v6608_v36  ;;  %1098 = vrot.lane.b32.xlu1 %v6608_v36, %s5894_s9 }
 0x131   : > { %v918_v37 = vpop.permute.xlu1 %917  ;;  %v902_v52 = vpop.permute.xlu0 %901 }
 0x132   : > { %921 = vst.msk [vmem:[#allocation2 + $0x30] sm:$0xf0] %vm920_vm3, %v918_v37  ;;  %vm1048_vm3 = vcmask 515324  }
 0x133   : > { %905 = vst.msk [vmem:[#allocation2 + $0x30] sm:$0xf] %vm904_vm4, %v902_v52  ;;  %vm1037_vm4 = vcmask 511224  }
 0x135   : > { %v937_v38 = vpop.permute.xlu1 %936  ;;  %v923_v39 = vpop.permute.xlu0 %922 }
 0x136   : > { %940 = vst.msk [vmem:[#allocation2 + $0x30] sm:$0xf0] %vm939_vm5, %v937_v38  ;;  %vm1064_vm5 = vcmask 794124  }
 0x137   : > { %942 = vst.msk [vmem:[#allocation2 + $0x38] sm:$0xf0] %vm941_vm6, %v937_v38  ;;  %vm1053_vm6 = vcmask 790024   ;;  %v1401_v38 = vld [vmem:[%s9404_s3] sm:$0xff] }
 0x138   : > { %926 = vst.msk [vmem:[#allocation2 + $0x30] sm:$0xf] %vm925_vm7, %v923_v39  ;;  %vm1381_vm7 = vcmask 474112  }
 0x139   : > { %928 = vst.msk [vmem:[#allocation2 + $0x38] sm:$0xf] %vm927_vm8, %v923_v39  ;;  %v963_v10 = vpop.permute.xlu1 %962  ;;  %v951_v13 = vpop.permute.xlu0 %950  ;;  %v2185_v39 = vld [vmem:[%s9406_s5] sm:$0xff]  ;;  %vm1342_vm8 = vcmask 482304  }
 0x13a   : > { %966 = vst.msk [vmem:[#allocation2 + $0x38] sm:$0xf0] %vm965_vm9, %v963_v10  ;;  %vm1303_vm9 = vcmask 490496  }
 0x13b   : > { %954 = vst.msk [vmem:[#allocation2 + $0x38] sm:$0xf] %vm953_vm10, %v951_v13  ;;  %vm1264_vm10 = vcmask 752640  }
 0x13d   : > { %v980_v40 = vpop.permute.xlu1 %979  ;;  %v968_v58 = vpop.permute.xlu0 %967 }
 0x13e   : > { %983 = vst.msk [vmem:[#allocation2 + $0x38] sm:$0xf0] %vm982_vm11, %v980_v40  ;;  %v5917_v40 = vmov 0   ;;  %vm1225_vm11 = vcmask 760832  }
 0x13f   : > { %v6612_v41 = vld [vmem:[#allocation2 + $0x30] sm:$0xff]  ;;  %971 = vst.msk [vmem:[#allocation2 + $0x38] sm:$0xf] %vm970_vm12, %v968_v58  ;;  %5747 = vset.pattern.permute.xlu0 %v5917_v40  ;;  %5748 = vset.pattern.permute.xlu1 %v5917_v40  ;;  %vm1186_vm12 = vcmask 769024  }
 0x140   : > { %9446 = vst [vmem:[#allocation15_spill] sm:$0xff] %v6612_v41  ;;  %1100 = vrot.lane.b32.xlu0 %v6612_v41, %s5894_s9 }
 0x141   : > { %v1003_v56 = vpop.permute.xlu1 %1002  ;;  %v992_v1 = vpop.permute.xlu0 %991 }
 0x142   : > { %1006 = vst.msk [vmem:[#allocation2 + $0x38] sm:$0xf0] %vm1005_vm13, %v1003_v56  ;;  %vm1147_vm13 = vcmask 1031168  }
 0x143   : > { %995 = vst.msk [vmem:[#allocation2 + $0x38] sm:$0xf] %vm994_vm14, %v992_v1  ;;  %vm1108_vm14 = vcmask 1039360  }
 0x145   : > { %v1021_v2 = vpop.permute.xlu1 %1020  ;;  %v1008_v33 = vpop.permute.xlu0 %1007 }
 0x146   : > { %1024 = vst.msk [vmem:[#allocation2 + $0x38] sm:$0xf0] %vm1023_vm15, %v1021_v2  ;;  %vm1407_vm15 = vcmask 588800  }
 0x147   : > { %1026 = vst.msk [vmem:[#allocation2 + $0x40] sm:$0xf0] %vm1025_vm0, %v1021_v2  ;;  %vm5918_vm0 = vmmov 0  }
 0x148   : > { %1011 = vst.msk [vmem:[#allocation2 + $0x38] sm:$0xf] %vm1010_vm1, %v1008_v33  ;;  %vm1857_vm1 = vcmask 285696  }
 0x149   : > { %1013 = vst.msk [vmem:[#allocation2 + $0x40] sm:$0xf] %vm1012_vm2, %v1008_v33  ;;  %v1046_v42 = vpop.permute.xlu1 %1045  ;;  %v1035_v45 = vpop.permute.xlu0 %1034  ;;  %vm5545_vm2 = vmneg %vm1857_vm1 }
 0x14a   : > { %1049 = vst.msk [vmem:[#allocation2 + $0x40] sm:$0xf0] %vm1048_vm3, %v1046_v42  ;;  %vm2615_vm3 = vcmask 253952  }
 0x14b   : > { %1038 = vst.msk [vmem:[#allocation2 + $0x40] sm:$0xf] %vm1037_vm4, %v1035_v45  ;;  %vm2867_vm4 = vcmask 211968  }
 0x14d   : > { %v1062_v46 = vpop.permute.xlu1 %1061  ;;  %v1051_v20 = vpop.permute.xlu0 %1050 }
 0x14e   : > { %1065 = vst.msk [vmem:[#allocation2 + $0x40] sm:$0xf0] %vm1064_vm5, %v1062_v46  ;;  %vm3216_vm5 = vcmask 146432  }
 0x14f   : > { %v6616_v21 = vld [vmem:[#allocation2 + $0x38] sm:$0xff]  ;;  %1054 = vst.msk [vmem:[#allocation2 + $0x40] sm:$0xf] %vm1053_vm6, %v1051_v20  ;;  %vm3565_vm6 = vcmask 80896  }
 0x150   : > { %9447 = vst [vmem:[#allocation16_spill] sm:$0xff] %v6616_v21  ;;  %1102 = vrot.lane.b32.xlu1 %v6616_v21, %s5894_s9 }
 0x154   : > { %1106 = vrot.lane.b32.xlu1 %v6620_v47, %s5894_s9 }
 0x156   : > { %v6624_v48 = vld [vmem:[#allocation2 + $0x40] sm:$0xff]  ;;  %v6724_v50 = vpop.permute.xlu0 %1088 }
 0x157   : > { %9448 = vst [vmem:[#allocation17_spill] sm:$0xff] %v6624_v48  ;;  %1104 = vrot.lane.b32.xlu0 %v6624_v48, %s5894_s9 }
 0x158   : > { %1129 = vrot.lane.b32.xlu1 %v6592_v57, %s5912_s8 }
 0x15b   : > { %1127 = vrot.lane.b32.xlu0 %v6588_v7, %s5912_s8 }
 0x15c   : > { %1133 = vrot.lane.b32.xlu1 %v6596_v22, %s5912_s8 }
 0x15f   : > { %1131 = vrot.lane.b32.xlu0 %v6604_v31, %s5912_s8 }
 0x160   : > { %1137 = vrot.lane.b32.xlu1 %v6608_v36, %s5912_s8 }
 0x163   : > { %1135 = vrot.lane.b32.xlu0 %v6600_v28, %s5912_s8 }
 0x164   : > { %1141 = vrot.lane.b32.xlu1 %v6616_v21, %s5912_s8 }
 0x166   : > { %v6722_v49 = vpop.permute.xlu1 %1090 }
 0x167   : > { %1139 = vrot.lane.b32.xlu0 %v6612_v41, %s5912_s8 }
 0x168   : > { %1145 = vrot.lane.b32.xlu1 %v6620_v47, %s5912_s8 }
 0x16b   : > { %1143 = vrot.lane.b32.xlu0 %v6624_v48, %s5912_s8 }
 0x16c   : > { %1168 = vrot.lane.b32.xlu1 %v6592_v57, %s5913_s17 }
 0x16f   : > { %1166 = vrot.lane.b32.xlu0 %v6588_v7, %s5913_s17 }
 0x170   : > { %1172 = vrot.lane.b32.xlu1 %v6596_v22, %s5913_s17 }
 0x173   : > { %1170 = vrot.lane.b32.xlu0 %v6604_v31, %s5913_s17 }
 0x174   : > { %1176 = vrot.lane.b32.xlu1 %v6608_v36, %s5913_s17 }
 0x177   : > { %1174 = vrot.lane.b32.xlu0 %v6600_v28, %s5913_s17 }
 0x178   : > { %1180 = vrot.lane.b32.xlu1 %v6616_v21, %s5913_s17 }
 0x17b   : > { %1178 = vrot.lane.b32.xlu0 %v6612_v41, %s5913_s17 }
 0x17c   : > { %1184 = vrot.lane.b32.xlu1 %v6620_v47, %s5913_s17 }
 0x17f   : > { %1182 = vrot.lane.b32.xlu0 %v6624_v48, %s5913_s17 }
 0x180   : > { %1207 = vrot.lane.b32.xlu1 %v6592_v57, %s5893_s12 }
 0x183   : > { %1205 = vrot.lane.b32.xlu0 %v6588_v7, %s5893_s12 }
 0x184   : > { %1211 = vrot.lane.b32.xlu1 %v6596_v22, %s5893_s12 }
 0x186   : > { %v6730_v51 = vpop.permute.xlu1 %1094 }
 0x187   : > { %1209 = vrot.lane.b32.xlu0 %v6604_v31, %s5893_s12 }
 0x188   : > { %1215 = vrot.lane.b32.xlu1 %v6608_v36, %s5893_s12 }
 0x18b   : > { %1213 = vrot.lane.b32.xlu0 %v6600_v28, %s5893_s12 }
 0x18c   : > { %1219 = vrot.lane.b32.xlu1 %v6616_v21, %s5893_s12 }
 0x18f   : > { %1217 = vrot.lane.b32.xlu0 %v6612_v41, %s5893_s12 }
 0x190   : > { %1223 = vrot.lane.b32.xlu1 %v6620_v47, %s5893_s12 }
 0x192   : > { %v6732_v4 = vpop.permute.xlu0 %1096 }
 0x193   : > { %1221 = vrot.lane.b32.xlu0 %v6624_v48, %s5893_s12 }
 0x194   : > { %1246 = vrot.lane.b32.xlu1 %v6592_v57, %s5914_s11 }
 0x196   : > { %v6744_v54 = vpop.permute.xlu0 %1092 }
 0x197   : > { %1244 = vrot.lane.b32.xlu0 %v6588_v7, %s5914_s11 }
 0x198   : > { %1250 = vrot.lane.b32.xlu1 %v6596_v22, %s5914_s11 }
 0x19b   : > { %1248 = vrot.lane.b32.xlu0 %v6604_v31, %s5914_s11 }
 0x19c   : > { %1254 = vrot.lane.b32.xlu1 %v6608_v36, %s5914_s11 }
 0x19f   : > { %1252 = vrot.lane.b32.xlu0 %v6600_v28, %s5914_s11 }
 0x1a0   : > { %1258 = vrot.lane.b32.xlu1 %v6616_v21, %s5914_s11 }
 0x1a2   : > { %v6738_v27 = vpop.permute.xlu1 %1098 }
 0x1a3   : > { %1256 = vrot.lane.b32.xlu0 %v6612_v41, %s5914_s11  ;;  %9449 = vst [vmem:[#allocation18_spill] sm:$0xff] %v6738_v27 }
 0x1a4   : > { %1262 = vrot.lane.b32.xlu1 %v6620_v47, %s5914_s11 }
 0x1a7   : > { %1260 = vrot.lane.b32.xlu0 %v6624_v48, %s5914_s11 }
 0x1a8   : > { %1285 = vrot.lane.b32.xlu1 %v6592_v57, %s5915_s21 }
 0x1ab   : > { %1283 = vrot.lane.b32.xlu0 %v6588_v7, %s5915_s21 }
 0x1ac   : > { %1289 = vrot.lane.b32.xlu1 %v6596_v22, %s5915_s21 }
 0x1af   : > { %1287 = vrot.lane.b32.xlu0 %v6604_v31, %s5915_s21 }
 0x1b0   : > { %1293 = vrot.lane.b32.xlu1 %v6608_v36, %s5915_s21 }
 0x1b2   : > { %v6752_v59 = vpop.permute.xlu0 %1100 }
 0x1b3   : > { %1291 = vrot.lane.b32.xlu0 %v6600_v28, %s5915_s21  ;;  %9451 = vst [vmem:[#allocation20_spill] sm:$0xff] %v6752_v59 }
 0x1b4   : > { %1297 = vrot.lane.b32.xlu1 %v6616_v21, %s5915_s21 }
 0x1b7   : > { %1295 = vrot.lane.b32.xlu0 %v6612_v41, %s5915_s21 }
 0x1b8   : > { %1301 = vrot.lane.b32.xlu1 %v6620_v47, %s5915_s21 }
 0x1bb   : > { %1299 = vrot.lane.b32.xlu0 %v6624_v48, %s5915_s21 }
 0x1bc   : > { %1324 = vrot.lane.b32.xlu1 %v6592_v57, %s5892_s23 }
 0x1bf   : > { %1322 = vrot.lane.b32.xlu0 %v6588_v7, %s5892_s23 }
 0x1c0   : > { %1328 = vrot.lane.b32.xlu1 %v6596_v22, %s5892_s23 }
 0x1c2   : > { %v6746_v55 = vpop.permute.xlu1 %1102 }
 0x1c3   : > { %9450 = vst [vmem:[#allocation19_spill] sm:$0xff] %v6746_v55  ;;  %1326 = vrot.lane.b32.xlu0 %v6604_v31, %s5892_s23 }
 0x1c4   : > { %1332 = vrot.lane.b32.xlu1 %v6608_v36, %s5892_s23 }
 0x1c6   : > { %v6754_v60 = vpop.permute.xlu1 %1106 }
 0x1c7   : > { %9452 = vst [vmem:[#allocation21_spill] sm:$0xff] %v6754_v60  ;;  %1330 = vrot.lane.b32.xlu0 %v6600_v28, %s5892_s23 }
 0x1c8   : > { %1336 = vrot.lane.b32.xlu1 %v6616_v21, %s5892_s23 }
 0x1c9   : > { %v6762_v62 = vpop.permute.xlu0 %1104 }
 0x1ca   : > { %v6760_v61 = vpop.permute.xlu1 %1129  ;;  %9453 = vst [vmem:[#allocation22_spill] sm:$0xff] %v6762_v62 }
 0x1cb   : > { %1334 = vrot.lane.b32.xlu0 %v6612_v41, %s5892_s23 }
 0x1cc   : > { %1340 = vrot.lane.b32.xlu1 %v6620_v47, %s5892_s23 }
 0x1cd   : > { %v6770_v5 = vpop.permute.xlu0 %1127 }
 0x1ce   : > { %v6768_v63 = vpop.permute.xlu1 %1133 }
 0x1cf   : > { %1338 = vrot.lane.b32.xlu0 %v6624_v48, %s5892_s23 }
 0x1d0   : > { %1363 = vrot.lane.b32.xlu1 %v6592_v57, %s5916_s10 }
 0x1d1   : > { %v6778_v9 = vpop.permute.xlu0 %1131 }
 0x1d2   : > { %v6776_v6 = vpop.permute.xlu1 %1137 }
 0x1d3   : > { %9454 = vst [vmem:[#allocation23_spill] sm:$0xff] %v6776_v6  ;;  %1361 = vrot.lane.b32.xlu0 %v6588_v7, %s5916_s10 }
 0x1d4   : > { %1367 = vrot.lane.b32.xlu1 %v6596_v22, %s5916_s10 }
 0x1d5   : > { %v6786_v15 = vpop.permute.xlu0 %1135 }
 0x1d6   : > { %v6784_v14 = vpop.permute.xlu1 %1141 }
 0x1d7   : > { %9455 = vst [vmem:[#allocation24_spill] sm:$0xff] %v6784_v14  ;;  %1365 = vrot.lane.b32.xlu0 %v6604_v31, %s5916_s10 }
 0x1d8   : > { %1371 = vrot.lane.b32.xlu1 %v6608_v36, %s5916_s10 }
 0x1d9   : > { %v6794_v17 = vpop.permute.xlu0 %1139 }
 0x1da   : > { %v6792_v16 = vpop.permute.xlu1 %1145  ;;  %9457 = vst [vmem:[#allocation26_spill] sm:$0xff] %v6794_v17 }
 0x1db   : > { %9456 = vst [vmem:[#allocation25_spill] sm:$0xff] %v6792_v16  ;;  %1369 = vrot.lane.b32.xlu0 %v6600_v28, %s5916_s10 }
 0x1dc   : > { %1375 = vrot.lane.b32.xlu1 %v6616_v21, %s5916_s10 }
 0x1dd   : > { %v6802_v44 = vpop.permute.xlu0 %1143 }
 0x1de   : > { %v6800_v43 = vpop.permute.xlu1 %1168  ;;  %9458 = vst [vmem:[#allocation27_spill] sm:$0xff] %v6802_v44 }
 0x1df   : > { %1373 = vrot.lane.b32.xlu0 %v6612_v41, %s5916_s10 }
 0x1e0   : > { %1379 = vrot.lane.b32.xlu1 %v6620_v47, %s5916_s10 }
 0x1e1   : > { %v6810_v19 = vpop.permute.xlu0 %1166 }
 0x1e2   : > { %v6808_v18 = vpop.permute.xlu1 %1172 }
 0x1e3   : > { %1377 = vrot.lane.b32.xlu0 %v6624_v48, %s5916_s10 }
 0x1e4   : > { %2188 = vperm.xlu1 %5748, %v2185_v39  }
 0x1e5   : > { %v6816_v24 = vpop.permute.xlu0 %1170 }
 0x1e6   : > { %v6814_v23 = vpop.permute.xlu1 %1176 }
 0x1e7   : > { %1404 = vperm.xlu0 %5747, %v1401_v38  }
 0x1e9   : > { %v6820_v25 = vpop.permute.xlu0 %1174 }
 0x1ea   : > { %v6818_v12 = vpop.permute.xlu1 %1180 }
 0x1eb   : > { %9459 = vst [vmem:[#allocation28_spill] sm:$0xff] %v6818_v12 }
 0x1ed   : > { %v6824_v26 = vpop.permute.xlu0 %1178 }
 0x1ee   : > { %v6822_v8 = vpop.permute.xlu1 %1184 }
 0x1ef   : > { %9460 = vst [vmem:[#allocation29_spill] sm:$0xff] %v6822_v8 }
 0x1f1   : > { %v6828_v30 = vpop.permute.xlu0 %1182 }
 0x1f2   : > { %v6826_v29 = vpop.permute.xlu1 %1207  ;;  %9461 = vst [vmem:[#allocation30_spill] sm:$0xff] %v6828_v30 }
 0x1f5   : > { %v6832_v32 = vpop.permute.xlu0 %1205 }
 0x1f6   : > { %v6830_v11 = vpop.permute.xlu1 %1211 }
 0x1f9   : > { %v6836_v3 = vpop.permute.xlu0 %1209 }
 0x1fa   : > { %v6834_v53 = vpop.permute.xlu1 %1215 }
 0x1fd   : > { %v6840_v35 = vpop.permute.xlu0 %1213 }
 0x1fe   : > { %v6838_v34 = vpop.permute.xlu1 %1219 }
 0x1ff   : > { %9462 = vst [vmem:[#allocation31_spill] sm:$0xff] %v6838_v34 }
 0x201   : > { %v6844_v52 = vpop.permute.xlu0 %1217 }
 0x202   : > { %v6842_v37 = vpop.permute.xlu1 %1223 }
 0x203   : > { %9463 = vst [vmem:[#allocation32_spill] sm:$0xff] %v6842_v37 }
 0x205   : > { %v6854_v13 = vpop.permute.xlu0 %1221 }
 0x206   : > { %v6852_v10 = vpop.permute.xlu1 %1246  ;;  %9464 = vst [vmem:[#allocation33_spill] sm:$0xff] %v6854_v13 }
 0x209   : > { %v1245_v56 = vpop.permute.xlu0 %1244 }
 0x20a   : > { %v6856_v58 = vpop.permute.xlu1 %1250 }
 0x20d   : > { %v6860_v2 = vpop.permute.xlu0 %1248 }
 0x20e   : > { %v6858_v1 = vpop.permute.xlu1 %1254 }
 0x211   : > { %v6864_v42 = vpop.permute.xlu0 %1252 }
 0x212   : > { %v6862_v33 = vpop.permute.xlu1 %1258 }
 0x213   : > { %9465 = vst [vmem:[#allocation34_spill] sm:$0xff] %v6862_v33 }
 0x215   : > { %v6868_v46 = vpop.permute.xlu0 %1256 }
 0x216   : > { %v6866_v45 = vpop.permute.xlu1 %1262 }
 0x217   : > { %9466 = vst [vmem:[#allocation35_spill] sm:$0xff] %v6866_v45 }
 0x219   : > { %v6870_v47 = vpop.permute.xlu0 %1260 }
 0x21a   : > { %v1286_v20 = vpop.permute.xlu1 %1285  ;;  %9467 = vst [vmem:[#allocation36_spill] sm:$0xff] %v6870_v47 }
 0x21d   : > { %v1284_v39 = vpop.permute.xlu0 %1283 }
 0x21e   : > { %v1290_v38 = vpop.permute.xlu1 %1289 }
 0x221   : > { %v1288_v0 = vpop.permute.xlu0 %1287 }
 0x222   : > { %v6872_v40 = vpop.permute.xlu1 %1293  ;;  %v1305_v33 = vsel %vm1303_vm9, %v1286_v20, %v1288_v0 }
 0x225   : > { %v6876_v60 = vpop.permute.xlu0 %1291 }
 0x226   : > { %v6874_v48 = vpop.permute.xlu1 %1297 }
 0x229   : > { %v6880_v8 = vpop.permute.xlu0 %1295 }
 0x22a   : > { %v6878_v16 = vpop.permute.xlu1 %1301 }
 0x22b   : > { %9468 = vst [vmem:[#allocation37_spill] sm:$0xff] %v6878_v16 }
 0x22d   : > { %v6882_v45 = vpop.permute.xlu0 %1299 }
 0x22e   : > { %v1325_v37 = vpop.permute.xlu1 %1324 }
 0x231   : > { %v1323_v21 = vpop.permute.xlu0 %1322 }
 0x232   : > { %v1329_v41 = vpop.permute.xlu1 %1328 }
 0x235   : > { %v1327_v62 = vpop.permute.xlu0 %1326 }
 0x236   : > { %v6884_v55 = vpop.permute.xlu1 %1332  ;;  %v1344_v13 = vsel %vm1342_vm8, %v1325_v37, %v1327_v62 }
 0x239   : > { %v6886_v28 = vpop.permute.xlu0 %1330 }
 0x23a   : > { %v6888_v36 = vpop.permute.xlu1 %1336 }
 0x23d   : > { %v6890_v14 = vpop.permute.xlu0 %1334 }
 0x23e   : > { %v6892_v44 = vpop.permute.xlu1 %1340 }
 0x23f   : > { %9469 = vst [vmem:[#allocation38_spill] sm:$0xff] %v6892_v44  ;;  %v1343_v44 = vsel %vm1342_vm8, %v1323_v21, %v1325_v37  ;;  %v1346_v21 = vsel %vm1342_vm8, %v1329_v41, %v6886_v28  ;;  %v1226_v37 = vsel %vm1225_vm11, %v6832_v32, %v6826_v29  ;;  %v1229_v32 = vsel %vm1225_vm11, %v6830_v11, %v6840_v35 }
 0x241   : > { %v6894_v12 = vpop.permute.xlu0 %1338 }
 0x242   : > { %v1364_v30 = vpop.permute.xlu1 %1363 }
 0x245   : > { %v1362_v16 = vpop.permute.xlu0 %1361 }
 0x246   : > { %v1382_v34 = vsel %vm1381_vm7, %v1362_v16, %v1364_v30  ;;  %v1368_v6 = vpop.permute.xlu1 %1367 }
 0x249   : > { %v1366_v27 = vpop.permute.xlu0 %1365 }
 0x24a   : > { %v1383_v59 = vsel %vm1381_vm7, %v1364_v30, %v1366_v27  ;;  %v1384_v16 = vsel %vm1381_vm7, %v1366_v27, %v1368_v6  ;;  %v1266_v30 = vsel %vm1264_vm10, %v6852_v10, %v6860_v2  ;;  %v1227_v27 = vsel %vm1225_vm11, %v6826_v29, %v6836_v3 }
 0x24b   : > { %1425 = vmatprep.subr.mxu0 %v1383_v59  ;;  %v1304_v59 = vsel %vm1303_vm9, %v1284_v39, %v1286_v20  ;;  %v1149_v29 = vsel %vm1147_vm13, %v6760_v61, %v6778_v9  ;;  %v1269_v20 = vsel %vm1264_vm10, %v6864_v42, %v6858_v1  ;;  %v9471_v39 = vld [vmem:[#allocation34_spill] sm:$0xff] }
 0x24c   : > { %1426 = vmatpush1.msra.mxu0 %v1382_v34  ;;  %v1345_v34 = vsel %vm1342_vm8, %v1327_v62, %v1329_v41  ;;  %v1188_v41 = vsel %vm1186_vm12, %v6800_v43, %v6816_v24  ;;  %v1268_v62 = vsel %vm1264_vm10, %v6856_v58, %v6864_v42  ;;  %v9470_v42 = vld [vmem:[#allocation36_spill] sm:$0xff] }
 0x24d   : > { %1427 = vmatprep.subr.mxu0 %v1344_v13  ;;  %v6899_v17 = vpop.permute.xlu0 %1369  ;;  %v1187_v13 = vsel %vm1186_vm12, %v6810_v19, %v6800_v43  ;;  %v1148_v43 = vsel %vm1147_vm13, %v6770_v5, %v6760_v61  ;;  %v1228_v19 = vsel %vm1225_vm11, %v6836_v3, %v6830_v11  ;;  %v1109_v61 = vsel %vm1108_vm14, %v6724_v50, %v6722_v49  ;;  %v1372_v11 = vpop.permute.xlu1 %1371 }
 0x24e   : > { %1428 = vmatpush1.msra.mxu0 %v1343_v44  ;;  %v1385_v47 = vsel %vm1381_vm7, %v1368_v6, %v6899_v17  ;;  %v1265_v44 = vsel %vm1264_vm10, %v1245_v56, %v6852_v10  ;;  %v1307_v6 = vsel %vm1303_vm9, %v1290_v38, %v6876_v60  ;;  %v1306_v10 = vsel %vm1303_vm9, %v1288_v0, %v1290_v38 }
 0x24f   : > { %1429 = vmatprep.subr.mxu0 %v1305_v33  ;;  %1496 = vmatprep.subr.mxu1 %v1385_v47  ;;  %v1267_v0 = vsel %vm1264_vm10, %v6860_v2, %v6856_v58  ;;  %v1110_v56 = vsel %vm1108_vm14, %v6722_v49, %v6744_v54  ;;  %v1190_v2 = vsel %vm1186_vm12, %v6808_v18, %v6820_v25  ;;  %v6966_v33 = vld [vmem:[%s9403_s2] sm:$0xff] }
 0x250   : > { %1430 = vmatpush1.msra.mxu0 %v1304_v59  ;;  %1497 = vmatpush1.msra.mxu1 %v1384_v16  ;;  %v1189_v5 = vsel %vm1186_vm12, %v6816_v24, %v6808_v18  ;;  %v1151_v3 = vsel %vm1147_vm13, %v6768_v63, %v6786_v15  ;;  %v1150_v49 = vsel %vm1147_vm13, %v6778_v9, %v6768_v63  ;;  %v9474_v16 = vld [vmem:[#allocation33_spill] sm:$0xff] }
 0x251   : > { %1431 = vmatprep.subr.mxu0 %v1266_v30  ;;  %1498 = vmatprep.subr.mxu1 %v1346_v21  ;;  %v1374_v58 = vpop.permute.xlu0 %1373  ;;  %v1112_v50 = vsel %vm1108_vm14, %v6730_v51, %v6732_v4  ;;  %v1348_v63 = vsel %vm1342_vm8, %v6884_v55, %v6890_v14  ;;  %v1376_v9 = vpop.permute.xlu1 %1375  ;;  %v1231_v47 = vsel %vm1225_vm11, %v6834_v53, %v6844_v52  ;;  %v9475_v30 = vld [vmem:[#allocation31_spill] sm:$0xff] }
 0x252   : > { %1432 = vmatpush1.msra.mxu0 %v1265_v44  ;;  %1499 = vmatpush1.msra.mxu1 %v1345_v34  ;;  %v1387_v18 = vsel %vm1381_vm7, %v1372_v11, %v1374_v58  ;;  %v1311_v38 = vsel %vm1303_vm9, %v6874_v48, %v6882_v45  ;;  %v1233_v21 = vsel %vm1225_vm11, %v9475_v30, %v9474_v16  ;;  %v9477_v44 = vld [vmem:[#allocation18_spill] sm:$0xff] }
 0x253   : > { %1433 = vmatprep.subr.mxu0 %v1227_v27  ;;  %1500 = vmatprep.subr.mxu1 %v1307_v6  ;;  %v9478_v27 = vld [vmem:[#allocation30_spill] sm:$0xff]  ;;  %v9479_v6 = vld [vmem:[#allocation28_spill] sm:$0xff] }
 0x254   : > { %1434 = vmatpush1.msra.mxu0 %v1226_v37  ;;  %1501 = vmatpush1.msra.mxu1 %v1306_v10  ;;  %v1194_v37 = vsel %vm1186_vm12, %v9479_v6, %v9478_v27  ;;  %v9480_v10 = vld [vmem:[#allocation27_spill] sm:$0xff] }
 0x255   : > { %1435 = vmatprep.subr.mxu0 %v1188_v41  ;;  %1502 = vmatprep.subr.mxu1 %v1268_v62  ;;  %v6982_v24 = vpop.permute.xlu0 %1377  ;;  %v9481_v41 = vld [vmem:[#allocation24_spill] sm:$0xff] }
 0x256   : > { %1436 = vmatpush1.msra.mxu0 %v1187_v13  ;;  %1503 = vmatpush1.msra.mxu1 %v1267_v0  ;;  %v1155_v62 = vsel %vm1147_vm13, %v9481_v41, %v9480_v10  ;;  %v1380_v13 = vpop.permute.xlu1 %1379  ;;  %v9482_v0 = vld [vmem:[#allocation14_spill] sm:$0xff] }
 0x257   : > { %1437 = vmatprep.subr.mxu0 %v1149_v29  ;;  %1504 = vmatprep.subr.mxu1 %v1229_v32  ;;  %v9483_v29 = vld [vmem:[#allocation13_spill] sm:$0xff]  ;;  %v9484_v32 = vmov 0.0  }
 0x258   : > { %1438 = vmatpush1.msra.mxu0 %v1148_v43  ;;  %1505 = vmatpush1.msra.mxu1 %v1228_v19  ;;  %v9486_v43 = vld [vmem:[#allocation19_spill] sm:$0xff] }
 0x259   : > { %1439 = vmatprep.subr.mxu0 %v1110_v56  ;;  %1506 = vmatprep.subr.mxu1 %v1190_v2  ;;  %v1390_v56 = vsel %vm1381_vm7, %v6982_v24, %v1380_v13  ;;  %v9487_v2 = vld [vmem:[#allocation16_spill] sm:$0xff] }
 0x25a   : > { %1440 = vmatpush1.msra.mxu0 %v1109_v61  ;;  %1507 = vmatpush1.msra.mxu1 %v1189_v5  ;;  %v9488_v61 = vld [vmem:[#allocation15_spill] sm:$0xff]  ;;  %v9489_v5 = vld [vmem:[#allocation38_spill] sm:$0xff] }
 0x25b   : > { %1441 = vmatprep.subr.mxu0 %v6592_v57  ;;  %1508 = vmatprep.subr.mxu1 %v1151_v3  ;;  %v1111_v57 = vsel %vm1108_vm14, %v6744_v54, %v6730_v51  ;;  %v1347_v51 = vsel %vm1342_vm8, %v6886_v28, %v6884_v55  ;;  %v1389_v54 = vsel %vm1381_vm7, %v1376_v9, %v6982_v24  ;;  %v9490_v3 = vld [vmem:[#allocation37_spill] sm:$0xff] }
 0x25c   : > { %1442 = vmatpush1.msra.mxu0 %v6588_v7  ;;  %1509 = vmatpush1.msra.mxu1 %v1150_v49  ;;  %v1386_v7 = vsel %vm1381_vm7, %v6899_v17, %v1372_v11  ;;  %v1388_v17 = vsel %vm1381_vm7, %v1374_v58, %v1376_v9  ;;  %v1270_v28 = vsel %vm1264_vm10, %v6858_v1, %v6868_v46  ;;  %v9495_v9 = vld [vmem:[#allocation21_spill] sm:$0xff] }
 0x25d   : > { %5539 = vmatmul.mubr.msk.f32.vlgmr.msra.gmra.mxu0 %vm1407_vm15, %v6966_v33  ;;  %1510 = vmatprep.subr.mxu1 %v1112_v50  ;;  %v1350_v55 = vsel %vm1342_vm8, %v6888_v36, %v6894_v12  ;;  %v1230_v1 = vsel %vm1225_vm11, %v6840_v35, %v6834_v53  ;;  %v1191_v53 = vsel %vm1186_vm12, %v6820_v25, %v6814_v23  ;;  %v9473_v35 = vld [vmem:[#allocation23_spill] sm:$0xff] }
 0x25e   : > { %1567 = vmatprep.subr.mxu0 %v1387_v18  ;;  %1511 = vmatpush1.msra.mxu1 %v1111_v57  ;;  %v1232_v25 = vsel %vm1225_vm11, %v6844_v52, %v9475_v30  ;;  %v1193_v52 = vsel %vm1186_vm12, %v6824_v26, %v9479_v6  ;;  %v1351_v11 = vsel %vm1342_vm8, %v6894_v12, %v9489_v5  ;;  %v9491_v12 = vld [vmem:[#allocation35_spill] sm:$0xff]  ;;  %v9492_v18 = vld [vmem:[#allocation32_spill] sm:$0xff]  ;;  %v9493_v57 = vld [vmem:[#allocation29_spill] sm:$0xff] }
 0x25f   : > { %1568 = vmatpush1.msra.mxu0 %v1386_v7  ;;  %1512 = vmatprep.subr.mxu1 %v6596_v22  ;;  %v1309_v22 = vsel %vm1303_vm9, %v6872_v40, %v6880_v8  ;;  %v1312_v49 = vsel %vm1303_vm9, %v6882_v45, %v9490_v3  ;;  %v1273_v50 = vsel %vm1264_vm10, %v9470_v42, %v9491_v12  ;;  %v9494_v7 = vld [vmem:[#allocation25_spill] sm:$0xff] }
 0x260   : > { %1569 = vmatprep.subr.mxu0 %v1348_v63  ;;  %1513 = vmatpush1.msra.mxu1 %v6604_v31  ;;  %v1308_v31 = vsel %vm1303_vm9, %v6876_v60, %v6872_v40  ;;  %v1349_v60 = vsel %vm1342_vm8, %v6890_v14, %v6888_v36  ;;  %v1310_v36 = vsel %vm1303_vm9, %v6880_v8, %v6874_v48  ;;  %v9472_v8 = vld [vmem:[#allocation26_spill] sm:$0xff] }
 0x261   : > { %1570 = vmatpush1.msra.mxu0 %v1347_v51  ;;  %5540 = vmatmul.mubr.msk.f32.vlgmr.msra.gmra.mxu1 %vm1407_vm15, %v6966_v33  ;;  %v1192_v14 = vsel %vm1186_vm12, %v6814_v23, %v6824_v26  ;;  %v1272_v40 = vsel %vm1264_vm10, %v9471_v39, %v9470_v42  ;;  %v1271_v48 = vsel %vm1264_vm10, %v6868_v46, %v9471_v39  ;;  %v9476_v46 = vld [vmem:[#allocation20_spill] sm:$0xff]  ;;  %v9485_v26 = vld [vmem:[#allocation22_spill] sm:$0xff] }
 0x262   : > { %1571 = vmatprep.subr.mxu0 %v1309_v22  ;;  %1638 = vmatprep.subr.mxu1 %v1389_v54  ;;  %v1153_v59 = vsel %vm1147_vm13, %v9473_v35, %v9472_v8  ;;  %v1152_v23 = vsel %vm1147_vm13, %v6786_v15, %v9473_v35  ;;  %v1114_v34 = vsel %vm1108_vm14, %v9477_v44, %v9476_v46  ;;  %v9496_v22 = vld [vmem:[#allocation17_spill] sm:$0xff]  ;;  %v1776_v54 = vlaneseq }
 0x263   : > { %1572 = vmatpush1.msra.mxu0 %v1308_v31  ;;  %1639 = vmatpush1.msra.mxu1 %v1388_v17  ;;  %v1113_v15 = vsel %vm1108_vm14, %v6732_v4, %v9477_v44  ;;  %v1154_v4 = vsel %vm1147_vm13, %v9472_v8, %v9481_v41  ;;  %v1116_v19 = vsel %vm1108_vm14, %v9486_v43, %v9485_v26 }
 0x264   : > { %1573 = vmatprep.subr.mxu0 %v1270_v28  ;;  %1640 = vmatprep.subr.mxu1 %v1350_v55  ;;  %v1115_v58 = vsel %vm1108_vm14, %v9476_v46, %v9486_v43  ;;  %v1234_v45 = vsel %vm1225_vm11, %v9474_v16, %v9492_v18  ;;  %v1195_v24 = vsel %vm1186_vm12, %v9478_v27, %v9493_v57  ;;  %v7126_v31 = vshrl.u32 %v1776_v54, 7  ;;  %v1405_v28 = vpop.permute.xlu0 %1404  ;;  %v1066_v55 = vld [vmem:[%s9407_s6] sm:$0xff]  ;;  %v5544_v18 = vld [vmem:[%s9407_s6 + $0x8] ss:$0 sm:$0xff] }
 0x265   : > { %1574 = vmatpush1.msra.mxu0 %v1269_v20  ;;  %1641 = vmatpush1.msra.mxu1 %v1349_v60  ;;  %v1156_v63 = vsel %vm1147_vm13, %v9480_v10, %v9494_v7  ;;  %v1117_v51 = vsel %vm1108_vm14, %v9485_v26, %v9495_v9  ;;  %v7157_v7 = vpop.permute.xlu1 %2188 }
 0x266   : > { %1575 = vmatprep.subr.mxu0 %v1231_v47  ;;  %1642 = vmatprep.subr.mxu1 %v1311_v38  ;;  %v7129_v17 = vsub.s32 0, %v7126_v31  ;;  %v7135_v60 = vsub.s32 1, %v7126_v31  ;;  %v1786_v47 = vsub.s32 2, %v7126_v31  ;;  %v1790_v8 = vsub.s32 3, %v7126_v31 }
 0x267   : > { %1576 = vmatpush1.msra.mxu0 %v1230_v1  ;;  %1643 = vmatpush1.msra.mxu1 %v1310_v36  ;;  %v1798_v27 = vsub.s32 5, %v7126_v31  ;;  %v1802_v10 = vsub.s32 6, %v7126_v31 }
 0x268   : > { %1577 = vmatprep.subr.mxu0 %v1192_v14  ;;  %1644 = vmatprep.subr.mxu1 %v1272_v40  ;;  %v1779_v38 = vrot.slane %v1066_v55, %v7129_v17  ;;  %v1783_v42 = vrot.slane %v1066_v55, %v7135_v60  ;;  %v1787_v40 = vrot.slane %v1066_v55, %v1786_v47 }
 0x269   : > { %1578 = vmatpush1.msra.mxu0 %v1191_v53  ;;  %1645 = vmatpush1.msra.mxu1 %v1271_v48  ;;  %v1791_v46 = vrot.slane %v1066_v55, %v1790_v8  ;;  %v1799_v13 = vrot.slane %v1066_v55, %v1798_v27 }
 0x26a   : > { %1579 = vmatprep.subr.mxu0 %v1153_v59  ;;  %1646 = vmatprep.subr.mxu1 %v1233_v21 }
 0x26b   : > { %1580 = vmatpush1.msra.mxu0 %v1152_v23  ;;  %1647 = vmatpush1.msra.mxu1 %v1232_v25 }
 0x26c   : > { %1581 = vmatprep.subr.mxu0 %v1114_v34  ;;  %1648 = vmatprep.subr.mxu1 %v1194_v37  ;;  %v1794_v34 = vsub.s32 4, %v7126_v31 }
 0x26d   : > { %1582 = vmatpush1.msra.mxu0 %v1113_v15  ;;  %1649 = vmatpush1.msra.mxu1 %v1193_v52 }
 0x26e   : > { %1583 = vmatprep.subr.mxu0 %v9482_v0  ;;  %1650 = vmatprep.subr.mxu1 %v1155_v62  ;;  %v1795_v15 = vrot.slane %v1066_v55, %v1794_v34  ;;  %v1806_v0 = vsub.s32 7, %v7126_v31 }
 0x26f   : > { %1584 = vmatpush1.msra.mxu0 %v9483_v29  ;;  %1617 = vmatprep.mubr.f32.mxu0 %v9484_v32 }
 0x270   : > { %1651 = vmatpush1.msra.mxu1 %v1154_v4  ;;  %5541 = vmatmul.mubr.msk.f32.vlgmr.msra.gmra.mxu0 %vm1407_vm15, %v6966_v33  ;;  %v1807_v5 = vrot.slane %v1066_v55, %v1806_v0 }
 0x271   : > { %1652 = vmatprep.subr.mxu1 %v1116_v19  ;;  %5580 = vmatprep.subr.mxu0 %v9484_v32  ;;  %v1803_v19 = vrot.slane %v1066_v55, %v1802_v10 }
 0x272   : > { %1653 = vmatpush1.msra.mxu1 %v1115_v58  ;;  %5581 = vmatpush3.msra.mxu0 %v1390_v56 }
 0x273   : > { %1654 = vmatprep.subr.mxu1 %v9487_v2  ;;  %5582 = vmatprep.subr.mxu0 %v9484_v32 }
 0x274   : > { %1655 = vmatpush1.msra.mxu1 %v9488_v61  ;;  %1688 = vmatprep.mubr.f32.mxu1 %v9484_v32 }
 0x275   : > { %5583 = vmatpush3.msra.mxu0 %v1351_v11  ;;  %5542 = vmatmul.mubr.msk.f32.vlgmr.msra.gmra.mxu1 %vm1407_vm15, %v6966_v33 }
 0x276   : > { %5584 = vmatprep.subr.mxu0 %v9484_v32  ;;  %5598 = vmatprep.mubr.msk.f32.mxu0 %vm5918_vm0, %v9484_v32 }
 0x277   : > { %5585 = vmatpush3.msra.mxu0 %v1312_v49  ;;  %2258 = vmatprep.mubr.f32.mxu1 %v9484_v32 }
 0x278   : > { %5586 = vmatprep.subr.mxu0 %v9484_v32 }
 0x279   : > { %5587 = vmatpush3.msra.mxu0 %v1273_v50 }
 0x27a   : > { %5588 = vmatprep.subr.mxu0 %v9484_v32 }
 0x27b   : > { %5589 = vmatpush3.msra.mxu0 %v1234_v45 }
 0x27c   : > { %5590 = vmatprep.subr.mxu0 %v9484_v32 }
 0x27d   : > { %5591 = vmatpush3.msra.mxu0 %v1195_v24 }
 0x27e   : > { %5592 = vmatprep.subr.mxu0 %v9484_v32 }
 0x27f   : > { %5593 = vmatpush3.msra.mxu0 %v1156_v63 }
 0x280   : > { %5594 = vmatprep.subr.mxu0 %v9484_v32 }
 0x281   : > { %5595 = vmatpush3.msra.mxu0 %v1117_v51 }
 0x282   : > { %5596 = vmatprep.subr.mxu0 %v9484_v32 }
 0x283   : > { %5597 = vmatpush3.msra.mxu0 %v9496_v22 }
 0x284   : > { %5599 = vmatmul.mubr.msk.f32.vlgmr.msra.gmra.mxu0 %vm1407_vm15, %v6966_v33 }
 0x285   : > { %2329 = vmatprep.mubr.f32.mxu0 %v9484_v32 }
 0x31d   : > { %v1477_v20 = vpop.f32.mrf.mxu0 }
 0x31e   : > { %v1478_v33 = vadd.f32 %v1477_v20, %v1405_v28 }
 0x31f   : > { %v1479_v1 = vpop.f32.mrf.mxu0 }
 0x320   : > { %v1480_v36 = vadd.f32 %v1479_v1, %v1405_v28  ;;  %v1765_v14 = vmax.f32 %v1478_v33, 0.0 }
 0x321   : > { %v1548_v39 = vpop.f32.mrf.mxu1 }
 0x322   : > { %v1766_v53 = vmax.f32 %v1480_v36, 0.0  ;;  %v1549_v48 = vadd.f32 %v1548_v39, %v1405_v28  ;;  %v1821_v35 = vmul.f32 %v1779_v38, %v1765_v14 }
 0x323   : > { %v1550_v59 = vpop.f32.mrf.mxu1 }
 0x324   : > { %v1767_v16 = vmax.f32 %v1549_v48, 0.0  ;;  %v1551_v30 = vadd.f32 %v1550_v59, %v1405_v28  ;;  %1839 = vrot.lane.b32.xlu1 %v1821_v35, %s5881_s18  ;;  %v1822_v21 = vmul.f32 %v1783_v42, %v1766_v53 }
 0x326   : > { %v1823_v23 = vmul.f32 %v1787_v40, %v1767_v16  ;;  %v1768_v25 = vmax.f32 %v1551_v30, 0.0 }
 0x328   : > { %1843 = vrot.lane.b32.xlu0 %v1823_v23, %s5881_s18  ;;  %1841 = vrot.lane.b32.xlu1 %v1822_v21, %s5881_s18  ;;  %v1824_v44 = vmul.f32 %v1791_v46, %v1768_v25 }
 0x32c   : > { %1845 = vrot.lane.b32.xlu1 %v1824_v44, %s5881_s18 }
 0x330   : > { %v1619_v6 = vpop.f32.mrf.mxu0 }
 0x331   : > { %v1620_v37 = vadd.f32 %v1619_v6, %v1405_v28 }
 0x332   : > { %v1621_v52 = vpop.f32.mrf.mxu0 }
 0x333   : > { %v1769_v41 = vmax.f32 %v1620_v37, 0.0  ;;  %v1622_v62 = vadd.f32 %v1621_v52, %v1405_v28 }
 0x335   : > { %v1825_v29 = vmul.f32 %v1795_v15, %v1769_v41  ;;  %v1770_v4 = vmax.f32 %v1622_v62, 0.0  ;;  %v1690_v26 = vpop.f32.mrf.mxu1 }
 0x336   : > { %v1691_v43 = vadd.f32 %v1690_v26, %v1405_v28 }
 0x337   : > { %v1826_v58 = vmul.f32 %v1799_v13, %v1770_v4  ;;  %v1692_v56 = vpop.f32.mrf.mxu1  ;;  %1847 = vrot.lane.b32.xlu0 %v1825_v29, %s5881_s18 }
 0x338   : > { %v1771_v2 = vmax.f32 %v1691_v43, 0.0  ;;  %v1693_v61 = vadd.f32 %v1692_v56, %v1405_v28 }
 0x339   : > { %1849 = vrot.lane.b32.xlu1 %v1826_v58, %s5881_s18 }
 0x33a   : > { %v1827_v11 = vmul.f32 %v1803_v19, %v1771_v2  ;;  %v1772_v3 = vmax.f32 %v1693_v61, 0.0 }
 0x33c   : > { %v1828_v49 = vmul.f32 %v1807_v5, %v1772_v3  ;;  %1851 = vrot.lane.b32.xlu0 %v1827_v11, %s5881_s18 }
 0x33e   : > { %1853 = vrot.lane.b32.xlu1 %v1828_v49, %s5881_s18 }
 0x344   : > { %v1761_v12 = vpop.f32.mrf.mxu0 }
 0x345   : > { %v1762_v50 = vadd.f32 %v1761_v12, %v1405_v28 }
 0x346   : > { %v5600_v45 = vpop.f32.mrf.mxu0 }
 0x347   : > { %v1773_v57 = vmax.f32 %v1762_v50, 0.0 }
 0x349   : > { %v1829_v24 = vmul.f32 %v5544_v18, %v1773_v57 }
 0x34b   : > { %1855 = vrot.lane.b32.xlu0 %v1829_v24, %s5881_s18  ;;  %s5931_s18 = smov 96  }
 0x396   : > { %v7159_v63 = vpop.permute.xlu1 %1839 }
 0x397   : > { %v1876_v9 = vsel %vm1857_vm1, 0.0, %v7159_v63 }
 0x398   : > { %1880 = vrot.lane.b32.xlu1 %v1876_v9, %s5894_s9 }
 0x39a   : > { %v1842_v51 = vpop.permute.xlu1 %1841  ;;  %v1844_v54 = vpop.permute.xlu0 %1843 }
 0x39b   : > { %v7166_v22 = vsel %vm1857_vm1, %v7159_v63, %v1842_v51  ;;  %v7193_v20 = vsel %vm1857_vm1, %v1842_v51, %v1844_v54 }
 0x39c   : > { %1918 = vrot.lane.b32.xlu1 %v1876_v9, %s5912_s8  ;;  %1882 = vrot.lane.b32.xlu0 %v7166_v22, %s5894_s9 }
 0x39e   : > { %v1846_v28 = vpop.permute.xlu1 %1845 }
 0x39f   : > { %v7172_v55 = vsel %vm1857_vm1, %v1844_v54, %v1846_v28 }
 0x3a0   : > { %1956 = vrot.lane.b32.xlu1 %v1876_v9, %s5913_s17  ;;  %1886 = vrot.lane.b32.xlu0 %v7172_v55, %s5894_s9 }
 0x3a4   : > { %1994 = vrot.lane.b32.xlu1 %v1876_v9, %s5893_s12  ;;  %1920 = vrot.lane.b32.xlu0 %v7166_v22, %s5912_s8 }
 0x3a8   : > { %2032 = vrot.lane.b32.xlu1 %v1876_v9, %s5914_s11  ;;  %1924 = vrot.lane.b32.xlu0 %v7172_v55, %s5912_s8 }
 0x3a9   : > { %v1848_v47 = vpop.permute.xlu0 %1847 }
 0x3aa   : > { %v7228_v38 = vsel %vm1857_vm1, %v1846_v28, %v1848_v47 }
 0x3ab   : > { %v1850_v33 = vpop.permute.xlu1 %1849 }
 0x3ac   : > { %2070 = vrot.lane.b32.xlu1 %v1876_v9, %s5915_s21  ;;  %1958 = vrot.lane.b32.xlu0 %v7166_v22, %s5913_s17  ;;  %v7235_v1 = vsel %vm1857_vm1, %v1848_v47, %v1850_v33 }
 0x3ae   : > { %v1852_v14 = vpop.permute.xlu0 %1851 }
 0x3af   : > { %v7269_v39 = vsel %vm1857_vm1, %v1850_v33, %v1852_v14 }
 0x3b0   : > { %2108 = vrot.lane.b32.xlu1 %v1876_v9, %s5892_s23  ;;  %1962 = vrot.lane.b32.xlu0 %v7172_v55, %s5913_s17  ;;  %v1854_v36 = vpop.permute.xlu1 %1853 }
 0x3b1   : > { %v7242_v42 = vsel %vm1857_vm1, %v1852_v14, %v1854_v36 }
 0x3b4   : > { %2146 = vrot.lane.b32.xlu1 %v1876_v9, %s5916_s10  ;;  %1996 = vrot.lane.b32.xlu0 %v7166_v22, %s5893_s12 }
 0x3b8   : > { %1884 = vrot.lane.b32.xlu1 %v7193_v20, %s5894_s9  ;;  %2000 = vrot.lane.b32.xlu0 %v7172_v55, %s5893_s12 }
 0x3bc   : > { %1922 = vrot.lane.b32.xlu1 %v7193_v20, %s5912_s8  ;;  %2034 = vrot.lane.b32.xlu0 %v7166_v22, %s5914_s11 }
 0x3bd   : > { %v1856_v40 = vpop.permute.xlu0 %1855 }
 0x3be   : > { %v7318_v21 = vsel %vm1857_vm1, %v1854_v36, %v1856_v40  ;;  %v1877_v46 = vsel %vm1857_vm1, %v1856_v40, 0.0 }
 0x3c0   : > { %1960 = vrot.lane.b32.xlu1 %v7193_v20, %s5913_s17  ;;  %2038 = vrot.lane.b32.xlu0 %v7172_v55, %s5914_s11 }
 0x3c4   : > { %1998 = vrot.lane.b32.xlu1 %v7193_v20, %s5893_s12  ;;  %2072 = vrot.lane.b32.xlu0 %v7166_v22, %s5915_s21 }
 0x3c8   : > { %2036 = vrot.lane.b32.xlu1 %v7193_v20, %s5914_s11  ;;  %2076 = vrot.lane.b32.xlu0 %v7172_v55, %s5915_s21 }
 0x3cc   : > { %2074 = vrot.lane.b32.xlu1 %v7193_v20, %s5915_s21  ;;  %2110 = vrot.lane.b32.xlu0 %v7166_v22, %s5892_s23 }
 0x3d0   : > { %2112 = vrot.lane.b32.xlu1 %v7193_v20, %s5892_s23  ;;  %2114 = vrot.lane.b32.xlu0 %v7172_v55, %s5892_s23 }
 0x3d4   : > { %2150 = vrot.lane.b32.xlu1 %v7193_v20, %s5916_s10  ;;  %2148 = vrot.lane.b32.xlu0 %v7166_v22, %s5916_s10 }
 0x3d8   : > { %1888 = vrot.lane.b32.xlu1 %v7228_v38, %s5894_s9  ;;  %2152 = vrot.lane.b32.xlu0 %v7172_v55, %s5916_s10 }
 0x3dc   : > { %1926 = vrot.lane.b32.xlu1 %v7228_v38, %s5912_s8  ;;  %1890 = vrot.lane.b32.xlu0 %v7235_v1, %s5894_s9 }
 0x3e0   : > { %1964 = vrot.lane.b32.xlu1 %v7228_v38, %s5913_s17  ;;  %1894 = vrot.lane.b32.xlu0 %v7242_v42, %s5894_s9 }
 0x3e4   : > { %2002 = vrot.lane.b32.xlu1 %v7228_v38, %s5893_s12  ;;  %1928 = vrot.lane.b32.xlu0 %v7235_v1, %s5912_s8 }
 0x3e8   : > { %2040 = vrot.lane.b32.xlu1 %v7228_v38, %s5914_s11  ;;  %1932 = vrot.lane.b32.xlu0 %v7242_v42, %s5912_s8 }
 0x3ec   : > { %2078 = vrot.lane.b32.xlu1 %v7228_v38, %s5915_s21  ;;  %1966 = vrot.lane.b32.xlu0 %v7235_v1, %s5913_s17 }
 0x3f0   : > { %2116 = vrot.lane.b32.xlu1 %v7228_v38, %s5892_s23  ;;  %1970 = vrot.lane.b32.xlu0 %v7242_v42, %s5913_s17 }
 0x3f4   : > { %2154 = vrot.lane.b32.xlu1 %v7228_v38, %s5916_s10  ;;  %2004 = vrot.lane.b32.xlu0 %v7235_v1, %s5893_s12 }
 0x3f8   : > { %1892 = vrot.lane.b32.xlu1 %v7269_v39, %s5894_s9  ;;  %2008 = vrot.lane.b32.xlu0 %v7242_v42, %s5893_s12 }
 0x3fc   : > { %1930 = vrot.lane.b32.xlu1 %v7269_v39, %s5912_s8  ;;  %2042 = vrot.lane.b32.xlu0 %v7235_v1, %s5914_s11 }
 0x400   : > { %1968 = vrot.lane.b32.xlu1 %v7269_v39, %s5913_s17  ;;  %2046 = vrot.lane.b32.xlu0 %v7242_v42, %s5914_s11 }
 0x404   : > { %2006 = vrot.lane.b32.xlu1 %v7269_v39, %s5893_s12  ;;  %2080 = vrot.lane.b32.xlu0 %v7235_v1, %s5915_s21 }
 0x408   : > { %2044 = vrot.lane.b32.xlu1 %v7269_v39, %s5914_s11  ;;  %2084 = vrot.lane.b32.xlu0 %v7242_v42, %s5915_s21 }
 0x40a   : > { %v7291_v53 = vpop.permute.xlu1 %1880 }
 0x40c   : > { %2082 = vrot.lane.b32.xlu1 %v7269_v39, %s5915_s21  ;;  %2118 = vrot.lane.b32.xlu0 %v7235_v1, %s5892_s23 }
 0x40e   : > { %v7297_v48 = vpop.permute.xlu0 %1882  ;;  %v7299_v8 = vpop.permute.xlu1 %1918 }
 0x410   : > { %2120 = vrot.lane.b32.xlu1 %v7269_v39, %s5892_s23  ;;  %2122 = vrot.lane.b32.xlu0 %v7242_v42, %s5892_s23 }
 0x412   : > { %v7305_v35 = vpop.permute.xlu0 %1886  ;;  %v7307_v59 = vpop.permute.xlu1 %1956 }
 0x414   : > { %2158 = vrot.lane.b32.xlu1 %v7269_v39, %s5916_s10  ;;  %2156 = vrot.lane.b32.xlu0 %v7235_v1, %s5916_s10 }
 0x416   : > { %v7313_v16 = vpop.permute.xlu0 %1920  ;;  %v7315_v30 = vpop.permute.xlu1 %1994 }
 0x418   : > { %1896 = vrot.lane.b32.xlu1 %v7318_v21, %s5894_s9  ;;  %2160 = vrot.lane.b32.xlu0 %v7242_v42, %s5916_s10 }
 0x41a   : > { %v7324_v23 = vpop.permute.xlu0 %1924  ;;  %v2033_v25 = vpop.permute.xlu1 %2032 }
 0x41c   : > { %1934 = vrot.lane.b32.xlu1 %v7318_v21, %s5912_s8  ;;  %1898 = vrot.lane.b32.xlu0 %v1877_v46, %s5894_s9 }
 0x41e   : > { %v7330_v44 = vpop.permute.xlu0 %1958  ;;  %v2071_v34 = vpop.permute.xlu1 %2070 }
 0x41f   : > { %v1976_v40 = vsel %vm1186_vm12, %v7307_v59, %v7330_v44  ;;  %v1900_v59 = vsel %vm1108_vm14, %v7291_v53, %v7297_v48 }
 0x420   : > { %1972 = vrot.lane.b32.xlu1 %v7318_v21, %s5913_s17  ;;  %1936 = vrot.lane.b32.xlu0 %v1877_v46, %s5912_s8  ;;  %s5920_s8 = smov 120  }
 0x422   : > { %v7335_v27 = vpop.permute.xlu0 %1962  ;;  %v2109_v6 = vpop.permute.xlu1 %2108 }
 0x424   : > { %2010 = vrot.lane.b32.xlu1 %v7318_v21, %s5893_s12  ;;  %1974 = vrot.lane.b32.xlu0 %v1877_v46, %s5913_s17 }
 0x426   : > { %v1997_v37 = vpop.permute.xlu0 %1996  ;;  %v2147_v15 = vpop.permute.xlu1 %2146 }
 0x427   : > { %v2014_v47 = vsel %vm1225_vm11, %v7315_v30, %v1997_v37  ;;  %v1938_v30 = vsel %vm1147_vm13, %v7299_v8, %v7313_v16  ;;  %v7426_v8 = vld [vmem:[%s9405_s4] sm:$0xff] }
 0x428   : > { %2048 = vrot.lane.b32.xlu1 %v7318_v21, %s5914_s11  ;;  %2012 = vrot.lane.b32.xlu0 %v1877_v46, %s5893_s12  ;;  %s5538_s12 = sshll.u32 %s6142_s22, 8 }
 0x429   : > { %s7649_s9 = scalar_lea.vmem [#allocation8], %s5538_s12  ;;  %s5933_s12 = smov 10  }
 0x42a   : > { %v7343_v52 = vpop.permute.xlu0 %2000  ;;  %v7345_v10 = vpop.permute.xlu1 %1884 }
 0x42c   : > { %2086 = vrot.lane.b32.xlu1 %v7318_v21, %s5915_s21  ;;  %2050 = vrot.lane.b32.xlu0 %v1877_v46, %s5914_s11  ;;  %s5921_s11 = smov 26  }
 0x42e   : > { %v2035_v41 = vpop.permute.xlu0 %2034  ;;  %v7350_v62 = vpop.permute.xlu1 %1922 }
 0x42f   : > { %v2052_v54 = vsel %vm1264_vm10, %v2033_v25, %v2035_v41  ;;  %v1939_v25 = vsel %vm1147_vm13, %v7313_v16, %v7350_v62 }
 0x430   : > { %2124 = vrot.lane.b32.xlu1 %v7318_v21, %s5892_s23  ;;  %2088 = vrot.lane.b32.xlu0 %v1877_v46, %s5915_s21 }
 0x432   : > { %v7355_v13 = vpop.permute.xlu0 %2038  ;;  %v7357_v0 = vpop.permute.xlu1 %1960 }
 0x433   : > { %v1977_v33 = vsel %vm1186_vm12, %v7330_v44, %v7357_v0 }
 0x434   : > { %2162 = vrot.lane.b32.xlu1 %v7318_v21, %s5916_s10  ;;  %2126 = vrot.lane.b32.xlu0 %v1877_v46, %s5892_s23  ;;  %s5932_s23 = smov 62  }
 0x436   : > { %v2073_v29 = vpop.permute.xlu0 %2072  ;;  %v7362_v4 = vpop.permute.xlu1 %1998 }
 0x437   : > { %v2090_v57 = vsel %vm1303_vm9, %v2071_v34, %v2073_v29  ;;  %v2015_v28 = vsel %vm1225_vm11, %v1997_v37, %v7362_v4 }
 0x438   : > { %2164 = vrot.lane.b32.xlu0 %v1877_v46, %s5916_s10  ;;  %v1901_v46 = vsel %vm1108_vm14, %v7297_v48, %v7345_v10  ;;  %s5922_s10 = smov 86  }
 0x43a   : > { %v7365_v26 = vpop.permute.xlu0 %2076  ;;  %v7367_v43 = vpop.permute.xlu1 %2036 }
 0x43b   : > { %v2053_v24 = vsel %vm1264_vm10, %v2035_v41, %v7367_v43 }
 0x43e   : > { %v2111_v19 = vpop.permute.xlu0 %2110  ;;  %v7369_v58 = vpop.permute.xlu1 %2074 }
 0x43f   : > { %v2128_v18 = vsel %vm1342_vm8, %v2109_v6, %v2111_v19  ;;  %v2091_v45 = vsel %vm1303_vm9, %v2073_v29, %v7369_v58 }
 0x442   : > { %v7371_v56 = vpop.permute.xlu0 %2114  ;;  %v7373_v2 = vpop.permute.xlu1 %2112 }
 0x443   : > { %v2129_v49 = vsel %vm1342_vm8, %v2111_v19, %v7373_v2 }
 0x446   : > { %v2149_v61 = vpop.permute.xlu0 %2148  ;;  %v2151_v5 = vpop.permute.xlu1 %2150 }
 0x447   : > { %v2167_v11 = vsel %vm1381_vm7, %v2149_v61, %v2151_v5  ;;  %v2166_v3 = vsel %vm1381_vm7, %v2147_v15, %v2149_v61 }
 0x448   : > { %2208 = vmatprep.subr.mxu1 %v2167_v11 }
 0x449   : > { %2209 = vmatpush1.msra.mxu1 %v2166_v3  ;;  %v2130_v3 = vsel %vm1342_vm8, %v7373_v2, %v7371_v56 }
 0x44a   : > { %v2153_v12 = vpop.permute.xlu0 %2152  ;;  %2210 = vmatprep.subr.mxu1 %v2129_v49  ;;  %v7379_v50 = vpop.permute.xlu1 %1888 }
 0x44b   : > { %2211 = vmatpush1.msra.mxu1 %v2128_v18  ;;  %v2168_v29 = vsel %vm1381_vm7, %v2151_v5, %v2153_v12  ;;  %v2092_v5 = vsel %vm1303_vm9, %v7369_v58, %v7365_v26 }
 0x44c   : > { %2212 = vmatprep.subr.mxu1 %v2091_v45 }
 0x44d   : > { %2213 = vmatpush1.msra.mxu1 %v2090_v57 }
 0x44e   : > { %v7387_v9 = vpop.permute.xlu0 %1890  ;;  %2214 = vmatprep.subr.mxu1 %v2053_v24  ;;  %v7389_v51 = vpop.permute.xlu1 %1926 }
 0x44f   : > { %2215 = vmatpush1.msra.mxu1 %v2052_v54 }
 0x450   : > { %2216 = vmatprep.subr.mxu1 %v2015_v28 }
 0x451   : > { %2217 = vmatpush1.msra.mxu1 %v2014_v47 }
 0x452   : > { %v7399_v36 = vpop.permute.xlu0 %1894  ;;  %2218 = vmatprep.subr.mxu1 %v1977_v33  ;;  %v7401_v14 = vpop.permute.xlu1 %1964 }
 0x453   : > { %2219 = vmatpush1.msra.mxu1 %v1976_v40  ;;  %v1979_v58 = vsel %vm1186_vm12, %v7335_v27, %v7401_v14 }
 0x454   : > { %2220 = vmatprep.subr.mxu1 %v1939_v25 }
 0x455   : > { %2221 = vmatpush1.msra.mxu1 %v1938_v30 }
 0x456   : > { %v7415_v34 = vpop.permute.xlu0 %1928  ;;  %2222 = vmatprep.subr.mxu1 %v1901_v46  ;;  %v7417_v6 = vpop.permute.xlu1 %2002 }
 0x457   : > { %2223 = vmatpush1.msra.mxu1 %v1900_v59  ;;  %v2017_v2 = vsel %vm1225_vm11, %v7343_v52, %v7417_v6 }
 0x458   : > { %2224 = vmatprep.subr.mxu1 %v7166_v22 }
 0x459   : > { %5546 = vmatpush1.msk.msra.mxu1 %vm5545_vm2, %v7159_v63 }
 0x45a   : > { %v7430_v16 = vpop.permute.xlu0 %1932  ;;  %5547 = vmatmul.mubr.msk.f32.vlgmr.msra.gmra.mxu1 %vm1407_vm15, %v7426_v8  ;;  %v7434_v44 = vpop.permute.xlu1 %2040 }
 0x45b   : > { %2400 = vmatprep.mubr.f32.mxu1 %v9484_v32 }
 0x45e   : > { %v7437_v53 = vpop.permute.xlu0 %1966  ;;  %v7439_v48 = vpop.permute.xlu1 %2078 }
 0x45f   : > { %v2093_v49 = vsel %vm1303_vm9, %v7365_v26, %v7439_v48  ;;  %v2016_v26 = vsel %vm1225_vm11, %v7362_v4, %v7343_v52  ;;  %v1940_v52 = vsel %vm1147_vm13, %v7350_v62, %v7324_v23  ;;  %v1903_v4 = vsel %vm1108_vm14, %v7305_v35, %v7379_v50 }
 0x462   : > { %v7441_v37 = vpop.permute.xlu0 %1970  ;;  %v7443_v15 = vpop.permute.xlu1 %2116 }
 0x463   : > { %v2131_v19 = vsel %vm1342_vm8, %v7371_v56, %v7443_v15  ;;  %v2054_v56 = vsel %vm1264_vm10, %v7367_v43, %v7355_v13  ;;  %v1941_v43 = vsel %vm1147_vm13, %v7324_v23, %v7389_v51 }
 0x466   : > { %v7445_v22 = vpop.permute.xlu0 %2004  ;;  %v2155_v63 = vpop.permute.xlu1 %2154 }
 0x467   : > { %v2169_v41 = vsel %vm1381_vm7, %v2153_v12, %v2155_v63  ;;  %v2055_v12 = vsel %vm1264_vm10, %v7355_v13, %v7434_v44  ;;  %v1978_v13 = vsel %vm1186_vm12, %v7357_v0, %v7335_v27  ;;  %v1902_v27 = vsel %vm1108_vm14, %v7345_v10, %v7305_v35 }
 0x468   : > { %2279 = vmatprep.subr.mxu0 %v2169_v41 }
 0x469   : > { %2280 = vmatpush1.msra.mxu0 %v2168_v29 }
 0x46a   : > { %v7452_v61 = vpop.permute.xlu0 %2008  ;;  %2281 = vmatprep.subr.mxu0 %v2131_v19  ;;  %v7454_v11 = vpop.permute.xlu1 %1892 }
 0x46b   : > { %2282 = vmatpush1.msra.mxu0 %v2130_v3 }
 0x46c   : > { %2283 = vmatprep.subr.mxu0 %v2093_v49 }
 0x46d   : > { %2284 = vmatpush1.msra.mxu0 %v2092_v5 }
 0x46e   : > { %v2043_v18 = vpop.permute.xlu0 %2042  ;;  %2285 = vmatprep.subr.mxu0 %v2055_v12  ;;  %v7468_v45 = vpop.permute.xlu1 %1930 }
 0x46f   : > { %2286 = vmatpush1.msra.mxu0 %v2054_v56 }
 0x470   : > { %2287 = vmatprep.subr.mxu0 %v2017_v2 }
 0x471   : > { %2288 = vmatpush1.msra.mxu0 %v2016_v26 }
 0x472   : > { %v7482_v57 = vpop.permute.xlu0 %2046  ;;  %2289 = vmatprep.subr.mxu0 %v1979_v58  ;;  %v7484_v24 = vpop.permute.xlu1 %1968 }
 0x473   : > { %2290 = vmatpush1.msra.mxu0 %v1978_v13  ;;  %v1981_v5 = vsel %vm1186_vm12, %v7437_v53, %v7484_v24 }
 0x474   : > { %2291 = vmatprep.subr.mxu0 %v1941_v43 }
 0x475   : > { %2292 = vmatpush1.msra.mxu0 %v1940_v52 }
 0x476   : > { %v2081_v54 = vpop.permute.xlu0 %2080  ;;  %2293 = vmatprep.subr.mxu0 %v1903_v4  ;;  %v7498_v28 = vpop.permute.xlu1 %2006 }
 0x477   : > { %2294 = vmatpush1.msra.mxu0 %v1902_v27  ;;  %v2019_v49 = vsel %vm1225_vm11, %v7445_v22, %v7498_v28 }
 0x478   : > { %2295 = vmatprep.subr.mxu0 %v7172_v55 }
 0x479   : > { %2296 = vmatpush1.msra.mxu0 %v7193_v20 }
 0x47a   : > { %v7505_v0 = vpop.permute.xlu0 %2084  ;;  %5548 = vmatmul.mubr.msk.f32.vlgmr.msra.gmra.mxu0 %vm1407_vm15, %v7426_v8  ;;  %v7509_v23 = vpop.permute.xlu1 %2044 }
 0x47b   : > { %2471 = vmatprep.mubr.f32.mxu0 %v9484_v32  ;;  %v2057_v29 = vsel %vm1264_vm10, %v2043_v18, %v7509_v23 }
 0x47e   : > { %v2119_v62 = vpop.permute.xlu0 %2118  ;;  %v7512_v47 = vpop.permute.xlu1 %2082 }
 0x47f   : > { %v2132_v59 = vsel %vm1342_vm8, %v7443_v15, %v2119_v62  ;;  %v2095_v41 = vsel %vm1303_vm9, %v2081_v54, %v7512_v47  ;;  %v2056_v15 = vsel %vm1264_vm10, %v7434_v44, %v2043_v18  ;;  %v1980_v44 = vsel %vm1186_vm12, %v7401_v14, %v7437_v53 }
 0x480   : > { %v1943_v18 = vsel %vm1147_vm13, %v7415_v34, %v7468_v45  ;;  %v1904_v14 = vsel %vm1108_vm14, %v7379_v50, %v7387_v9 }
 0x482   : > { %v7514_v33 = vpop.permute.xlu0 %2122  ;;  %v7516_v35 = vpop.permute.xlu1 %2120 }
 0x483   : > { %v2133_v25 = vsel %vm1342_vm8, %v2119_v62, %v7516_v35 }
 0x486   : > { %v2157_v10 = vpop.permute.xlu0 %2156  ;;  %v2159_v55 = vpop.permute.xlu1 %2158 }
 0x487   : > { %v2171_v20 = vsel %vm1381_vm7, %v2157_v10, %v2159_v55  ;;  %v2170_v40 = vsel %vm1381_vm7, %v2155_v63, %v2157_v10  ;;  %v2094_v63 = vsel %vm1303_vm9, %v7439_v48, %v2081_v54  ;;  %v2018_v48 = vsel %vm1225_vm11, %v7417_v6, %v7445_v22 }
 0x488   : > { %2350 = vmatprep.subr.mxu1 %v2171_v20  ;;  %v1942_v6 = vsel %vm1147_vm13, %v7389_v51, %v7415_v34  ;;  %v1905_v22 = vsel %vm1108_vm14, %v7387_v9, %v7454_v11  ;;  %v2134_v54 = vsel %vm1342_vm8, %v7516_v35, %v7514_v33  ;;  %v2096_v10 = vsel %vm1303_vm9, %v7512_v47, %v7505_v0 }
 0x489   : > { %2351 = vmatpush1.msra.mxu1 %v2170_v40  ;;  %v2058_v35 = vsel %vm1264_vm10, %v7509_v23, %v7482_v57  ;;  %v2020_v47 = vsel %vm1225_vm11, %v7498_v28, %v7452_v61  ;;  %v1982_v23 = vsel %vm1186_vm12, %v7484_v24, %v7441_v37  ;;  %v1944_v28 = vsel %vm1147_vm13, %v7468_v45, %v7430_v16 }
 0x48a   : > { %v2161_v30 = vpop.permute.xlu0 %2160  ;;  %2352 = vmatprep.subr.mxu1 %v2133_v25  ;;  %v7522_v46 = vpop.permute.xlu1 %1896  ;;  %v1906_v24 = vsel %vm1108_vm14, %v7454_v11, %v7399_v36 }
 0x48b   : > { %2353 = vmatpush1.msra.mxu1 %v2132_v59 }
 0x48c   : > { %2354 = vmatprep.subr.mxu1 %v2095_v41 }
 0x48d   : > { %2355 = vmatpush1.msra.mxu1 %v2094_v63 }
 0x48e   : > { %v7532_v19 = vpop.permute.xlu0 %1898  ;;  %2356 = vmatprep.subr.mxu1 %v2057_v29  ;;  %v7534_v3 = vpop.permute.xlu1 %1934 }
 0x48f   : > { %2357 = vmatpush1.msra.mxu1 %v2056_v15  ;;  %v1908_v45 = vsel %vm1108_vm14, %v7522_v46, %v7532_v19 }
 0x490   : > { %2358 = vmatprep.subr.mxu1 %v2019_v49 }
 0x491   : > { %2359 = vmatpush1.msra.mxu1 %v2018_v48 }
 0x492   : > { %v7547_v12 = vpop.permute.xlu0 %1936  ;;  %2360 = vmatprep.subr.mxu1 %v1981_v5  ;;  %v7549_v56 = vpop.permute.xlu1 %1972 }
 0x493   : > { %2361 = vmatpush1.msra.mxu1 %v1980_v44 }
 0x494   : > { %2362 = vmatprep.subr.mxu1 %v1943_v18 }
 0x495   : > { %2363 = vmatpush1.msra.mxu1 %v1942_v6 }
 0x496   : > { %v1975_v2 = vpop.permute.xlu0 %1974  ;;  %2364 = vmatprep.subr.mxu1 %v1905_v22  ;;  %v2011_v26 = vpop.permute.xlu1 %2010 }
 0x497   : > { %2365 = vmatpush1.msra.mxu1 %v1904_v14 }
 0x498   : > { %2366 = vmatprep.subr.mxu1 %v7235_v1 }
 0x499   : > { %2367 = vmatpush1.msra.mxu1 %v7228_v38  ;;  %v2172_v38 = vsel %vm1381_vm7, %v2159_v55, %v2161_v30 }
 0x49a   : > { %v2013_v53 = vpop.permute.xlu0 %2012  ;;  %5549 = vmatmul.mubr.msk.f32.vlgmr.msra.gmra.mxu1 %vm1407_vm15, %v7426_v8  ;;  %v2049_v51 = vpop.permute.xlu1 %2048  ;;  %5601 = vmatprep.subr.mxu1 %v9484_v32 }
 0x49b   : > { %5619 = vmatprep.mubr.msk.f32.mxu1 %vm5918_vm0, %v9484_v32  ;;  %v2022_v25 = vsel %vm1225_vm11, %v2011_v26, %v2013_v53 }
 0x49e   : > { %v2051_v34 = vpop.permute.xlu0 %2050  ;;  %v2087_v58 = vpop.permute.xlu1 %2086 }
 0x49f   : > { %v2097_v62 = vsel %vm1303_vm9, %v7505_v0, %v2087_v58  ;;  %v2021_v0 = vsel %vm1225_vm11, %v7452_v61, %v2011_v26  ;;  %v2060_v40 = vsel %vm1264_vm10, %v2049_v51, %v2051_v34  ;;  %v1945_v61 = vsel %vm1147_vm13, %v7430_v16, %v7534_v3 }
 0x4a0   : > { %v1946_v16 = vsel %vm1147_vm13, %v7534_v3, %v7547_v12  ;;  %vm5278_vm11 = vcmask 31744  }
 0x4a2   : > { %v2089_v13 = vpop.permute.xlu0 %2088  ;;  %v2125_v43 = vpop.permute.xlu1 %2124 }
 0x4a3   : > { %v2135_v52 = vsel %vm1342_vm8, %v7514_v33, %v2125_v43  ;;  %v2059_v33 = vsel %vm1264_vm10, %v7482_v57, %v2049_v51  ;;  %v2098_v20 = vsel %vm1303_vm9, %v2087_v58, %v2089_v13  ;;  %v1983_v57 = vsel %vm1186_vm12, %v7441_v37, %v7549_v56 }
 0x4a4   : > { %v1907_v37 = vsel %vm1108_vm14, %v7399_v36, %v7522_v46  ;;  %vm4580_vm9 = vcmask 162816   ;;  %vm4929_vm10 = vcmask 97280  }
 0x4a6   : > { %v2127_v50 = vpop.permute.xlu0 %2126  ;;  %v2163_v9 = vpop.permute.xlu1 %2162 }
 0x4a7   : > { %v2173_v1 = vsel %vm1381_vm7, %v2161_v30, %v2163_v9  ;;  %v2136_v55 = vsel %vm1342_vm8, %v2125_v43, %v2127_v50  ;;  %v1984_v30 = vsel %vm1186_vm12, %v7549_v56, %v1975_v2  ;;  %vm4231_vm8 = vcmask 228352  }
 0x4a8   : > { %2421 = vmatprep.subr.mxu0 %v2173_v1 }
 0x4a9   : > { %2422 = vmatpush1.msra.mxu0 %v2172_v38 }
 0x4aa   : > { %v2165_v4 = vpop.permute.xlu0 %2164  ;;  %2423 = vmatprep.subr.mxu0 %v2135_v52 }
 0x4ab   : > { %v2174_v27 = vsel %vm1381_vm7, %v2163_v9, %v2165_v4  ;;  %2424 = vmatpush1.msra.mxu0 %v2134_v54  ;;  %vm3914_vm7 = vcmask 15360  }
 0x4ac   : > { %2425 = vmatprep.subr.mxu0 %v2097_v62  ;;  %5602 = vmatpush3.msra.mxu1 %v2174_v27 }
 0x4ad   : > { %2426 = vmatpush1.msra.mxu0 %v2096_v10  ;;  %5603 = vmatprep.subr.mxu1 %v9484_v32 }
 0x4ae   : > { %2427 = vmatprep.subr.mxu0 %v2059_v33  ;;  %5604 = vmatpush3.msra.mxu1 %v2136_v55 }
 0x4af   : > { %2428 = vmatpush1.msra.mxu0 %v2058_v35  ;;  %5605 = vmatprep.subr.mxu1 %v9484_v32 }
 0x4b0   : > { %2429 = vmatprep.subr.mxu0 %v2021_v0  ;;  %5606 = vmatpush3.msra.mxu1 %v2098_v20 }
 0x4b1   : > { %2430 = vmatpush1.msra.mxu0 %v2020_v47  ;;  %5607 = vmatprep.subr.mxu1 %v9484_v32 }
 0x4b2   : > { %2431 = vmatprep.subr.mxu0 %v1983_v57  ;;  %5608 = vmatpush3.msra.mxu1 %v2060_v40 }
 0x4b3   : > { %2432 = vmatpush1.msra.mxu0 %v1982_v23  ;;  %5609 = vmatprep.subr.mxu1 %v9484_v32 }
 0x4b4   : > { %2433 = vmatprep.subr.mxu0 %v1945_v61  ;;  %5610 = vmatpush3.msra.mxu1 %v2022_v25 }
 0x4b5   : > { %2434 = vmatpush1.msra.mxu0 %v1944_v28  ;;  %5611 = vmatprep.subr.mxu1 %v9484_v32 }
 0x4b6   : > { %2435 = vmatprep.subr.mxu0 %v1907_v37  ;;  %5612 = vmatpush3.msra.mxu1 %v1984_v30 }
 0x4b7   : > { %2436 = vmatpush1.msra.mxu0 %v1906_v24  ;;  %5613 = vmatprep.subr.mxu1 %v9484_v32 }
 0x4b8   : > { %2437 = vmatprep.subr.mxu0 %v7242_v42  ;;  %5614 = vmatpush3.msra.mxu1 %v1946_v16  ;;  %v5919_v42 = vmov 1966171168  }
 0x4b9   : > { %2438 = vmatpush1.msra.mxu0 %v7269_v39  ;;  %5615 = vmatprep.subr.mxu1 %v9484_v32  ;;  %v2560_v36 = vunpack.c.l.s4 %v5919_v42 }
 0x4ba   : > { %5550 = vmatmul.mubr.msk.f32.vlgmr.msra.gmra.mxu0 %vm1407_vm15, %v7426_v8  ;;  %5616 = vmatpush3.msra.mxu1 %v1908_v45 }
 0x4bb   : > { %5617 = vmatprep.subr.mxu1 %v9484_v32  ;;  %v2561_v11 = vunpack.c.0.s8 %v2560_v36 }
 0x4bc   : > { %5618 = vmatpush3.msra.mxu1 %v7318_v21 }
 0x4bd   : > { %5620 = vmatmul.mubr.msk.f32.vlgmr.msra.gmra.mxu1 %vm1407_vm15, %v7426_v8  ;;  %v7642_v46 = vsub.s32 %v2561_v11, %v7126_v31 }
 0x51a   : > { %v2260_v59 = vpop.f32.mrf.mxu1 }
 0x51b   : > { %v2261_v39 = vadd.f32 %v2260_v59, %v7157_v7 }
 0x51c   : > { %v2262_v56 = vpop.f32.mrf.mxu1 }
 0x51d   : > { %v2548_v41 = vmax.f32 %v2261_v39, 0.0  ;;  %v2263_v6 = vadd.f32 %v2262_v56, %v7157_v7 }
 0x51f   : > { %v2558_v63 = vcombine.high %v2548_v41, %v2548_v41  ;;  %v2565_v29 = vrot.slane %v2548_v41, %v7642_v46  ;;  %v7678_v2 = vmax.f32 %v2263_v6, 0.0 }
 0x521   : > { %v2572_v32 = vrot.slane %v2558_v63, %v7642_v46  ;;  %v2573_v21 = vcombine.high %v2565_v29, %v2565_v29  ;;  %v2581_v8 = vrot.slane %v2565_v29, %v7642_v46  ;;  %v2721_v51 = vcombine.low %v2548_v41, %v7678_v2 }
 0x522   : > { %v2899_v34 = vrot.slane %v7678_v2, %v7642_v46  ;;  %v2722_v13 = vcombine.high %v2548_v41, %v7678_v2  ;;  %v2892_v33 = vcombine.high %v7678_v2, %v7678_v2 }
 0x523   : > { %v2574_v19 = vcombine.high %v2572_v32, %v2572_v32  ;;  %2616 = vst.msk [vmem:[%s7649_s9] sm:$0x1] %vm2615_vm3, %v2581_v8  ;;  %v2627_v31 = vrot.slane %v2581_v8, %v7129_v17  ;;  %v2595_v3 = vrot.slane %v2573_v21, %v7642_v46  ;;  %v2603_v15 = vcombine.high %v2581_v8, %v2581_v8 }
 0x524   : > { %v2588_v49 = vrot.slane %v2572_v32, %v7642_v46  ;;  %v2729_v58 = vrot.slane %v2721_v51, %v7642_v46  ;;  %v2915_v43 = vrot.slane %v2899_v34, %v7642_v46  ;;  %v2736_v9 = vrot.slane %v2722_v13, %v7642_v46 }
 0x525   : > { %2656 = vrot.lane.b32.xlu0 %v2627_v31, %s5913_s17  ;;  %v2631_v48 = vrot.slane %v2595_v3, %v7129_v17  ;;  %2617 = vst.msk [vmem:[%s7649_s9 + $0x20] sm:$0x1] %vm2615_vm3, %v2595_v3  ;;  %2618 = vst.msk [vmem:[%s7649_s9 + $0x40] sm:$0x1] %vm2615_vm3, %v2603_v15  ;;  %v2605_v5 = vcombine.high %v2595_v3, %v2595_v3  ;;  %v2602_v12 = vrot.slane %v2574_v19, %v7642_v46 }
 0x526   : > { %2620 = vst.msk [vmem:[%s7649_s9 + $0x80] sm:$0x1] %vm2615_vm3, %v2588_v49  ;;  %v2604_v44 = vcombine.high %v2588_v49, %v2588_v49  ;;  %v2635_v22 = vrot.slane %v2603_v15, %v7129_v17  ;;  %v2643_v14 = vrot.slane %v2588_v49, %v7129_v17  ;;  %v2745_v50 = vrot.slane %v2729_v58, %v7642_v46 }
 0x527   : > { %2658 = vrot.lane.b32.xlu1 %v2631_v48, %s5913_s17  ;;  %2619 = vst.msk [vmem:[%s7649_s9 + $0x60] sm:$0x1] %vm2615_vm3, %v2605_v5  ;;  %2621 = vst.msk [vmem:[%s7649_s9 + $0xa0] sm:$0x1] %vm2615_vm3, %v2602_v12  ;;  %v2606_v18 = vcombine.high %v2602_v12, %v2602_v12  ;;  %v2639_v26 = vrot.slane %v2605_v5, %v7129_v17  ;;  %v2647_v53 = vrot.slane %v2602_v12, %v7129_v17 }
 0x528   : > { %2622 = vst.msk [vmem:[%s7649_s9 + $0xc0] sm:$0x1] %vm2615_vm3, %v2604_v44  ;;  %v2944_v1 = vrot.slane %v2915_v43, %v7129_v17  ;;  %v2778_v38 = vrot.slane %v2745_v50, %v7135_v60  ;;  %v2752_v52 = vrot.slane %v2736_v9, %v7642_v46  ;;  %v2907_v4 = vcombine.high %v2899_v34, %v2899_v34 }
 0x529   : > { %2688 = vrot.lane.b32.xlu0 %v2627_v31, %s5915_s21  ;;  %2623 = vst.msk [vmem:[%s7649_s9 + $0xe0] sm:$0x1] %vm2615_vm3, %v2606_v18  ;;  %v2651_v10 = vrot.slane %v2604_v44, %v7129_v17  ;;  %v2774_v55 = vrot.slane %v2745_v50, %v7129_v17  ;;  %v2655_v35 = vrot.slane %v2606_v18, %v7129_v17 }
 0x52a   : > { %v2810_v54 = vrot.slane %v2752_v52, %v7135_v60  ;;  %v2929_v27 = vrot.slane %v2907_v4, %v7642_v46  ;;  %v2737_v20 = vcombine.high %v2729_v58, %v2729_v58  ;;  %v2806_v0 = vrot.slane %v2752_v52, %v7129_v17 }
 0x52b   : > { %2690 = vrot.lane.b32.xlu1 %v2631_v48, %s5915_s21  ;;  %v2937_v47 = vcombine.high %v2915_v43, %v2915_v43  ;;  %v2906_v40 = vrot.slane %v2892_v33, %v7642_v46  ;;  %v2767_v28 = vcombine.high %v2745_v50, %v2745_v50  ;;  %v2738_v30 = vcombine.high %v2736_v9, %v2736_v9 }
 0x52c   : > { %v2948_v62 = vrot.slane %v2929_v27, %v7129_v17  ;;  %v2759_v57 = vrot.slane %v2737_v20, %v7642_v46  ;;  %v2768_v63 = vcombine.high %v2752_v52, %v2752_v52  ;;  %v2939_v8 = vcombine.high %v2929_v27, %v2929_v27 }
 0x52d   : > { %2660 = vrot.lane.b32.xlu0 %v2635_v22, %s5913_s17  ;;  %v2952_v23 = vrot.slane %v2937_v47, %v7129_v17  ;;  %v2922_v25 = vrot.slane %v2906_v40, %v7642_v46  ;;  %v2794_v36 = vrot.slane %v2767_v28, %v7135_v60  ;;  %v2766_v11 = vrot.slane %v2738_v30, %v7642_v46 }
 0x52e   : > { %v2786_v61 = vrot.slane %v2759_v57, %v7135_v60  ;;  %v2826_v21 = vrot.slane %v2768_v63, %v7135_v60  ;;  %v2908_v19 = vcombine.high %v2906_v40, %v2906_v40  ;;  %v2956_v31 = vrot.slane %v2939_v8, %v7129_v17 }
 0x52f   : > { %2662 = vrot.lane.b32.xlu1 %v2639_v26, %s5913_s17  ;;  %v2960_v24 = vrot.slane %v2922_v25, %v7129_v17  ;;  %v2818_v41 = vrot.slane %v2766_v11, %v7135_v60  ;;  %v2782_v49 = vrot.slane %v2759_v57, %v7129_v17  ;;  %v2790_v48 = vrot.slane %v2767_v28, %v7129_v17 }
 0x530   : > { %v2936_v3 = vrot.slane %v2908_v19, %v7642_v46  ;;  %v2814_v12 = vrot.slane %v2766_v11, %v7129_v17  ;;  %v2822_v18 = vrot.slane %v2768_v63, %v7129_v17  ;;  %v2938_v6 = vcombine.high %v2922_v25, %v2922_v25 }
 0x531   : > { %2664 = vrot.lane.b32.xlu0 %v2643_v14, %s5913_s17 }
 0x532   : > { %v2964_v15 = vrot.slane %v2936_v3, %v7129_v17  ;;  %v2968_v58 = vrot.slane %v2938_v6, %v7129_v17  ;;  %v2940_v27 = vcombine.high %v2936_v3, %v2936_v3 }
 0x533   : > { %2666 = vrot.lane.b32.xlu1 %v2647_v53, %s5913_s17 }
 0x535   : > { %2692 = vrot.lane.b32.xlu0 %v2635_v22, %s5915_s21 }
 0x537   : > { %2694 = vrot.lane.b32.xlu1 %v2639_v26, %s5915_s21 }
 0x539   : > { %2696 = vrot.lane.b32.xlu0 %v2643_v14, %s5915_s21 }
 0x53a   : > { %v2331_v5 = vpop.f32.mrf.mxu0 }
 0x53b   : > { %2698 = vrot.lane.b32.xlu1 %v2647_v53, %s5915_s21  ;;  %v2769_v53 = vcombine.high %v2759_v57, %v2759_v57  ;;  %v2332_v50 = vadd.f32 %v2331_v5, %v7157_v7 }
 0x53c   : > { %v7767_v56 = vpop.f32.mrf.mxu0 }
 0x53d   : > { %2973 = vrot.lane.b32.xlu0 %v2944_v1, %s5920_s8  ;;  %v2802_v9 = vrot.slane %v2769_v53, %v7135_v60  ;;  %v7791_v4 = vmax.f32 %v2332_v50, 0.0  ;;  %v2334_v50 = vadd.f32 %v7767_v56, %v7157_v7 }
 0x53f   : > { %2837 = vrot.lane.b32.xlu1 %v2778_v38, %s5921_s11  ;;  %v3248_v33 = vrot.slane %v7791_v4, %v7642_v46  ;;  %v3071_v20 = vcombine.high %v7678_v2, %v7791_v4 }
 0x541   : > { %3005 = vrot.lane.b32.xlu0 %v2944_v1, %s5922_s10  ;;  %v3264_v47 = vrot.slane %v3248_v33, %v7642_v46  ;;  %v7814_v57 = vrot.slane %v3071_v20, %v7642_v46 }
 0x543   : > { %2853 = vrot.lane.b32.xlu1 %v2810_v54, %s5921_s11  ;;  %v7822_v25 = vrot.slane %v7814_v57, %v7642_v46 }
 0x545   : > { %3037 = vrot.lane.b32.xlu0 %v2944_v1, %s5923_s16  ;;  %v2770_v1 = vcombine.high %v2766_v11, %v2766_v11  ;;  %v3155_v19 = vrot.slane %v7822_v25, %v7129_v17 }
 0x547   : > { %2975 = vrot.lane.b32.xlu1 %v2948_v62, %s5920_s8  ;;  %v2834_v54 = vrot.slane %v2770_v1, %v7135_v60 }
 0x549   : > { %2668 = vrot.lane.b32.xlu0 %v2651_v10, %s5913_s17 }
 0x54b   : > { %3007 = vrot.lane.b32.xlu1 %v2948_v62, %s5922_s10 }
 0x54d   : > { %2700 = vrot.lane.b32.xlu0 %v2651_v10, %s5915_s21  ;;  %v3070_v10 = vcombine.low %v7678_v2, %v7791_v4 }
 0x54f   : > { %3039 = vrot.lane.b32.xlu1 %v2948_v62, %s5923_s16  ;;  %v2972_v62 = vrot.slane %v2940_v27, %v7129_v17  ;;  %v7903_v27 = vcombine.high %v7822_v25, %v7822_v25 }
 0x551   : > { %2835 = vrot.lane.b32.xlu0 %v2774_v55, %s5921_s11  ;;  %v2798_v55 = vrot.slane %v2769_v53, %v7129_v17 }
 0x553   : > { %2670 = vrot.lane.b32.xlu1 %v2655_v35, %s5913_s17  ;;  %s5924_s17 = smov 112  }
 0x555   : > { %2851 = vrot.lane.b32.xlu0 %v2806_v0, %s5921_s11  ;;  %v2830_v0 = vrot.slane %v2770_v1, %v7129_v17 }
 0x557   : > { %2702 = vrot.lane.b32.xlu1 %v2655_v35, %s5915_s21  ;;  %v3078_v35 = vrot.slane %v3070_v10, %v7642_v46  ;;  %s5925_s21 = smov 18  }
 0x559   : > { %2977 = vrot.lane.b32.xlu0 %v2952_v23, %s5920_s8  ;;  %v3094_v40 = vrot.slane %v3078_v35, %v7642_v46 }
 0x55a   : > { %v2402_v37 = vpop.f32.mrf.mxu1 }
 0x55b   : > { %2841 = vrot.lane.b32.xlu1 %v2786_v61, %s5921_s11  ;;  %v2403_v16 = vadd.f32 %v2402_v37, %v7157_v7  ;;  %v3127_v2 = vrot.slane %v3094_v40, %v7135_v60  ;;  %v3256_v61 = vcombine.high %v3248_v33, %v3248_v33  ;;  %v3159_v37 = vrot.slane %v7822_v25, %v7135_v60 }
 0x55c   : > { %v2404_v45 = vpop.f32.mrf.mxu1  ;;  %v3123_v11 = vrot.slane %v3094_v40, %v7129_v17 }
 0x55d   : > { %v2405_v42 = vadd.f32 %v2404_v45, %v7157_v7  ;;  %2981 = vrot.lane.b32.xlu0 %v2960_v24, %s5920_s8  ;;  %v7741_v39 = vmax.f32 %v2403_v16, 0.0 }
 0x55f   : > { %v7738_v59 = vmax.f32 %v2405_v42, 0.0  ;;  %2845 = vrot.lane.b32.xlu1 %v2794_v36, %s5921_s11 }
 0x561   : > { %3009 = vrot.lane.b32.xlu0 %v2952_v23, %s5922_s10  ;;  %v4085_v29 = vcombine.low %v7741_v39, %v7738_v59  ;;  %v4086_v32 = vcombine.high %v7741_v39, %v7738_v59 }
 0x563   : > { %2857 = vrot.lane.b32.xlu1 %v2818_v41, %s5921_s11  ;;  %v3241_v41 = vcombine.high %v7791_v4, %v7791_v4 }
 0x565   : > { %3013 = vrot.lane.b32.xlu0 %v2960_v24, %s5922_s10  ;;  %v3255_v3 = vrot.slane %v3241_v41, %v7642_v46 }
 0x567   : > { %2861 = vrot.lane.b32.xlu1 %v2826_v21, %s5921_s11  ;;  %v3086_v21 = vcombine.high %v3078_v35, %v3078_v35  ;;  %v3257_v35 = vcombine.high %v3255_v3, %v3255_v3 }
 0x569   : > { %3041 = vrot.lane.b32.xlu0 %v2952_v23, %s5923_s16  ;;  %v3293_v23 = vrot.slane %v3264_v47, %v7129_v17 }
 0x56b   : > { %2979 = vrot.lane.b32.xlu1 %v2956_v31, %s5920_s8 }
 0x56d   : > { %3045 = vrot.lane.b32.xlu0 %v2960_v24, %s5923_s16  ;;  %v7831_v24 = vrot.slane %v3256_v61, %v7642_v46 }
 0x56f   : > { %2983 = vrot.lane.b32.xlu1 %v2964_v15, %s5920_s8  ;;  %v3297_v42 = vrot.slane %v7831_v24, %v7129_v17  ;;  %v3288_v33 = vcombine.high %v7831_v24, %v7831_v24 }
 0x571   : > { %2839 = vrot.lane.b32.xlu0 %v2782_v49, %s5921_s11  ;;  %v7860_v49 = vrot.slane %v3086_v21, %v7642_v46 }
 0x573   : > { %3011 = vrot.lane.b32.xlu1 %v2956_v31, %s5922_s10  ;;  %v3135_v6 = vrot.slane %v7860_v49, %v7135_v60 }
 0x575   : > { %2843 = vrot.lane.b32.xlu0 %v2790_v48, %s5921_s11 }
 0x577   : > { %3015 = vrot.lane.b32.xlu1 %v2964_v15, %s5922_s10 }
 0x579   : > { %2855 = vrot.lane.b32.xlu0 %v2814_v12, %s5921_s11  ;;  %v7867_v12 = vrot.slane %v3255_v3, %v7642_v46 }
 0x57a   : > { %v7770_v44 = vpop.f32.mrf.mxu0 }
 0x57b   : > { %3043 = vrot.lane.b32.xlu1 %v2956_v31, %s5923_s16  ;;  %v3286_v31 = vcombine.high %v3264_v47, %v3264_v47  ;;  %v3309_v53 = vrot.slane %v7867_v12, %v7129_v17 }
 0x57c   : > { %v2475_v22 = vpop.f32.mrf.mxu0 }
 0x57d   : > { %v2476_v26 = vadd.f32 %v2475_v22, %v7157_v7  ;;  %2859 = vrot.lane.b32.xlu0 %v2822_v18, %s5921_s11  ;;  %v2544_v14 = vpop.f32.mrf.mxu1  ;;  %v3301_v5 = vrot.slane %v3286_v31, %v7129_v17  ;;  %v7874_v22 = vcombine.high %v3094_v40, %v3094_v40  ;;  %v3305_v40 = vrot.slane %v3288_v33, %v7129_v17 }
 0x57e   : > { %v2545_v51 = vadd.f32 %v2544_v14, %v7157_v7 }
 0x57f   : > { %v7777_v34 = vmax.f32 %v2476_v26, 0.0  ;;  %3047 = vrot.lane.b32.xlu1 %v2964_v15, %s5923_s16  ;;  %v5621_v13 = vpop.f32.mrf.mxu1  ;;  %v3087_v26 = vcombine.high %v7814_v57, %v7814_v57  ;;  %v7925_v57 = vrot.slane %v3257_v35, %v7642_v46 }
 0x580   : > { %v7781_v43 = vmax.f32 %v2545_v51, 0.0 }
 0x581   : > { %2985 = vrot.lane.b32.xlu0 %v2968_v58, %s5920_s8  ;;  %v7889_v13 = vrot.slane %v3087_v26, %v7642_v46  ;;  %v3313_v61 = vrot.slane %v7925_v57, %v7129_v17 }
 0x582   : > { %v5132_v38 = vcombine.low %v7777_v34, %v7781_v43  ;;  %v5133_v52 = vcombine.high %v7777_v34, %v7781_v43 }
 0x583   : > { %2849 = vrot.lane.b32.xlu1 %v2802_v9, %s5921_s11  ;;  %v3163_v35 = vrot.slane %v7889_v13, %v7129_v17 }
 0x585   : > { %3017 = vrot.lane.b32.xlu0 %v2968_v58, %s5922_s10 }
 0x587   : > { %2865 = vrot.lane.b32.xlu1 %v2834_v54, %s5921_s11  ;;  %v3167_v54 = vrot.slane %v7889_v13, %v7135_v60 }
 0x589   : > { %3049 = vrot.lane.b32.xlu0 %v2968_v58, %s5923_s16  ;;  %v3143_v58 = vrot.slane %v7874_v22, %v7135_v60 }
 0x58b   : > { %2987 = vrot.lane.b32.xlu1 %v2972_v62, %s5920_s8  ;;  %s5934_s8 = smov 2  }
 0x58d   : > { %2847 = vrot.lane.b32.xlu0 %v2798_v55, %s5921_s11  ;;  %v3175_v55 = vrot.slane %v7903_v27, %v7135_v60 }
 0x58f   : > { %3019 = vrot.lane.b32.xlu1 %v2972_v62, %s5922_s10  ;;  %s5936_s10 = smov 88  }
 0x591   : > { %2863 = vrot.lane.b32.xlu0 %v2830_v0, %s5921_s11  ;;  %s5935_s11 = smov 122  }
 0x593   : > { %3051 = vrot.lane.b32.xlu1 %v2972_v62, %s5923_s16  ;;  %v7905_v62 = vmax.f32 %v2334_v50, 0.0  ;;  %s5937_s16 = smov 54  }
 0x595   : > { %3322 = vrot.lane.b32.xlu0 %v3293_v23, %s5924_s17  ;;  %v7918_v0 = vrot.slane %v7905_v62, %v7642_v46 }
 0x597   : > { %v2657_v28 = vpop.permute.xlu0 %2656  ;;  %3186 = vrot.lane.b32.xlu1 %v3127_v2, %s5925_s21  ;;  %v7932_v2 = vrot.slane %v7918_v0, %v7642_v46 }
 0x598   : > { %2680 = vst.msk [vmem:[%s7649_s9 + $0x1] sm:$0x1] %vm2615_vm3, %v2657_v28 }
 0x599   : > { %3354 = vrot.lane.b32.xlu0 %v3293_v23, %s5926_s29  ;;  %v2659_v30 = vpop.permute.xlu1 %2658 }
 0x59a   : > { %2681 = vst.msk [vmem:[%s7649_s9 + $0x21] sm:$0x1] %vm2615_vm3, %v2659_v30  ;;  %v3642_v30 = vrot.slane %v7932_v2, %v7129_v17 }
 0x59b   : > { %v2689_v16 = vpop.permute.xlu0 %2688  ;;  %3202 = vrot.lane.b32.xlu1 %v3159_v37, %s5925_s21 }
 0x59c   : > { %2712 = vst.msk [vmem:[%s7649_s9 + $0x2] sm:$0x1] %vm2615_vm3, %v2689_v16  ;;  %v7952_v16 = vrot.slane %v7741_v39, %v7642_v46 }
 0x59d   : > { %3386 = vrot.lane.b32.xlu0 %v3293_v23, %s5927_s0  ;;  %v2691_v45 = vpop.permute.xlu1 %2690 }
 0x59e   : > { %2713 = vst.msk [vmem:[%s7649_s9 + $0x22] sm:$0x1] %vm2615_vm3, %v2691_v45  ;;  %v7965_v41 = vrot.slane %v7952_v16, %v7642_v46 }
 0x59f   : > { %v2661_v36 = vpop.permute.xlu0 %2660  ;;  %3324 = vrot.lane.b32.xlu1 %v3297_v42, %s5924_s17 }
 0x5a0   : > { %2682 = vst.msk [vmem:[%s7649_s9 + $0x41] sm:$0x1] %vm2615_vm3, %v2661_v36  ;;  %v3419_v36 = vcombine.low %v7791_v4, %v7905_v62  ;;  %v3991_v3 = vrot.slane %v7965_v41, %v7129_v17 }
 0x5a1   : > { %3184 = vrot.lane.b32.xlu0 %v3123_v11, %s5925_s21  ;;  %v2663_v63 = vpop.permute.xlu1 %2662 }
 0x5a2   : > { %2683 = vst.msk [vmem:[%s7649_s9 + $0x61] sm:$0x1] %vm2615_vm3, %v2663_v63 }
 0x5a3   : > { %v2665_v8 = vpop.permute.xlu0 %2664  ;;  %3356 = vrot.lane.b32.xlu1 %v3297_v42, %s5926_s29 }
 0x5a4   : > { %2684 = vst.msk [vmem:[%s7649_s9 + $0x81] sm:$0x1] %vm2615_vm3, %v2665_v8  ;;  %v7972_v8 = vrot.slane %v3419_v36, %v7642_v46 }
 0x5a5   : > { %3200 = vrot.lane.b32.xlu0 %v3155_v19, %s5925_s21  ;;  %v2667_v15 = vpop.permute.xlu1 %2666  ;;  %v3420_v19 = vcombine.high %v7791_v4, %v7905_v62 }
 0x5a6   : > { %2685 = vst.msk [vmem:[%s7649_s9 + $0xa1] sm:$0x1] %vm2615_vm3, %v2667_v15 }
 0x5a7   : > { %v2693_v48 = vpop.permute.xlu0 %2692  ;;  %3388 = vrot.lane.b32.xlu1 %v3297_v42, %s5927_s0  ;;  %v7989_v4 = vrot.slane %v3420_v19, %v7642_v46 }
 0x5a8   : > { %2714 = vst.msk [vmem:[%s7649_s9 + $0x42] sm:$0x1] %vm2615_vm3, %v2693_v48  ;;  %v7986_v48 = vrot.slane %v7972_v8, %v7642_v46 }
 0x5a9   : > { %3326 = vrot.lane.b32.xlu0 %v3301_v5, %s5924_s17  ;;  %v2695_v18 = vpop.permute.xlu1 %2694  ;;  %v7999_v26 = vrot.slane %v7989_v4, %v7642_v46 }
 0x5aa   : > { %2715 = vst.msk [vmem:[%s7649_s9 + $0x62] sm:$0x1] %vm2615_vm3, %v2695_v18 }
 0x5ab   : > { %v2697_v14 = vpop.permute.xlu0 %2696  ;;  %3190 = vrot.lane.b32.xlu1 %v3135_v6, %s5925_s21  ;;  %v3476_v6 = vrot.slane %v7986_v48, %v7135_v60  ;;  %v3508_v50 = vrot.slane %v7999_v26, %v7135_v60 }
 0x5ac   : > { %2716 = vst.msk [vmem:[%s7649_s9 + $0x82] sm:$0x1] %vm2615_vm3, %v2697_v14  ;;  %v3605_v14 = vcombine.high %v7918_v0, %v7918_v0  ;;  %v3769_v0 = vcombine.high %v7905_v62, %v7741_v39 }
 0x5ad   : > { %3330 = vrot.lane.b32.xlu0 %v3309_v53, %s5924_s17  ;;  %v2699_v51 = vpop.permute.xlu1 %2698 }
 0x5ae   : > { %2717 = vst.msk [vmem:[%s7649_s9 + $0xa2] sm:$0x1] %vm2615_vm3, %v2699_v51  ;;  %v3131_v51 = vrot.slane %v7860_v49, %v7129_v17 }
 0x5af   : > { %v2974_v9 = vpop.permute.xlu0 %2973  ;;  %3194 = vrot.lane.b32.xlu1 %v3143_v58, %s5925_s21 }
 0x5b0   : > { %2997 = vst.msk [vmem:[%s7649_s9 + $0x4] sm:$0x1] %vm2615_vm3, %v2974_v9  ;;  %v8012_v9 = vrot.slane %v3605_v14, %v7642_v46 }
 0x5b1   : > { %3358 = vrot.lane.b32.xlu0 %v3301_v5, %s5926_s29  ;;  %v2838_v1 = vpop.permute.xlu1 %2837 }
 0x5b3   : > { %v3006_v10 = vpop.permute.xlu0 %3005  ;;  %3206 = vrot.lane.b32.xlu1 %v3167_v54, %s5925_s21  ;;  %v3139_v54 = vrot.slane %v7874_v22, %v7129_v17 }
 0x5b4   : > { %3029 = vst.msk [vmem:[%s7649_s9 + $0x5] sm:$0x1] %vm2615_vm3, %v3006_v10 }
 0x5b5   : > { %3362 = vrot.lane.b32.xlu0 %v3309_v53, %s5926_s29  ;;  %v2854_v56 = vpop.permute.xlu1 %2853 }
 0x5b7   : > { %v3038_v20 = vpop.permute.xlu0 %3037  ;;  %3210 = vrot.lane.b32.xlu1 %v3175_v55, %s5925_s21  ;;  %v3768_v55 = vcombine.low %v7905_v62, %v7741_v39 }
 0x5b8   : > { %3061 = vst.msk [vmem:[%s7649_s9 + $0x6] sm:$0x1] %vm2615_vm3, %v3038_v20 }
 0x5b9   : > { %3390 = vrot.lane.b32.xlu0 %v3301_v5, %s5927_s0  ;;  %v2976_v47 = vpop.permute.xlu1 %2975  ;;  %v8031_v20 = vrot.slane %v3768_v55, %v7642_v46 }
 0x5ba   : > { %2998 = vst.msk [vmem:[%s7649_s9 + $0x24] sm:$0x1] %vm2615_vm3, %v2976_v47 }
 0x5bb   : > { %v2669_v23 = vpop.permute.xlu0 %2668  ;;  %3328 = vrot.lane.b32.xlu1 %v3305_v40, %s5924_s17 }
 0x5bc   : > { %2686 = vst.msk [vmem:[%s7649_s9 + $0xc1] sm:$0x1] %vm2615_vm3, %v2669_v23  ;;  %v3287_v23 = vcombine.high %v7867_v12, %v7867_v12 }
 0x5bd   : > { %3394 = vrot.lane.b32.xlu0 %v3309_v53, %s5927_s0  ;;  %v3008_v25 = vpop.permute.xlu1 %3007 }
 0x5be   : > { %3030 = vst.msk [vmem:[%s7649_s9 + $0x25] sm:$0x1] %vm2615_vm3, %v3008_v25  ;;  %v3317_v12 = vrot.slane %v3287_v23, %v7129_v17 }
 0x5bf   : > { %v2701_v28 = vpop.permute.xlu0 %2700  ;;  %3332 = vrot.lane.b32.xlu1 %v3313_v61, %s5924_s17 }
 0x5c0   : > { %2718 = vst.msk [vmem:[%s7649_s9 + $0xc2] sm:$0x1] %vm2615_vm3, %v2701_v28  ;;  %v8050_v28 = vrot.slane %v3769_v0, %v7642_v46 }
 0x5c1   : > { %3671 = vrot.lane.b32.xlu0 %v3642_v30, %s5928_s20  ;;  %v3040_v37 = vpop.permute.xlu1 %3039 }
 0x5c2   : > { %3062 = vst.msk [vmem:[%s7649_s9 + $0x26] sm:$0x1] %vm2615_vm3, %v3040_v37 }
 0x5c3   : > { %v2836_v24 = vpop.permute.xlu0 %2835  ;;  %3360 = vrot.lane.b32.xlu1 %v3305_v40, %s5926_s29 }
 0x5c4   : > { %v2868_v45 = vsel %vm2867_vm4, %v2836_v24, %v2838_v1 }
 0x5c5   : > { %2884 = vst.msk [vmem:[%s7649_s9 + $0x3] sm:$0x1] %vm2615_vm3, %v2868_v45  ;;  %3703 = vrot.lane.b32.xlu0 %v3642_v30, %s5929_s15  ;;  %v2671_v42 = vpop.permute.xlu1 %2670  ;;  %v8064_v45 = vrot.slane %v8050_v28, %v7642_v46 }
 0x5c6   : > { %2687 = vst.msk [vmem:[%s7649_s9 + $0xe1] sm:$0x1] %vm2615_vm3, %v2671_v42  ;;  %v3954_v42 = vcombine.high %v7952_v16, %v7952_v16 }
 0x5c7   : > { %v2852_v11 = vpop.permute.xlu0 %2851  ;;  %3364 = vrot.lane.b32.xlu1 %v3313_v61, %s5926_s29 }
 0x5c8   : > { %v2872_v63 = vsel %vm2867_vm4, %v2852_v11, %v2854_v56  ;;  %v3646_v56 = vrot.slane %v8012_v9, %v7129_v17  ;;  %v8078_v16 = vrot.slane %v3954_v42, %v7642_v46 }
 0x5c9   : > { %2888 = vst.msk [vmem:[%s7649_s9 + $0x83] sm:$0x1] %vm2615_vm3, %v2872_v63  ;;  %3735 = vrot.lane.b32.xlu0 %v3642_v30, %s5930_s19  ;;  %v2703_v21 = vpop.permute.xlu1 %2702 }
 0x5ca   : > { %2719 = vst.msk [vmem:[%s7649_s9 + $0xe2] sm:$0x1] %vm2615_vm3, %v2703_v21  ;;  %v3857_v21 = vrot.slane %v8064_v45, %v7135_v60 }
 0x5cb   : > { %v2978_v31 = vpop.permute.xlu0 %2977  ;;  %3392 = vrot.lane.b32.xlu1 %v3305_v40, %s5927_s0  ;;  %v3171_v40 = vrot.slane %v7903_v27, %v7129_v17 }
 0x5cc   : > { %2999 = vst.msk [vmem:[%s7649_s9 + $0x44] sm:$0x1] %vm2615_vm3, %v2978_v31 }
 0x5cd   : > { %4020 = vrot.lane.b32.xlu0 %v3991_v3, %s5931_s18  ;;  %v2842_v15 = vpop.permute.xlu1 %2841 }
 0x5cf   : > { %v2982_v5 = vpop.permute.xlu0 %2981  ;;  %3396 = vrot.lane.b32.xlu1 %v3313_v61, %s5927_s0  ;;  %v8047_v61 = vrot.slane %v8031_v20, %v7642_v46 }
 0x5d0   : > { %3001 = vst.msk [vmem:[%s7649_s9 + $0x84] sm:$0x1] %vm2615_vm3, %v2982_v5 }
 0x5d1   : > { %4052 = vrot.lane.b32.xlu0 %v3991_v3, %s5932_s23  ;;  %v2846_v18 = vpop.permute.xlu1 %2845  ;;  %v3825_v24 = vrot.slane %v8047_v61, %v7135_v60 }
 0x5d3   : > { %v3010_v53 = vpop.permute.xlu0 %3009  ;;  %3535 = vrot.lane.b32.xlu1 %v3476_v6, %s5933_s12  ;;  %v3590_v6 = vcombine.high %v7905_v62, %v7905_v62  ;;  %v3504_v62 = vrot.slane %v7999_v26, %v7129_v17 }
 0x5d4   : > { %3031 = vst.msk [vmem:[%s7649_s9 + $0x45] sm:$0x1] %vm2615_vm3, %v3010_v53 }
 0x5d5   : > { %3188 = vrot.lane.b32.xlu0 %v3131_v51, %s5925_s21  ;;  %v2858_v58 = vpop.permute.xlu1 %2857  ;;  %v8102_v51 = vcombine.high %v7860_v49, %v7860_v49 }
 0x5d7   : > { %v3014_v1 = vpop.permute.xlu0 %3013  ;;  %3551 = vrot.lane.b32.xlu1 %v3508_v50, %s5933_s12  ;;  %v3635_v50 = vcombine.high %v7932_v2, %v7932_v2 }
 0x5d8   : > { %3033 = vst.msk [vmem:[%s7649_s9 + $0x85] sm:$0x1] %vm2615_vm3, %v3014_v1  ;;  %v8112_v1 = vrot.slane %v3590_v6, %v7642_v46  ;;  %v8197_v6 = vcombine.high %v7999_v26, %v7999_v26 }
 0x5d9   : > { %3192 = vrot.lane.b32.xlu0 %v3139_v54, %s5925_s21  ;;  %v2862_v10 = vpop.permute.xlu1 %2861  ;;  %v3151_v54 = vrot.slane %v8102_v51, %v7135_v60  ;;  %v3650_v2 = vrot.slane %v3635_v50, %v7129_v17 }
 0x5da   : > { %v8127_v55 = vrot.slane %v8112_v1, %v7642_v46 }
 0x5db   : > { %v3042_v33 = vpop.permute.xlu0 %3041  ;;  %3673 = vrot.lane.b32.xlu1 %v3646_v56, %s5928_s20 }
 0x5dc   : > { %3063 = vst.msk [vmem:[%s7649_s9 + $0x46] sm:$0x1] %vm2615_vm3, %v3042_v33  ;;  %v3658_v0 = vrot.slane %v8127_v55, %v7129_v17 }
 0x5dd   : > { %3204 = vrot.lane.b32.xlu0 %v3163_v35, %s5925_s21  ;;  %v2980_v22 = vpop.permute.xlu1 %2979  ;;  %v3289_v35 = vcombine.high %v7925_v57, %v7925_v57 }
 0x5de   : > { %3000 = vst.msk [vmem:[%s7649_s9 + $0x64] sm:$0x1] %vm2615_vm3, %v2980_v22 }
 0x5df   : > { %v3046_v47 = vpop.permute.xlu0 %3045  ;;  %3705 = vrot.lane.b32.xlu1 %v3646_v56, %s5929_s15 }
 0x5e0   : > { %3065 = vst.msk [vmem:[%s7649_s9 + $0x86] sm:$0x1] %vm2615_vm3, %v3046_v47 }
 0x5e1   : > { %3208 = vrot.lane.b32.xlu0 %v3171_v40, %s5925_s21  ;;  %v2984_v25 = vpop.permute.xlu1 %2983  ;;  %v3321_v40 = vrot.slane %v3289_v35, %v7129_v17 }
 0x5e2   : > { %3002 = vst.msk [vmem:[%s7649_s9 + $0xa4] sm:$0x1] %vm2615_vm3, %v2984_v25 }
 0x5e3   : > { %v2840_v27 = vpop.permute.xlu0 %2839  ;;  %3737 = vrot.lane.b32.xlu1 %v3646_v56, %s5930_s19 }
 0x5e4   : > { %v2869_v30 = vsel %vm2867_vm4, %v2840_v27, %v2842_v15  ;;  %v3995_v15 = vrot.slane %v8078_v16, %v7129_v17  ;;  %v3435_v27 = vcombine.high %v7972_v8, %v7972_v8 }
 0x5e5   : > { %2885 = vst.msk [vmem:[%s7649_s9 + $0x23] sm:$0x1] %vm2615_vm3, %v2869_v30  ;;  %3334 = vrot.lane.b32.xlu0 %v3317_v12, %s5924_s17  ;;  %v3012_v37 = vpop.permute.xlu1 %3011 }
 0x5e6   : > { %3032 = vst.msk [vmem:[%s7649_s9 + $0x65] sm:$0x1] %vm2615_vm3, %v3012_v37 }
 0x5e7   : > { %v2844_v36 = vpop.permute.xlu0 %2843  ;;  %3884 = vrot.lane.b32.xlu1 %v3825_v24, %s5934_s8  ;;  %v8160_v24 = vrot.slane %v3435_v27, %v7642_v46 }
 0x5e8   : > { %v2870_v11 = vsel %vm2867_vm4, %v2844_v36, %v2846_v18  ;;  %v3472_v18 = vrot.slane %v7986_v48, %v7129_v17 }
 0x5e9   : > { %2886 = vst.msk [vmem:[%s7649_s9 + $0x43] sm:$0x1] %vm2615_vm3, %v2870_v11  ;;  %3366 = vrot.lane.b32.xlu0 %v3317_v12, %s5926_s29  ;;  %v3016_v63 = vpop.permute.xlu1 %3015  ;;  %v3484_v36 = vrot.slane %v8160_v24, %v7135_v60  ;;  %v8172_v11 = vcombine.high %v7986_v48, %v7986_v48 }
 0x5ea   : > { %3034 = vst.msk [vmem:[%s7649_s9 + $0xa5] sm:$0x1] %vm2615_vm3, %v3016_v63  ;;  %v3436_v63 = vcombine.high %v7989_v4, %v7989_v4  ;;  %v3821_v4 = vrot.slane %v8047_v61, %v7129_v17 }
 0x5eb   : > { %v2856_v19 = vpop.permute.xlu0 %2855  ;;  %3900 = vrot.lane.b32.xlu1 %v3857_v21, %s5934_s8 }
 0x5ec   : > { %v2873_v31 = vsel %vm2867_vm4, %v2856_v19, %v2858_v58 }
 0x5ed   : > { %2889 = vst.msk [vmem:[%s7649_s9 + $0xa3] sm:$0x1] %vm2615_vm3, %v2873_v31  ;;  %3398 = vrot.lane.b32.xlu0 %v3317_v12, %s5927_s0  ;;  %v3044_v3 = vpop.permute.xlu1 %3043  ;;  %v3492_v31 = vrot.slane %v8172_v11, %v7135_v60 }
 0x5ee   : > { %3064 = vst.msk [vmem:[%s7649_s9 + $0x66] sm:$0x1] %vm2615_vm3, %v3044_v3  ;;  %v8183_v3 = vrot.slane %v3436_v63, %v7642_v46 }
 0x5ef   : > { %v2860_v5 = vpop.permute.xlu0 %2859  ;;  %4022 = vrot.lane.b32.xlu1 %v3995_v15, %s5931_s18 }
 0x5f0   : > { %v2874_v14 = vsel %vm2867_vm4, %v2860_v5, %v2862_v10  ;;  %v8121_v10 = vcombine.high %v7889_v13, %v7889_v13 }
 0x5f1   : > { %2890 = vst.msk [vmem:[%s7649_s9 + $0xc3] sm:$0x1] %vm2615_vm3, %v2874_v14  ;;  %3533 = vrot.lane.b32.xlu0 %v3472_v18, %s5933_s12  ;;  %v3048_v53 = vpop.permute.xlu1 %3047  ;;  %v3516_v18 = vrot.slane %v8183_v3, %v7135_v60 }
 0x5f2   : > { %3066 = vst.msk [vmem:[%s7649_s9 + $0xa6] sm:$0x1] %vm2615_vm3, %v3048_v53  ;;  %v3183_v13 = vrot.slane %v8121_v10, %v7135_v60  ;;  %v3853_v53 = vrot.slane %v8064_v45, %v7129_v17 }
 0x5f3   : > { %v2986_v58 = vpop.permute.xlu0 %2985  ;;  %4054 = vrot.lane.b32.xlu1 %v3995_v15, %s5932_s23  ;;  %v3939_v15 = vcombine.high %v7741_v39, %v7741_v39 }
 0x5f4   : > { %3003 = vst.msk [vmem:[%s7649_s9 + $0xc4] sm:$0x1] %vm2615_vm3, %v2986_v58  ;;  %v3984_v58 = vcombine.high %v7965_v41, %v7965_v41  ;;  %v3606_v41 = vcombine.high %v8112_v1, %v8112_v1 }
 0x5f5   : > { %3549 = vrot.lane.b32.xlu0 %v3504_v62, %s5933_s12  ;;  %v2850_v49 = vpop.permute.xlu1 %2849  ;;  %v8207_v62 = vrot.slane %v3939_v15, %v7642_v46  ;;  %v3785_v15 = vcombine.high %v8050_v28, %v8050_v28 }
 0x5f6   : > { %v8233_v35 = vrot.slane %v3606_v41, %v7642_v46 }
 0x5f7   : > { %v3018_v56 = vpop.permute.xlu0 %3017  ;;  %3198 = vrot.lane.b32.xlu1 %v3151_v54, %s5925_s21  ;;  %v3637_v54 = vcombine.high %v8012_v9, %v8012_v9  ;;  %v8309_v28 = vrot.slane %v3785_v15, %v7642_v46 }
 0x5f8   : > { %3035 = vst.msk [vmem:[%s7649_s9 + $0xc5] sm:$0x1] %vm2615_vm3, %v3018_v56 }
 0x5f9   : > { %3675 = vrot.lane.b32.xlu0 %v3650_v2, %s5928_s20  ;;  %v2866_v33 = vpop.permute.xlu1 %2865  ;;  %v3654_v1 = vrot.slane %v3637_v54, %v7129_v17 }
 0x5fb   : > { %v3050_v22 = vpop.permute.xlu0 %3049  ;;  %3214 = vrot.lane.b32.xlu1 %v3183_v13, %s5925_s21 }
 0x5fc   : > { %3067 = vst.msk [vmem:[%s7649_s9 + $0xc6] sm:$0x1] %vm2615_vm3, %v3050_v22 }
 0x5fd   : > { %3679 = vrot.lane.b32.xlu0 %v3658_v0, %s5928_s20  ;;  %v2988_v47 = vpop.permute.xlu1 %2987 }
 0x5fe   : > { %3004 = vst.msk [vmem:[%s7649_s9 + $0xe4] sm:$0x1] %vm2615_vm3, %v2988_v47 }
 0x5ff   : > { %v2848_v23 = vpop.permute.xlu0 %2847  ;;  %3336 = vrot.lane.b32.xlu1 %v3321_v40, %s5924_s17  ;;  %s5938_s17 = smov 28  }
 0x600   : > { %v2871_v57 = vsel %vm2867_vm4, %v2848_v23, %v2850_v49  ;;  %v3524_v49 = vrot.slane %v8197_v6, %v7135_v60 }
 0x601   : > { %2887 = vst.msk [vmem:[%s7649_s9 + $0x63] sm:$0x1] %vm2615_vm3, %v2871_v57  ;;  %3707 = vrot.lane.b32.xlu0 %v3650_v2, %s5929_s15  ;;  %v3020_v25 = vpop.permute.xlu1 %3019  ;;  %v8250_v57 = vrot.slane %v7738_v59, %v7642_v46 }
 0x602   : > { %3036 = vst.msk [vmem:[%s7649_s9 + $0xe5] sm:$0x1] %vm2615_vm3, %v3020_v25 }
 0x603   : > { %v2864_v12 = vpop.permute.xlu0 %2863  ;;  %3368 = vrot.lane.b32.xlu1 %v3321_v40, %s5926_s29  ;;  %s5940_s29 = smov 20  }
 0x604   : > { %v2875_v30 = vsel %vm2867_vm4, %v2864_v12, %v2866_v33  ;;  %v8225_v33 = vrot.slane %v8207_v62, %v7642_v46  ;;  %v8260_v12 = vrot.slane %v8250_v57, %v7642_v46 }
 0x605   : > { %2891 = vst.msk [vmem:[%s7649_s9 + $0xe3] sm:$0x1] %vm2615_vm3, %v2875_v30  ;;  %3711 = vrot.lane.b32.xlu0 %v3658_v0, %s5929_s15  ;;  %v3052_v37 = vpop.permute.xlu1 %3051 }
 0x606   : > { %3068 = vst.msk [vmem:[%s7649_s9 + $0xe6] sm:$0x1] %vm2615_vm3, %v3052_v37 }
 0x607   : > { %v3323_v42 = vpop.permute.xlu0 %3322  ;;  %3400 = vrot.lane.b32.xlu1 %v3321_v40, %s5927_s0  ;;  %v3662_v40 = vrot.slane %v8233_v35, %v7129_v17  ;;  %s5941_s0 = smov 80  }
 0x608   : > { %3346 = vst.msk [vmem:[%s7649_s9 + $0x8] sm:$0x1] %vm2615_vm3, %v3323_v42  ;;  %v4308_v42 = vrot.slane %v8260_v12, %v7129_v17 }
 0x609   : > { %3739 = vrot.lane.b32.xlu0 %v3650_v2, %s5930_s19  ;;  %v3187_v8 = vpop.permute.xlu1 %3186  ;;  %v3999_v2 = vrot.slane %v3984_v58, %v7129_v17 }
 0x60b   : > { %v3355_v21 = vpop.permute.xlu0 %3354  ;;  %3539 = vrot.lane.b32.xlu1 %v3484_v36, %s5933_s12  ;;  %v3784_v36 = vcombine.high %v8031_v20, %v8031_v20 }
 0x60c   : > { %3378 = vst.msk [vmem:[%s7649_s9 + $0x9] sm:$0x1] %vm2615_vm3, %v3355_v21 }
 0x60d   : > { %3743 = vrot.lane.b32.xlu0 %v3658_v0, %s5930_s19  ;;  %v3203_v19 = vpop.permute.xlu1 %3202  ;;  %v4007_v0 = vrot.slane %v8225_v33, %v7129_v17 }
 0x60f   : > { %v3387_v48 = vpop.permute.xlu0 %3386  ;;  %3543 = vrot.lane.b32.xlu1 %v3492_v31, %s5933_s12 }
 0x610   : > { %3410 = vst.msk [vmem:[%s7649_s9 + $0xa] sm:$0x1] %vm2615_vm3, %v3387_v48 }
 0x611   : > { %3882 = vrot.lane.b32.xlu0 %v3821_v4, %s5934_s8  ;;  %v3325_v5 = vpop.permute.xlu1 %3324  ;;  %v8294_v4 = vcombine.high %v8047_v61, %v8047_v61 }
 0x612   : > { %3347 = vst.msk [vmem:[%s7649_s9 + $0x28] sm:$0x1] %vm2615_vm3, %v3325_v5 }
 0x613   : > { %v3185_v14 = vpop.permute.xlu0 %3184  ;;  %3555 = vrot.lane.b32.xlu1 %v3516_v18, %s5933_s12  ;;  %v3147_v18 = vrot.slane %v8102_v51, %v7129_v17  ;;  %v3841_v61 = vrot.slane %v8294_v4, %v7135_v60  ;;  %v3179_v51 = vrot.slane %v8121_v10, %v7129_v17  ;;  %v3480_v10 = vrot.slane %v8160_v24, %v7129_v17 }
 0x614   : > { %v3217_v50 = vsel %vm3216_vm5, %v3185_v14, %v3187_v8 }
 0x615   : > { %3233 = vst.msk [vmem:[%s7649_s9 + $0x7] sm:$0x1] %vm2615_vm3, %v3217_v50  ;;  %3898 = vrot.lane.b32.xlu0 %v3853_v53, %s5934_s8  ;;  %v3357_v26 = vpop.permute.xlu1 %3356  ;;  %v3865_v50 = vrot.slane %v8309_v28, %v7135_v60 }
 0x616   : > { %3379 = vst.msk [vmem:[%s7649_s9 + $0x29] sm:$0x1] %vm2615_vm3, %v3357_v26  ;;  %v8323_v26 = vcombine.high %v8064_v45, %v8064_v45  ;;  %v3986_v45 = vcombine.high %v8078_v16, %v8078_v16 }
 0x617   : > { %v3201_v56 = vpop.permute.xlu0 %3200  ;;  %3559 = vrot.lane.b32.xlu1 %v3524_v49, %s5933_s12 }
 0x618   : > { %v3221_v13 = vsel %vm3216_vm5, %v3201_v56, %v3203_v19  ;;  %v8282_v19 = vrot.slane %v3784_v36, %v7642_v46  ;;  %v3873_v41 = vrot.slane %v8323_v26, %v7135_v60  ;;  %v3955_v56 = vcombine.high %v8207_v62, %v8207_v62 }
 0x619   : > { %3237 = vst.msk [vmem:[%s7649_s9 + $0x87] sm:$0x1] %vm2615_vm3, %v3221_v13  ;;  %4024 = vrot.lane.b32.xlu0 %v3999_v2, %s5931_s18  ;;  %v3389_v9 = vpop.permute.xlu1 %3388  ;;  %v3488_v13 = vrot.slane %v8172_v11, %v7129_v17  ;;  %v8379_v36 = vrot.slane %v4085_v29, %v7642_v46  ;;  %v8396_v29 = vrot.slane %v4086_v32, %v7642_v46 }
 0x61a   : > { %3411 = vst.msk [vmem:[%s7649_s9 + $0x2a] sm:$0x1] %vm2615_vm3, %v3389_v9  ;;  %v3833_v48 = vrot.slane %v8282_v19, %v7135_v60  ;;  %v8349_v16 = vrot.slane %v3955_v56, %v7642_v46  ;;  %v3985_v56 = vcombine.high %v8225_v33, %v8225_v33 }
 0x61b   : > { %v3327_v22 = vpop.permute.xlu0 %3326  ;;  %3677 = vrot.lane.b32.xlu1 %v3654_v1, %s5928_s20  ;;  %v8410_v32 = vrot.slane %v8396_v29, %v7642_v46 }
 0x61c   : > { %3348 = vst.msk [vmem:[%s7649_s9 + $0x48] sm:$0x1] %vm2615_vm3, %v3327_v22  ;;  %v3512_v22 = vrot.slane %v8183_v3, %v7129_v17  ;;  %v4015_v33 = vrot.slane %v3985_v56, %v7129_v17  ;;  %v4102_v56 = vcombine.high %v8396_v29, %v8396_v29 }
 0x61d   : > { %4028 = vrot.lane.b32.xlu0 %v4007_v0, %s5931_s18  ;;  %v8243_v47 = vpop.permute.xlu1 %3190 }
 0x61f   : > { %v3331_v23 = vpop.permute.xlu0 %3330  ;;  %3681 = vrot.lane.b32.xlu1 %v3662_v40, %s5928_s20 }
 0x620   : > { %3350 = vst.msk [vmem:[%s7649_s9 + $0x88] sm:$0x1] %vm2615_vm3, %v3331_v23  ;;  %v3520_v23 = vrot.slane %v8197_v6, %v7129_v17 }
 0x621   : > { %4056 = vrot.lane.b32.xlu0 %v3999_v2, %s5932_s23  ;;  %v8255_v25 = vpop.permute.xlu1 %3194 }
 0x623   : > { %v3359_v27 = vpop.permute.xlu0 %3358  ;;  %3709 = vrot.lane.b32.xlu1 %v3654_v1, %s5929_s15 }
 0x624   : > { %3380 = vst.msk [vmem:[%s7649_s9 + $0x49] sm:$0x1] %vm2615_vm3, %v3359_v27  ;;  %v3636_v27 = vcombine.high %v8127_v55, %v8127_v55 }
 0x625   : > { %4060 = vrot.lane.b32.xlu0 %v4007_v0, %s5932_s23  ;;  %v8265_v30 = vpop.permute.xlu1 %3206  ;;  %v4011_v0 = vrot.slane %v8349_v16, %v7129_v17 }
 0x626   : > { %v3666_v55 = vrot.slane %v3636_v27, %v7129_v17 }
 0x627   : > { %v3363_v37 = vpop.permute.xlu0 %3362  ;;  %3713 = vrot.lane.b32.xlu1 %v3662_v40, %s5929_s15 }
 0x628   : > { %3382 = vst.msk [vmem:[%s7649_s9 + $0x89] sm:$0x1] %vm2615_vm3, %v3363_v37 }
 0x629   : > { %4337 = vrot.lane.b32.xlu0 %v4308_v42, %s5935_s11  ;;  %v8273_v8 = vpop.permute.xlu1 %3210 }
 0x62b   : > { %v3391_v63 = vpop.permute.xlu0 %3390  ;;  %3741 = vrot.lane.b32.xlu1 %v3654_v1, %s5930_s19  ;;  %v4003_v1 = vrot.slane %v3986_v45, %v7129_v17  ;;  %v3869_v45 = vrot.slane %v8323_v26, %v7129_v17 }
 0x62c   : > { %3412 = vst.msk [vmem:[%s7649_s9 + $0x4a] sm:$0x1] %vm2615_vm3, %v3391_v63 }
 0x62d   : > { %4369 = vrot.lane.b32.xlu0 %v4308_v42, %s5936_s10  ;;  %v3329_v21 = vpop.permute.xlu1 %3328 }
 0x62e   : > { %3349 = vst.msk [vmem:[%s7649_s9 + $0x68] sm:$0x1] %vm2615_vm3, %v3329_v21  ;;  %v8390_v21 = vrot.slane %v8379_v36, %v7642_v46 }
 0x62f   : > { %v3395_v31 = vpop.permute.xlu0 %3394  ;;  %3745 = vrot.lane.b32.xlu1 %v3662_v40, %s5930_s19 }
 0x630   : > { %3414 = vst.msk [vmem:[%s7649_s9 + $0x8a] sm:$0x1] %vm2615_vm3, %v3395_v31  ;;  %v4142_v39 = vrot.slane %v8390_v21, %v7135_v60  ;;  %v4138_v27 = vrot.slane %v8390_v21, %v7129_v17 }
 0x631   : > { %4401 = vrot.lane.b32.xlu0 %v4308_v42, %s5937_s16  ;;  %v3333_v20 = vpop.permute.xlu1 %3332 }
 0x632   : > { %3351 = vst.msk [vmem:[%s7649_s9 + $0xa8] sm:$0x1] %vm2615_vm3, %v3333_v20 }
 0x633   : > { %v3672_v5 = vpop.permute.xlu0 %3671  ;;  %3888 = vrot.lane.b32.xlu1 %v3833_v48, %s5934_s8  ;;  %v4271_v48 = vcombine.high %v8250_v57, %v8250_v57 }
 0x634   : > { %3695 = vst.msk [vmem:[%s7649_s9 + $0xc] sm:$0x1] %vm2615_vm3, %v3672_v5 }
 0x635   : > { %3196 = vrot.lane.b32.xlu0 %v3147_v18, %s5925_s21  ;;  %v3361_v14 = vpop.permute.xlu1 %3360  ;;  %v4174_v18 = vrot.slane %v8410_v32, %v7135_v60  ;;  %v8425_v57 = vrot.slane %v4271_v48, %v7642_v46  ;;  %v8537_v48 = vcombine.high %v8309_v28, %v8309_v28 }
 0x636   : > { %3381 = vst.msk [vmem:[%s7649_s9 + $0x69] sm:$0x1] %vm2615_vm3, %v3361_v14 }
 0x637   : > { %v3704_v53 = vpop.permute.xlu0 %3703  ;;  %3892 = vrot.lane.b32.xlu1 %v3841_v61, %s5934_s8 }
 0x638   : > { %3727 = vst.msk [vmem:[%s7649_s9 + $0xd] sm:$0x1] %vm2615_vm3, %v3704_v53  ;;  %v4312_v53 = vrot.slane %v8425_v57, %v7129_v17 }
 0x639   : > { %3212 = vrot.lane.b32.xlu0 %v3179_v51, %s5925_s21  ;;  %v3365_v58 = vpop.permute.xlu1 %3364  ;;  %s5939_s21 = smov 114  }
 0x63a   : > { %3383 = vst.msk [vmem:[%s7649_s9 + $0xa9] sm:$0x1] %vm2615_vm3, %v3365_v58  ;;  %v3837_v58 = vrot.slane %v8294_v4, %v7129_v17  ;;  %v8455_v4 = vcombine.high %v8160_v24, %v8160_v24 }
 0x63b   : > { %v3736_v49 = vpop.permute.xlu0 %3735  ;;  %3904 = vrot.lane.b32.xlu1 %v3865_v50, %s5934_s8 }
 0x63c   : > { %3759 = vst.msk [vmem:[%s7649_s9 + $0xe] sm:$0x1] %vm2615_vm3, %v3736_v49  ;;  %v3496_v29 = vrot.slane %v8455_v4, %v7129_v17 }
 0x63d   : > { %3537 = vrot.lane.b32.xlu0 %v3480_v10, %s5933_s12  ;;  %v3393_v54 = vpop.permute.xlu1 %3392  ;;  %v3861_v10 = vrot.slane %v8309_v28, %v7129_v17  ;;  %v3987_v28 = vcombine.high %v8349_v16, %v8349_v16 }
 0x63e   : > { %3413 = vst.msk [vmem:[%s7649_s9 + $0x6a] sm:$0x1] %vm2615_vm3, %v3393_v54 }
 0x63f   : > { %v4021_v2 = vpop.permute.xlu0 %4020  ;;  %3908 = vrot.lane.b32.xlu1 %v3873_v41, %s5934_s8 }
 0x640   : > { %4044 = vst.msk [vmem:[%s7649_s9 + $0x10] sm:$0x1] %vm2615_vm3, %v4021_v2 }
 0x641   : > { %3541 = vrot.lane.b32.xlu0 %v3488_v13, %s5933_s12  ;;  %v3397_v9 = vpop.permute.xlu1 %3396  ;;  %v3500_v13 = vrot.slane %v8455_v4, %v7135_v60 }
 0x642   : > { %3415 = vst.msk [vmem:[%s7649_s9 + $0xaa] sm:$0x1] %vm2615_vm3, %v3397_v9  ;;  %v8473_v9 = vcombine.high %v8183_v3, %v8183_v3 }
 0x643   : > { %v4053_v62 = vpop.permute.xlu0 %4052  ;;  %4026 = vrot.lane.b32.xlu1 %v4003_v1, %s5931_s18 }
 0x644   : > { %4076 = vst.msk [vmem:[%s7649_s9 + $0x11] sm:$0x1] %vm2615_vm3, %v4053_v62  ;;  %v3532_v3 = vrot.slane %v8473_v9, %v7135_v60  ;;  %v3528_v4 = vrot.slane %v8473_v9, %v7129_v17 }
 0x645   : > { %3553 = vrot.lane.b32.xlu0 %v3512_v22, %s5933_s12  ;;  %v8359_v11 = vpop.permute.xlu1 %3535  ;;  %v3638_v22 = vcombine.high %v8233_v35, %v8233_v35  ;;  %v4256_v35 = vcombine.high %v7738_v59, %v7738_v59 }
 0x647   : > { %v3189_v40 = vpop.permute.xlu0 %3188  ;;  %4030 = vrot.lane.b32.xlu1 %v4011_v0, %s5931_s18 }
 0x648   : > { %v3218_v37 = vsel %vm3216_vm5, %v3189_v40, %v8243_v47  ;;  %v3670_v40 = vrot.slane %v3638_v22, %v7129_v17 }
 0x649   : > { %3234 = vst.msk [vmem:[%s7649_s9 + $0x27] sm:$0x1] %vm2615_vm3, %v3218_v37  ;;  %3557 = vrot.lane.b32.xlu0 %v3520_v23, %s5933_s12  ;;  %v8373_v42 = vpop.permute.xlu1 %3551 }
 0x64b   : > { %v3193_v6 = vpop.permute.xlu0 %3192  ;;  %4058 = vrot.lane.b32.xlu1 %v4003_v1, %s5932_s23 }
 0x64c   : > { %v3219_v47 = vsel %vm3216_vm5, %v3193_v6, %v8255_v25  ;;  %v4170_v6 = vrot.slane %v8410_v32, %v7129_v17 }
 0x64d   : > { %3235 = vst.msk [vmem:[%s7649_s9 + $0x47] sm:$0x1] %vm2615_vm3, %v3219_v47  ;;  %3683 = vrot.lane.b32.xlu0 %v3666_v55, %s5928_s20  ;;  %v3674_v63 = vpop.permute.xlu1 %3673  ;;  %v8513_v47 = vrot.slane %v4256_v35, %v7642_v46 }
 0x64e   : > { %3696 = vst.msk [vmem:[%s7649_s9 + $0x2c] sm:$0x1] %vm2615_vm3, %v3674_v63 }
 0x64f   : > { %v3205_v25 = vpop.permute.xlu0 %3204  ;;  %4062 = vrot.lane.b32.xlu1 %v4011_v0, %s5932_s23 }
 0x650   : > { %v3222_v31 = vsel %vm3216_vm5, %v3205_v25, %v8265_v30  ;;  %v8520_v25 = vcombine.high %v8282_v19, %v8282_v19 }
 0x651   : > { %3238 = vst.msk [vmem:[%s7649_s9 + $0xa7] sm:$0x1] %vm2615_vm3, %v3222_v31  ;;  %3715 = vrot.lane.b32.xlu0 %v3666_v55, %s5929_s15  ;;  %v3706_v20 = vpop.permute.xlu1 %3705 }
 0x652   : > { %3728 = vst.msk [vmem:[%s7649_s9 + $0x2d] sm:$0x1] %vm2615_vm3, %v3706_v20  ;;  %v8528_v20 = vrot.slane %v8513_v47, %v7642_v46  ;;  %v3845_v9 = vrot.slane %v8520_v25, %v7129_v17 }
 0x653   : > { %v3209_v30 = vpop.permute.xlu0 %3208  ;;  %4201 = vrot.lane.b32.xlu1 %v4142_v39, %s5938_s17 }
 0x654   : > { %v3223_v15 = vsel %vm3216_vm5, %v3209_v30, %v8273_v8  ;;  %v3829_v8 = vrot.slane %v8282_v19, %v7129_v17  ;;  %v3849_v19 = vrot.slane %v8520_v25, %v7135_v60 }
 0x655   : > { %3239 = vst.msk [vmem:[%s7649_s9 + $0xc7] sm:$0x1] %vm2615_vm3, %v3223_v15  ;;  %3747 = vrot.lane.b32.xlu0 %v3666_v55, %s5930_s19  ;;  %v3738_v5 = vpop.permute.xlu1 %3737  ;;  %v4301_v55 = vcombine.high %v8260_v12, %v8260_v12  ;;  %v4324_v15 = vrot.slane %v8528_v20, %v7129_v17 }
 0x656   : > { %3760 = vst.msk [vmem:[%s7649_s9 + $0x2e] sm:$0x1] %vm2615_vm3, %v3738_v5 }
 0x657   : > { %v3335_v14 = vpop.permute.xlu0 %3334  ;;  %4217 = vrot.lane.b32.xlu1 %v4174_v18, %s5938_s17  ;;  %v4316_v12 = vrot.slane %v4301_v55, %v7129_v17  ;;  %v3881_v18 = vrot.slane %v8537_v48, %v7135_v60 }
 0x658   : > { %3352 = vst.msk [vmem:[%s7649_s9 + $0xc8] sm:$0x1] %vm2615_vm3, %v3335_v14 }
 0x659   : > { %3886 = vrot.lane.b32.xlu0 %v3829_v8, %s5934_s8  ;;  %v8435_v61 = vpop.permute.xlu1 %3884 }
 0x65b   : > { %v3367_v51 = vpop.permute.xlu0 %3366  ;;  %4339 = vrot.lane.b32.xlu1 %v4312_v53, %s5935_s11 }
 0x65c   : > { %3384 = vst.msk [vmem:[%s7649_s9 + $0xc9] sm:$0x1] %vm2615_vm3, %v3367_v51  ;;  %v4101_v51 = vcombine.high %v8379_v36, %v8379_v36 }
 0x65d   : > { %3890 = vrot.lane.b32.xlu0 %v3837_v58, %s5934_s8  ;;  %v8445_v50 = vpop.permute.xlu1 %3900 }
 0x65f   : > { %v3399_v49 = vpop.permute.xlu0 %3398  ;;  %4371 = vrot.lane.b32.xlu1 %v4312_v53, %s5936_s10 }
 0x660   : > { %3416 = vst.msk [vmem:[%s7649_s9 + $0xca] sm:$0x1] %vm2615_vm3, %v3399_v49 }
 0x661   : > { %3902 = vrot.lane.b32.xlu0 %v3861_v10, %s5934_s8  ;;  %v4023_v54 = vpop.permute.xlu1 %4022  ;;  %v8571_v10 = vrot.slane %v4101_v51, %v7642_v46 }
 0x662   : > { %4045 = vst.msk [vmem:[%s7649_s9 + $0x30] sm:$0x1] %vm2615_vm3, %v4023_v54 }
 0x663   : > { %v3534_v41 = vpop.permute.xlu0 %3533  ;;  %4403 = vrot.lane.b32.xlu1 %v4312_v53, %s5937_s16  ;;  %v4019_v53 = vrot.slane %v3987_v28, %v7129_v17  ;;  %v4133_v51 = vcombine.high %v8571_v10, %v8571_v10 }
 0x664   : > { %v3566_v2 = vsel %vm3565_vm6, %v3534_v41, %v8359_v11  ;;  %v4150_v41 = vrot.slane %v8571_v10, %v7135_v60 }
 0x665   : > { %3582 = vst.msk [vmem:[%s7649_s9 + $0xb] sm:$0x1] %vm2615_vm3, %v3566_v2  ;;  %3906 = vrot.lane.b32.xlu0 %v3869_v45, %s5934_s8  ;;  %v4055_v24 = vpop.permute.xlu1 %4054  ;;  %v4131_v45 = vcombine.high %v8390_v21, %v8390_v21 }
 0x666   : > { %4077 = vst.msk [vmem:[%s7649_s9 + $0x31] sm:$0x1] %vm2615_vm3, %v4055_v24 }
 0x667   : > { %v3550_v26 = vpop.permute.xlu0 %3549  ;;  %3547 = vrot.lane.b32.xlu1 %v3500_v13, %s5933_s12  ;;  %v4158_v24 = vrot.slane %v4131_v45, %v7135_v60  ;;  %v8593_v13 = vrot.slane %v4102_v56, %v7642_v46 }
 0x668   : > { %v3570_v1 = vsel %vm3565_vm6, %v3550_v26, %v8373_v42 }
 0x669   : > { %3586 = vst.msk [vmem:[%s7649_s9 + $0x8b] sm:$0x1] %vm2615_vm3, %v3570_v1  ;;  %4032 = vrot.lane.b32.xlu0 %v4015_v33, %s5931_s18  ;;  %v8484_v62 = vpop.permute.xlu1 %3198  ;;  %v4132_v1 = vcombine.high %v8410_v32, %v8410_v32  ;;  %v4303_v32 = vcombine.high %v8425_v57, %v8425_v57 }
 0x66b   : > { %v3676_v11 = vpop.permute.xlu0 %3675  ;;  %3563 = vrot.lane.b32.xlu1 %v3532_v3, %s5933_s12  ;;  %v4320_v57 = vrot.slane %v4303_v32, %v7129_v17  ;;  %v4186_v28 = vrot.slane %v4132_v1, %v7129_v17 }
 0x66c   : > { %3697 = vst.msk [vmem:[%s7649_s9 + $0x4c] sm:$0x1] %vm2615_vm3, %v3676_v11  ;;  %v4190_v11 = vrot.slane %v4132_v1, %v7135_v60 }
 0x66d   : > { %4064 = vrot.lane.b32.xlu0 %v4015_v33, %s5932_s23  ;;  %v8494_v0 = vpop.permute.xlu1 %3214  ;;  %v4182_v33 = vrot.slane %v8593_v13, %v7135_v60 }
 0x66f   : > { %v3680_v23 = vpop.permute.xlu0 %3679  ;;  %3685 = vrot.lane.b32.xlu1 %v3670_v40, %s5928_s20  ;;  %s5942_s20 = smov 46  }
 0x670   : > { %3699 = vst.msk [vmem:[%s7649_s9 + $0x8c] sm:$0x1] %vm2615_vm3, %v3680_v23 }
 0x671   : > { %4199 = vrot.lane.b32.xlu0 %v4138_v27, %s5938_s17  ;;  %v3337_v37 = vpop.permute.xlu1 %3336 }
 0x672   : > { %3353 = vst.msk [vmem:[%s7649_s9 + $0xe8] sm:$0x1] %vm2615_vm3, %v3337_v37 }
 0x673   : > { %v3708_v42 = vpop.permute.xlu0 %3707  ;;  %3717 = vrot.lane.b32.xlu1 %v3670_v40, %s5929_s15  ;;  %s5943_s15 = smov 12  }
 0x674   : > { %3729 = vst.msk [vmem:[%s7649_s9 + $0x4d] sm:$0x1] %vm2615_vm3, %v3708_v42  ;;  %v3877_v42 = vrot.slane %v8537_v48, %v7129_v17  ;;  %v4178_v48 = vrot.slane %v8593_v13, %v7129_v17 }
 0x675   : > { %4215 = vrot.lane.b32.xlu0 %v4170_v6, %s5938_s17  ;;  %v3369_v63 = vpop.permute.xlu1 %3368 }
 0x676   : > { %3385 = vst.msk [vmem:[%s7649_s9 + $0xe9] sm:$0x1] %vm2615_vm3, %v3369_v63  ;;  %v4146_v63 = vrot.slane %v8571_v10, %v7129_v17  ;;  %v4166_v10 = vrot.slane %v4133_v51, %v7135_v60 }
 0x677   : > { %v3712_v31 = vpop.permute.xlu0 %3711  ;;  %3749 = vrot.lane.b32.xlu1 %v3670_v40, %s5930_s19  ;;  %v4272_v40 = vcombine.high %v8513_v47, %v8513_v47  ;;  %s5944_s19 = smov 106  }
 0x678   : > { %3731 = vst.msk [vmem:[%s7649_s9 + $0x8d] sm:$0x1] %vm2615_vm3, %v3712_v31 }
 0x679   : > { %4341 = vrot.lane.b32.xlu0 %v4316_v12, %s5935_s11  ;;  %v3401_v39 = vpop.permute.xlu1 %3400  ;;  %v8630_v35 = vrot.slane %v4272_v40, %v7642_v46 }
 0x67a   : > { %3417 = vst.msk [vmem:[%s7649_s9 + $0xea] sm:$0x1] %vm2615_vm3, %v3401_v39 }
 0x67b   : > { %v3740_v30 = vpop.permute.xlu0 %3739  ;;  %3896 = vrot.lane.b32.xlu1 %v3849_v19, %s5934_s8  ;;  %v4328_v55 = vrot.slane %v8630_v35, %v7129_v17  ;;  %v4304_v56 = vcombine.high %v8630_v35, %v8630_v35 }
 0x67c   : > { %3761 = vst.msk [vmem:[%s7649_s9 + $0x4e] sm:$0x1] %vm2615_vm3, %v3740_v30 }
 0x67d   : > { %4345 = vrot.lane.b32.xlu0 %v4324_v15, %s5935_s11  ;;  %v8547_v5 = vpop.permute.xlu1 %3539 }
 0x67f   : > { %v3744_v14 = vpop.permute.xlu0 %3743  ;;  %3912 = vrot.lane.b32.xlu1 %v3881_v18, %s5934_s8 }
 0x680   : > { %3763 = vst.msk [vmem:[%s7649_s9 + $0x8e] sm:$0x1] %vm2615_vm3, %v3744_v14  ;;  %v4302_v14 = vcombine.high %v8528_v20, %v8528_v20 }
 0x681   : > { %4373 = vrot.lane.b32.xlu0 %v4316_v12, %s5936_s10  ;;  %v8557_v8 = vpop.permute.xlu1 %3543 }
 0x683   : > { %v3883_v58 = vpop.permute.xlu0 %3882  ;;  %4034 = vrot.lane.b32.xlu1 %v4019_v53, %s5931_s18  ;;  %s5945_s18 = smov 72  }
 0x684   : > { %v3915_v16 = vsel %vm3914_vm7, %v3883_v58, %v8435_v61 }
 0x685   : > { %3931 = vst.msk [vmem:[%s7649_s9 + $0xf] sm:$0x1] %vm2615_vm3, %v3915_v16  ;;  %4377 = vrot.lane.b32.xlu0 %v4324_v15, %s5936_s10  ;;  %v8568_v49 = vpop.permute.xlu1 %3555  ;;  %v4332_v16 = vrot.slane %v4302_v14, %v7129_v17 }
 0x687   : > { %v3899_v54 = vpop.permute.xlu0 %3898  ;;  %4066 = vrot.lane.b32.xlu1 %v4019_v53, %s5932_s23  ;;  %s5946_s23 = smov 38  }
 0x688   : > { %v3919_v36 = vsel %vm3914_vm7, %v3899_v54, %v8445_v50 }
 0x689   : > { %3935 = vst.msk [vmem:[%s7649_s9 + $0x8f] sm:$0x1] %vm2615_vm3, %v3919_v36  ;;  %4405 = vrot.lane.b32.xlu0 %v4316_v12, %s5937_s16  ;;  %v8579_v61 = vpop.permute.xlu1 %3559  ;;  %v4154_v12 = vrot.slane %v4131_v45, %v7129_v17  ;;  %v4134_v36 = vcombine.high %v8593_v13, %v8593_v13 }
 0x68b   : > { %v4025_v2 = vpop.permute.xlu0 %4024  ;;  %4205 = vrot.lane.b32.xlu1 %v4150_v41, %s5938_s17  ;;  %v4198_v45 = vrot.slane %v4134_v36, %v7135_v60 }
 0x68c   : > { %4046 = vst.msk [vmem:[%s7649_s9 + $0x50] sm:$0x1] %vm2615_vm3, %v4025_v2 }
 0x68d   : > { %4409 = vrot.lane.b32.xlu0 %v4324_v15, %s5937_s16  ;;  %v3678_v50 = vpop.permute.xlu1 %3677 }
 0x68e   : > { %3698 = vst.msk [vmem:[%s7649_s9 + $0x6c] sm:$0x1] %vm2615_vm3, %v3678_v50 }
 0x68f   : > { %v4029_v21 = vpop.permute.xlu0 %4028  ;;  %4209 = vrot.lane.b32.xlu1 %v4158_v24, %s5938_s17  ;;  %v4336_v24 = vrot.slane %v4304_v56, %v7129_v17 }
 0x690   : > { %4048 = vst.msk [vmem:[%s7649_s9 + $0x90] sm:$0x1] %vm2615_vm3, %v4029_v21 }
 0x691   : > { %3545 = vrot.lane.b32.xlu0 %v3496_v29, %s5933_s12  ;;  %v3682_v26 = vpop.permute.xlu1 %3681  ;;  %v4162_v29 = vrot.slane %v4133_v51, %v7129_v17 }
 0x692   : > { %3700 = vst.msk [vmem:[%s7649_s9 + $0xac] sm:$0x1] %vm2615_vm3, %v3682_v26 }
 0x693   : > { %v4057_v3 = vpop.permute.xlu0 %4056  ;;  %4221 = vrot.lane.b32.xlu1 %v4182_v33, %s5938_s17 }
 0x694   : > { %4078 = vst.msk [vmem:[%s7649_s9 + $0x51] sm:$0x1] %vm2615_vm3, %v4057_v3 }
 0x695   : > { %3561 = vrot.lane.b32.xlu0 %v3528_v4, %s5933_s12  ;;  %v3710_v22 = vpop.permute.xlu1 %3709  ;;  %s5947_s12 = smov 4  }
 0x696   : > { %3730 = vst.msk [vmem:[%s7649_s9 + $0x6d] sm:$0x1] %vm2615_vm3, %v3710_v22  ;;  %v4194_v22 = vrot.slane %v4134_v36, %v7129_v17 }
 0x697   : > { %v4061_v23 = vpop.permute.xlu0 %4060  ;;  %4225 = vrot.lane.b32.xlu1 %v4190_v11, %s5938_s17 }
 0x698   : > { %4080 = vst.msk [vmem:[%s7649_s9 + $0x91] sm:$0x1] %vm2615_vm3, %v4061_v23 }
 0x699   : > { %3894 = vrot.lane.b32.xlu0 %v3845_v9, %s5934_s8  ;;  %v3714_v27 = vpop.permute.xlu1 %3713 }
 0x69a   : > { %3732 = vst.msk [vmem:[%s7649_s9 + $0xad] sm:$0x1] %vm2615_vm3, %v3714_v27 }
 0x69b   : > { %v4338_v37 = vpop.permute.xlu0 %4337  ;;  %4343 = vrot.lane.b32.xlu1 %v4320_v57, %s5935_s11 }
 0x69c   : > { %4361 = vst.msk [vmem:[%s7649_s9 + $0x13] sm:$0x1] %vm2615_vm3, %v4338_v37 }
 0x69d   : > { %3910 = vrot.lane.b32.xlu0 %v3877_v42, %s5934_s8  ;;  %v3742_v6 = vpop.permute.xlu1 %3741  ;;  %s5948_s8 = smov 98  }
 0x69e   : > { %3762 = vst.msk [vmem:[%s7649_s9 + $0x6e] sm:$0x1] %vm2615_vm3, %v3742_v6 }
 0x69f   : > { %v4370_v47 = vpop.permute.xlu0 %4369  ;;  %4347 = vrot.lane.b32.xlu1 %v4328_v55, %s5935_s11 }
 0x6a0   : > { %4393 = vst.msk [vmem:[%s7649_s9 + $0x14] sm:$0x1] %vm2615_vm3, %v4370_v47 }
 0x6a1   : > { %4203 = vrot.lane.b32.xlu0 %v4146_v63, %s5938_s17  ;;  %v3746_v25 = vpop.permute.xlu1 %3745 }
 0x6a2   : > { %3764 = vst.msk [vmem:[%s7649_s9 + $0xae] sm:$0x1] %vm2615_vm3, %v3746_v25 }
 0x6a3   : > { %v4402_v31 = vpop.permute.xlu0 %4401  ;;  %4375 = vrot.lane.b32.xlu1 %v4320_v57, %s5936_s10 }
 0x6a4   : > { %4425 = vst.msk [vmem:[%s7649_s9 + $0x15] sm:$0x1] %vm2615_vm3, %v4402_v31 }
 0x6a5   : > { %4207 = vrot.lane.b32.xlu0 %v4154_v12, %s5938_s17  ;;  %v8657_v39 = vpop.permute.xlu1 %3888 }
 0x6a7   : > { %v3197_v19 = vpop.permute.xlu0 %3196  ;;  %4379 = vrot.lane.b32.xlu1 %v4328_v55, %s5936_s10 }
 0x6a8   : > { %v3220_v30 = vsel %vm3216_vm5, %v3197_v19, %v8484_v62 }
 0x6a9   : > { %3236 = vst.msk [vmem:[%s7649_s9 + $0x67] sm:$0x1] %vm2615_vm3, %v3220_v30  ;;  %4219 = vrot.lane.b32.xlu0 %v4178_v48, %s5938_s17  ;;  %v8667_v15 = vpop.permute.xlu1 %3892 }
 0x6ab   : > { %v3213_v18 = vpop.permute.xlu0 %3212  ;;  %4407 = vrot.lane.b32.xlu1 %v4320_v57, %s5937_s16 }
 0x6ac   : > { %v3224_v53 = vsel %vm3216_vm5, %v3213_v18, %v8494_v0  ;;  %v2474_v0 = vadd.f32 %v7770_v44, %v7157_v7 }
 0x6ad   : > { %3240 = vst.msk [vmem:[%s7649_s9 + $0xe7] sm:$0x1] %vm2615_vm3, %v3224_v53  ;;  %4223 = vrot.lane.b32.xlu0 %v4186_v28, %s5938_s17  ;;  %v8678_v62 = vpop.permute.xlu1 %3904 }
 0x6ae   : > { %v8699_v7 = vmax.f32 %v2474_v0, 0.0 }
 0x6af   : > { %v3538_v58 = vpop.permute.xlu0 %3537  ;;  %4411 = vrot.lane.b32.xlu1 %v4328_v55, %s5937_s16 }
 0x6b0   : > { %v3567_v20 = vsel %vm3565_vm6, %v3538_v58, %v8547_v5  ;;  %v4434_v13 = vcombine.low %v7738_v59, %v8699_v7  ;;  %v4435_v3 = vcombine.high %v7738_v59, %v8699_v7 }
 0x6b1   : > { %3583 = vst.msk [vmem:[%s7649_s9 + $0x2b] sm:$0x1] %vm2615_vm3, %v3567_v20  ;;  %4349 = vrot.lane.b32.xlu0 %v4332_v16, %s5935_s11  ;;  %v8691_v54 = vpop.permute.xlu1 %3908 }
 0x6b2   : > { %v4442_v1 = vrot.slane %v4434_v13, %v7642_v46  ;;  %v8742_v40 = vrot.slane %v4435_v3, %v7642_v46 }
 0x6b3   : > { %v3542_v41 = vpop.permute.xlu0 %3541  ;;  %4213 = vrot.lane.b32.xlu1 %v4166_v10, %s5938_s17 }
 0x6b4   : > { %v3568_v5 = vsel %vm3565_vm6, %v3542_v41, %v8557_v8  ;;  %v4458_v32 = vrot.slane %v4442_v1, %v7642_v46  ;;  %v8756_v57 = vrot.slane %v8742_v40, %v7642_v46  ;;  %v4450_v18 = vcombine.high %v4442_v1, %v4442_v1 }
 0x6b5   : > { %3584 = vst.msk [vmem:[%s7649_s9 + $0x4b] sm:$0x1] %vm2615_vm3, %v3568_v5  ;;  %4381 = vrot.lane.b32.xlu0 %v4332_v16, %s5936_s10  ;;  %v4027_v44 = vpop.permute.xlu1 %4026 }
 0x6b6   : > { %4047 = vst.msk [vmem:[%s7649_s9 + $0x70] sm:$0x1] %vm2615_vm3, %v4027_v44  ;;  %v4491_v27 = vrot.slane %v4458_v32, %v7135_v60  ;;  %v4523_v6 = vrot.slane %v8756_v57, %v7135_v60  ;;  %v4487_v19 = vrot.slane %v4458_v32, %v7129_v17  ;;  %v4519_v14 = vrot.slane %v8756_v57, %v7129_v17 }
 0x6b7   : > { %v3554_v2 = vpop.permute.xlu0 %3553  ;;  %4229 = vrot.lane.b32.xlu1 %v4198_v45, %s5938_s17  ;;  %v4480_v5 = vcombine.high %v4458_v32, %v4458_v32  ;;  %v4451_v44 = vcombine.high %v8742_v40, %v8742_v40 }
 0x6b8   : > { %v3571_v8 = vsel %vm3565_vm6, %v3554_v2, %v8568_v49  ;;  %v4612_v49 = vrot.slane %v8699_v7, %v7642_v46 }
 0x6b9   : > { %3587 = vst.msk [vmem:[%s7649_s9 + $0xab] sm:$0x1] %vm2615_vm3, %v3571_v8  ;;  %4413 = vrot.lane.b32.xlu0 %v4332_v16, %s5937_s16  ;;  %v4031_v50 = vpop.permute.xlu1 %4030  ;;  %v8800_v16 = vrot.slane %v4450_v18, %v7642_v46  ;;  %v4507_v2 = vrot.slane %v4480_v5, %v7135_v60  ;;  %v8830_v8 = vrot.slane %v4451_v44, %v7642_v46 }
 0x6ba   : > { %4049 = vst.msk [vmem:[%s7649_s9 + $0xb0] sm:$0x1] %vm2615_vm3, %v4031_v50  ;;  %v4620_v35 = vcombine.high %v4612_v49, %v4612_v49 }
 0x6bb   : > { %v3558_v21 = vpop.permute.xlu0 %3557  ;;  %4351 = vrot.lane.b32.xlu1 %v4336_v24, %s5935_s11  ;;  %v4499_v41 = vrot.slane %v8800_v16, %v7135_v60  ;;  %v4531_v13 = vrot.slane %v8830_v8, %v7135_v60  ;;  %s5559_s11 = sshll.u32 %s6013_s28, 12  ;;  %s5417_s28 = scalar_lea.sflag [#allocation5], %s6142_s22 }
 0x6bc   : > { %v3572_v26 = vsel %vm3565_vm6, %v3558_v21, %v8579_v61  ;;  %v4628_v61 = vrot.slane %v4612_v49, %v7642_v46  ;;  %v8767_v55 = vrot.slane %v4620_v35, %v7642_v46  ;;  %v4481_v21 = vcombine.high %v8756_v57, %v8756_v57 }
 0x6bd   : > { %3588 = vst.msk [vmem:[%s7649_s9 + $0xcb] sm:$0x1] %vm2615_vm3, %v3572_v26  ;;  %4211 = vrot.lane.b32.xlu0 %v4162_v29, %s5938_s17  ;;  %v4059_v33 = vpop.permute.xlu1 %4058 }
 0x6be   : > { %4079 = vst.msk [vmem:[%s7649_s9 + $0x71] sm:$0x1] %vm2615_vm3, %v4059_v33  ;;  %v4657_v23 = vrot.slane %v4628_v61, %v7129_v17  ;;  %v4661_v31 = vrot.slane %v8767_v55, %v7129_v17  ;;  %v4650_v53 = vcombine.high %v4628_v61, %v4628_v61  ;;  %v4539_v33 = vrot.slane %v4481_v21, %v7135_v60 }
 0x6bf   : > { %v3684_v4 = vpop.permute.xlu0 %3683  ;;  %4383 = vrot.lane.b32.xlu1 %v4336_v24, %s5936_s10  ;;  %v4652_v1 = vcombine.high %v8767_v55, %v8767_v55  ;;  %s5430_s10 = sshll.u32 %s7649_s9, 4  ;;  %s9354_s10 = int_to_ptr.vmem [resolvable:$true] %s5430_s10 }
 0x6c0   : > { %3701 = vst.msk [vmem:[%s7649_s9 + $0xcc] sm:$0x1] %vm2615_vm3, %v3684_v4  ;;  %v4665_v0 = vrot.slane %v4650_v53, %v7129_v17  ;;  %v4482_v53 = vcombine.high %v8800_v16, %v8800_v16 }
 0x6c1   : > { %4227 = vrot.lane.b32.xlu0 %v4194_v22, %s5938_s17  ;;  %v4063_v11 = vpop.permute.xlu1 %4062 }
 0x6c2   : > { %4081 = vst.msk [vmem:[%s7649_s9 + $0xb1] sm:$0x1] %vm2615_vm3, %v4063_v11  ;;  %v4669_v11 = vrot.slane %v4652_v1, %v7129_v17 }
 0x6c3   : > { %v3716_v59 = vpop.permute.xlu0 %3715  ;;  %4415 = vrot.lane.b32.xlu1 %v4336_v24, %s5937_s16 }
 0x6c4   : > { %3733 = vst.msk [vmem:[%s7649_s9 + $0xcd] sm:$0x1] %vm2615_vm3, %v3716_v59 }
 0x6c5   : > { %4686 = vrot.lane.b32.xlu0 %v4657_v23, %s5939_s21  ;;  %v8751_v9 = vpop.permute.xlu1 %4201 }
 0x6c7   : > { %v3748_v37 = vpop.permute.xlu0 %3747  ;;  %4550 = vrot.lane.b32.xlu1 %v4491_v27, %s5940_s29  ;;  %v4495_v27 = vrot.slane %v8800_v16, %v7129_v17 }
 0x6c8   : > { %3765 = vst.msk [vmem:[%s7649_s9 + $0xce] sm:$0x1] %vm2615_vm3, %v3748_v37  ;;  %v4503_v37 = vrot.slane %v4480_v5, %v7129_v17 }
 0x6c9   : > { %4718 = vrot.lane.b32.xlu0 %v4657_v23, %s5941_s0  ;;  %v8762_v42 = vpop.permute.xlu1 %4217 }
 0x6cb   : > { %v3887_v47 = vpop.permute.xlu0 %3886  ;;  %4566 = vrot.lane.b32.xlu1 %v4523_v6, %s5940_s29  ;;  %v4783_v6 = vcombine.low %v8699_v7, %v7777_v34 }
 0x6cc   : > { %v3916_v63 = vsel %vm3914_vm7, %v3887_v47, %v8657_v39  ;;  %v4605_v39 = vcombine.high %v8699_v7, %v8699_v7  ;;  %v4527_v47 = vrot.slane %v8830_v8, %v7129_v17 }
 0x6cd   : > { %3932 = vst.msk [vmem:[%s7649_s9 + $0x2f] sm:$0x1] %vm2615_vm3, %v3916_v63  ;;  %4750 = vrot.lane.b32.xlu0 %v4657_v23, %s5942_s20  ;;  %v4340_v25 = vpop.permute.xlu1 %4339 }
 0x6ce   : > { %4362 = vst.msk [vmem:[%s7649_s9 + $0x33] sm:$0x1] %vm2615_vm3, %v4340_v25  ;;  %v4619_v51 = vrot.slane %v4605_v39, %v7642_v46  ;;  %v4791_v25 = vrot.slane %v4783_v6, %v7642_v46 }
 0x6cf   : > { %v3891_v12 = vpop.permute.xlu0 %3890  ;;  %4688 = vrot.lane.b32.xlu1 %v4661_v31, %s5939_s21 }
 0x6d0   : > { %v3917_v48 = vsel %vm3914_vm7, %v3891_v12, %v8667_v15  ;;  %v8807_v10 = vrot.slane %v4619_v51, %v7642_v46  ;;  %v4621_v3 = vcombine.high %v4619_v51, %v4619_v51  ;;  %v4535_v12 = vrot.slane %v4481_v21, %v7129_v17 }
 0x6d1   : > { %3933 = vst.msk [vmem:[%s7649_s9 + $0x4f] sm:$0x1] %vm2615_vm3, %v3917_v48  ;;  %4548 = vrot.lane.b32.xlu0 %v4487_v19, %s5940_s29  ;;  %v4372_v30 = vpop.permute.xlu1 %4371  ;;  %v4807_v48 = vrot.slane %v4791_v25, %v7642_v46 }
 0x6d2   : > { %4394 = vst.msk [vmem:[%s7649_s9 + $0x34] sm:$0x1] %vm2615_vm3, %v4372_v30  ;;  %v8861_v32 = vrot.slane %v4621_v3, %v7642_v46  ;;  %v4651_v19 = vcombine.high %v8807_v10, %v8807_v10 }
 0x6d3   : > { %v3903_v28 = vpop.permute.xlu0 %3902  ;;  %4720 = vrot.lane.b32.xlu1 %v4661_v31, %s5941_s0  ;;  %v4836_v44 = vrot.slane %v4807_v48, %v7129_v17 }
 0x6d4   : > { %v3920_v15 = vsel %vm3914_vm7, %v3903_v28, %v8678_v62  ;;  %v4677_v23 = vrot.slane %v8861_v32, %v7129_v17  ;;  %v4681_v18 = vrot.slane %v4651_v19, %v7129_v17 }
 0x6d5   : > { %3936 = vst.msk [vmem:[%s7649_s9 + $0xaf] sm:$0x1] %vm2615_vm3, %v3920_v15  ;;  %4564 = vrot.lane.b32.xlu0 %v4519_v14, %s5940_s29  ;;  %v4404_v58 = vpop.permute.xlu1 %4403  ;;  %v4840_v14 = vrot.slane %v4807_v48, %v7135_v60 }
 0x6d6   : > { %4426 = vst.msk [vmem:[%s7649_s9 + $0x35] sm:$0x1] %vm2615_vm3, %v4404_v58 }
 0x6d7   : > { %v3907_v20 = vpop.permute.xlu0 %3906  ;;  %4752 = vrot.lane.b32.xlu1 %v4661_v31, %s5942_s20 }
 0x6d8   : > { %v3921_v62 = vsel %vm3914_vm7, %v3907_v20, %v8691_v54  ;;  %v4673_v54 = vrot.slane %v8807_v10, %v7129_v17  ;;  %v4515_v20 = vrot.slane %v4482_v53, %v7135_v60 }
 0x6d9   : > { %3937 = vst.msk [vmem:[%s7649_s9 + $0xcf] sm:$0x1] %vm2615_vm3, %v3921_v62  ;;  %4690 = vrot.lane.b32.xlu0 %v4665_v0, %s5939_s21  ;;  %v8814_v36 = vpop.permute.xlu1 %3547 }
 0x6db   : > { %v4033_v45 = vpop.permute.xlu0 %4032  ;;  %4554 = vrot.lane.b32.xlu1 %v4499_v41, %s5940_s29  ;;  %v4653_v41 = vcombine.high %v8861_v32, %v8861_v32 }
 0x6dc   : > { %4050 = vst.msk [vmem:[%s7649_s9 + $0xd0] sm:$0x1] %vm2615_vm3, %v4033_v45 }
 0x6dd   : > { %4694 = vrot.lane.b32.xlu0 %v4673_v54, %s5939_s21  ;;  %v8826_v56 = vpop.permute.xlu1 %3563 }
 0x6df   : > { %v4065_v50 = vpop.permute.xlu0 %4064  ;;  %4558 = vrot.lane.b32.xlu1 %v4507_v2, %s5940_s29 }
 0x6e0   : > { %4082 = vst.msk [vmem:[%s7649_s9 + $0xd1] sm:$0x1] %vm2615_vm3, %v4065_v50  ;;  %v4799_v50 = vcombine.high %v4791_v25, %v4791_v25 }
 0x6e1   : > { %4722 = vrot.lane.b32.xlu0 %v4665_v0, %s5941_s0  ;;  %v3686_v24 = vpop.permute.xlu1 %3685 }
 0x6e2   : > { %3702 = vst.msk [vmem:[%s7649_s9 + $0xec] sm:$0x1] %vm2615_vm3, %v3686_v24 }
 0x6e3   : > { %v4200_v29 = vpop.permute.xlu0 %4199  ;;  %4570 = vrot.lane.b32.xlu1 %v4531_v13, %s5940_s29 }
 0x6e4   : > { %v4232_v49 = vsel %vm4231_vm8, %v4200_v29, %v8751_v9 }
 0x6e5   : > { %4248 = vst.msk [vmem:[%s7649_s9 + $0x12] sm:$0x1] %vm2615_vm3, %v4232_v49  ;;  %4726 = vrot.lane.b32.xlu0 %v4673_v54, %s5941_s0  ;;  %v3718_v26 = vpop.permute.xlu1 %3717  ;;  %v4821_v49 = vrot.slane %v4799_v50, %v7642_v46 }
 0x6e6   : > { %3734 = vst.msk [vmem:[%s7649_s9 + $0xed] sm:$0x1] %vm2615_vm3, %v3718_v26 }
 0x6e7   : > { %v4216_v4 = vpop.permute.xlu0 %4215  ;;  %4574 = vrot.lane.b32.xlu1 %v4539_v33, %s5940_s29  ;;  %v4844_v3 = vrot.slane %v4821_v49, %v7129_v17  ;;  %v4848_v32 = vrot.slane %v4821_v49, %v7135_v60 }
 0x6e8   : > { %v4236_v22 = vsel %vm4231_vm8, %v4216_v4, %v8762_v42  ;;  %v4829_v4 = vcombine.high %v4807_v48, %v4807_v48 }
 0x6e9   : > { %4252 = vst.msk [vmem:[%s7649_s9 + $0x92] sm:$0x1] %vm2615_vm3, %v4236_v22  ;;  %4754 = vrot.lane.b32.xlu0 %v4665_v0, %s5942_s20  ;;  %v3750_v61 = vpop.permute.xlu1 %3749  ;;  %v4483_v0 = vcombine.high %v8830_v8, %v8830_v8  ;;  %v4511_v8 = vrot.slane %v4482_v53, %v7129_v17  ;;  %v4784_v22 = vcombine.high %v8699_v7, %v7777_v34 }
 0x6ea   : > { %3766 = vst.msk [vmem:[%s7649_s9 + $0xee] sm:$0x1] %vm2615_vm3, %v3750_v61  ;;  %v4961_v53 = vrot.slane %v7777_v34, %v7642_v46 }
 0x6eb   : > { %v4342_v40 = vpop.permute.xlu0 %4341  ;;  %4692 = vrot.lane.b32.xlu1 %v4669_v11, %s5939_s21  ;;  %v4543_v29 = vrot.slane %v4483_v0, %v7129_v17  ;;  %v4798_v7 = vrot.slane %v4784_v22, %v7642_v46 }
 0x6ec   : > { %4363 = vst.msk [vmem:[%s7649_s9 + $0x53] sm:$0x1] %vm2615_vm3, %v4342_v40 }
 0x6ed   : > { %4758 = vrot.lane.b32.xlu0 %v4673_v54, %s5942_s20  ;;  %v3897_v59 = vpop.permute.xlu1 %3896  ;;  %v4800_v6 = vcombine.high %v4798_v7, %v4798_v7 }
 0x6ef   : > { %v4346_v9 = vpop.permute.xlu0 %4345  ;;  %4696 = vrot.lane.b32.xlu1 %v4677_v23, %s5939_s21 }
 0x6f0   : > { %4365 = vst.msk [vmem:[%s7649_s9 + $0x93] sm:$0x1] %vm2615_vm3, %v4346_v9 }
 0x6f1   : > { %4552 = vrot.lane.b32.xlu0 %v4495_v27, %s5940_s29  ;;  %v8877_v57 = vpop.permute.xlu1 %3912 }
 0x6f3   : > { %v4374_v35 = vpop.permute.xlu0 %4373  ;;  %4724 = vrot.lane.b32.xlu1 %v4669_v11, %s5941_s0 }
 0x6f4   : > { %4395 = vst.msk [vmem:[%s7649_s9 + $0x54] sm:$0x1] %vm2615_vm3, %v4374_v35 }
 0x6f5   : > { %4556 = vrot.lane.b32.xlu0 %v4503_v37, %s5940_s29  ;;  %v4035_v42 = vpop.permute.xlu1 %4034 }
 0x6f6   : > { %4051 = vst.msk [vmem:[%s7649_s9 + $0xf0] sm:$0x1] %vm2615_vm3, %v4035_v42  ;;  %v4814_v42 = vrot.slane %v4798_v7, %v7642_v46 }
 0x6f7   : > { %v4378_v55 = vpop.permute.xlu0 %4377  ;;  %4728 = vrot.lane.b32.xlu1 %v4677_v23, %s5941_s0 }
 0x6f8   : > { %4397 = vst.msk [vmem:[%s7649_s9 + $0x94] sm:$0x1] %vm2615_vm3, %v4378_v55 }
 0x6f9   : > { %4568 = vrot.lane.b32.xlu0 %v4527_v47, %s5940_s29  ;;  %v4067_v63 = vpop.permute.xlu1 %4066 }
 0x6fa   : > { %4083 = vst.msk [vmem:[%s7649_s9 + $0xf1] sm:$0x1] %vm2615_vm3, %v4067_v63 }
 0x6fb   : > { %v4406_v31 = vpop.permute.xlu0 %4405  ;;  %4756 = vrot.lane.b32.xlu1 %v4669_v11, %s5942_s20 }
 0x6fc   : > { %4427 = vst.msk [vmem:[%s7649_s9 + $0x55] sm:$0x1] %vm2615_vm3, %v4406_v31  ;;  %v4868_v31 = vrot.slane %v4814_v42, %v7129_v17 }
 0x6fd   : > { %4572 = vrot.lane.b32.xlu0 %v4535_v12, %s5940_s29  ;;  %v4206_v39 = vpop.permute.xlu1 %4205  ;;  %v4828_v12 = vrot.slane %v4800_v6, %v7642_v46 }
 0x6ff   : > { %v4410_v30 = vpop.permute.xlu0 %4409  ;;  %4760 = vrot.lane.b32.xlu1 %v4677_v23, %s5942_s20  ;;  %v4831_v23 = vcombine.high %v4821_v49, %v4821_v49 }
 0x700   : > { %4429 = vst.msk [vmem:[%s7649_s9 + $0x95] sm:$0x1] %vm2615_vm3, %v4410_v30  ;;  %v4876_v30 = vrot.slane %v4828_v12, %v7129_v17 }
 0x701   : > { %4698 = vrot.lane.b32.xlu0 %v4681_v18, %s5939_s21  ;;  %v4210_v28 = vpop.permute.xlu1 %4209  ;;  %v4860_v37 = vrot.slane %v4831_v23, %v7129_v17  ;;  %v4864_v63 = vrot.slane %v4831_v23, %v7135_v60 }
 0x703   : > { %v3546_v51 = vpop.permute.xlu0 %3545  ;;  %4899 = vrot.lane.b32.xlu1 %v4840_v14, %s5943_s15  ;;  %v4880_v14 = vrot.slane %v4828_v12, %v7135_v60 }
 0x704   : > { %v3569_v15 = vsel %vm3565_vm6, %v3546_v51, %v8814_v36  ;;  %v4547_v36 = vrot.slane %v4483_v0, %v7135_v60 }
 0x705   : > { %3585 = vst.msk [vmem:[%s7649_s9 + $0x6b] sm:$0x1] %vm2615_vm3, %v3569_v15  ;;  %4730 = vrot.lane.b32.xlu0 %v4681_v18, %s5941_s0  ;;  %v4222_v58 = vpop.permute.xlu1 %4221 }
 0x707   : > { %v3562_v10 = vpop.permute.xlu0 %3561  ;;  %4562 = vrot.lane.b32.xlu1 %v4515_v20, %s5940_s29 }
 0x708   : > { %v3573_v16 = vsel %vm3565_vm6, %v3562_v10, %v8826_v56  ;;  %v4685_v56 = vrot.slane %v4653_v41, %v7129_v17  ;;  %v4969_v10 = vcombine.high %v4961_v53, %v4961_v53  ;;  %v4977_v41 = vrot.slane %v4961_v53, %v7642_v46 }
 0x709   : > { %3589 = vst.msk [vmem:[%s7649_s9 + $0xeb] sm:$0x1] %vm2615_vm3, %v3573_v16  ;;  %4762 = vrot.lane.b32.xlu0 %v4681_v18, %s5942_s20  ;;  %v4226_v62 = vpop.permute.xlu1 %4225  ;;  %v4830_v18 = vcombine.high %v4814_v42, %v4814_v42  ;;  %v4954_v16 = vcombine.high %v7777_v34, %v7777_v34 }
 0x70a   : > { %v4999_v50 = vcombine.high %v4977_v41, %v4977_v41 }
 0x70b   : > { %v3895_v5 = vpop.permute.xlu0 %3894  ;;  %4578 = vrot.lane.b32.xlu1 %v4547_v36, %s5940_s29  ;;  %v4884_v15 = vrot.slane %v4830_v18, %v7129_v17  ;;  %v4888_v0 = vrot.slane %v4830_v18, %v7135_v60 }
 0x70c   : > { %v3918_v45 = vsel %vm3914_vm7, %v3895_v5, %v3897_v59  ;;  %v4852_v59 = vrot.slane %v4829_v4, %v7129_v17 }
 0x70d   : > { %3934 = vst.msk [vmem:[%s7649_s9 + $0x6f] sm:$0x1] %vm2615_vm3, %v3918_v45  ;;  %4897 = vrot.lane.b32.xlu0 %v4836_v44, %s5943_s15  ;;  %v4344_v54 = vpop.permute.xlu1 %4343 }
 0x70e   : > { %4364 = vst.msk [vmem:[%s7649_s9 + $0x73] sm:$0x1] %vm2615_vm3, %v4344_v54  ;;  %v4991_v54 = vrot.slane %v4969_v10, %v7642_v46 }
 0x70f   : > { %v3911_v2 = vpop.permute.xlu0 %3910  ;;  %4700 = vrot.lane.b32.xlu1 %v4685_v56, %s5939_s21  ;;  %s9352_s21 = scalar_lea.hbm %s9408_s7, %s5559_s11 }
 0x710   : > { %v3922_v24 = vsel %vm3914_vm7, %v3911_v2, %v8877_v57  ;;  %v4856_v57 = vrot.slane %v4829_v4, %v7135_v60 }
 0x711   : > { %3938 = vst.msk [vmem:[%s7649_s9 + $0xef] sm:$0x1] %vm2615_vm3, %v3922_v24  ;;  %4560 = vrot.lane.b32.xlu0 %v4511_v8, %s5940_s29  ;;  %v4348_v13 = vpop.permute.xlu1 %4347  ;;  %v9028_v8 = vrot.slane %v4977_v41, %v7129_v17 }
 0x712   : > { %4366 = vst.msk [vmem:[%s7649_s9 + $0xb3] sm:$0x1] %vm2615_vm3, %v4348_v13 }
 0x713   : > { %v4204_v21 = vpop.permute.xlu0 %4203  ;;  %4732 = vrot.lane.b32.xlu1 %v4685_v56, %s5941_s0  ;;  %s5949_s0 = smov [#allocation8]  }
 0x714   : > { %v4233_v26 = vsel %vm4231_vm8, %v4204_v21, %v4206_v39  ;;  %v4872_v39 = vrot.slane %v4814_v42, %v7135_v60  ;;  %v9036_v21 = vrot.slane %v4991_v54, %v7129_v17 }
 0x715   : > { %4249 = vst.msk [vmem:[%s7649_s9 + $0x32] sm:$0x1] %vm2615_vm3, %v4233_v26  ;;  %4576 = vrot.lane.b32.xlu0 %v4543_v29, %s5940_s29  ;;  %v4376_v33 = vpop.permute.xlu1 %4375  ;;  %v5001_v29 = vcombine.high %v4991_v54, %v4991_v54  ;;  %s5805_s29 = scalar_lea.vmem %s9354_s10, 4096 }
 0x716   : > { %4396 = vst.msk [vmem:[%s7649_s9 + $0x74] sm:$0x1] %vm2615_vm3, %v4376_v33  ;;  %v9043_v33 = vrot.slane %v4999_v50, %v7129_v17  ;;  %p5806_p13 = scmp.ne.s32.totalorder %s9354_s10, %s5805_s29 }
 0x717   : > { %v4208_v1 = vpop.permute.xlu0 %4207  ;;  %4764 = vrot.lane.b32.xlu1 %v4685_v56, %s5942_s20  ;;  %v4968_v56 = vrot.slane %v4954_v16, %v7642_v46  ;;  %v9051_v4 = vrot.slane %v5001_v29, %v7129_v17  ;;  %v5147_v16 = vrot.slane %v5133_v52, %v7642_v46  ;;  %s5809_s20 = sshll.u32 %s5949_s0, 4  ;;  %s5810_s20 = int_to_ptr.vmem [resolvable:$false] %s5809_s20 }
 0x718   : > { %v4234_v61 = vsel %vm4231_vm8, %v4208_v1, %v4210_v28  ;;  %p5807_p12 = pnand %p5806_p13, %p9497_p1  ;;  %p5812_p10 = scmp.lt.s32.totalorder %s9354_s10, %s5810_s20 }
 0x719   : > { %4250 = vst.msk [vmem:[%s7649_s9 + $0x52] sm:$0x1] %vm2615_vm3, %v4234_v61  ;;  %4901 = vrot.lane.b32.xlu0 %v4844_v3, %s5943_s15  ;;  %v4380_v11 = vpop.permute.xlu1 %4379  ;;  %v4970_v49 = vcombine.high %v4968_v56, %v4968_v56  ;;  %v4984_v1 = vrot.slane %v4968_v56, %v7642_v46  ;;  %v5163_v54 = vrot.slane %v5147_v16, %v7642_v46 }
 0x71a   : > { %4398 = vst.msk [vmem:[%s7649_s9 + $0xb4] sm:$0x1] %vm2615_vm3, %v4380_v11  ;;  %p5808_p7 = pneg %p5807_p12 }
 0x71b   : > { %v4220_v40 = vpop.permute.xlu0 %4219  ;;  %4903 = vrot.lane.b32.xlu1 %v4848_v32, %s5943_s15  ;;  %v4998_v22 = vrot.slane %v4970_v49, %v7642_v46  ;;  %v9057_v11 = vrot.slane %v4984_v1, %v7129_v17  ;;  %v5000_v32 = vcombine.high %v4984_v1, %v4984_v1  ;;  %v5221_v49 = vrot.slane %v5163_v54, %v7135_v60 }
 0x71c   : > { %v4237_v9 = vsel %vm4231_vm8, %v4220_v40, %v4222_v58  ;;  %v4832_v58 = vcombine.high %v4828_v12, %v4828_v12 }
 0x71d   : > { %4253 = vst.msk [vmem:[%s7649_s9 + $0xb2] sm:$0x1] %vm2615_vm3, %v4237_v9  ;;  %4905 = vrot.lane.b32.xlu0 %v4852_v59, %s5943_s15  ;;  %v4408_v27 = vpop.permute.xlu1 %4407  ;;  %v9064_v59 = vrot.slane %v4998_v22, %v7129_v17  ;;  %v5002_v23 = vcombine.high %v4998_v22, %v4998_v22  ;;  %v9069_v9 = vrot.slane %v5000_v32, %v7129_v17 }
 0x71e   : > { %4428 = vst.msk [vmem:[%s7649_s9 + $0x75] sm:$0x1] %vm2615_vm3, %v4408_v27  ;;  %v4892_v36 = vrot.slane %v4832_v58, %v7129_v17  ;;  %v4896_v45 = vrot.slane %v4832_v58, %v7135_v60 }
 0x71f   : > { %v4224_v35 = vpop.permute.xlu0 %4223  ;;  %4907 = vrot.lane.b32.xlu1 %v4856_v57, %s5943_s15  ;;  %v9076_v57 = vrot.slane %v5002_v23, %v7129_v17 }
 0x720   : > { %v4238_v55 = vsel %vm4231_vm8, %v4224_v35, %v4226_v62 }
 0x721   : > { %4254 = vst.msk [vmem:[%s7649_s9 + $0xd2] sm:$0x1] %vm2615_vm3, %v4238_v55  ;;  %4909 = vrot.lane.b32.xlu0 %v4860_v37, %s5943_s15  ;;  %v4412_v47 = vpop.permute.xlu1 %4411 }
 0x722   : > { %4430 = vst.msk [vmem:[%s7649_s9 + $0xb5] sm:$0x1] %vm2615_vm3, %v4412_v47 }
 0x723   : > { %v4350_v25 = vpop.permute.xlu0 %4349  ;;  %4911 = vrot.lane.b32.xlu1 %v4864_v63, %s5943_s15 }
 0x724   : > { %4367 = vst.msk [vmem:[%s7649_s9 + $0xd3] sm:$0x1] %vm2615_vm3, %v4350_v25 }
 0x725   : > { %4913 = vrot.lane.b32.xlu0 %v4868_v31, %s5943_s15  ;;  %v4214_v19 = vpop.permute.xlu1 %4213  ;;  %v5140_v31 = vrot.slane %v5132_v38, %v7642_v46 }
 0x727   : > { %v4382_v48 = vpop.permute.xlu0 %4381  ;;  %4915 = vrot.lane.b32.xlu1 %v4872_v39, %s5943_s15  ;;  %v5148_v39 = vcombine.high %v5140_v31, %v5140_v31 }
 0x728   : > { %4399 = vst.msk [vmem:[%s7649_s9 + $0xd4] sm:$0x1] %vm2615_vm3, %v4382_v48 }
 0x729   : > { %4917 = vrot.lane.b32.xlu0 %v4876_v30, %s5943_s15  ;;  %v4230_v28 = vpop.permute.xlu1 %4229  ;;  %v5156_v30 = vrot.slane %v5140_v31, %v7642_v46 }
 0x72b   : > { %v4414_v51 = vpop.permute.xlu0 %4413  ;;  %4919 = vrot.lane.b32.xlu1 %v4880_v14, %s5943_s15  ;;  %v5170_v14 = vrot.slane %v5148_v39, %v7642_v46 }
 0x72c   : > { %4431 = vst.msk [vmem:[%s7649_s9 + $0xd5] sm:$0x1] %vm2615_vm3, %v4414_v51  ;;  %v5189_v51 = vrot.slane %v5156_v30, %v7135_v60 }
 0x72d   : > { %4921 = vrot.lane.b32.xlu0 %v4884_v15, %s5943_s15  ;;  %v4352_v20 = vpop.permute.xlu1 %4351  ;;  %v5193_v58 = vrot.slane %v5170_v14, %v7129_v17  ;;  %v5197_v10 = vrot.slane %v5170_v14, %v7135_v60  ;;  %v5180_v41 = vcombine.high %v5170_v14, %v5170_v14 }
 0x72e   : > { %4368 = vst.msk [vmem:[%s7649_s9 + $0xf3] sm:$0x1] %vm2615_vm3, %v4352_v20  ;;  %v5178_v20 = vcombine.high %v5156_v30, %v5156_v30 }
 0x72f   : > { %v4212_v62 = vpop.permute.xlu0 %4211  ;;  %4923 = vrot.lane.b32.xlu1 %v4888_v0, %s5943_s15  ;;  %v5209_v52 = vrot.slane %v5180_v41, %v7129_v17 }
 0x730   : > { %v4235_v5 = vsel %vm4231_vm8, %v4212_v62, %v4214_v19 }
 0x731   : > { %4251 = vst.msk [vmem:[%s7649_s9 + $0x72] sm:$0x1] %vm2615_vm3, %v4235_v5  ;;  %4925 = vrot.lane.b32.xlu0 %v4892_v36, %s5943_s15  ;;  %v4384_v44 = vpop.permute.xlu1 %4383  ;;  %v5201_v36 = vrot.slane %v5178_v20, %v7129_v17 }
 0x732   : > { %4400 = vst.msk [vmem:[%s7649_s9 + $0xf4] sm:$0x1] %vm2615_vm3, %v4384_v44  ;;  %v5205_v44 = vrot.slane %v5178_v20, %v7135_v60 }
 0x733   : > { %v4228_v2 = vpop.permute.xlu0 %4227  ;;  %4927 = vrot.lane.b32.xlu1 %v4896_v45, %s5943_s15  ;;  %v5149_v45 = vcombine.high %v5147_v16, %v5147_v16  ;;  %s5811_s15 = scalar_lea.vmem %s5810_s20, 8192 }
 0x734   : > { %v4239_v24 = vsel %vm4231_vm8, %v4228_v2, %v4230_v28  ;;  %v5185_v28 = vrot.slane %v5156_v30, %v7129_v17  ;;  %p5813_p0 = scmp.lt.s32.totalorder %s5811_s15, %s5805_s29 }
 0x735   : > { %4255 = vst.msk [vmem:[%s7649_s9 + $0xf2] sm:$0x1] %vm2615_vm3, %v4239_v24  ;;  %5035 = vrot.lane.b32.xlu0 %v9028_v8, %s5944_s19  ;;  %v4416_v13 = vpop.permute.xlu1 %4415  ;;  %v5217_v24 = vrot.slane %v5163_v54, %v7129_v17 }
 0x736   : > { %4432 = vst.msk [vmem:[%s7649_s9 + $0xf5] sm:$0x1] %vm2615_vm3, %v4416_v13  ;;  %v5177_v13 = vrot.slane %v5149_v45, %v7642_v46  ;;  %p5814_p2 = por %p5813_p0, %p5812_p10 }
 0x737   : > { %v4687_v26 = vpop.permute.xlu0 %4686  ;;  %5037 = vrot.lane.b32.xlu1 %v9036_v21, %s5944_s19 }
 0x738   : > { %4710 = vst.msk [vmem:[%s7649_s9 + $0x17] sm:$0x1] %vm2615_vm3, %v4687_v26  ;;  %v5225_v1 = vrot.slane %v5177_v13, %v7129_v17  ;;  %v5229_v32 = vrot.slane %v5177_v13, %v7135_v60  ;;  %p5815_p4 = pnand %p5814_p2, %p5808_p7 }
 0x739   : > { %5039 = vrot.lane.b32.xlu0 %v9043_v33, %s5944_s19  ;;  %v4551_v3 = vpop.permute.xlu1 %4550 }
 0x73b   : > { %v4719_v61 = vpop.permute.xlu0 %4718  ;;  %5041 = vrot.lane.b32.xlu1 %v9051_v4, %s5944_s19 }
 0x73c   : > { %4742 = vst.msk [vmem:[%s7649_s9 + $0x18] sm:$0x1] %vm2615_vm3, %v4719_v61 }
 0x73d   : > { %5043 = vrot.lane.b32.xlu0 %v9057_v11, %s5944_s19  ;;  %v4567_v40 = vpop.permute.xlu1 %4566 }
 0x73f   : > { %v4751_v7 = vpop.permute.xlu0 %4750  ;;  %5045 = vrot.lane.b32.xlu1 %v9064_v59, %s5944_s19 }
 0x740   : > { %4774 = vst.msk [vmem:[%s7649_s9 + $0x19] sm:$0x1] %vm2615_vm3, %v4751_v7  ;;  %v5181_v7 = vcombine.high %v5177_v13, %v5177_v13 }
 0x741   : > { %5047 = vrot.lane.b32.xlu0 %v9069_v9, %s5944_s19  ;;  %v4689_v27 = vpop.permute.xlu1 %4688 }
 0x742   : > { %4711 = vst.msk [vmem:[%s7649_s9 + $0x37] sm:$0x1] %vm2615_vm3, %v4689_v27 }
 0x743   : > { %v4549_v35 = vpop.permute.xlu0 %4548  ;;  %5049 = vrot.lane.b32.xlu1 %v9076_v57, %s5944_s19 }
 0x744   : > { %v4581_v37 = vsel %vm4580_vm9, %v4549_v35, %v4551_v3  ;;  %v5179_v3 = vcombine.high %v5163_v54, %v5163_v54 }
 0x745   : > { %4597 = vst.msk [vmem:[%s7649_s9 + $0x16] sm:$0x1] %vm2615_vm3, %v4581_v37  ;;  %5067 = vrot.lane.b32.xlu0 %v9028_v8, %s5945_s18  ;;  %v4721_v42 = vpop.permute.xlu1 %4720 }
 0x746   : > { %4743 = vst.msk [vmem:[%s7649_s9 + $0x38] sm:$0x1] %vm2615_vm3, %v4721_v42  ;;  %v5233_v23 = vrot.slane %v5179_v3, %v7129_v17  ;;  %v5237_v37 = vrot.slane %v5179_v3, %v7135_v60 }
 0x747   : > { %v4565_v6 = vpop.permute.xlu0 %4564  ;;  %5069 = vrot.lane.b32.xlu1 %v9036_v21, %s5945_s18 }
 0x748   : > { %v4585_v55 = vsel %vm4580_vm9, %v4565_v6, %v4567_v40  ;;  %v5241_v6 = vrot.slane %v5181_v7, %v7129_v17 }
 0x749   : > { %4601 = vst.msk [vmem:[%s7649_s9 + $0x96] sm:$0x1] %vm2615_vm3, %v4585_v55  ;;  %5071 = vrot.lane.b32.xlu0 %v9043_v33, %s5945_s18  ;;  %v4753_v47 = vpop.permute.xlu1 %4752 }
 0x74a   : > { %4775 = vst.msk [vmem:[%s7649_s9 + $0x39] sm:$0x1] %vm2615_vm3, %v4753_v47  ;;  %v5245_v47 = vrot.slane %v5181_v7, %v7135_v60 }
 0x74b   : > { %v4691_v63 = vpop.permute.xlu0 %4690  ;;  %5073 = vrot.lane.b32.xlu1 %v9051_v4, %s5945_s18 }
 0x74c   : > { %4712 = vst.msk [vmem:[%s7649_s9 + $0x57] sm:$0x1] %vm2615_vm3, %v4691_v63 }
 0x74d   : > { %5075 = vrot.lane.b32.xlu0 %v9057_v11, %s5945_s18  ;;  %v4555_v25 = vpop.permute.xlu1 %4554 }
 0x74f   : > { %v4695_v12 = vpop.permute.xlu0 %4694  ;;  %5077 = vrot.lane.b32.xlu1 %v9064_v59, %s5945_s18 }
 0x750   : > { %4714 = vst.msk [vmem:[%s7649_s9 + $0x97] sm:$0x1] %vm2615_vm3, %v4695_v12 }
 0x751   : > { %5079 = vrot.lane.b32.xlu0 %v9069_v9, %s5945_s18  ;;  %v4559_v19 = vpop.permute.xlu1 %4558 }
 0x753   : > { %v4723_v48 = vpop.permute.xlu0 %4722  ;;  %5081 = vrot.lane.b32.xlu1 %v9076_v57, %s5945_s18 }
 0x754   : > { %4744 = vst.msk [vmem:[%s7649_s9 + $0x58] sm:$0x1] %vm2615_vm3, %v4723_v48 }
 0x755   : > { %5099 = vrot.lane.b32.xlu0 %v9028_v8, %s5946_s23  ;;  %v4571_v38 = vpop.permute.xlu1 %4570  ;;  %v5213_v8 = vrot.slane %v5180_v41, %v7135_v60  ;;  %v5303_v60 = vcombine.high %v7781_v43, %v7781_v43 }
 0x757   : > { %v4727_v18 = vpop.permute.xlu0 %4726  ;;  %5101 = vrot.lane.b32.xlu1 %v9036_v21, %s5946_s23  ;;  %v5317_v30 = vrot.slane %v5303_v60, %v7642_v46 }
 0x758   : > { %4746 = vst.msk [vmem:[%s7649_s9 + $0x98] sm:$0x1] %vm2615_vm3, %v4727_v18 }
 0x759   : > { %5246 = vrot.lane.b32.xlu0 %v5185_v28, %s5947_s12  ;;  %v4575_v53 = vpop.permute.xlu1 %4574 }
 0x75b   : > { %v4755_v15 = vpop.permute.xlu0 %4754  ;;  %5248 = vrot.lane.b32.xlu1 %v5189_v51, %s5947_s12  ;;  %v5319_v51 = vcombine.high %v5317_v30, %v5317_v30 }
 0x75c   : > { %4776 = vst.msk [vmem:[%s7649_s9 + $0x59] sm:$0x1] %vm2615_vm3, %v4755_v15 }
 0x75d   : > { %5250 = vrot.lane.b32.xlu0 %v5193_v58, %s5947_s12  ;;  %v4693_v0 = vpop.permute.xlu1 %4692  ;;  %v5333_v58 = vrot.slane %v5317_v30, %v7642_v46  ;;  %v5347_v16 = vrot.slane %v5319_v51, %v7642_v46 }
 0x75e   : > { %4713 = vst.msk [vmem:[%s7649_s9 + $0x77] sm:$0x1] %vm2615_vm3, %v4693_v0 }
 0x75f   : > { %v4759_v62 = vpop.permute.xlu0 %4758  ;;  %5252 = vrot.lane.b32.xlu1 %v5197_v10, %s5947_s12  ;;  %v5349_v41 = vcombine.high %v5333_v58, %v5333_v58  ;;  %v5351_v45 = vcombine.high %v5347_v16, %v5347_v16 }
 0x760   : > { %4778 = vst.msk [vmem:[%s7649_s9 + $0x99] sm:$0x1] %vm2615_vm3, %v4759_v62 }
 0x761   : > { %5254 = vrot.lane.b32.xlu0 %v5201_v36, %s5947_s12  ;;  %v4697_v5 = vpop.permute.xlu1 %4696  ;;  %v5371_v36 = vrot.slane %v5333_v58, %v7129_v17 }
 0x762   : > { %4715 = vst.msk [vmem:[%s7649_s9 + $0xb7] sm:$0x1] %vm2615_vm3, %v4697_v5 }
 0x763   : > { %v4553_v34 = vpop.permute.xlu0 %4552  ;;  %5256 = vrot.lane.b32.xlu1 %v5205_v44, %s5947_s12  ;;  %v5375_v44 = vrot.slane %v5347_v16, %v7129_v17 }
 0x764   : > { %v4582_v56 = vsel %vm4580_vm9, %v4553_v34, %v4555_v25  ;;  %v5310_v25 = vrot.slane %v7781_v43, %v7642_v46 }
 0x765   : > { %4598 = vst.msk [vmem:[%s7649_s9 + $0x36] sm:$0x1] %vm2615_vm3, %v4582_v56  ;;  %5258 = vrot.lane.b32.xlu0 %v5209_v52, %s5947_s12  ;;  %v4725_v2 = vpop.permute.xlu1 %4724  ;;  %v5379_v52 = vrot.slane %v5349_v41, %v7129_v17  ;;  %v5383_v56 = vrot.slane %v5351_v45, %v7129_v17 }
 0x766   : > { %4745 = vst.msk [vmem:[%s7649_s9 + $0x78] sm:$0x1] %vm2615_vm3, %v4725_v2 }
 0x767   : > { %v4557_v50 = vpop.permute.xlu0 %4556  ;;  %5260 = vrot.lane.b32.xlu1 %v5213_v8, %s5947_s12 }
 0x768   : > { %v4583_v21 = vsel %vm4580_vm9, %v4557_v50, %v4559_v19  ;;  %v5318_v19 = vcombine.high %v5310_v25, %v5310_v25 }
 0x769   : > { %4599 = vst.msk [vmem:[%s7649_s9 + $0x56] sm:$0x1] %vm2615_vm3, %v4583_v21  ;;  %5262 = vrot.lane.b32.xlu0 %v5217_v24, %s5947_s12  ;;  %v4729_v29 = vpop.permute.xlu1 %4728 }
 0x76a   : > { %4747 = vst.msk [vmem:[%s7649_s9 + $0xb8] sm:$0x1] %vm2615_vm3, %v4729_v29 }
 0x76b   : > { %v4569_v26 = vpop.permute.xlu0 %4568  ;;  %5264 = vrot.lane.b32.xlu1 %v5221_v49, %s5947_s12 }
 0x76c   : > { %v4586_v22 = vsel %vm4580_vm9, %v4569_v26, %v4571_v38 }
 0x76d   : > { %4602 = vst.msk [vmem:[%s7649_s9 + $0xb6] sm:$0x1] %vm2615_vm3, %v4586_v22  ;;  %5266 = vrot.lane.b32.xlu0 %v5225_v1, %s5947_s12  ;;  %v4757_v61 = vpop.permute.xlu1 %4756 }
 0x76e   : > { %4777 = vst.msk [vmem:[%s7649_s9 + $0x79] sm:$0x1] %vm2615_vm3, %v4757_v61 }
 0x76f   : > { %v4573_v40 = vpop.permute.xlu0 %4572  ;;  %5268 = vrot.lane.b32.xlu1 %v5229_v32, %s5947_s12 }
 0x770   : > { %v4587_v27 = vsel %vm4580_vm9, %v4573_v40, %v4575_v53 }
 0x771   : > { %4603 = vst.msk [vmem:[%s7649_s9 + $0xd6] sm:$0x1] %vm2615_vm3, %v4587_v27  ;;  %5270 = vrot.lane.b32.xlu0 %v5233_v23, %s5947_s12  ;;  %v4761_v35 = vpop.permute.xlu1 %4760 }
 0x772   : > { %4779 = vst.msk [vmem:[%s7649_s9 + $0xb9] sm:$0x1] %vm2615_vm3, %v4761_v35 }
 0x773   : > { %v4699_v42 = vpop.permute.xlu0 %4698  ;;  %5272 = vrot.lane.b32.xlu1 %v5237_v37, %s5947_s12 }
 0x774   : > { %4716 = vst.msk [vmem:[%s7649_s9 + $0xd7] sm:$0x1] %vm2615_vm3, %v4699_v42 }
 0x775   : > { %5274 = vrot.lane.b32.xlu0 %v5241_v6, %s5947_s12  ;;  %v4900_v55 = vpop.permute.xlu1 %4899 }
 0x777   : > { %v4731_v63 = vpop.permute.xlu0 %4730  ;;  %5276 = vrot.lane.b32.xlu1 %v5245_v47, %s5947_s12 }
 0x778   : > { %4748 = vst.msk [vmem:[%s7649_s9 + $0xd8] sm:$0x1] %vm2615_vm3, %v4731_v63 }
 0x779   : > { %5103 = vrot.lane.b32.xlu0 %v9043_v33, %s5946_s23  ;;  %v4563_v31 = vpop.permute.xlu1 %4562  ;;  %v5326_v33 = vrot.slane %v5310_v25, %v7642_v46 }
 0x77b   : > { %v4763_v12 = vpop.permute.xlu0 %4762  ;;  %5105 = vrot.lane.b32.xlu1 %v9051_v4, %s5946_s23  ;;  %v5348_v18 = vcombine.high %v5326_v33, %v5326_v33 }
 0x77c   : > { %4780 = vst.msk [vmem:[%s7649_s9 + $0xd9] sm:$0x1] %vm2615_vm3, %v4763_v12 }
 0x77d   : > { %5107 = vrot.lane.b32.xlu0 %v9057_v11, %s5946_s23  ;;  %v4579_v39 = vpop.permute.xlu1 %4578  ;;  %v5340_v11 = vrot.slane %v5318_v19, %v7642_v46  ;;  %v5363_v15 = vrot.slane %v5348_v18, %v7129_v17 }
 0x77f   : > { %v4898_v48 = vpop.permute.xlu0 %4897  ;;  %5109 = vrot.lane.b32.xlu1 %v9064_v59, %s5946_s23  ;;  %v5355_v59 = vrot.slane %v5326_v33, %v7129_v17  ;;  %v5359_v14 = vrot.slane %v5340_v11, %v7129_v17  ;;  %v5350_v53 = vcombine.high %v5340_v11, %v5340_v11 }
 0x780   : > { %v4930_v4 = vsel %vm4929_vm10, %v4898_v48, %v4900_v55 }
 0x781   : > { %4946 = vst.msk [vmem:[%s7649_s9 + $0x1a] sm:$0x1] %vm2615_vm3, %v4930_v4  ;;  %5111 = vrot.lane.b32.xlu0 %v9069_v9, %s5946_s23  ;;  %v4701_v43 = vpop.permute.xlu1 %4700  ;;  %v5367_v10 = vrot.slane %v5350_v53, %v7129_v17 }
 0x782   : > { %4717 = vst.msk [vmem:[%s7649_s9 + $0xf7] sm:$0x1] %vm2615_vm3, %v4701_v43 }
 0x783   : > { %v4561_v38 = vpop.permute.xlu0 %4560  ;;  %5113 = vrot.lane.b32.xlu1 %v9076_v57, %s5946_s23 }
 0x784   : > { %v4584_v28 = vsel %vm4580_vm9, %v4561_v38, %v4563_v31 }
 0x785   : > { %4600 = vst.msk [vmem:[%s7649_s9 + $0x76] sm:$0x1] %vm2615_vm3, %v4584_v28  ;;  %5384 = vrot.lane.b32.xlu0 %v5355_v59, %s5948_s8  ;;  %v4733_v9 = vpop.permute.xlu1 %4732 }
 0x786   : > { %4749 = vst.msk [vmem:[%s7649_s9 + $0xf8] sm:$0x1] %vm2615_vm3, %v4733_v9 }
 0x787   : > { %v4577_v57 = vpop.permute.xlu0 %4576  ;;  %5386 = vrot.lane.b32.xlu1 %v5359_v14, %s5948_s8 }
 0x788   : > { %v4588_v20 = vsel %vm4580_vm9, %v4577_v57, %v4579_v39 }
 0x789   : > { %4604 = vst.msk [vmem:[%s7649_s9 + $0xf6] sm:$0x1] %vm2615_vm3, %v4588_v20  ;;  %5388 = vrot.lane.b32.xlu0 %v5363_v15, %s5948_s8  ;;  %v4765_v0 = vpop.permute.xlu1 %4764 }
 0x78a   : > { %4781 = vst.msk [vmem:[%s7649_s9 + $0xf9] sm:$0x1] %vm2615_vm3, %v4765_v0 }
 0x78b   : > { %v4902_v62 = vpop.permute.xlu0 %4901  ;;  %5390 = vrot.lane.b32.xlu1 %v5367_v10, %s5948_s8 }
 0x78d   : > { %5392 = vrot.lane.b32.xlu0 %v5371_v36, %s5948_s8  ;;  %v4904_v5 = vpop.permute.xlu1 %4903 }
 0x78e   : > { %v4931_v34 = vsel %vm4929_vm10, %v4902_v62, %v4904_v5 }
 0x78f   : > { %4947 = vst.msk [vmem:[%s7649_s9 + $0x3a] sm:$0x1] %vm2615_vm3, %v4931_v34  ;;  %v4906_v46 = vpop.permute.xlu0 %4905  ;;  %5394 = vrot.lane.b32.xlu1 %v5375_v44, %s5948_s8 }
 0x791   : > { %5396 = vrot.lane.b32.xlu0 %v5379_v52, %s5948_s8  ;;  %v4908_v54 = vpop.permute.xlu1 %4907 }
 0x792   : > { %v4932_v2 = vsel %vm4929_vm10, %v4906_v46, %v4908_v54 }
 0x793   : > { %4948 = vst.msk [vmem:[%s7649_s9 + $0x5a] sm:$0x1] %vm2615_vm3, %v4932_v2  ;;  %v4910_v8 = vpop.permute.xlu0 %4909  ;;  %5398 = vrot.lane.b32.xlu1 %v5383_v56, %s5948_s8 }
 0x795   : > { %v4912_v50 = vpop.permute.xlu1 %4911 }
 0x796   : > { %v4933_v24 = vsel %vm4929_vm10, %v4910_v8, %v4912_v50 }
 0x797   : > { %4949 = vst.msk [vmem:[%s7649_s9 + $0x7a] sm:$0x1] %vm2615_vm3, %v4933_v24  ;;  %v4914_v13 = vpop.permute.xlu0 %4913 }
 0x799   : > { %v4916_v21 = vpop.permute.xlu1 %4915 }
 0x79a   : > { %v4934_v29 = vsel %vm4929_vm10, %v4914_v13, %v4916_v21 }
 0x79b   : > { %4950 = vst.msk [vmem:[%s7649_s9 + $0x9a] sm:$0x1] %vm2615_vm3, %v4934_v29  ;;  %v4918_v17 = vpop.permute.xlu0 %4917 }
 0x79d   : > { %v4920_v49 = vpop.permute.xlu1 %4919 }
 0x79e   : > { %v4935_v26 = vsel %vm4929_vm10, %v4918_v17, %v4920_v49 }
 0x79f   : > { %4951 = vst.msk [vmem:[%s7649_s9 + $0xba] sm:$0x1] %vm2615_vm3, %v4935_v26  ;;  %v4922_v1 = vpop.permute.xlu0 %4921 }
 0x7a1   : > { %v4924_v3 = vpop.permute.xlu1 %4923 }
 0x7a2   : > { %v4936_v22 = vsel %vm4929_vm10, %v4922_v1, %v4924_v3 }
 0x7a3   : > { %4952 = vst.msk [vmem:[%s7649_s9 + $0xda] sm:$0x1] %vm2615_vm3, %v4936_v22  ;;  %v4926_v61 = vpop.permute.xlu0 %4925 }
 0x7a5   : > { %v4928_v32 = vpop.permute.xlu1 %4927 }
 0x7a6   : > { %v4937_v40 = vsel %vm4929_vm10, %v4926_v61, %v4928_v32 }
 0x7a7   : > { %4953 = vst.msk [vmem:[%s7649_s9 + $0xfa] sm:$0x1] %vm2615_vm3, %v4937_v40  ;;  %v5036_v23 = vpop.permute.xlu0 %5035 }
 0x7a8   : > { %5059 = vst.msk [vmem:[%s7649_s9 + $0x1b] sm:$0x1] %vm2615_vm3, %v5036_v23 }
 0x7a9   : > { %v5038_v7 = vpop.permute.xlu1 %5037 }
 0x7aa   : > { %5060 = vst.msk [vmem:[%s7649_s9 + $0x3b] sm:$0x1] %vm2615_vm3, %v5038_v7 }
 0x7ab   : > { %v5040_v27 = vpop.permute.xlu0 %5039 }
 0x7ac   : > { %5061 = vst.msk [vmem:[%s7649_s9 + $0x5b] sm:$0x1] %vm2615_vm3, %v5040_v27 }
 0x7ad   : > { %v5042_v35 = vpop.permute.xlu1 %5041 }
 0x7ae   : > { %5062 = vst.msk [vmem:[%s7649_s9 + $0x7b] sm:$0x1] %vm2615_vm3, %v5042_v35 }
 0x7af   : > { %v5044_v37 = vpop.permute.xlu0 %5043 }
 0x7b0   : > { %5063 = vst.msk [vmem:[%s7649_s9 + $0x9b] sm:$0x1] %vm2615_vm3, %v5044_v37 }
 0x7b1   : > { %v5046_v42 = vpop.permute.xlu1 %5045 }
 0x7b2   : > { %5064 = vst.msk [vmem:[%s7649_s9 + $0xbb] sm:$0x1] %vm2615_vm3, %v5046_v42 }
 0x7b3   : > { %v5048_v6 = vpop.permute.xlu0 %5047 }
 0x7b4   : > { %5065 = vst.msk [vmem:[%s7649_s9 + $0xdb] sm:$0x1] %vm2615_vm3, %v5048_v6 }
 0x7b5   : > { %v5050_v55 = vpop.permute.xlu1 %5049 }
 0x7b6   : > { %5066 = vst.msk [vmem:[%s7649_s9 + $0xfb] sm:$0x1] %vm2615_vm3, %v5050_v55 }
 0x7b7   : > { %v5068_v47 = vpop.permute.xlu0 %5067 }
 0x7b8   : > { %5091 = vst.msk [vmem:[%s7649_s9 + $0x1c] sm:$0x1] %vm2615_vm3, %v5068_v47 }
 0x7b9   : > { %v5070_v63 = vpop.permute.xlu1 %5069 }
 0x7ba   : > { %5092 = vst.msk [vmem:[%s7649_s9 + $0x3c] sm:$0x1] %vm2615_vm3, %v5070_v63 }
 0x7bb   : > { %v5072_v25 = vpop.permute.xlu0 %5071 }
 0x7bc   : > { %5093 = vst.msk [vmem:[%s7649_s9 + $0x5c] sm:$0x1] %vm2615_vm3, %v5072_v25 }
 0x7bd   : > { %v5074_v31 = vpop.permute.xlu1 %5073 }
 0x7be   : > { %5094 = vst.msk [vmem:[%s7649_s9 + $0x7c] sm:$0x1] %vm2615_vm3, %v5074_v31 }
 0x7bf   : > { %v5076_v12 = vpop.permute.xlu0 %5075 }
 0x7c0   : > { %5095 = vst.msk [vmem:[%s7649_s9 + $0x9c] sm:$0x1] %vm2615_vm3, %v5076_v12 }
 0x7c1   : > { %v5078_v60 = vpop.permute.xlu1 %5077 }
 0x7c2   : > { %5096 = vst.msk [vmem:[%s7649_s9 + $0xbc] sm:$0x1] %vm2615_vm3, %v5078_v60 }
 0x7c3   : > { %v5080_v19 = vpop.permute.xlu0 %5079 }
 0x7c4   : > { %5097 = vst.msk [vmem:[%s7649_s9 + $0xdc] sm:$0x1] %vm2615_vm3, %v5080_v19 }
 0x7c5   : > { %v5082_v39 = vpop.permute.xlu1 %5081 }
 0x7c6   : > { %5098 = vst.msk [vmem:[%s7649_s9 + $0xfc] sm:$0x1] %vm2615_vm3, %v5082_v39 }
 0x7c7   : > { %v5100_v48 = vpop.permute.xlu0 %5099 }
 0x7c8   : > { %5123 = vst.msk [vmem:[%s7649_s9 + $0x1d] sm:$0x1] %vm2615_vm3, %v5100_v48 }
 0x7c9   : > { %v5102_v33 = vpop.permute.xlu1 %5101 }
 0x7ca   : > { %5124 = vst.msk [vmem:[%s7649_s9 + $0x3d] sm:$0x1] %vm2615_vm3, %v5102_v33 }
 0x7cb   : > { %v5247_v4 = vpop.permute.xlu0 %5246 }
 0x7cd   : > { %v5249_v30 = vpop.permute.xlu1 %5248 }
 0x7ce   : > { %v5279_v43 = vsel %vm5278_vm11, %v5247_v4, %v5249_v30 }
 0x7cf   : > { %5295 = vst.msk [vmem:[%s7649_s9 + $0x1e] sm:$0x1] %vm2615_vm3, %v5279_v43  ;;  %v5251_v11 = vpop.permute.xlu0 %5250 }
 0x7d1   : > { %v5253_v38 = vpop.permute.xlu1 %5252 }
 0x7d2   : > { %v5280_v59 = vsel %vm5278_vm11, %v5251_v11, %v5253_v38 }
 0x7d3   : > { %5296 = vst.msk [vmem:[%s7649_s9 + $0x3e] sm:$0x1] %vm2615_vm3, %v5280_v59  ;;  %v5255_v18 = vpop.permute.xlu0 %5254 }
 0x7d5   : > { %v5257_v28 = vpop.permute.xlu1 %5256 }
 0x7d6   : > { %v5281_v9 = vsel %vm5278_vm11, %v5255_v18, %v5257_v28 }
 0x7d7   : > { %5297 = vst.msk [vmem:[%s7649_s9 + $0x5e] sm:$0x1] %vm2615_vm3, %v5281_v9  ;;  %v5259_v14 = vpop.permute.xlu0 %5258 }
 0x7d9   : > { %v5261_v53 = vpop.permute.xlu1 %5260 }
 0x7da   : > { %v5282_v51 = vsel %vm5278_vm11, %v5259_v14, %v5261_v53 }
 0x7db   : > { %5298 = vst.msk [vmem:[%s7649_s9 + $0x7e] sm:$0x1] %vm2615_vm3, %v5282_v51  ;;  %v5263_v57 = vpop.permute.xlu0 %5262 }
 0x7dd   : > { %v5265_v15 = vpop.permute.xlu1 %5264 }
 0x7de   : > { %v5283_v58 = vsel %vm5278_vm11, %v5263_v57, %v5265_v15 }
 0x7df   : > { %5299 = vst.msk [vmem:[%s7649_s9 + $0x9e] sm:$0x1] %vm2615_vm3, %v5283_v58  ;;  %v5267_v20 = vpop.permute.xlu0 %5266 }
 0x7e1   : > { %v5269_v0 = vpop.permute.xlu1 %5268 }
 0x7e2   : > { %v5284_v10 = vsel %vm5278_vm11, %v5267_v20, %v5269_v0 }
 0x7e3   : > { %5300 = vst.msk [vmem:[%s7649_s9 + $0xbe] sm:$0x1] %vm2615_vm3, %v5284_v10  ;;  %v5271_v16 = vpop.permute.xlu0 %5270 }
 0x7e5   : > { %v5273_v62 = vpop.permute.xlu1 %5272 }
 0x7e6   : > { %v5285_v36 = vsel %vm5278_vm11, %v5271_v16, %v5273_v62 }
 0x7e7   : > { %5301 = vst.msk [vmem:[%s7649_s9 + $0xde] sm:$0x1] %vm2615_vm3, %v5285_v36  ;;  %v5275_v41 = vpop.permute.xlu0 %5274 }
 0x7e9   : > { %v5277_v5 = vpop.permute.xlu1 %5276 }
 0x7ea   : > { %v5286_v44 = vsel %vm5278_vm11, %v5275_v41, %v5277_v5 }
 0x7eb   : > { %5302 = vst.msk [vmem:[%s7649_s9 + $0xfe] sm:$0x1] %vm2615_vm3, %v5286_v44  ;;  %v5104_v45 = vpop.permute.xlu0 %5103 }
 0x7ec   : > { %5125 = vst.msk [vmem:[%s7649_s9 + $0x5d] sm:$0x1] %vm2615_vm3, %v5104_v45 }
 0x7ed   : > { %v5106_v34 = vpop.permute.xlu1 %5105 }
 0x7ee   : > { %5126 = vst.msk [vmem:[%s7649_s9 + $0x7d] sm:$0x1] %vm2615_vm3, %v5106_v34 }
 0x7ef   : > { %v5108_v46 = vpop.permute.xlu0 %5107 }
 0x7f0   : > { %5127 = vst.msk [vmem:[%s7649_s9 + $0x9d] sm:$0x1] %vm2615_vm3, %v5108_v46 }
 0x7f1   : > { %v5110_v52 = vpop.permute.xlu1 %5109 }
 0x7f2   : > { %5128 = vst.msk [vmem:[%s7649_s9 + $0xbd] sm:$0x1] %vm2615_vm3, %v5110_v52 }
 0x7f3   : > { %v5112_v54 = vpop.permute.xlu0 %5111 }
 0x7f4   : > { %5129 = vst.msk [vmem:[%s7649_s9 + $0xdd] sm:$0x1] %vm2615_vm3, %v5112_v54 }
 0x7f5   : > { %v5114_v56 = vpop.permute.xlu1 %5113 }
 0x7f6   : > { %5130 = vst.msk [vmem:[%s7649_s9 + $0xfd] sm:$0x1] %vm2615_vm3, %v5114_v56 }
 0x7f7   : > { %v5385_v2 = vpop.permute.xlu0 %5384 }
 0x7f8   : > { %5408 = vst.msk [vmem:[%s7649_s9 + $0x1f] sm:$0x1] %vm2615_vm3, %v5385_v2 }
 0x7f9   : > { %v5387_v8 = vpop.permute.xlu1 %5386 }
 0x7fa   : > { %5409 = vst.msk [vmem:[%s7649_s9 + $0x3f] sm:$0x1] %vm2615_vm3, %v5387_v8 }
 0x7fb   : > { %v5389_v50 = vpop.permute.xlu0 %5388 }
 0x7fc   : > { %5410 = vst.msk [vmem:[%s7649_s9 + $0x5f] sm:$0x1] %vm2615_vm3, %v5389_v50 }
 0x7fd   : > { %v5391_v24 = vpop.permute.xlu1 %5390 }
 0x7fe   : > { %5411 = vst.msk [vmem:[%s7649_s9 + $0x7f] sm:$0x1] %vm2615_vm3, %v5391_v24 }
 0x7ff   : > { %v5393_v13 = vpop.permute.xlu0 %5392 }
 0x800   : > { %5412 = vst.msk [vmem:[%s7649_s9 + $0x9f] sm:$0x1] %vm2615_vm3, %v5393_v13 }
 0x801   : > { %v5395_v21 = vpop.permute.xlu1 %5394 }
 0x802   : > { %5413 = vst.msk [vmem:[%s7649_s9 + $0xbf] sm:$0x1] %vm2615_vm3, %v5395_v21 }
 0x803   : > { %v5397_v29 = vpop.permute.xlu0 %5396 }
 0x804   : > { %5414 = vst.msk [vmem:[%s7649_s9 + $0xdf] sm:$0x1] %vm2615_vm3, %v5397_v29 }
 0x805   : > { %v5399_v17 = vpop.permute.xlu1 %5398 }
 0x806   : > { %5415 = vst.msk [vmem:[%s7649_s9 + $0xff] sm:$0x1] %vm2615_vm3, %v5399_v17 }
 0x807   : > { %5818 = shalt.err (!%p5815_p4)
}
 0x808   : > { %s5819_s9 = scalar_lea.hbm %s9352_s21, 4096  ;;  %s5823_s23 = scalar_lea.hbm %s9408_s7, 8192 }
 0x809   : > { %p5820_p9 = scmp.ne.s32.totalorder %s9352_s21, %s5819_s9  ;;  %p5824_p5 = scmp.lt.s32.totalorder %s9352_s21, %s9408_s7 }
 0x80a   : > { %p5825_p8 = scmp.lt.s32.totalorder %s5823_s23, %s5819_s9 }
 0x80b   : > { %p5821_p11 = pnand %p5820_p9, %p9497_p1 }
 0x80c   : > { %p5826_p6 = por %p5825_p8, %p5824_p5 }
 0x80d   : > { %p5822_p3 = pneg %p5821_p11 }
 0x80f   : > { %p5827_p13 = pnand %p5826_p6, %p5822_p3 }
 0x811   : > { %5830 = shalt.err (!%p5827_p13)
}
 0x812   : > { %s5950_s11 = smov 128   ;;  %s5951_s16 = smov 8  }
 0x813   : > { %5626 = dma.vmem_to_hbm [thread:$0]  (%p9497_p1), %s9354_s10, 4096, %s9352_s21, %s5417_s28, %s5950_s11, %s5950_s11, %s5951_s16  }
 0x814 PF: > { %s5445_s17 = sand.u32 1, %s5861_s24   ;;  %p9498_p12 = scmp.ne.s32.totalorder %s9438_s14, 0 }
 0x815   : > { %p9499_p7 = scmp.ge.s32.totalorder %s5873_s27, 2  ;;  %s5446_s29 = scalar_lea.sflag [#allocation5], %s5445_s17 }
 0x817   : > { %p5636_p10 = pnand %p9499_p7, %p9498_p12 }
 0x819   : > { %p5637_p0 = pneg %p5636_p10 }
 0x81b   : > { %5856 = dma.done.wait (%p5637_p0), %s5446_s29, 4096  }
 0x81c   : > { %5858 = vsyncadd (%p5637_p0), %s5446_s29, 4294963200  ;;  %s9500_s0 = sld [smem:[#allocation12_spill]]  ;;  %p23_p2 = scmp.ge.s32.totalorder %s6017_s30, 4  }
 0x81d   : > { %s9501_s24 = smov %s5865_s25  ;;  %s9502_s25 = smov %s5869_s26 }
 0x81e   : > { %s9504_s27 = smov %s6017_s30  ;;  %25 = sbr.rel (!%p23_p2) target bundleno = 9 (0x9), region = 106 }
 0x822   : > { %s9503_s26 = smov %s9500_s0 }
 0x823   :  { %5451 = vsyncpa [#allocation4], 1 }
 0x824   :  { %5453 = vsyncpa [#allocation4 + $0x1], 1 }
 0x825   :  { %5454 = vsyncpa [#allocation7], 1 }
 0x826   :  { %5456 = vsyncpa [#allocation7 + $0x1], 1 }
 0x827   :  { %5457 = vsyncpa [#allocation5], 1 }
 0x828   :  { %5459 = vsyncpa [#allocation5 + $0x1], 1 }

</bundles_post_ra>
